<compile_context>
chip_gen: v7x
topology: tpu7x:2x2x1
jax: 0.10.0
libtpu: 0.0.40
codegen_flags: <defaults>
</compile_context>

<pallas_src>
import jax
import jax.numpy as jnp
from jax import lax
from jax.experimental import pallas as pl
from jax.experimental.pallas import tpu as pltpu

# ----------------------------- geometry constants ---------------------------
LANES = 128
K1 = 128            # conv1 contraction: 5*5*3 = 75  -> padded to 128
PB_ROWS = 208       # rows per pool1-parity block: 14*14 = 196 -> padded to 208
X_ROWS = 4 * PB_ROWS            # 832 conv1-im2col rows per image
TAP_L = 8           # lanes per conv2 tap (6 channels + 2 zero lanes)
K2 = 256            # conv2 contraction: 25*8 = 200 -> padded to 256
IM2_ROWS = 144      # conv2 row space: 9*14 + 9 + 1 = 136 -> padded to 144
IM2_VALID = 136
FC_IN = 512         # fc1 input: 16*5*5 = 400 -> padded to 512


# ------------------------------- Pallas kernel ------------------------------
def _make_lenet_kernel(b_tile):
    f32, bf16 = jnp.float32, jnp.bfloat16

    def kernel(x_ref, w1_ref, b1_ref, w2_ref, b2_ref,
               wf1_ref, bf1_ref, wf2_ref, bf2_ref, wf3_ref, bf3_ref,
               out_ref, p1, im2, c2, m2, feat):
        # Zero the zero-padded regions every grid step: stale/uninitialised
        # VMEM there would otherwise feed the matmuls (pad weights are zero,
        # but NaN * 0 = NaN).  Cheap: ~25 vreg stores.
        im2[...] = jnp.zeros_like(im2)
        feat[...] = jnp.zeros_like(feat)

        for img in range(b_tile):
            # ---- conv1 + bias + ReLU with the 2x2 max-pool fused into the
            # epilogue.  x rows are pre-ordered into 4 parity blocks
            # (ho%2, wo%2); the pool is an elementwise max across blocks.
            for q in range(4):
                blk = jnp.dot(x_ref[img, q * PB_ROWS:(q + 1) * PB_ROWS, :],
                              w1_ref[...], preferred_element_type=f32)
                blk = jnp.maximum(blk + b1_ref[...], 0.0)
                if q == 0:
                    p1[...] = blk
                else:
                    p1[...] = jnp.maximum(p1[...], blk)
            # p1 row i*14+j == pooled conv1 at (i, j); lanes 0..5 = channels,
            # lanes 6..127 are exactly zero (zero-padded conv1 weights/bias).

            # ---- conv2 im2col: tap (di,dj) of the 5x5 window is a contiguous
            # 136-row slab of p1 placed at lanes [8*tap, 8*tap+8).
            for di in range(5):
                for dj in range(5):
                    t = di * 5 + dj
                    src = di * 14 + dj
                    im2[0:IM2_VALID, t * TAP_L:(t + 1) * TAP_L] = (
                        p1[src:src + IM2_VALID, 0:TAP_L].astype(bf16))

            # ---- conv2 + bias + ReLU: one dense (144,256)x(256,128) matmul.
            a2 = jnp.dot(im2[...], w2_ref[...], preferred_element_type=f32)
            c2[...] = jnp.maximum(a2 + b2_ref[...], 0.0)
            # c2 row oi*14+oj == conv2 output at (oi, oj); lanes 0..15 = ch.

            # ---- 2x2 max-pool 2: row shifts {0, 1, 14, 15} of the c2 space.
            m2[...] = jnp.maximum(
                jnp.maximum(c2[0:128, :], c2[1:129, :]),
                jnp.maximum(c2[14:142, :], c2[15:143, :]))

            # ---- flatten pool2 (5x5x16) into feat[img]; the torch flatten
            # order (c*25 + a*5 + b) is folded into wf1's packing, so the
            # kernel lane order is simply (a*5+b)*16 + c.
            for a in range(5):
                for b in range(5):
                    s = a * 5 + b
                    base = a * 28 + 2 * b
                    feat[img:img + 1, s * 16:(s + 1) * 16] = \
                        m2[base:base + 1, 0:16]

        # ---- batched FC tail (M = b_tile images at once) --------------------
        h = jnp.dot(feat[...].astype(bf16), wf1_ref[...],
                    preferred_element_type=f32)
        h = jnp.maximum(h + bf1_ref[...], 0.0)
        h = jnp.dot(h.astype(bf16), wf2_ref[...], preferred_element_type=f32)
        h = jnp.maximum(h + bf2_ref[...], 0.0)
        out = jnp.dot(h.astype(bf16), wf3_ref[...],
                      preferred_element_type=f32) + bf3_ref[...]
        out_ref[...] = out.astype(out_ref.dtype)

    return kernel


# ------------------------------ forward wrapper ------------------------------
def _conv1_im2col(x):
    """(N,3,32,32) f32 -> (N, 832, 128) bf16 conv1 im2col.

    Output rows are grouped into the four 2x2-pool parity blocks
    (q = 2*(ho%2) + (wo%2)); within a block, row = (ho//2)*14 + (wo//2).
    Blocks are padded 196 -> 208 rows and K is padded 75 -> 128."""
    n = x.shape[0]
    x_nhwc = jnp.transpose(x, (0, 2, 3, 1))                       # (N,32,32,3)
    taps = [x_nhwc[:, di:di + 28, dj:dj + 28, :]
            for di in range(5) for dj in range(5)]
    patches = jnp.concatenate(taps, axis=-1)                      # (N,28,28,75)
    p = patches.reshape(n, 14, 2, 14, 2, 75)                      # i,pu,j,pv,K
    p = p.transpose(0, 2, 4, 1, 3, 5).reshape(n, 4, 196, 75)      # parity blks
    p = jnp.pad(p, ((0, 0), (0, 0), (0, PB_ROWS - 196), (0, K1 - 75)))
    return p.reshape(n, X_ROWS, K1).astype(jnp.bfloat16)


@jax.jit
def net_forward(packed, x):
    """x: (N, 3, 32, 32) float32 (NCHW, like the PyTorch module) -> (N, 10)."""
    n = x.shape[0]
    bt = min(8, n)                       # images per grid step (batched FCs);
    n_pad = -(-n // bt) * bt             # for large N keep n_pad/bt even (v7x)
    x_cols = _conv1_im2col(x)
    if n_pad != n:
        x_cols = jnp.pad(x_cols, ((0, n_pad - n), (0, 0), (0, 0)))

    def rep(shape):                      # replicated (weight / bias) spec
        return pl.BlockSpec(shape, lambda g: (0, 0))

    out = pl.pallas_call(
        _make_lenet_kernel(bt),
        out_shape=jax.ShapeDtypeStruct((n_pad, LANES), jnp.float32),
        grid=(n_pad // bt,),
        in_specs=[
            pl.BlockSpec((bt, X_ROWS, K1), lambda g: (g, 0, 0)),   # x im2col
            rep((K1, LANES)), rep((1, LANES)),                     # w1, b1
            rep((K2, LANES)), rep((1, LANES)),                     # w2, b2
            rep((FC_IN, LANES)), rep((1, LANES)),                  # wf1, bf1
            rep((LANES, LANES)), rep((1, LANES)),                  # wf2, bf2
            rep((LANES, LANES)), rep((1, LANES)),                  # wf3, bf3
        ],
        out_specs=pl.BlockSpec((bt, LANES), lambda g: (g, 0)),
        scratch_shapes=[
            pltpu.VMEM((PB_ROWS, LANES), jnp.float32),     # p1: pooled conv1
            pltpu.VMEM((IM2_ROWS, K2), jnp.bfloat16),      # conv2 im2col
            pltpu.VMEM((IM2_ROWS, LANES), jnp.float32),    # conv2 activations
            pltpu.VMEM((128, LANES), jnp.float32),         # pool2 slab
            pltpu.VMEM((bt, FC_IN), jnp.float32),          # fc feature block
        ],
        compiler_params=pltpu.CompilerParams(
            dimension_semantics=("parallel",),
            vmem_limit_bytes=32 * 1024 * 1024,
        ),
    )(x_cols, packed["w1"], packed["b1"], packed["w2"], packed["b2"],
      packed["wf1"], packed["bf1"], packed["wf2"], packed["bf2"],
      packed["wf3"], packed["bf3"])
    return out[:n, :10]


# ------------------------------- parameters ----------------------------------
def init_params(key):
    """PyTorch-style uniform(-1/sqrt(fan_in), 1/sqrt(fan_in)) init, torch layout."""
    def uni(k, shape, fan_in):
        bound = 1.0 / float(fan_in) ** 0.5
        return jax.random.uniform(k, shape, jnp.float32, -bound, bound)

    ks = jax.random.split(key, 10)
    return {
        "conv1_w": uni(ks[0], (6, 3, 5, 5), 3 * 5 * 5),
        "conv1_b": uni(ks[1], (6,), 3 * 5 * 5),
        "conv2_w": uni(ks[2], (16, 6, 5, 5), 6 * 5 * 5),
        "conv2_b": uni(ks[3], (16,), 6 * 5 * 5),
        "fc1_w": uni(ks[4], (120, 16 * 5 * 5), 16 * 5 * 5),
        "fc1_b": uni(ks[5], (120,), 16 * 5 * 5),
        "fc2_w": uni(ks[6], (84, 120), 120),
        "fc2_b": uni(ks[7], (84,), 120),
        "fc3_w": uni(ks[8], (10, 84), 84),
        "fc3_b": uni(ks[9], (10,), 84),
    }


def pack_params(p):
    """One-time repack of torch-layout params into the kernel's dense bf16
    layouts (matmul RHS are bf16; biases stay f32 and are added post-matmul)."""
    bf16 = jnp.bfloat16

    def pad2(a, rows, cols):
        return jnp.pad(a, ((0, rows - a.shape[0]), (0, cols - a.shape[1])))

    # conv1: (cout,cin,kh,kw) -> K index (di*5+dj)*3 + c  (matches wrapper).
    w1 = p["conv1_w"].transpose(2, 3, 1, 0).reshape(75, 6)
    # conv2: (cout,cin,kh,kw) -> K index (di*5+dj)*8 + c  (channels padded to 8).
    w2 = p["conv2_w"].transpose(2, 3, 1, 0)                     # (5,5,6,16)
    w2 = jnp.pad(w2, ((0, 0), (0, 0), (0, 2), (0, 0))).reshape(200, 16)
    # fc1: torch input index c*25 + a*5 + b  ->  kernel lane (a*5+b)*16 + c.
    wf1 = (p["fc1_w"].reshape(120, 16, 5, 5)
           .transpose(2, 3, 1, 0).reshape(400, 120))
    wf2 = p["fc2_w"].T
    wf3 = p["fc3_w"].T

    def bias(b):
        return jnp.pad(b, (0, LANES - b.shape[0])).reshape(1, LANES)

    return dict(
        w1=pad2(w1, K1, LANES).astype(bf16),      b1=bias(p["conv1_b"]),
        w2=pad2(w2, K2, LANES).astype(bf16),      b2=bias(p["conv2_b"]),
        wf1=pad2(wf1, FC_IN, LANES).astype(bf16), bf1=bias(p["fc1_b"]),
        wf2=pad2(wf2, LANES, LANES).astype(bf16), bf2=bias(p["fc2_b"]),
        wf3=pad2(wf3, LANES, LANES).astype(bf16), bf3=bias(p["fc3_b"]),
    )


# --------------------------- pure-JAX reference -------------------------------
def net_forward_reference(params, x):
    hp = lax.Precision.HIGHEST

    def conv(z, w, b):
        z = lax.conv_general_dilated(z, w, (1, 1), "VALID",
                                     dimension_numbers=("NCHW", "OIHW", "NCHW"),
                                     precision=hp)
        return jax.nn.relu(z + b[None, :, None, None])

    def pool(z):
        return lax.reduce_window(z, -jnp.inf, lax.max,
                                 (1, 1, 2, 2), (1, 1, 2, 2), "VALID")

    z = pool(conv(x, params["conv1_w"], params["conv1_b"]))
    z = pool(conv(z, params["conv2_w"], params["conv2_b"]))
    z = z.reshape(z.shape[0], -1)
    z = jax.nn.relu(jnp.dot(z, params["fc1_w"].T, precision=hp) + params["fc1_b"])
    z = jax.nn.relu(jnp.dot(z, params["fc2_w"].T, precision=hp) + params["fc2_b"])
    return jnp.dot(z, params["fc3_w"].T, precision=hp) + params["fc3_b"]


if __name__ == "__main__":
    key = jax.random.PRNGKey(0)
    pkey, xkey = jax.random.split(key)
    params = init_params(pkey)
    packed = pack_params(params)
    x = jax.random.normal(xkey, (2, 3, 32, 32), dtype=jnp.float32)

    out = jax.block_until_ready(net_forward(packed, x))
    assert out.shape == (2, 10), out.shape
    assert bool(jnp.all(jnp.isfinite(out)))

    ref = net_forward_reference(params, x)
    max_err = float(jnp.max(jnp.abs(out - ref)))
    # bf16 MXU operands (f32 accumulation): expected |err| ~1e-2 at this scale.
    assert max_err < 5e-2, f"kernel/reference mismatch: {max_err}"
    print("KERNEL_OK")
</pallas_src>

<mosaic_0001>
module attributes {stable_mosaic.version = 11 : i64} {
  func.func @kernel(%arg0: i32, %arg1: memref<2x832x128xbf16, #tpu.memory_space<vmem>>, %arg2: memref<128x128xbf16, #tpu.memory_space<vmem>>, %arg3: memref<1x128xf32, #tpu.memory_space<vmem>>, %arg4: memref<256x128xbf16, #tpu.memory_space<vmem>>, %arg5: memref<1x128xf32, #tpu.memory_space<vmem>>, %arg6: memref<512x128xbf16, #tpu.memory_space<vmem>>, %arg7: memref<1x128xf32, #tpu.memory_space<vmem>>, %arg8: memref<128x128xbf16, #tpu.memory_space<vmem>>, %arg9: memref<1x128xf32, #tpu.memory_space<vmem>>, %arg10: memref<128x128xbf16, #tpu.memory_space<vmem>>, %arg11: memref<1x128xf32, #tpu.memory_space<vmem>>, %arg12: memref<2x128xf32, #tpu.memory_space<vmem>>, %arg13: memref<208x128xf32, #tpu.memory_space<vmem>>, %arg14: memref<144x256xbf16, #tpu.memory_space<vmem>>, %arg15: memref<144x128xf32, #tpu.memory_space<vmem>>, %arg16: memref<128x128xf32, #tpu.memory_space<vmem>>, %arg17: memref<2x512xf32, #tpu.memory_space<vmem>>) attributes {dimension_semantics = [#tpu.dimension_semantics<parallel>], iteration_bounds = array<i64: 1>, scalar_prefetch = 0 : i64, scratch_operands = 5 : i64, tpu.core_type = #tpu.core_type<tc>, window_params = [{transform_indices = @transform_0, window_bounds = array<i64: 2, 832, 128>}, {pipeline_mode = #tpu.pipeline_mode<synchronous>, transform_indices = @transform_1, window_bounds = array<i64: 128, 128>}, {pipeline_mode = #tpu.pipeline_mode<synchronous>, transform_indices = @transform_2, window_bounds = array<i64: 1, 128>}, {pipeline_mode = #tpu.pipeline_mode<synchronous>, transform_indices = @transform_3, window_bounds = array<i64: 256, 128>}, {pipeline_mode = #tpu.pipeline_mode<synchronous>, transform_indices = @transform_4, window_bounds = array<i64: 1, 128>}, {pipeline_mode = #tpu.pipeline_mode<synchronous>, transform_indices = @transform_5, window_bounds = array<i64: 512, 128>}, {pipeline_mode = #tpu.pipeline_mode<synchronous>, transform_indices = @transform_6, window_bounds = array<i64: 1, 128>}, {pipeline_mode = #tpu.pipeline_mode<synchronous>, transform_indices = @transform_7, window_bounds = array<i64: 128, 128>}, {pipeline_mode = #tpu.pipeline_mode<synchronous>, transform_indices = @transform_8, window_bounds = array<i64: 1, 128>}, {pipeline_mode = #tpu.pipeline_mode<synchronous>, transform_indices = @transform_9, window_bounds = array<i64: 128, 128>}, {pipeline_mode = #tpu.pipeline_mode<synchronous>, transform_indices = @transform_10, window_bounds = array<i64: 1, 128>}, {transform_indices = @transform_11, window_bounds = array<i64: 2, 128>}]} {
    %cst = arith.constant 0.000000e+00 : bf16
    %0 = vector.broadcast %cst : bf16 to vector<144x256xbf16>
    %c0 = arith.constant 0 : index
    %c0_0 = arith.constant 0 : index
    %1 = vector.load %arg14[%c0, %c0_0] : memref<144x256xbf16, #tpu.memory_space<vmem>>, vector<144x256xbf16>
    tpu.vector_store %arg14[%c0, %c0_0], %0 {strides = array<i32>} : memref<144x256xbf16, #tpu.memory_space<vmem>>, vector<144x256xbf16>,
    %cst_1 = arith.constant 0.000000e+00 : f32
    %2 = vector.broadcast %cst_1 : f32 to vector<2x512xf32>
    %c0_2 = arith.constant 0 : index
    %c0_3 = arith.constant 0 : index
    %3 = vector.load %arg17[%c0_2, %c0_3] : memref<2x512xf32, #tpu.memory_space<vmem>>, vector<2x512xf32>
    tpu.vector_store %arg17[%c0_2, %c0_3], %2 {strides = array<i32>} : memref<2x512xf32, #tpu.memory_space<vmem>>, vector<2x512xf32>,
    %c0_4 = arith.constant 0 : index
    %c0_5 = arith.constant 0 : index
    %c0_6 = arith.constant 0 : index
    %4 = vector.load %arg1[%c0_4, %c0_5, %c0_6] : memref<2x832x128xbf16, #tpu.memory_space<vmem>>, vector<1x208x128xbf16>
    %5 = vector.shape_cast %4 : vector<1x208x128xbf16> to vector<208x128xbf16>
    %c0_7 = arith.constant 0 : index
    %c0_8 = arith.constant 0 : index
    %6 = vector.load %arg2[%c0_7, %c0_8] : memref<128x128xbf16, #tpu.memory_space<vmem>>, vector<128x128xbf16>
    %cst_9 = arith.constant dense<0.000000e+00> : vector<208x128xf32>
    %7 = tpu.matmul %5, %6, %cst_9 {dimension_numbers = #tpu.dot_dimension_numbers<[1], [0], [0], [1], [0, 0, 1, 1], [], []>} : vector<208x128xbf16>, vector<128x128xbf16>, vector<208x128xf32> -> vector<208x128xf32>
    %c0_10 = arith.constant 0 : index
    %c0_11 = arith.constant 0 : index
    %8 = vector.load %arg3[%c0_10, %c0_11] : memref<1x128xf32, #tpu.memory_space<vmem>>, vector<1x128xf32>
    %9 = vector.broadcast %8 : vector<1x128xf32> to vector<208x128xf32>
    %10 = arith.addf %7, %9 : vector<208x128xf32>
    %cst_12 = arith.constant 0.000000e+00 : f32
    %11 = vector.broadcast %cst_12 : f32 to vector<208x128xf32>
    %12 = arith.maximumf %10, %11 : vector<208x128xf32>
    %c0_13 = arith.constant 0 : index
    %c0_14 = arith.constant 0 : index
    %13 = vector.load %arg13[%c0_13, %c0_14] : memref<208x128xf32, #tpu.memory_space<vmem>>, vector<208x128xf32>
    tpu.vector_store %arg13[%c0_13, %c0_14], %12 {strides = array<i32>} : memref<208x128xf32, #tpu.memory_space<vmem>>, vector<208x128xf32>,
    %c0_15 = arith.constant 0 : index
    %c208 = arith.constant 208 : index
    %c0_16 = arith.constant 0 : index
    %14 = vector.load %arg1[%c0_15, %c208, %c0_16] : memref<2x832x128xbf16, #tpu.memory_space<vmem>>, vector<1x208x128xbf16>
    %15 = vector.shape_cast %14 : vector<1x208x128xbf16> to vector<208x128xbf16>
    %c0_17 = arith.constant 0 : index
    %c0_18 = arith.constant 0 : index
    %16 = vector.load %arg2[%c0_17, %c0_18] : memref<128x128xbf16, #tpu.memory_space<vmem>>, vector<128x128xbf16>
    %cst_19 = arith.constant dense<0.000000e+00> : vector<208x128xf32>
    %17 = tpu.matmul %15, %16, %cst_19 {dimension_numbers = #tpu.dot_dimension_numbers<[1], [0], [0], [1], [0, 0, 1, 1], [], []>} : vector<208x128xbf16>, vector<128x128xbf16>, vector<208x128xf32> -> vector<208x128xf32>
    %c0_20 = arith.constant 0 : index
    %c0_21 = arith.constant 0 : index
    %18 = vector.load %arg3[%c0_20, %c0_21] : memref<1x128xf32, #tpu.memory_space<vmem>>, vector<1x128xf32>
    %19 = vector.broadcast %18 : vector<1x128xf32> to vector<208x128xf32>
    %20 = arith.addf %17, %19 : vector<208x128xf32>
    %cst_22 = arith.constant 0.000000e+00 : f32
    %21 = vector.broadcast %cst_22 : f32 to vector<208x128xf32>
    %22 = arith.maximumf %20, %21 : vector<208x128xf32>
    %c0_23 = arith.constant 0 : index
    %c0_24 = arith.constant 0 : index
    %23 = vector.load %arg13[%c0_23, %c0_24] : memref<208x128xf32, #tpu.memory_space<vmem>>, vector<208x128xf32>
    %24 = arith.maximumf %23, %22 : vector<208x128xf32>
    %c0_25 = arith.constant 0 : index
    %c0_26 = arith.constant 0 : index
    %25 = vector.load %arg13[%c0_25, %c0_26] : memref<208x128xf32, #tpu.memory_space<vmem>>, vector<208x128xf32>
    tpu.vector_store %arg13[%c0_25, %c0_26], %24 {strides = array<i32>} : memref<208x128xf32, #tpu.memory_space<vmem>>, vector<208x128xf32>,
    %c0_27 = arith.constant 0 : index
    %c416 = arith.constant 416 : index
    %c0_28 = arith.constant 0 : index
    %26 = vector.load %arg1[%c0_27, %c416, %c0_28] : memref<2x832x128xbf16, #tpu.memory_space<vmem>>, vector<1x208x128xbf16>
    %27 = vector.shape_cast %26 : vector<1x208x128xbf16> to vector<208x128xbf16>
    %c0_29 = arith.constant 0 : index
    %c0_30 = arith.constant 0 : index
    %28 = vector.load %arg2[%c0_29, %c0_30] : memref<128x128xbf16, #tpu.memory_space<vmem>>, vector<128x128xbf16>
    %cst_31 = arith.constant dense<0.000000e+00> : vector<208x128xf32>
    %29 = tpu.matmul %27, %28, %cst_31 {dimension_numbers = #tpu.dot_dimension_numbers<[1], [0], [0], [1], [0, 0, 1, 1], [], []>} : vector<208x128xbf16>, vector<128x128xbf16>, vector<208x128xf32> -> vector<208x128xf32>
    %c0_32 = arith.constant 0 : index
    %c0_33 = arith.constant 0 : index
    %30 = vector.load %arg3[%c0_32, %c0_33] : memref<1x128xf32, #tpu.memory_space<vmem>>, vector<1x128xf32>
    %31 = vector.broadcast %30 : vector<1x128xf32> to vector<208x128xf32>
    %32 = arith.addf %29, %31 : vector<208x128xf32>
    %cst_34 = arith.constant 0.000000e+00 : f32
    %33 = vector.broadcast %cst_34 : f32 to vector<208x128xf32>
    %34 = arith.maximumf %32, %33 : vector<208x128xf32>
    %c0_35 = arith.constant 0 : index
    %c0_36 = arith.constant 0 : index
    %35 = vector.load %arg13[%c0_35, %c0_36] : memref<208x128xf32, #tpu.memory_space<vmem>>, vector<208x128xf32>
    %36 = arith.maximumf %35, %34 : vector<208x128xf32>
    %c0_37 = arith.constant 0 : index
    %c0_38 = arith.constant 0 : index
    %37 = vector.load %arg13[%c0_37, %c0_38] : memref<208x128xf32, #tpu.memory_space<vmem>>, vector<208x128xf32>
    tpu.vector_store %arg13[%c0_37, %c0_38], %36 {strides = array<i32>} : memref<208x128xf32, #tpu.memory_space<vmem>>, vector<208x128xf32>,
    %c0_39 = arith.constant 0 : index
    %c624 = arith.constant 624 : index
    %c0_40 = arith.constant 0 : index
    %38 = vector.load %arg1[%c0_39, %c624, %c0_40] : memref<2x832x128xbf16, #tpu.memory_space<vmem>>, vector<1x208x128xbf16>
    %39 = vector.shape_cast %38 : vector<1x208x128xbf16> to vector<208x128xbf16>
    %c0_41 = arith.constant 0 : index
    %c0_42 = arith.constant 0 : index
    %40 = vector.load %arg2[%c0_41, %c0_42] : memref<128x128xbf16, #tpu.memory_space<vmem>>, vector<128x128xbf16>
    %cst_43 = arith.constant dense<0.000000e+00> : vector<208x128xf32>
    %41 = tpu.matmul %39, %40, %cst_43 {dimension_numbers = #tpu.dot_dimension_numbers<[1], [0], [0], [1], [0, 0, 1, 1], [], []>} : vector<208x128xbf16>, vector<128x128xbf16>, vector<208x128xf32> -> vector<208x128xf32>
    %c0_44 = arith.constant 0 : index
    %c0_45 = arith.constant 0 : index
    %42 = vector.load %arg3[%c0_44, %c0_45] : memref<1x128xf32, #tpu.memory_space<vmem>>, vector<1x128xf32>
    %43 = vector.broadcast %42 : vector<1x128xf32> to vector<208x128xf32>
    %44 = arith.addf %41, %43 : vector<208x128xf32>
    %cst_46 = arith.constant 0.000000e+00 : f32
    %45 = vector.broadcast %cst_46 : f32 to vector<208x128xf32>
    %46 = arith.maximumf %44, %45 : vector<208x128xf32>
    %c0_47 = arith.constant 0 : index
    %c0_48 = arith.constant 0 : index
    %47 = vector.load %arg13[%c0_47, %c0_48] : memref<208x128xf32, #tpu.memory_space<vmem>>, vector<208x128xf32>
    %48 = arith.maximumf %47, %46 : vector<208x128xf32>
    %c0_49 = arith.constant 0 : index
    %c0_50 = arith.constant 0 : index
    %49 = vector.load %arg13[%c0_49, %c0_50] : memref<208x128xf32, #tpu.memory_space<vmem>>, vector<208x128xf32>
    tpu.vector_store %arg13[%c0_49, %c0_50], %48 {strides = array<i32>} : memref<208x128xf32, #tpu.memory_space<vmem>>, vector<208x128xf32>,
    %c0_51 = arith.constant 0 : index
    %c0_52 = arith.constant 0 : index
    %50 = vector.load %arg13[%c0_51, %c0_52] : memref<208x128xf32, #tpu.memory_space<vmem>>, vector<136x8xf32>
    %51 = arith.truncf %50 : vector<136x8xf32> to vector<136x8xbf16>
    %c0_53 = arith.constant 0 : index
    %c0_54 = arith.constant 0 : index
    %52 = vector.load %arg14[%c0_53, %c0_54] : memref<144x256xbf16, #tpu.memory_space<vmem>>, vector<136x8xbf16>
    tpu.vector_store %arg14[%c0_53, %c0_54], %51 {strides = array<i32>} : memref<144x256xbf16, #tpu.memory_space<vmem>>, vector<136x8xbf16>,
    %c1 = arith.constant 1 : index
    %c0_55 = arith.constant 0 : index
    %53 = vector.load %arg13[%c1, %c0_55] : memref<208x128xf32, #tpu.memory_space<vmem>>, vector<136x8xf32>
    %54 = arith.truncf %53 : vector<136x8xf32> to vector<136x8xbf16>
    %c0_56 = arith.constant 0 : index
    %c8 = arith.constant 8 : index
    %55 = vector.load %arg14[%c0_56, %c8] : memref<144x256xbf16, #tpu.memory_space<vmem>>, vector<136x8xbf16>
    tpu.vector_store %arg14[%c0_56, %c8], %54 {strides = array<i32>} : memref<144x256xbf16, #tpu.memory_space<vmem>>, vector<136x8xbf16>,
    %c2 = arith.constant 2 : index
    %c0_57 = arith.constant 0 : index
    %56 = vector.load %arg13[%c2, %c0_57] : memref<208x128xf32, #tpu.memory_space<vmem>>, vector<136x8xf32>
    %57 = arith.truncf %56 : vector<136x8xf32> to vector<136x8xbf16>
    %c0_58 = arith.constant 0 : index
    %c16 = arith.constant 16 : index
    %58 = vector.load %arg14[%c0_58, %c16] : memref<144x256xbf16, #tpu.memory_space<vmem>>, vector<136x8xbf16>
    tpu.vector_store %arg14[%c0_58, %c16], %57 {strides = array<i32>} : memref<144x256xbf16, #tpu.memory_space<vmem>>, vector<136x8xbf16>,
    %c3 = arith.constant 3 : index
    %c0_59 = arith.constant 0 : index
    %59 = vector.load %arg13[%c3, %c0_59] : memref<208x128xf32, #tpu.memory_space<vmem>>, vector<136x8xf32>
    %60 = arith.truncf %59 : vector<136x8xf32> to vector<136x8xbf16>
    %c0_60 = arith.constant 0 : index
    %c24 = arith.constant 24 : index
    %61 = vector.load %arg14[%c0_60, %c24] : memref<144x256xbf16, #tpu.memory_space<vmem>>, vector<136x8xbf16>
    tpu.vector_store %arg14[%c0_60, %c24], %60 {strides = array<i32>} : memref<144x256xbf16, #tpu.memory_space<vmem>>, vector<136x8xbf16>,
    %c4 = arith.constant 4 : index
    %c0_61 = arith.constant 0 : index
    %62 = vector.load %arg13[%c4, %c0_61] : memref<208x128xf32, #tpu.memory_space<vmem>>, vector<136x8xf32>
    %63 = arith.truncf %62 : vector<136x8xf32> to vector<136x8xbf16>
    %c0_62 = arith.constant 0 : index
    %c32 = arith.constant 32 : index
    %64 = vector.load %arg14[%c0_62, %c32] : memref<144x256xbf16, #tpu.memory_space<vmem>>, vector<136x8xbf16>
    tpu.vector_store %arg14[%c0_62, %c32], %63 {strides = array<i32>} : memref<144x256xbf16, #tpu.memory_space<vmem>>, vector<136x8xbf16>,
    %c14 = arith.constant 14 : index
    %c0_63 = arith.constant 0 : index
    %65 = vector.load %arg13[%c14, %c0_63] : memref<208x128xf32, #tpu.memory_space<vmem>>, vector<136x8xf32>
    %66 = arith.truncf %65 : vector<136x8xf32> to vector<136x8xbf16>
    %c0_64 = arith.constant 0 : index
    %c40 = arith.constant 40 : index
    %67 = vector.load %arg14[%c0_64, %c40] : memref<144x256xbf16, #tpu.memory_space<vmem>>, vector<136x8xbf16>
    tpu.vector_store %arg14[%c0_64, %c40], %66 {strides = array<i32>} : memref<144x256xbf16, #tpu.memory_space<vmem>>, vector<136x8xbf16>,
    %c15 = arith.constant 15 : index
    %c0_65 = arith.constant 0 : index
    %68 = vector.load %arg13[%c15, %c0_65] : memref<208x128xf32, #tpu.memory_space<vmem>>, vector<136x8xf32>
    %69 = arith.truncf %68 : vector<136x8xf32> to vector<136x8xbf16>
    %c0_66 = arith.constant 0 : index
    %c48 = arith.constant 48 : index
    %70 = vector.load %arg14[%c0_66, %c48] : memref<144x256xbf16, #tpu.memory_space<vmem>>, vector<136x8xbf16>
    tpu.vector_store %arg14[%c0_66, %c48], %69 {strides = array<i32>} : memref<144x256xbf16, #tpu.memory_space<vmem>>, vector<136x8xbf16>,
    %c16_67 = arith.constant 16 : index
    %c0_68 = arith.constant 0 : index
    %71 = vector.load %arg13[%c16_67, %c0_68] : memref<208x128xf32, #tpu.memory_space<vmem>>, vector<136x8xf32>
    %72 = arith.truncf %71 : vector<136x8xf32> to vector<136x8xbf16>
    %c0_69 = arith.constant 0 : index
    %c56 = arith.constant 56 : index
    %73 = vector.load %arg14[%c0_69, %c56] : memref<144x256xbf16, #tpu.memory_space<vmem>>, vector<136x8xbf16>
    tpu.vector_store %arg14[%c0_69, %c56], %72 {strides = array<i32>} : memref<144x256xbf16, #tpu.memory_space<vmem>>, vector<136x8xbf16>,
    %c17 = arith.constant 17 : index
    %c0_70 = arith.constant 0 : index
    %74 = vector.load %arg13[%c17, %c0_70] : memref<208x128xf32, #tpu.memory_space<vmem>>, vector<136x8xf32>
    %75 = arith.truncf %74 : vector<136x8xf32> to vector<136x8xbf16>
    %c0_71 = arith.constant 0 : index
    %c64 = arith.constant 64 : index
    %76 = vector.load %arg14[%c0_71, %c64] : memref<144x256xbf16, #tpu.memory_space<vmem>>, vector<136x8xbf16>
    tpu.vector_store %arg14[%c0_71, %c64], %75 {strides = array<i32>} : memref<144x256xbf16, #tpu.memory_space<vmem>>, vector<136x8xbf16>,
    %c18 = arith.constant 18 : index
    %c0_72 = arith.constant 0 : index
    %77 = vector.load %arg13[%c18, %c0_72] : memref<208x128xf32, #tpu.memory_space<vmem>>, vector<136x8xf32>
    %78 = arith.truncf %77 : vector<136x8xf32> to vector<136x8xbf16>
    %c0_73 = arith.constant 0 : index
    %c72 = arith.constant 72 : index
    %79 = vector.load %arg14[%c0_73, %c72] : memref<144x256xbf16, #tpu.memory_space<vmem>>, vector<136x8xbf16>
    tpu.vector_store %arg14[%c0_73, %c72], %78 {strides = array<i32>} : memref<144x256xbf16, #tpu.memory_space<vmem>>, vector<136x8xbf16>,
    %c28 = arith.constant 28 : index
    %c0_74 = arith.constant 0 : index
    %80 = vector.load %arg13[%c28, %c0_74] : memref<208x128xf32, #tpu.memory_space<vmem>>, vector<136x8xf32>
    %81 = arith.truncf %80 : vector<136x8xf32> to vector<136x8xbf16>
    %c0_75 = arith.constant 0 : index
    %c80 = arith.constant 80 : index
    %82 = vector.load %arg14[%c0_75, %c80] : memref<144x256xbf16, #tpu.memory_space<vmem>>, vector<136x8xbf16>
    tpu.vector_store %arg14[%c0_75, %c80], %81 {strides = array<i32>} : memref<144x256xbf16, #tpu.memory_space<vmem>>, vector<136x8xbf16>,
    %c29 = arith.constant 29 : index
    %c0_76 = arith.constant 0 : index
    %83 = vector.load %arg13[%c29, %c0_76] : memref<208x128xf32, #tpu.memory_space<vmem>>, vector<136x8xf32>
    %84 = arith.truncf %83 : vector<136x8xf32> to vector<136x8xbf16>
    %c0_77 = arith.constant 0 : index
    %c88 = arith.constant 88 : index
    %85 = vector.load %arg14[%c0_77, %c88] : memref<144x256xbf16, #tpu.memory_space<vmem>>, vector<136x8xbf16>
    tpu.vector_store %arg14[%c0_77, %c88], %84 {strides = array<i32>} : memref<144x256xbf16, #tpu.memory_space<vmem>>, vector<136x8xbf16>,
    %c30 = arith.constant 30 : index
    %c0_78 = arith.constant 0 : index
    %86 = vector.load %arg13[%c30, %c0_78] : memref<208x128xf32, #tpu.memory_space<vmem>>, vector<136x8xf32>
    %87 = arith.truncf %86 : vector<136x8xf32> to vector<136x8xbf16>
    %c0_79 = arith.constant 0 : index
    %c96 = arith.constant 96 : index
    %88 = vector.load %arg14[%c0_79, %c96] : memref<144x256xbf16, #tpu.memory_space<vmem>>, vector<136x8xbf16>
    tpu.vector_store %arg14[%c0_79, %c96], %87 {strides = array<i32>} : memref<144x256xbf16, #tpu.memory_space<vmem>>, vector<136x8xbf16>,
    %c31 = arith.constant 31 : index
    %c0_80 = arith.constant 0 : index
    %89 = vector.load %arg13[%c31, %c0_80] : memref<208x128xf32, #tpu.memory_space<vmem>>, vector<136x8xf32>
    %90 = arith.truncf %89 : vector<136x8xf32> to vector<136x8xbf16>
    %c0_81 = arith.constant 0 : index
    %c104 = arith.constant 104 : index
    %91 = vector.load %arg14[%c0_81, %c104] : memref<144x256xbf16, #tpu.memory_space<vmem>>, vector<136x8xbf16>
    tpu.vector_store %arg14[%c0_81, %c104], %90 {strides = array<i32>} : memref<144x256xbf16, #tpu.memory_space<vmem>>, vector<136x8xbf16>,
    %c32_82 = arith.constant 32 : index
    %c0_83 = arith.constant 0 : index
    %92 = vector.load %arg13[%c32_82, %c0_83] : memref<208x128xf32, #tpu.memory_space<vmem>>, vector<136x8xf32>
    %93 = arith.truncf %92 : vector<136x8xf32> to vector<136x8xbf16>
    %c0_84 = arith.constant 0 : index
    %c112 = arith.constant 112 : index
    %94 = vector.load %arg14[%c0_84, %c112] : memref<144x256xbf16, #tpu.memory_space<vmem>>, vector<136x8xbf16>
    tpu.vector_store %arg14[%c0_84, %c112], %93 {strides = array<i32>} : memref<144x256xbf16, #tpu.memory_space<vmem>>, vector<136x8xbf16>,
    %c42 = arith.constant 42 : index
    %c0_85 = arith.constant 0 : index
    %95 = vector.load %arg13[%c42, %c0_85] : memref<208x128xf32, #tpu.memory_space<vmem>>, vector<136x8xf32>
    %96 = arith.truncf %95 : vector<136x8xf32> to vector<136x8xbf16>
    %c0_86 = arith.constant 0 : index
    %c120 = arith.constant 120 : index
    %97 = vector.load %arg14[%c0_86, %c120] : memref<144x256xbf16, #tpu.memory_space<vmem>>, vector<136x8xbf16>
    tpu.vector_store %arg14[%c0_86, %c120], %96 {strides = array<i32>} : memref<144x256xbf16, #tpu.memory_space<vmem>>, vector<136x8xbf16>,
    %c43 = arith.constant 43 : index
    %c0_87 = arith.constant 0 : index
    %98 = vector.load %arg13[%c43, %c0_87] : memref<208x128xf32, #tpu.memory_space<vmem>>, vector<136x8xf32>
    %99 = arith.truncf %98 : vector<136x8xf32> to vector<136x8xbf16>
    %c0_88 = arith.constant 0 : index
    %c128 = arith.constant 128 : index
    %100 = vector.load %arg14[%c0_88, %c128] : memref<144x256xbf16, #tpu.memory_space<vmem>>, vector<136x8xbf16>
    tpu.vector_store %arg14[%c0_88, %c128], %99 {strides = array<i32>} : memref<144x256xbf16, #tpu.memory_space<vmem>>, vector<136x8xbf16>,
    %c44 = arith.constant 44 : index
    %c0_89 = arith.constant 0 : index
    %101 = vector.load %arg13[%c44, %c0_89] : memref<208x128xf32, #tpu.memory_space<vmem>>, vector<136x8xf32>
    %102 = arith.truncf %101 : vector<136x8xf32> to vector<136x8xbf16>
    %c0_90 = arith.constant 0 : index
    %c136 = arith.constant 136 : index
    %103 = vector.load %arg14[%c0_90, %c136] : memref<144x256xbf16, #tpu.memory_space<vmem>>, vector<136x8xbf16>
    tpu.vector_store %arg14[%c0_90, %c136], %102 {strides = array<i32>} : memref<144x256xbf16, #tpu.memory_space<vmem>>, vector<136x8xbf16>,
    %c45 = arith.constant 45 : index
    %c0_91 = arith.constant 0 : index
    %104 = vector.load %arg13[%c45, %c0_91] : memref<208x128xf32, #tpu.memory_space<vmem>>, vector<136x8xf32>
    %105 = arith.truncf %104 : vector<136x8xf32> to vector<136x8xbf16>
    %c0_92 = arith.constant 0 : index
    %c144 = arith.constant 144 : index
    %106 = vector.load %arg14[%c0_92, %c144] : memref<144x256xbf16, #tpu.memory_space<vmem>>, vector<136x8xbf16>
    tpu.vector_store %arg14[%c0_92, %c144], %105 {strides = array<i32>} : memref<144x256xbf16, #tpu.memory_space<vmem>>, vector<136x8xbf16>,
    %c46 = arith.constant 46 : index
    %c0_93 = arith.constant 0 : index
    %107 = vector.load %arg13[%c46, %c0_93] : memref<208x128xf32, #tpu.memory_space<vmem>>, vector<136x8xf32>
    %108 = arith.truncf %107 : vector<136x8xf32> to vector<136x8xbf16>
    %c0_94 = arith.constant 0 : index
    %c152 = arith.constant 152 : index
    %109 = vector.load %arg14[%c0_94, %c152] : memref<144x256xbf16, #tpu.memory_space<vmem>>, vector<136x8xbf16>
    tpu.vector_store %arg14[%c0_94, %c152], %108 {strides = array<i32>} : memref<144x256xbf16, #tpu.memory_space<vmem>>, vector<136x8xbf16>,
    %c56_95 = arith.constant 56 : index
    %c0_96 = arith.constant 0 : index
    %110 = vector.load %arg13[%c56_95, %c0_96] : memref<208x128xf32, #tpu.memory_space<vmem>>, vector<136x8xf32>
    %111 = arith.truncf %110 : vector<136x8xf32> to vector<136x8xbf16>
    %c0_97 = arith.constant 0 : index
    %c160 = arith.constant 160 : index
    %112 = vector.load %arg14[%c0_97, %c160] : memref<144x256xbf16, #tpu.memory_space<vmem>>, vector<136x8xbf16>
    tpu.vector_store %arg14[%c0_97, %c160], %111 {strides = array<i32>} : memref<144x256xbf16, #tpu.memory_space<vmem>>, vector<136x8xbf16>,
    %c57 = arith.constant 57 : index
    %c0_98 = arith.constant 0 : index
    %113 = vector.load %arg13[%c57, %c0_98] : memref<208x128xf32, #tpu.memory_space<vmem>>, vector<136x8xf32>
    %114 = arith.truncf %113 : vector<136x8xf32> to vector<136x8xbf16>
    %c0_99 = arith.constant 0 : index
    %c168 = arith.constant 168 : index
    %115 = vector.load %arg14[%c0_99, %c168] : memref<144x256xbf16, #tpu.memory_space<vmem>>, vector<136x8xbf16>
    tpu.vector_store %arg14[%c0_99, %c168], %114 {strides = array<i32>} : memref<144x256xbf16, #tpu.memory_space<vmem>>, vector<136x8xbf16>,
    %c58 = arith.constant 58 : index
    %c0_100 = arith.constant 0 : index
    %116 = vector.load %arg13[%c58, %c0_100] : memref<208x128xf32, #tpu.memory_space<vmem>>, vector<136x8xf32>
    %117 = arith.truncf %116 : vector<136x8xf32> to vector<136x8xbf16>
    %c0_101 = arith.constant 0 : index
    %c176 = arith.constant 176 : index
    %118 = vector.load %arg14[%c0_101, %c176] : memref<144x256xbf16, #tpu.memory_space<vmem>>, vector<136x8xbf16>
    tpu.vector_store %arg14[%c0_101, %c176], %117 {strides = array<i32>} : memref<144x256xbf16, #tpu.memory_space<vmem>>, vector<136x8xbf16>,
    %c59 = arith.constant 59 : index
    %c0_102 = arith.constant 0 : index
    %119 = vector.load %arg13[%c59, %c0_102] : memref<208x128xf32, #tpu.memory_space<vmem>>, vector<136x8xf32>
    %120 = arith.truncf %119 : vector<136x8xf32> to vector<136x8xbf16>
    %c0_103 = arith.constant 0 : index
    %c184 = arith.constant 184 : index
    %121 = vector.load %arg14[%c0_103, %c184] : memref<144x256xbf16, #tpu.memory_space<vmem>>, vector<136x8xbf16>
    tpu.vector_store %arg14[%c0_103, %c184], %120 {strides = array<i32>} : memref<144x256xbf16, #tpu.memory_space<vmem>>, vector<136x8xbf16>,
    %c60 = arith.constant 60 : index
    %c0_104 = arith.constant 0 : index
    %122 = vector.load %arg13[%c60, %c0_104] : memref<208x128xf32, #tpu.memory_space<vmem>>, vector<136x8xf32>
    %123 = arith.truncf %122 : vector<136x8xf32> to vector<136x8xbf16>
    %c0_105 = arith.constant 0 : index
    %c192 = arith.constant 192 : index
    %124 = vector.load %arg14[%c0_105, %c192] : memref<144x256xbf16, #tpu.memory_space<vmem>>, vector<136x8xbf16>
    tpu.vector_store %arg14[%c0_105, %c192], %123 {strides = array<i32>} : memref<144x256xbf16, #tpu.memory_space<vmem>>, vector<136x8xbf16>,
    %c0_106 = arith.constant 0 : index
    %c0_107 = arith.constant 0 : index
    %125 = vector.load %arg14[%c0_106, %c0_107] : memref<144x256xbf16, #tpu.memory_space<vmem>>, vector<144x256xbf16>
    %c0_108 = arith.constant 0 : index
    %c0_109 = arith.constant 0 : index
    %126 = vector.load %arg4[%c0_108, %c0_109] : memref<256x128xbf16, #tpu.memory_space<vmem>>, vector<256x128xbf16>
    %cst_110 = arith.constant dense<0.000000e+00> : vector<144x128xf32>
    %127 = tpu.matmul %125, %126, %cst_110 {dimension_numbers = #tpu.dot_dimension_numbers<[1], [0], [0], [1], [0, 0, 1, 1], [], []>} : vector<144x256xbf16>, vector<256x128xbf16>, vector<144x128xf32> -> vector<144x128xf32>
    %c0_111 = arith.constant 0 : index
    %c0_112 = arith.constant 0 : index
    %128 = vector.load %arg5[%c0_111, %c0_112] : memref<1x128xf32, #tpu.memory_space<vmem>>, vector<1x128xf32>
    %129 = vector.broadcast %128 : vector<1x128xf32> to vector<144x128xf32>
    %130 = arith.addf %127, %129 : vector<144x128xf32>
    %cst_113 = arith.constant 0.000000e+00 : f32
    %131 = vector.broadcast %cst_113 : f32 to vector<144x128xf32>
    %132 = arith.maximumf %130, %131 : vector<144x128xf32>
    %c0_114 = arith.constant 0 : index
    %c0_115 = arith.constant 0 : index
    %133 = vector.load %arg15[%c0_114, %c0_115] : memref<144x128xf32, #tpu.memory_space<vmem>>, vector<144x128xf32>
    tpu.vector_store %arg15[%c0_114, %c0_115], %132 {strides = array<i32>} : memref<144x128xf32, #tpu.memory_space<vmem>>, vector<144x128xf32>,
    %c0_116 = arith.constant 0 : index
    %c0_117 = arith.constant 0 : index
    %134 = vector.load %arg15[%c0_116, %c0_117] : memref<144x128xf32, #tpu.memory_space<vmem>>, vector<128x128xf32>
    %c1_118 = arith.constant 1 : index
    %c0_119 = arith.constant 0 : index
    %135 = vector.load %arg15[%c1_118, %c0_119] : memref<144x128xf32, #tpu.memory_space<vmem>>, vector<128x128xf32>
    %136 = arith.maximumf %134, %135 : vector<128x128xf32>
    %c14_120 = arith.constant 14 : index
    %c0_121 = arith.constant 0 : index
    %137 = vector.load %arg15[%c14_120, %c0_121] : memref<144x128xf32, #tpu.memory_space<vmem>>, vector<128x128xf32>
    %c15_122 = arith.constant 15 : index
    %c0_123 = arith.constant 0 : index
    %138 = vector.load %arg15[%c15_122, %c0_123] : memref<144x128xf32, #tpu.memory_space<vmem>>, vector<128x128xf32>
    %139 = arith.maximumf %137, %138 : vector<128x128xf32>
    %140 = arith.maximumf %136, %139 : vector<128x128xf32>
    %c0_124 = arith.constant 0 : index
    %c0_125 = arith.constant 0 : index
    %141 = vector.load %arg16[%c0_124, %c0_125] : memref<128x128xf32, #tpu.memory_space<vmem>>, vector<128x128xf32>
    tpu.vector_store %arg16[%c0_124, %c0_125], %140 {strides = array<i32>} : memref<128x128xf32, #tpu.memory_space<vmem>>, vector<128x128xf32>,
    %c0_126 = arith.constant 0 : index
    %c0_127 = arith.constant 0 : index
    %142 = vector.load %arg16[%c0_126, %c0_127] : memref<128x128xf32, #tpu.memory_space<vmem>>, vector<1x16xf32>
    %c0_128 = arith.constant 0 : index
    %c0_129 = arith.constant 0 : index
    %143 = vector.load %arg17[%c0_128, %c0_129] : memref<2x512xf32, #tpu.memory_space<vmem>>, vector<1x16xf32>
    tpu.vector_store %arg17[%c0_128, %c0_129], %142 {strides = array<i32>} : memref<2x512xf32, #tpu.memory_space<vmem>>, vector<1x16xf32>,
    %c2_130 = arith.constant 2 : index
    %c0_131 = arith.constant 0 : index
    %144 = vector.load %arg16[%c2_130, %c0_131] : memref<128x128xf32, #tpu.memory_space<vmem>>, vector<1x16xf32>
    %c0_132 = arith.constant 0 : index
    %c16_133 = arith.constant 16 : index
    %145 = vector.load %arg17[%c0_132, %c16_133] : memref<2x512xf32, #tpu.memory_space<vmem>>, vector<1x16xf32>
    tpu.vector_store %arg17[%c0_132, %c16_133], %144 {strides = array<i32>} : memref<2x512xf32, #tpu.memory_space<vmem>>, vector<1x16xf32>,
    %c4_134 = arith.constant 4 : index
    %c0_135 = arith.constant 0 : index
    %146 = vector.load %arg16[%c4_134, %c0_135] : memref<128x128xf32, #tpu.memory_space<vmem>>, vector<1x16xf32>
    %c0_136 = arith.constant 0 : index
    %c32_137 = arith.constant 32 : index
    %147 = vector.load %arg17[%c0_136, %c32_137] : memref<2x512xf32, #tpu.memory_space<vmem>>, vector<1x16xf32>
    tpu.vector_store %arg17[%c0_136, %c32_137], %146 {strides = array<i32>} : memref<2x512xf32, #tpu.memory_space<vmem>>, vector<1x16xf32>,
    %c6 = arith.constant 6 : index
    %c0_138 = arith.constant 0 : index
    %148 = vector.load %arg16[%c6, %c0_138] : memref<128x128xf32, #tpu.memory_space<vmem>>, vector<1x16xf32>
    %c0_139 = arith.constant 0 : index
    %c48_140 = arith.constant 48 : index
    %149 = vector.load %arg17[%c0_139, %c48_140] : memref<2x512xf32, #tpu.memory_space<vmem>>, vector<1x16xf32>
    tpu.vector_store %arg17[%c0_139, %c48_140], %148 {strides = array<i32>} : memref<2x512xf32, #tpu.memory_space<vmem>>, vector<1x16xf32>,
    %c8_141 = arith.constant 8 : index
    %c0_142 = arith.constant 0 : index
    %150 = vector.load %arg16[%c8_141, %c0_142] : memref<128x128xf32, #tpu.memory_space<vmem>>, vector<1x16xf32>
    %c0_143 = arith.constant 0 : index
    %c64_144 = arith.constant 64 : index
    %151 = vector.load %arg17[%c0_143, %c64_144] : memref<2x512xf32, #tpu.memory_space<vmem>>, vector<1x16xf32>
    tpu.vector_store %arg17[%c0_143, %c64_144], %150 {strides = array<i32>} : memref<2x512xf32, #tpu.memory_space<vmem>>, vector<1x16xf32>,
    %c28_145 = arith.constant 28 : index
    %c0_146 = arith.constant 0 : index
    %152 = vector.load %arg16[%c28_145, %c0_146] : memref<128x128xf32, #tpu.memory_space<vmem>>, vector<1x16xf32>
    %c0_147 = arith.constant 0 : index
    %c80_148 = arith.constant 80 : index
    %153 = vector.load %arg17[%c0_147, %c80_148] : memref<2x512xf32, #tpu.memory_space<vmem>>, vector<1x16xf32>
    tpu.vector_store %arg17[%c0_147, %c80_148], %152 {strides = array<i32>} : memref<2x512xf32, #tpu.memory_space<vmem>>, vector<1x16xf32>,
    %c30_149 = arith.constant 30 : index
    %c0_150 = arith.constant 0 : index
    %154 = vector.load %arg16[%c30_149, %c0_150] : memref<128x128xf32, #tpu.memory_space<vmem>>, vector<1x16xf32>
    %c0_151 = arith.constant 0 : index
    %c96_152 = arith.constant 96 : index
    %155 = vector.load %arg17[%c0_151, %c96_152] : memref<2x512xf32, #tpu.memory_space<vmem>>, vector<1x16xf32>
    tpu.vector_store %arg17[%c0_151, %c96_152], %154 {strides = array<i32>} : memref<2x512xf32, #tpu.memory_space<vmem>>, vector<1x16xf32>,
    %c32_153 = arith.constant 32 : index
    %c0_154 = arith.constant 0 : index
    %156 = vector.load %arg16[%c32_153, %c0_154] : memref<128x128xf32, #tpu.memory_space<vmem>>, vector<1x16xf32>
    %c0_155 = arith.constant 0 : index
    %c112_156 = arith.constant 112 : index
    %157 = vector.load %arg17[%c0_155, %c112_156] : memref<2x512xf32, #tpu.memory_space<vmem>>, vector<1x16xf32>
    tpu.vector_store %arg17[%c0_155, %c112_156], %156 {strides = array<i32>} : memref<2x512xf32, #tpu.memory_space<vmem>>, vector<1x16xf32>,
    %c34 = arith.constant 34 : index
    %c0_157 = arith.constant 0 : index
    %158 = vector.load %arg16[%c34, %c0_157] : memref<128x128xf32, #tpu.memory_space<vmem>>, vector<1x16xf32>
    %c0_158 = arith.constant 0 : index
    %c128_159 = arith.constant 128 : index
    %159 = vector.load %arg17[%c0_158, %c128_159] : memref<2x512xf32, #tpu.memory_space<vmem>>, vector<1x16xf32>
    tpu.vector_store %arg17[%c0_158, %c128_159], %158 {strides = array<i32>} : memref<2x512xf32, #tpu.memory_space<vmem>>, vector<1x16xf32>,
    %c36 = arith.constant 36 : index
    %c0_160 = arith.constant 0 : index
    %160 = vector.load %arg16[%c36, %c0_160] : memref<128x128xf32, #tpu.memory_space<vmem>>, vector<1x16xf32>
    %c0_161 = arith.constant 0 : index
    %c144_162 = arith.constant 144 : index
    %161 = vector.load %arg17[%c0_161, %c144_162] : memref<2x512xf32, #tpu.memory_space<vmem>>, vector<1x16xf32>
    tpu.vector_store %arg17[%c0_161, %c144_162], %160 {strides = array<i32>} : memref<2x512xf32, #tpu.memory_space<vmem>>, vector<1x16xf32>,
    %c56_163 = arith.constant 56 : index
    %c0_164 = arith.constant 0 : index
    %162 = vector.load %arg16[%c56_163, %c0_164] : memref<128x128xf32, #tpu.memory_space<vmem>>, vector<1x16xf32>
    %c0_165 = arith.constant 0 : index
    %c160_166 = arith.constant 160 : index
    %163 = vector.load %arg17[%c0_165, %c160_166] : memref<2x512xf32, #tpu.memory_space<vmem>>, vector<1x16xf32>
    tpu.vector_store %arg17[%c0_165, %c160_166], %162 {strides = array<i32>} : memref<2x512xf32, #tpu.memory_space<vmem>>, vector<1x16xf32>,
    %c58_167 = arith.constant 58 : index
    %c0_168 = arith.constant 0 : index
    %164 = vector.load %arg16[%c58_167, %c0_168] : memref<128x128xf32, #tpu.memory_space<vmem>>, vector<1x16xf32>
    %c0_169 = arith.constant 0 : index
    %c176_170 = arith.constant 176 : index
    %165 = vector.load %arg17[%c0_169, %c176_170] : memref<2x512xf32, #tpu.memory_space<vmem>>, vector<1x16xf32>
    tpu.vector_store %arg17[%c0_169, %c176_170], %164 {strides = array<i32>} : memref<2x512xf32, #tpu.memory_space<vmem>>, vector<1x16xf32>,
    %c60_171 = arith.constant 60 : index
    %c0_172 = arith.constant 0 : index
    %166 = vector.load %arg16[%c60_171, %c0_172] : memref<128x128xf32, #tpu.memory_space<vmem>>, vector<1x16xf32>
    %c0_173 = arith.constant 0 : index
    %c192_174 = arith.constant 192 : index
    %167 = vector.load %arg17[%c0_173, %c192_174] : memref<2x512xf32, #tpu.memory_space<vmem>>, vector<1x16xf32>
    tpu.vector_store %arg17[%c0_173, %c192_174], %166 {strides = array<i32>} : memref<2x512xf32, #tpu.memory_space<vmem>>, vector<1x16xf32>,
    %c62 = arith.constant 62 : index
    %c0_175 = arith.constant 0 : index
    %168 = vector.load %arg16[%c62, %c0_175] : memref<128x128xf32, #tpu.memory_space<vmem>>, vector<1x16xf32>
    %c0_176 = arith.constant 0 : index
    %c208_177 = arith.constant 208 : index
    %169 = vector.load %arg17[%c0_176, %c208_177] : memref<2x512xf32, #tpu.memory_space<vmem>>, vector<1x16xf32>
    tpu.vector_store %arg17[%c0_176, %c208_177], %168 {strides = array<i32>} : memref<2x512xf32, #tpu.memory_space<vmem>>, vector<1x16xf32>,
    %c64_178 = arith.constant 64 : index
    %c0_179 = arith.constant 0 : index
    %170 = vector.load %arg16[%c64_178, %c0_179] : memref<128x128xf32, #tpu.memory_space<vmem>>, vector<1x16xf32>
    %c0_180 = arith.constant 0 : index
    %c224 = arith.constant 224 : index
    %171 = vector.load %arg17[%c0_180, %c224] : memref<2x512xf32, #tpu.memory_space<vmem>>, vector<1x16xf32>
    tpu.vector_store %arg17[%c0_180, %c224], %170 {strides = array<i32>} : memref<2x512xf32, #tpu.memory_space<vmem>>, vector<1x16xf32>,
    %c84 = arith.constant 84 : index
    %c0_181 = arith.constant 0 : index
    %172 = vector.load %arg16[%c84, %c0_181] : memref<128x128xf32, #tpu.memory_space<vmem>>, vector<1x16xf32>
    %c0_182 = arith.constant 0 : index
    %c240 = arith.constant 240 : index
    %173 = vector.load %arg17[%c0_182, %c240] : memref<2x512xf32, #tpu.memory_space<vmem>>, vector<1x16xf32>
    tpu.vector_store %arg17[%c0_182, %c240], %172 {strides = array<i32>} : memref<2x512xf32, #tpu.memory_space<vmem>>, vector<1x16xf32>,
    %c86 = arith.constant 86 : index
    %c0_183 = arith.constant 0 : index
    %174 = vector.load %arg16[%c86, %c0_183] : memref<128x128xf32, #tpu.memory_space<vmem>>, vector<1x16xf32>
    %c0_184 = arith.constant 0 : index
    %c256 = arith.constant 256 : index
    %175 = vector.load %arg17[%c0_184, %c256] : memref<2x512xf32, #tpu.memory_space<vmem>>, vector<1x16xf32>
    tpu.vector_store %arg17[%c0_184, %c256], %174 {strides = array<i32>} : memref<2x512xf32, #tpu.memory_space<vmem>>, vector<1x16xf32>,
    %c88_185 = arith.constant 88 : index
    %c0_186 = arith.constant 0 : index
    %176 = vector.load %arg16[%c88_185, %c0_186] : memref<128x128xf32, #tpu.memory_space<vmem>>, vector<1x16xf32>
    %c0_187 = arith.constant 0 : index
    %c272 = arith.constant 272 : index
    %177 = vector.load %arg17[%c0_187, %c272] : memref<2x512xf32, #tpu.memory_space<vmem>>, vector<1x16xf32>
    tpu.vector_store %arg17[%c0_187, %c272], %176 {strides = array<i32>} : memref<2x512xf32, #tpu.memory_space<vmem>>, vector<1x16xf32>,
    %c90 = arith.constant 90 : index
    %c0_188 = arith.constant 0 : index
    %178 = vector.load %arg16[%c90, %c0_188] : memref<128x128xf32, #tpu.memory_space<vmem>>, vector<1x16xf32>
    %c0_189 = arith.constant 0 : index
    %c288 = arith.constant 288 : index
    %179 = vector.load %arg17[%c0_189, %c288] : memref<2x512xf32, #tpu.memory_space<vmem>>, vector<1x16xf32>
    tpu.vector_store %arg17[%c0_189, %c288], %178 {strides = array<i32>} : memref<2x512xf32, #tpu.memory_space<vmem>>, vector<1x16xf32>,
    %c92 = arith.constant 92 : index
    %c0_190 = arith.constant 0 : index
    %180 = vector.load %arg16[%c92, %c0_190] : memref<128x128xf32, #tpu.memory_space<vmem>>, vector<1x16xf32>
    %c0_191 = arith.constant 0 : index
    %c304 = arith.constant 304 : index
    %181 = vector.load %arg17[%c0_191, %c304] : memref<2x512xf32, #tpu.memory_space<vmem>>, vector<1x16xf32>
    tpu.vector_store %arg17[%c0_191, %c304], %180 {strides = array<i32>} : memref<2x512xf32, #tpu.memory_space<vmem>>, vector<1x16xf32>,
    %c112_192 = arith.constant 112 : index
    %c0_193 = arith.constant 0 : index
    %182 = vector.load %arg16[%c112_192, %c0_193] : memref<128x128xf32, #tpu.memory_space<vmem>>, vector<1x16xf32>
    %c0_194 = arith.constant 0 : index
    %c320 = arith.constant 320 : index
    %183 = vector.load %arg17[%c0_194, %c320] : memref<2x512xf32, #tpu.memory_space<vmem>>, vector<1x16xf32>
    tpu.vector_store %arg17[%c0_194, %c320], %182 {strides = array<i32>} : memref<2x512xf32, #tpu.memory_space<vmem>>, vector<1x16xf32>,
    %c114 = arith.constant 114 : index
    %c0_195 = arith.constant 0 : index
    %184 = vector.load %arg16[%c114, %c0_195] : memref<128x128xf32, #tpu.memory_space<vmem>>, vector<1x16xf32>
    %c0_196 = arith.constant 0 : index
    %c336 = arith.constant 336 : index
    %185 = vector.load %arg17[%c0_196, %c336] : memref<2x512xf32, #tpu.memory_space<vmem>>, vector<1x16xf32>
    tpu.vector_store %arg17[%c0_196, %c336], %184 {strides = array<i32>} : memref<2x512xf32, #tpu.memory_space<vmem>>, vector<1x16xf32>,
    %c116 = arith.constant 116 : index
    %c0_197 = arith.constant 0 : index
    %186 = vector.load %arg16[%c116, %c0_197] : memref<128x128xf32, #tpu.memory_space<vmem>>, vector<1x16xf32>
    %c0_198 = arith.constant 0 : index
    %c352 = arith.constant 352 : index
    %187 = vector.load %arg17[%c0_198, %c352] : memref<2x512xf32, #tpu.memory_space<vmem>>, vector<1x16xf32>
    tpu.vector_store %arg17[%c0_198, %c352], %186 {strides = array<i32>} : memref<2x512xf32, #tpu.memory_space<vmem>>, vector<1x16xf32>,
    %c118 = arith.constant 118 : index
    %c0_199 = arith.constant 0 : index
    %188 = vector.load %arg16[%c118, %c0_199] : memref<128x128xf32, #tpu.memory_space<vmem>>, vector<1x16xf32>
    %c0_200 = arith.constant 0 : index
    %c368 = arith.constant 368 : index
    %189 = vector.load %arg17[%c0_200, %c368] : memref<2x512xf32, #tpu.memory_space<vmem>>, vector<1x16xf32>
    tpu.vector_store %arg17[%c0_200, %c368], %188 {strides = array<i32>} : memref<2x512xf32, #tpu.memory_space<vmem>>, vector<1x16xf32>,
    %c120_201 = arith.constant 120 : index
    %c0_202 = arith.constant 0 : index
    %190 = vector.load %arg16[%c120_201, %c0_202] : memref<128x128xf32, #tpu.memory_space<vmem>>, vector<1x16xf32>
    %c0_203 = arith.constant 0 : index
    %c384 = arith.constant 384 : index
    %191 = vector.load %arg17[%c0_203, %c384] : memref<2x512xf32, #tpu.memory_space<vmem>>, vector<1x16xf32>
    tpu.vector_store %arg17[%c0_203, %c384], %190 {strides = array<i32>} : memref<2x512xf32, #tpu.memory_space<vmem>>, vector<1x16xf32>,
    %c1_204 = arith.constant 1 : index
    %c0_205 = arith.constant 0 : index
    %c0_206 = arith.constant 0 : index
    %192 = vector.load %arg1[%c1_204, %c0_205, %c0_206] : memref<2x832x128xbf16, #tpu.memory_space<vmem>>, vector<1x208x128xbf16>
    %193 = vector.shape_cast %192 : vector<1x208x128xbf16> to vector<208x128xbf16>
    %c0_207 = arith.constant 0 : index
    %c0_208 = arith.constant 0 : index
    %194 = vector.load %arg2[%c0_207, %c0_208] : memref<128x128xbf16, #tpu.memory_space<vmem>>, vector<128x128xbf16>
    %cst_209 = arith.constant dense<0.000000e+00> : vector<208x128xf32>
    %195 = tpu.matmul %193, %194, %cst_209 {dimension_numbers = #tpu.dot_dimension_numbers<[1], [0], [0], [1], [0, 0, 1, 1], [], []>} : vector<208x128xbf16>, vector<128x128xbf16>, vector<208x128xf32> -> vector<208x128xf32>
    %c0_210 = arith.constant 0 : index
    %c0_211 = arith.constant 0 : index
    %196 = vector.load %arg3[%c0_210, %c0_211] : memref<1x128xf32, #tpu.memory_space<vmem>>, vector<1x128xf32>
    %197 = vector.broadcast %196 : vector<1x128xf32> to vector<208x128xf32>
    %198 = arith.addf %195, %197 : vector<208x128xf32>
    %cst_212 = arith.constant 0.000000e+00 : f32
    %199 = vector.broadcast %cst_212 : f32 to vector<208x128xf32>
    %200 = arith.maximumf %198, %199 : vector<208x128xf32>
    %c0_213 = arith.constant 0 : index
    %c0_214 = arith.constant 0 : index
    %201 = vector.load %arg13[%c0_213, %c0_214] : memref<208x128xf32, #tpu.memory_space<vmem>>, vector<208x128xf32>
    tpu.vector_store %arg13[%c0_213, %c0_214], %200 {strides = array<i32>} : memref<208x128xf32, #tpu.memory_space<vmem>>, vector<208x128xf32>,
    %c1_215 = arith.constant 1 : index
    %c208_216 = arith.constant 208 : index
    %c0_217 = arith.constant 0 : index
    %202 = vector.load %arg1[%c1_215, %c208_216, %c0_217] : memref<2x832x128xbf16, #tpu.memory_space<vmem>>, vector<1x208x128xbf16>
    %203 = vector.shape_cast %202 : vector<1x208x128xbf16> to vector<208x128xbf16>
    %c0_218 = arith.constant 0 : index
    %c0_219 = arith.constant 0 : index
    %204 = vector.load %arg2[%c0_218, %c0_219] : memref<128x128xbf16, #tpu.memory_space<vmem>>, vector<128x128xbf16>
    %cst_220 = arith.constant dense<0.000000e+00> : vector<208x128xf32>
    %205 = tpu.matmul %203, %204, %cst_220 {dimension_numbers = #tpu.dot_dimension_numbers<[1], [0], [0], [1], [0, 0, 1, 1], [], []>} : vector<208x128xbf16>, vector<128x128xbf16>, vector<208x128xf32> -> vector<208x128xf32>
    %c0_221 = arith.constant 0 : index
    %c0_222 = arith.constant 0 : index
    %206 = vector.load %arg3[%c0_221, %c0_222] : memref<1x128xf32, #tpu.memory_space<vmem>>, vector<1x128xf32>
    %207 = vector.broadcast %206 : vector<1x128xf32> to vector<208x128xf32>
    %208 = arith.addf %205, %207 : vector<208x128xf32>
    %cst_223 = arith.constant 0.000000e+00 : f32
    %209 = vector.broadcast %cst_223 : f32 to vector<208x128xf32>
    %210 = arith.maximumf %208, %209 : vector<208x128xf32>
    %c0_224 = arith.constant 0 : index
    %c0_225 = arith.constant 0 : index
    %211 = vector.load %arg13[%c0_224, %c0_225] : memref<208x128xf32, #tpu.memory_space<vmem>>, vector<208x128xf32>
    %212 = arith.maximumf %211, %210 : vector<208x128xf32>
    %c0_226 = arith.constant 0 : index
    %c0_227 = arith.constant 0 : index
    %213 = vector.load %arg13[%c0_226, %c0_227] : memref<208x128xf32, #tpu.memory_space<vmem>>, vector<208x128xf32>
    tpu.vector_store %arg13[%c0_226, %c0_227], %212 {strides = array<i32>} : memref<208x128xf32, #tpu.memory_space<vmem>>, vector<208x128xf32>,
    %c1_228 = arith.constant 1 : index
    %c416_229 = arith.constant 416 : index
    %c0_230 = arith.constant 0 : index
    %214 = vector.load %arg1[%c1_228, %c416_229, %c0_230] : memref<2x832x128xbf16, #tpu.memory_space<vmem>>, vector<1x208x128xbf16>
    %215 = vector.shape_cast %214 : vector<1x208x128xbf16> to vector<208x128xbf16>
    %c0_231 = arith.constant 0 : index
    %c0_232 = arith.constant 0 : index
    %216 = vector.load %arg2[%c0_231, %c0_232] : memref<128x128xbf16, #tpu.memory_space<vmem>>, vector<128x128xbf16>
    %cst_233 = arith.constant dense<0.000000e+00> : vector<208x128xf32>
    %217 = tpu.matmul %215, %216, %cst_233 {dimension_numbers = #tpu.dot_dimension_numbers<[1], [0], [0], [1], [0, 0, 1, 1], [], []>} : vector<208x128xbf16>, vector<128x128xbf16>, vector<208x128xf32> -> vector<208x128xf32>
    %c0_234 = arith.constant 0 : index
    %c0_235 = arith.constant 0 : index
    %218 = vector.load %arg3[%c0_234, %c0_235] : memref<1x128xf32, #tpu.memory_space<vmem>>, vector<1x128xf32>
    %219 = vector.broadcast %218 : vector<1x128xf32> to vector<208x128xf32>
    %220 = arith.addf %217, %219 : vector<208x128xf32>
    %cst_236 = arith.constant 0.000000e+00 : f32
    %221 = vector.broadcast %cst_236 : f32 to vector<208x128xf32>
    %222 = arith.maximumf %220, %221 : vector<208x128xf32>
    %c0_237 = arith.constant 0 : index
    %c0_238 = arith.constant 0 : index
    %223 = vector.load %arg13[%c0_237, %c0_238] : memref<208x128xf32, #tpu.memory_space<vmem>>, vector<208x128xf32>
    %224 = arith.maximumf %223, %222 : vector<208x128xf32>
    %c0_239 = arith.constant 0 : index
    %c0_240 = arith.constant 0 : index
    %225 = vector.load %arg13[%c0_239, %c0_240] : memref<208x128xf32, #tpu.memory_space<vmem>>, vector<208x128xf32>
    tpu.vector_store %arg13[%c0_239, %c0_240], %224 {strides = array<i32>} : memref<208x128xf32, #tpu.memory_space<vmem>>, vector<208x128xf32>,
    %c1_241 = arith.constant 1 : index
    %c624_242 = arith.constant 624 : index
    %c0_243 = arith.constant 0 : index
    %226 = vector.load %arg1[%c1_241, %c624_242, %c0_243] : memref<2x832x128xbf16, #tpu.memory_space<vmem>>, vector<1x208x128xbf16>
    %227 = vector.shape_cast %226 : vector<1x208x128xbf16> to vector<208x128xbf16>
    %c0_244 = arith.constant 0 : index
    %c0_245 = arith.constant 0 : index
    %228 = vector.load %arg2[%c0_244, %c0_245] : memref<128x128xbf16, #tpu.memory_space<vmem>>, vector<128x128xbf16>
    %cst_246 = arith.constant dense<0.000000e+00> : vector<208x128xf32>
    %229 = tpu.matmul %227, %228, %cst_246 {dimension_numbers = #tpu.dot_dimension_numbers<[1], [0], [0], [1], [0, 0, 1, 1], [], []>} : vector<208x128xbf16>, vector<128x128xbf16>, vector<208x128xf32> -> vector<208x128xf32>
    %c0_247 = arith.constant 0 : index
    %c0_248 = arith.constant 0 : index
    %230 = vector.load %arg3[%c0_247, %c0_248] : memref<1x128xf32, #tpu.memory_space<vmem>>, vector<1x128xf32>
    %231 = vector.broadcast %230 : vector<1x128xf32> to vector<208x128xf32>
    %232 = arith.addf %229, %231 : vector<208x128xf32>
    %cst_249 = arith.constant 0.000000e+00 : f32
    %233 = vector.broadcast %cst_249 : f32 to vector<208x128xf32>
    %234 = arith.maximumf %232, %233 : vector<208x128xf32>
    %c0_250 = arith.constant 0 : index
    %c0_251 = arith.constant 0 : index
    %235 = vector.load %arg13[%c0_250, %c0_251] : memref<208x128xf32, #tpu.memory_space<vmem>>, vector<208x128xf32>
    %236 = arith.maximumf %235, %234 : vector<208x128xf32>
    %c0_252 = arith.constant 0 : index
    %c0_253 = arith.constant 0 : index
    %237 = vector.load %arg13[%c0_252, %c0_253] : memref<208x128xf32, #tpu.memory_space<vmem>>, vector<208x128xf32>
    tpu.vector_store %arg13[%c0_252, %c0_253], %236 {strides = array<i32>} : memref<208x128xf32, #tpu.memory_space<vmem>>, vector<208x128xf32>,
    %c0_254 = arith.constant 0 : index
    %c0_255 = arith.constant 0 : index
    %238 = vector.load %arg13[%c0_254, %c0_255] : memref<208x128xf32, #tpu.memory_space<vmem>>, vector<136x8xf32>
    %239 = arith.truncf %238 : vector<136x8xf32> to vector<136x8xbf16>
    %c0_256 = arith.constant 0 : index
    %c0_257 = arith.constant 0 : index
    %240 = vector.load %arg14[%c0_256, %c0_257] : memref<144x256xbf16, #tpu.memory_space<vmem>>, vector<136x8xbf16>
    tpu.vector_store %arg14[%c0_256, %c0_257], %239 {strides = array<i32>} : memref<144x256xbf16, #tpu.memory_space<vmem>>, vector<136x8xbf16>,
    %c1_258 = arith.constant 1 : index
    %c0_259 = arith.constant 0 : index
    %241 = vector.load %arg13[%c1_258, %c0_259] : memref<208x128xf32, #tpu.memory_space<vmem>>, vector<136x8xf32>
    %242 = arith.truncf %241 : vector<136x8xf32> to vector<136x8xbf16>
    %c0_260 = arith.constant 0 : index
    %c8_261 = arith.constant 8 : index
    %243 = vector.load %arg14[%c0_260, %c8_261] : memref<144x256xbf16, #tpu.memory_space<vmem>>, vector<136x8xbf16>
    tpu.vector_store %arg14[%c0_260, %c8_261], %242 {strides = array<i32>} : memref<144x256xbf16, #tpu.memory_space<vmem>>, vector<136x8xbf16>,
    %c2_262 = arith.constant 2 : index
    %c0_263 = arith.constant 0 : index
    %244 = vector.load %arg13[%c2_262, %c0_263] : memref<208x128xf32, #tpu.memory_space<vmem>>, vector<136x8xf32>
    %245 = arith.truncf %244 : vector<136x8xf32> to vector<136x8xbf16>
    %c0_264 = arith.constant 0 : index
    %c16_265 = arith.constant 16 : index
    %246 = vector.load %arg14[%c0_264, %c16_265] : memref<144x256xbf16, #tpu.memory_space<vmem>>, vector<136x8xbf16>
    tpu.vector_store %arg14[%c0_264, %c16_265], %245 {strides = array<i32>} : memref<144x256xbf16, #tpu.memory_space<vmem>>, vector<136x8xbf16>,
    %c3_266 = arith.constant 3 : index
    %c0_267 = arith.constant 0 : index
    %247 = vector.load %arg13[%c3_266, %c0_267] : memref<208x128xf32, #tpu.memory_space<vmem>>, vector<136x8xf32>
    %248 = arith.truncf %247 : vector<136x8xf32> to vector<136x8xbf16>
    %c0_268 = arith.constant 0 : index
    %c24_269 = arith.constant 24 : index
    %249 = vector.load %arg14[%c0_268, %c24_269] : memref<144x256xbf16, #tpu.memory_space<vmem>>, vector<136x8xbf16>
    tpu.vector_store %arg14[%c0_268, %c24_269], %248 {strides = array<i32>} : memref<144x256xbf16, #tpu.memory_space<vmem>>, vector<136x8xbf16>,
    %c4_270 = arith.constant 4 : index
    %c0_271 = arith.constant 0 : index
    %250 = vector.load %arg13[%c4_270, %c0_271] : memref<208x128xf32, #tpu.memory_space<vmem>>, vector<136x8xf32>
    %251 = arith.truncf %250 : vector<136x8xf32> to vector<136x8xbf16>
    %c0_272 = arith.constant 0 : index
    %c32_273 = arith.constant 32 : index
    %252 = vector.load %arg14[%c0_272, %c32_273] : memref<144x256xbf16, #tpu.memory_space<vmem>>, vector<136x8xbf16>
    tpu.vector_store %arg14[%c0_272, %c32_273], %251 {strides = array<i32>} : memref<144x256xbf16, #tpu.memory_space<vmem>>, vector<136x8xbf16>,
    %c14_274 = arith.constant 14 : index
    %c0_275 = arith.constant 0 : index
    %253 = vector.load %arg13[%c14_274, %c0_275] : memref<208x128xf32, #tpu.memory_space<vmem>>, vector<136x8xf32>
    %254 = arith.truncf %253 : vector<136x8xf32> to vector<136x8xbf16>
    %c0_276 = arith.constant 0 : index
    %c40_277 = arith.constant 40 : index
    %255 = vector.load %arg14[%c0_276, %c40_277] : memref<144x256xbf16, #tpu.memory_space<vmem>>, vector<136x8xbf16>
    tpu.vector_store %arg14[%c0_276, %c40_277], %254 {strides = array<i32>} : memref<144x256xbf16, #tpu.memory_space<vmem>>, vector<136x8xbf16>,
    %c15_278 = arith.constant 15 : index
    %c0_279 = arith.constant 0 : index
    %256 = vector.load %arg13[%c15_278, %c0_279] : memref<208x128xf32, #tpu.memory_space<vmem>>, vector<136x8xf32>
    %257 = arith.truncf %256 : vector<136x8xf32> to vector<136x8xbf16>
    %c0_280 = arith.constant 0 : index
    %c48_281 = arith.constant 48 : index
    %258 = vector.load %arg14[%c0_280, %c48_281] : memref<144x256xbf16, #tpu.memory_space<vmem>>, vector<136x8xbf16>
    tpu.vector_store %arg14[%c0_280, %c48_281], %257 {strides = array<i32>} : memref<144x256xbf16, #tpu.memory_space<vmem>>, vector<136x8xbf16>,
    %c16_282 = arith.constant 16 : index
    %c0_283 = arith.constant 0 : index
    %259 = vector.load %arg13[%c16_282, %c0_283] : memref<208x128xf32, #tpu.memory_space<vmem>>, vector<136x8xf32>
    %260 = arith.truncf %259 : vector<136x8xf32> to vector<136x8xbf16>
    %c0_284 = arith.constant 0 : index
    %c56_285 = arith.constant 56 : index
    %261 = vector.load %arg14[%c0_284, %c56_285] : memref<144x256xbf16, #tpu.memory_space<vmem>>, vector<136x8xbf16>
    tpu.vector_store %arg14[%c0_284, %c56_285], %260 {strides = array<i32>} : memref<144x256xbf16, #tpu.memory_space<vmem>>, vector<136x8xbf16>,
    %c17_286 = arith.constant 17 : index
    %c0_287 = arith.constant 0 : index
    %262 = vector.load %arg13[%c17_286, %c0_287] : memref<208x128xf32, #tpu.memory_space<vmem>>, vector<136x8xf32>
    %263 = arith.truncf %262 : vector<136x8xf32> to vector<136x8xbf16>
    %c0_288 = arith.constant 0 : index
    %c64_289 = arith.constant 64 : index
    %264 = vector.load %arg14[%c0_288, %c64_289] : memref<144x256xbf16, #tpu.memory_space<vmem>>, vector<136x8xbf16>
    tpu.vector_store %arg14[%c0_288, %c64_289], %263 {strides = array<i32>} : memref<144x256xbf16, #tpu.memory_space<vmem>>, vector<136x8xbf16>,
    %c18_290 = arith.constant 18 : index
    %c0_291 = arith.constant 0 : index
    %265 = vector.load %arg13[%c18_290, %c0_291] : memref<208x128xf32, #tpu.memory_space<vmem>>, vector<136x8xf32>
    %266 = arith.truncf %265 : vector<136x8xf32> to vector<136x8xbf16>
    %c0_292 = arith.constant 0 : index
    %c72_293 = arith.constant 72 : index
    %267 = vector.load %arg14[%c0_292, %c72_293] : memref<144x256xbf16, #tpu.memory_space<vmem>>, vector<136x8xbf16>
    tpu.vector_store %arg14[%c0_292, %c72_293], %266 {strides = array<i32>} : memref<144x256xbf16, #tpu.memory_space<vmem>>, vector<136x8xbf16>,
    %c28_294 = arith.constant 28 : index
    %c0_295 = arith.constant 0 : index
    %268 = vector.load %arg13[%c28_294, %c0_295] : memref<208x128xf32, #tpu.memory_space<vmem>>, vector<136x8xf32>
    %269 = arith.truncf %268 : vector<136x8xf32> to vector<136x8xbf16>
    %c0_296 = arith.constant 0 : index
    %c80_297 = arith.constant 80 : index
    %270 = vector.load %arg14[%c0_296, %c80_297] : memref<144x256xbf16, #tpu.memory_space<vmem>>, vector<136x8xbf16>
    tpu.vector_store %arg14[%c0_296, %c80_297], %269 {strides = array<i32>} : memref<144x256xbf16, #tpu.memory_space<vmem>>, vector<136x8xbf16>,
    %c29_298 = arith.constant 29 : index
    %c0_299 = arith.constant 0 : index
    %271 = vector.load %arg13[%c29_298, %c0_299] : memref<208x128xf32, #tpu.memory_space<vmem>>, vector<136x8xf32>
    %272 = arith.truncf %271 : vector<136x8xf32> to vector<136x8xbf16>
    %c0_300 = arith.constant 0 : index
    %c88_301 = arith.constant 88 : index
    %273 = vector.load %arg14[%c0_300, %c88_301] : memref<144x256xbf16, #tpu.memory_space<vmem>>, vector<136x8xbf16>
    tpu.vector_store %arg14[%c0_300, %c88_301], %272 {strides = array<i32>} : memref<144x256xbf16, #tpu.memory_space<vmem>>, vector<136x8xbf16>,
    %c30_302 = arith.constant 30 : index
    %c0_303 = arith.constant 0 : index
    %274 = vector.load %arg13[%c30_302, %c0_303] : memref<208x128xf32, #tpu.memory_space<vmem>>, vector<136x8xf32>
    %275 = arith.truncf %274 : vector<136x8xf32> to vector<136x8xbf16>
    %c0_304 = arith.constant 0 : index
    %c96_305 = arith.constant 96 : index
    %276 = vector.load %arg14[%c0_304, %c96_305] : memref<144x256xbf16, #tpu.memory_space<vmem>>, vector<136x8xbf16>
    tpu.vector_store %arg14[%c0_304, %c96_305], %275 {strides = array<i32>} : memref<144x256xbf16, #tpu.memory_space<vmem>>, vector<136x8xbf16>,
    %c31_306 = arith.constant 31 : index
    %c0_307 = arith.constant 0 : index
    %277 = vector.load %arg13[%c31_306, %c0_307] : memref<208x128xf32, #tpu.memory_space<vmem>>, vector<136x8xf32>
    %278 = arith.truncf %277 : vector<136x8xf32> to vector<136x8xbf16>
    %c0_308 = arith.constant 0 : index
    %c104_309 = arith.constant 104 : index
    %279 = vector.load %arg14[%c0_308, %c104_309] : memref<144x256xbf16, #tpu.memory_space<vmem>>, vector<136x8xbf16>
    tpu.vector_store %arg14[%c0_308, %c104_309], %278 {strides = array<i32>} : memref<144x256xbf16, #tpu.memory_space<vmem>>, vector<136x8xbf16>,
    %c32_310 = arith.constant 32 : index
    %c0_311 = arith.constant 0 : index
    %280 = vector.load %arg13[%c32_310, %c0_311] : memref<208x128xf32, #tpu.memory_space<vmem>>, vector<136x8xf32>
    %281 = arith.truncf %280 : vector<136x8xf32> to vector<136x8xbf16>
    %c0_312 = arith.constant 0 : index
    %c112_313 = arith.constant 112 : index
    %282 = vector.load %arg14[%c0_312, %c112_313] : memref<144x256xbf16, #tpu.memory_space<vmem>>, vector<136x8xbf16>
    tpu.vector_store %arg14[%c0_312, %c112_313], %281 {strides = array<i32>} : memref<144x256xbf16, #tpu.memory_space<vmem>>, vector<136x8xbf16>,
    %c42_314 = arith.constant 42 : index
    %c0_315 = arith.constant 0 : index
    %283 = vector.load %arg13[%c42_314, %c0_315] : memref<208x128xf32, #tpu.memory_space<vmem>>, vector<136x8xf32>
    %284 = arith.truncf %283 : vector<136x8xf32> to vector<136x8xbf16>
    %c0_316 = arith.constant 0 : index
    %c120_317 = arith.constant 120 : index
    %285 = vector.load %arg14[%c0_316, %c120_317] : memref<144x256xbf16, #tpu.memory_space<vmem>>, vector<136x8xbf16>
    tpu.vector_store %arg14[%c0_316, %c120_317], %284 {strides = array<i32>} : memref<144x256xbf16, #tpu.memory_space<vmem>>, vector<136x8xbf16>,
    %c43_318 = arith.constant 43 : index
    %c0_319 = arith.constant 0 : index
    %286 = vector.load %arg13[%c43_318, %c0_319] : memref<208x128xf32, #tpu.memory_space<vmem>>, vector<136x8xf32>
    %287 = arith.truncf %286 : vector<136x8xf32> to vector<136x8xbf16>
    %c0_320 = arith.constant 0 : index
    %c128_321 = arith.constant 128 : index
    %288 = vector.load %arg14[%c0_320, %c128_321] : memref<144x256xbf16, #tpu.memory_space<vmem>>, vector<136x8xbf16>
    tpu.vector_store %arg14[%c0_320, %c128_321], %287 {strides = array<i32>} : memref<144x256xbf16, #tpu.memory_space<vmem>>, vector<136x8xbf16>,
    %c44_322 = arith.constant 44 : index
    %c0_323 = arith.constant 0 : index
    %289 = vector.load %arg13[%c44_322, %c0_323] : memref<208x128xf32, #tpu.memory_space<vmem>>, vector<136x8xf32>
    %290 = arith.truncf %289 : vector<136x8xf32> to vector<136x8xbf16>
    %c0_324 = arith.constant 0 : index
    %c136_325 = arith.constant 136 : index
    %291 = vector.load %arg14[%c0_324, %c136_325] : memref<144x256xbf16, #tpu.memory_space<vmem>>, vector<136x8xbf16>
    tpu.vector_store %arg14[%c0_324, %c136_325], %290 {strides = array<i32>} : memref<144x256xbf16, #tpu.memory_space<vmem>>, vector<136x8xbf16>,
    %c45_326 = arith.constant 45 : index
    %c0_327 = arith.constant 0 : index
    %292 = vector.load %arg13[%c45_326, %c0_327] : memref<208x128xf32, #tpu.memory_space<vmem>>, vector<136x8xf32>
    %293 = arith.truncf %292 : vector<136x8xf32> to vector<136x8xbf16>
    %c0_328 = arith.constant 0 : index
    %c144_329 = arith.constant 144 : index
    %294 = vector.load %arg14[%c0_328, %c144_329] : memref<144x256xbf16, #tpu.memory_space<vmem>>, vector<136x8xbf16>
    tpu.vector_store %arg14[%c0_328, %c144_329], %293 {strides = array<i32>} : memref<144x256xbf16, #tpu.memory_space<vmem>>, vector<136x8xbf16>,
    %c46_330 = arith.constant 46 : index
    %c0_331 = arith.constant 0 : index
    %295 = vector.load %arg13[%c46_330, %c0_331] : memref<208x128xf32, #tpu.memory_space<vmem>>, vector<136x8xf32>
    %296 = arith.truncf %295 : vector<136x8xf32> to vector<136x8xbf16>
    %c0_332 = arith.constant 0 : index
    %c152_333 = arith.constant 152 : index
    %297 = vector.load %arg14[%c0_332, %c152_333] : memref<144x256xbf16, #tpu.memory_space<vmem>>, vector<136x8xbf16>
    tpu.vector_store %arg14[%c0_332, %c152_333], %296 {strides = array<i32>} : memref<144x256xbf16, #tpu.memory_space<vmem>>, vector<136x8xbf16>,
    %c56_334 = arith.constant 56 : index
    %c0_335 = arith.constant 0 : index
    %298 = vector.load %arg13[%c56_334, %c0_335] : memref<208x128xf32, #tpu.memory_space<vmem>>, vector<136x8xf32>
    %299 = arith.truncf %298 : vector<136x8xf32> to vector<136x8xbf16>
    %c0_336 = arith.constant 0 : index
    %c160_337 = arith.constant 160 : index
    %300 = vector.load %arg14[%c0_336, %c160_337] : memref<144x256xbf16, #tpu.memory_space<vmem>>, vector<136x8xbf16>
    tpu.vector_store %arg14[%c0_336, %c160_337], %299 {strides = array<i32>} : memref<144x256xbf16, #tpu.memory_space<vmem>>, vector<136x8xbf16>,
    %c57_338 = arith.constant 57 : index
    %c0_339 = arith.constant 0 : index
    %301 = vector.load %arg13[%c57_338, %c0_339] : memref<208x128xf32, #tpu.memory_space<vmem>>, vector<136x8xf32>
    %302 = arith.truncf %301 : vector<136x8xf32> to vector<136x8xbf16>
    %c0_340 = arith.constant 0 : index
    %c168_341 = arith.constant 168 : index
    %303 = vector.load %arg14[%c0_340, %c168_341] : memref<144x256xbf16, #tpu.memory_space<vmem>>, vector<136x8xbf16>
    tpu.vector_store %arg14[%c0_340, %c168_341], %302 {strides = array<i32>} : memref<144x256xbf16, #tpu.memory_space<vmem>>, vector<136x8xbf16>,
    %c58_342 = arith.constant 58 : index
    %c0_343 = arith.constant 0 : index
    %304 = vector.load %arg13[%c58_342, %c0_343] : memref<208x128xf32, #tpu.memory_space<vmem>>, vector<136x8xf32>
    %305 = arith.truncf %304 : vector<136x8xf32> to vector<136x8xbf16>
    %c0_344 = arith.constant 0 : index
    %c176_345 = arith.constant 176 : index
    %306 = vector.load %arg14[%c0_344, %c176_345] : memref<144x256xbf16, #tpu.memory_space<vmem>>, vector<136x8xbf16>
    tpu.vector_store %arg14[%c0_344, %c176_345], %305 {strides = array<i32>} : memref<144x256xbf16, #tpu.memory_space<vmem>>, vector<136x8xbf16>,
    %c59_346 = arith.constant 59 : index
    %c0_347 = arith.constant 0 : index
    %307 = vector.load %arg13[%c59_346, %c0_347] : memref<208x128xf32, #tpu.memory_space<vmem>>, vector<136x8xf32>
    %308 = arith.truncf %307 : vector<136x8xf32> to vector<136x8xbf16>
    %c0_348 = arith.constant 0 : index
    %c184_349 = arith.constant 184 : index
    %309 = vector.load %arg14[%c0_348, %c184_349] : memref<144x256xbf16, #tpu.memory_space<vmem>>, vector<136x8xbf16>
    tpu.vector_store %arg14[%c0_348, %c184_349], %308 {strides = array<i32>} : memref<144x256xbf16, #tpu.memory_space<vmem>>, vector<136x8xbf16>,
    %c60_350 = arith.constant 60 : index
    %c0_351 = arith.constant 0 : index
    %310 = vector.load %arg13[%c60_350, %c0_351] : memref<208x128xf32, #tpu.memory_space<vmem>>, vector<136x8xf32>
    %311 = arith.truncf %310 : vector<136x8xf32> to vector<136x8xbf16>
    %c0_352 = arith.constant 0 : index
    %c192_353 = arith.constant 192 : index
    %312 = vector.load %arg14[%c0_352, %c192_353] : memref<144x256xbf16, #tpu.memory_space<vmem>>, vector<136x8xbf16>
    tpu.vector_store %arg14[%c0_352, %c192_353], %311 {strides = array<i32>} : memref<144x256xbf16, #tpu.memory_space<vmem>>, vector<136x8xbf16>,
    %c0_354 = arith.constant 0 : index
    %c0_355 = arith.constant 0 : index
    %313 = vector.load %arg14[%c0_354, %c0_355] : memref<144x256xbf16, #tpu.memory_space<vmem>>, vector<144x256xbf16>
    %c0_356 = arith.constant 0 : index
    %c0_357 = arith.constant 0 : index
    %314 = vector.load %arg4[%c0_356, %c0_357] : memref<256x128xbf16, #tpu.memory_space<vmem>>, vector<256x128xbf16>
    %cst_358 = arith.constant dense<0.000000e+00> : vector<144x128xf32>
    %315 = tpu.matmul %313, %314, %cst_358 {dimension_numbers = #tpu.dot_dimension_numbers<[1], [0], [0], [1], [0, 0, 1, 1], [], []>} : vector<144x256xbf16>, vector<256x128xbf16>, vector<144x128xf32> -> vector<144x128xf32>
    %c0_359 = arith.constant 0 : index
    %c0_360 = arith.constant 0 : index
    %316 = vector.load %arg5[%c0_359, %c0_360] : memref<1x128xf32, #tpu.memory_space<vmem>>, vector<1x128xf32>
    %317 = vector.broadcast %316 : vector<1x128xf32> to vector<144x128xf32>
    %318 = arith.addf %315, %317 : vector<144x128xf32>
    %cst_361 = arith.constant 0.000000e+00 : f32
    %319 = vector.broadcast %cst_361 : f32 to vector<144x128xf32>
    %320 = arith.maximumf %318, %319 : vector<144x128xf32>
    %c0_362 = arith.constant 0 : index
    %c0_363 = arith.constant 0 : index
    %321 = vector.load %arg15[%c0_362, %c0_363] : memref<144x128xf32, #tpu.memory_space<vmem>>, vector<144x128xf32>
    tpu.vector_store %arg15[%c0_362, %c0_363], %320 {strides = array<i32>} : memref<144x128xf32, #tpu.memory_space<vmem>>, vector<144x128xf32>,
    %c0_364 = arith.constant 0 : index
    %c0_365 = arith.constant 0 : index
    %322 = vector.load %arg15[%c0_364, %c0_365] : memref<144x128xf32, #tpu.memory_space<vmem>>, vector<128x128xf32>
    %c1_366 = arith.constant 1 : index
    %c0_367 = arith.constant 0 : index
    %323 = vector.load %arg15[%c1_366, %c0_367] : memref<144x128xf32, #tpu.memory_space<vmem>>, vector<128x128xf32>
    %324 = arith.maximumf %322, %323 : vector<128x128xf32>
    %c14_368 = arith.constant 14 : index
    %c0_369 = arith.constant 0 : index
    %325 = vector.load %arg15[%c14_368, %c0_369] : memref<144x128xf32, #tpu.memory_space<vmem>>, vector<128x128xf32>
    %c15_370 = arith.constant 15 : index
    %c0_371 = arith.constant 0 : index
    %326 = vector.load %arg15[%c15_370, %c0_371] : memref<144x128xf32, #tpu.memory_space<vmem>>, vector<128x128xf32>
    %327 = arith.maximumf %325, %326 : vector<128x128xf32>
    %328 = arith.maximumf %324, %327 : vector<128x128xf32>
    %c0_372 = arith.constant 0 : index
    %c0_373 = arith.constant 0 : index
    %329 = vector.load %arg16[%c0_372, %c0_373] : memref<128x128xf32, #tpu.memory_space<vmem>>, vector<128x128xf32>
    tpu.vector_store %arg16[%c0_372, %c0_373], %328 {strides = array<i32>} : memref<128x128xf32, #tpu.memory_space<vmem>>, vector<128x128xf32>,
    %c0_374 = arith.constant 0 : index
    %c0_375 = arith.constant 0 : index
    %330 = vector.load %arg16[%c0_374, %c0_375] : memref<128x128xf32, #tpu.memory_space<vmem>>, vector<1x16xf32>
    %c1_376 = arith.constant 1 : index
    %c0_377 = arith.constant 0 : index
    %331 = vector.load %arg17[%c1_376, %c0_377] : memref<2x512xf32, #tpu.memory_space<vmem>>, vector<1x16xf32>
    tpu.vector_store %arg17[%c1_376, %c0_377], %330 {strides = array<i32>} : memref<2x512xf32, #tpu.memory_space<vmem>>, vector<1x16xf32>,
    %c2_378 = arith.constant 2 : index
    %c0_379 = arith.constant 0 : index
    %332 = vector.load %arg16[%c2_378, %c0_379] : memref<128x128xf32, #tpu.memory_space<vmem>>, vector<1x16xf32>
    %c1_380 = arith.constant 1 : index
    %c16_381 = arith.constant 16 : index
    %333 = vector.load %arg17[%c1_380, %c16_381] : memref<2x512xf32, #tpu.memory_space<vmem>>, vector<1x16xf32>
    tpu.vector_store %arg17[%c1_380, %c16_381], %332 {strides = array<i32>} : memref<2x512xf32, #tpu.memory_space<vmem>>, vector<1x16xf32>,
    %c4_382 = arith.constant 4 : index
    %c0_383 = arith.constant 0 : index
    %334 = vector.load %arg16[%c4_382, %c0_383] : memref<128x128xf32, #tpu.memory_space<vmem>>, vector<1x16xf32>
    %c1_384 = arith.constant 1 : index
    %c32_385 = arith.constant 32 : index
    %335 = vector.load %arg17[%c1_384, %c32_385] : memref<2x512xf32, #tpu.memory_space<vmem>>, vector<1x16xf32>
    tpu.vector_store %arg17[%c1_384, %c32_385], %334 {strides = array<i32>} : memref<2x512xf32, #tpu.memory_space<vmem>>, vector<1x16xf32>,
    %c6_386 = arith.constant 6 : index
    %c0_387 = arith.constant 0 : index
    %336 = vector.load %arg16[%c6_386, %c0_387] : memref<128x128xf32, #tpu.memory_space<vmem>>, vector<1x16xf32>
    %c1_388 = arith.constant 1 : index
    %c48_389 = arith.constant 48 : index
    %337 = vector.load %arg17[%c1_388, %c48_389] : memref<2x512xf32, #tpu.memory_space<vmem>>, vector<1x16xf32>
    tpu.vector_store %arg17[%c1_388, %c48_389], %336 {strides = array<i32>} : memref<2x512xf32, #tpu.memory_space<vmem>>, vector<1x16xf32>,
    %c8_390 = arith.constant 8 : index
    %c0_391 = arith.constant 0 : index
    %338 = vector.load %arg16[%c8_390, %c0_391] : memref<128x128xf32, #tpu.memory_space<vmem>>, vector<1x16xf32>
    %c1_392 = arith.constant 1 : index
    %c64_393 = arith.constant 64 : index
    %339 = vector.load %arg17[%c1_392, %c64_393] : memref<2x512xf32, #tpu.memory_space<vmem>>, vector<1x16xf32>
    tpu.vector_store %arg17[%c1_392, %c64_393], %338 {strides = array<i32>} : memref<2x512xf32, #tpu.memory_space<vmem>>, vector<1x16xf32>,
    %c28_394 = arith.constant 28 : index
    %c0_395 = arith.constant 0 : index
    %340 = vector.load %arg16[%c28_394, %c0_395] : memref<128x128xf32, #tpu.memory_space<vmem>>, vector<1x16xf32>
    %c1_396 = arith.constant 1 : index
    %c80_397 = arith.constant 80 : index
    %341 = vector.load %arg17[%c1_396, %c80_397] : memref<2x512xf32, #tpu.memory_space<vmem>>, vector<1x16xf32>
    tpu.vector_store %arg17[%c1_396, %c80_397], %340 {strides = array<i32>} : memref<2x512xf32, #tpu.memory_space<vmem>>, vector<1x16xf32>,
    %c30_398 = arith.constant 30 : index
    %c0_399 = arith.constant 0 : index
    %342 = vector.load %arg16[%c30_398, %c0_399] : memref<128x128xf32, #tpu.memory_space<vmem>>, vector<1x16xf32>
    %c1_400 = arith.constant 1 : index
    %c96_401 = arith.constant 96 : index
    %343 = vector.load %arg17[%c1_400, %c96_401] : memref<2x512xf32, #tpu.memory_space<vmem>>, vector<1x16xf32>
    tpu.vector_store %arg17[%c1_400, %c96_401], %342 {strides = array<i32>} : memref<2x512xf32, #tpu.memory_space<vmem>>, vector<1x16xf32>,
    %c32_402 = arith.constant 32 : index
    %c0_403 = arith.constant 0 : index
    %344 = vector.load %arg16[%c32_402, %c0_403] : memref<128x128xf32, #tpu.memory_space<vmem>>, vector<1x16xf32>
    %c1_404 = arith.constant 1 : index
    %c112_405 = arith.constant 112 : index
    %345 = vector.load %arg17[%c1_404, %c112_405] : memref<2x512xf32, #tpu.memory_space<vmem>>, vector<1x16xf32>
    tpu.vector_store %arg17[%c1_404, %c112_405], %344 {strides = array<i32>} : memref<2x512xf32, #tpu.memory_space<vmem>>, vector<1x16xf32>,
    %c34_406 = arith.constant 34 : index
    %c0_407 = arith.constant 0 : index
    %346 = vector.load %arg16[%c34_406, %c0_407] : memref<128x128xf32, #tpu.memory_space<vmem>>, vector<1x16xf32>
    %c1_408 = arith.constant 1 : index
    %c128_409 = arith.constant 128 : index
    %347 = vector.load %arg17[%c1_408, %c128_409] : memref<2x512xf32, #tpu.memory_space<vmem>>, vector<1x16xf32>
    tpu.vector_store %arg17[%c1_408, %c128_409], %346 {strides = array<i32>} : memref<2x512xf32, #tpu.memory_space<vmem>>, vector<1x16xf32>,
    %c36_410 = arith.constant 36 : index
    %c0_411 = arith.constant 0 : index
    %348 = vector.load %arg16[%c36_410, %c0_411] : memref<128x128xf32, #tpu.memory_space<vmem>>, vector<1x16xf32>
    %c1_412 = arith.constant 1 : index
    %c144_413 = arith.constant 144 : index
    %349 = vector.load %arg17[%c1_412, %c144_413] : memref<2x512xf32, #tpu.memory_space<vmem>>, vector<1x16xf32>
    tpu.vector_store %arg17[%c1_412, %c144_413], %348 {strides = array<i32>} : memref<2x512xf32, #tpu.memory_space<vmem>>, vector<1x16xf32>,
    %c56_414 = arith.constant 56 : index
    %c0_415 = arith.constant 0 : index
    %350 = vector.load %arg16[%c56_414, %c0_415] : memref<128x128xf32, #tpu.memory_space<vmem>>, vector<1x16xf32>
    %c1_416 = arith.constant 1 : index
    %c160_417 = arith.constant 160 : index
    %351 = vector.load %arg17[%c1_416, %c160_417] : memref<2x512xf32, #tpu.memory_space<vmem>>, vector<1x16xf32>
    tpu.vector_store %arg17[%c1_416, %c160_417], %350 {strides = array<i32>} : memref<2x512xf32, #tpu.memory_space<vmem>>, vector<1x16xf32>,
    %c58_418 = arith.constant 58 : index
    %c0_419 = arith.constant 0 : index
    %352 = vector.load %arg16[%c58_418, %c0_419] : memref<128x128xf32, #tpu.memory_space<vmem>>, vector<1x16xf32>
    %c1_420 = arith.constant 1 : index
    %c176_421 = arith.constant 176 : index
    %353 = vector.load %arg17[%c1_420, %c176_421] : memref<2x512xf32, #tpu.memory_space<vmem>>, vector<1x16xf32>
    tpu.vector_store %arg17[%c1_420, %c176_421], %352 {strides = array<i32>} : memref<2x512xf32, #tpu.memory_space<vmem>>, vector<1x16xf32>,
    %c60_422 = arith.constant 60 : index
    %c0_423 = arith.constant 0 : index
    %354 = vector.load %arg16[%c60_422, %c0_423] : memref<128x128xf32, #tpu.memory_space<vmem>>, vector<1x16xf32>
    %c1_424 = arith.constant 1 : index
    %c192_425 = arith.constant 192 : index
    %355 = vector.load %arg17[%c1_424, %c192_425] : memref<2x512xf32, #tpu.memory_space<vmem>>, vector<1x16xf32>
    tpu.vector_store %arg17[%c1_424, %c192_425], %354 {strides = array<i32>} : memref<2x512xf32, #tpu.memory_space<vmem>>, vector<1x16xf32>,
    %c62_426 = arith.constant 62 : index
    %c0_427 = arith.constant 0 : index
    %356 = vector.load %arg16[%c62_426, %c0_427] : memref<128x128xf32, #tpu.memory_space<vmem>>, vector<1x16xf32>
    %c1_428 = arith.constant 1 : index
    %c208_429 = arith.constant 208 : index
    %357 = vector.load %arg17[%c1_428, %c208_429] : memref<2x512xf32, #tpu.memory_space<vmem>>, vector<1x16xf32>
    tpu.vector_store %arg17[%c1_428, %c208_429], %356 {strides = array<i32>} : memref<2x512xf32, #tpu.memory_space<vmem>>, vector<1x16xf32>,
    %c64_430 = arith.constant 64 : index
    %c0_431 = arith.constant 0 : index
    %358 = vector.load %arg16[%c64_430, %c0_431] : memref<128x128xf32, #tpu.memory_space<vmem>>, vector<1x16xf32>
    %c1_432 = arith.constant 1 : index
    %c224_433 = arith.constant 224 : index
    %359 = vector.load %arg17[%c1_432, %c224_433] : memref<2x512xf32, #tpu.memory_space<vmem>>, vector<1x16xf32>
    tpu.vector_store %arg17[%c1_432, %c224_433], %358 {strides = array<i32>} : memref<2x512xf32, #tpu.memory_space<vmem>>, vector<1x16xf32>,
    %c84_434 = arith.constant 84 : index
    %c0_435 = arith.constant 0 : index
    %360 = vector.load %arg16[%c84_434, %c0_435] : memref<128x128xf32, #tpu.memory_space<vmem>>, vector<1x16xf32>
    %c1_436 = arith.constant 1 : index
    %c240_437 = arith.constant 240 : index
    %361 = vector.load %arg17[%c1_436, %c240_437] : memref<2x512xf32, #tpu.memory_space<vmem>>, vector<1x16xf32>
    tpu.vector_store %arg17[%c1_436, %c240_437], %360 {strides = array<i32>} : memref<2x512xf32, #tpu.memory_space<vmem>>, vector<1x16xf32>,
    %c86_438 = arith.constant 86 : index
    %c0_439 = arith.constant 0 : index
    %362 = vector.load %arg16[%c86_438, %c0_439] : memref<128x128xf32, #tpu.memory_space<vmem>>, vector<1x16xf32>
    %c1_440 = arith.constant 1 : index
    %c256_441 = arith.constant 256 : index
    %363 = vector.load %arg17[%c1_440, %c256_441] : memref<2x512xf32, #tpu.memory_space<vmem>>, vector<1x16xf32>
    tpu.vector_store %arg17[%c1_440, %c256_441], %362 {strides = array<i32>} : memref<2x512xf32, #tpu.memory_space<vmem>>, vector<1x16xf32>,
    %c88_442 = arith.constant 88 : index
    %c0_443 = arith.constant 0 : index
    %364 = vector.load %arg16[%c88_442, %c0_443] : memref<128x128xf32, #tpu.memory_space<vmem>>, vector<1x16xf32>
    %c1_444 = arith.constant 1 : index
    %c272_445 = arith.constant 272 : index
    %365 = vector.load %arg17[%c1_444, %c272_445] : memref<2x512xf32, #tpu.memory_space<vmem>>, vector<1x16xf32>
    tpu.vector_store %arg17[%c1_444, %c272_445], %364 {strides = array<i32>} : memref<2x512xf32, #tpu.memory_space<vmem>>, vector<1x16xf32>,
    %c90_446 = arith.constant 90 : index
    %c0_447 = arith.constant 0 : index
    %366 = vector.load %arg16[%c90_446, %c0_447] : memref<128x128xf32, #tpu.memory_space<vmem>>, vector<1x16xf32>
    %c1_448 = arith.constant 1 : index
    %c288_449 = arith.constant 288 : index
    %367 = vector.load %arg17[%c1_448, %c288_449] : memref<2x512xf32, #tpu.memory_space<vmem>>, vector<1x16xf32>
    tpu.vector_store %arg17[%c1_448, %c288_449], %366 {strides = array<i32>} : memref<2x512xf32, #tpu.memory_space<vmem>>, vector<1x16xf32>,
    %c92_450 = arith.constant 92 : index
    %c0_451 = arith.constant 0 : index
    %368 = vector.load %arg16[%c92_450, %c0_451] : memref<128x128xf32, #tpu.memory_space<vmem>>, vector<1x16xf32>
    %c1_452 = arith.constant 1 : index
    %c304_453 = arith.constant 304 : index
    %369 = vector.load %arg17[%c1_452, %c304_453] : memref<2x512xf32, #tpu.memory_space<vmem>>, vector<1x16xf32>
    tpu.vector_store %arg17[%c1_452, %c304_453], %368 {strides = array<i32>} : memref<2x512xf32, #tpu.memory_space<vmem>>, vector<1x16xf32>,
    %c112_454 = arith.constant 112 : index
    %c0_455 = arith.constant 0 : index
    %370 = vector.load %arg16[%c112_454, %c0_455] : memref<128x128xf32, #tpu.memory_space<vmem>>, vector<1x16xf32>
    %c1_456 = arith.constant 1 : index
    %c320_457 = arith.constant 320 : index
    %371 = vector.load %arg17[%c1_456, %c320_457] : memref<2x512xf32, #tpu.memory_space<vmem>>, vector<1x16xf32>
    tpu.vector_store %arg17[%c1_456, %c320_457], %370 {strides = array<i32>} : memref<2x512xf32, #tpu.memory_space<vmem>>, vector<1x16xf32>,
    %c114_458 = arith.constant 114 : index
    %c0_459 = arith.constant 0 : index
    %372 = vector.load %arg16[%c114_458, %c0_459] : memref<128x128xf32, #tpu.memory_space<vmem>>, vector<1x16xf32>
    %c1_460 = arith.constant 1 : index
    %c336_461 = arith.constant 336 : index
    %373 = vector.load %arg17[%c1_460, %c336_461] : memref<2x512xf32, #tpu.memory_space<vmem>>, vector<1x16xf32>
    tpu.vector_store %arg17[%c1_460, %c336_461], %372 {strides = array<i32>} : memref<2x512xf32, #tpu.memory_space<vmem>>, vector<1x16xf32>,
    %c116_462 = arith.constant 116 : index
    %c0_463 = arith.constant 0 : index
    %374 = vector.load %arg16[%c116_462, %c0_463] : memref<128x128xf32, #tpu.memory_space<vmem>>, vector<1x16xf32>
    %c1_464 = arith.constant 1 : index
    %c352_465 = arith.constant 352 : index
    %375 = vector.load %arg17[%c1_464, %c352_465] : memref<2x512xf32, #tpu.memory_space<vmem>>, vector<1x16xf32>
    tpu.vector_store %arg17[%c1_464, %c352_465], %374 {strides = array<i32>} : memref<2x512xf32, #tpu.memory_space<vmem>>, vector<1x16xf32>,
    %c118_466 = arith.constant 118 : index
    %c0_467 = arith.constant 0 : index
    %376 = vector.load %arg16[%c118_466, %c0_467] : memref<128x128xf32, #tpu.memory_space<vmem>>, vector<1x16xf32>
    %c1_468 = arith.constant 1 : index
    %c368_469 = arith.constant 368 : index
    %377 = vector.load %arg17[%c1_468, %c368_469] : memref<2x512xf32, #tpu.memory_space<vmem>>, vector<1x16xf32>
    tpu.vector_store %arg17[%c1_468, %c368_469], %376 {strides = array<i32>} : memref<2x512xf32, #tpu.memory_space<vmem>>, vector<1x16xf32>,
    %c120_470 = arith.constant 120 : index
    %c0_471 = arith.constant 0 : index
    %378 = vector.load %arg16[%c120_470, %c0_471] : memref<128x128xf32, #tpu.memory_space<vmem>>, vector<1x16xf32>
    %c1_472 = arith.constant 1 : index
    %c384_473 = arith.constant 384 : index
    %379 = vector.load %arg17[%c1_472, %c384_473] : memref<2x512xf32, #tpu.memory_space<vmem>>, vector<1x16xf32>
    tpu.vector_store %arg17[%c1_472, %c384_473], %378 {strides = array<i32>} : memref<2x512xf32, #tpu.memory_space<vmem>>, vector<1x16xf32>,
    %c0_474 = arith.constant 0 : index
    %c0_475 = arith.constant 0 : index
    %380 = vector.load %arg17[%c0_474, %c0_475] : memref<2x512xf32, #tpu.memory_space<vmem>>, vector<2x512xf32>
    %381 = arith.truncf %380 : vector<2x512xf32> to vector<2x512xbf16>
    %c0_476 = arith.constant 0 : index
    %c0_477 = arith.constant 0 : index
    %382 = vector.load %arg6[%c0_476, %c0_477] : memref<512x128xbf16, #tpu.memory_space<vmem>>, vector<512x128xbf16>
    %cst_478 = arith.constant dense<0.000000e+00> : vector<2x128xf32>
    %383 = tpu.matmul %381, %382, %cst_478 {dimension_numbers = #tpu.dot_dimension_numbers<[1], [0], [0], [1], [0, 0, 1, 1], [], []>} : vector<2x512xbf16>, vector<512x128xbf16>, vector<2x128xf32> -> vector<2x128xf32>
    %c0_479 = arith.constant 0 : index
    %c0_480 = arith.constant 0 : index
    %384 = vector.load %arg7[%c0_479, %c0_480] : memref<1x128xf32, #tpu.memory_space<vmem>>, vector<1x128xf32>
    %385 = vector.broadcast %384 : vector<1x128xf32> to vector<2x128xf32>
    %386 = arith.addf %383, %385 : vector<2x128xf32>
    %cst_481 = arith.constant 0.000000e+00 : f32
    %387 = vector.broadcast %cst_481 : f32 to vector<2x128xf32>
    %388 = arith.maximumf %386, %387 : vector<2x128xf32>
    %389 = arith.truncf %388 : vector<2x128xf32> to vector<2x128xbf16>
    %c0_482 = arith.constant 0 : index
    %c0_483 = arith.constant 0 : index
    %390 = vector.load %arg8[%c0_482, %c0_483] : memref<128x128xbf16, #tpu.memory_space<vmem>>, vector<128x128xbf16>
    %cst_484 = arith.constant dense<0.000000e+00> : vector<2x128xf32>
    %391 = tpu.matmul %389, %390, %cst_484 {dimension_numbers = #tpu.dot_dimension_numbers<[1], [0], [0], [1], [0, 0, 1, 1], [], []>} : vector<2x128xbf16>, vector<128x128xbf16>, vector<2x128xf32> -> vector<2x128xf32>
    %c0_485 = arith.constant 0 : index
    %c0_486 = arith.constant 0 : index
    %392 = vector.load %arg9[%c0_485, %c0_486] : memref<1x128xf32, #tpu.memory_space<vmem>>, vector<1x128xf32>
    %393 = vector.broadcast %392 : vector<1x128xf32> to vector<2x128xf32>
    %394 = arith.addf %391, %393 : vector<2x128xf32>
    %cst_487 = arith.constant 0.000000e+00 : f32
    %395 = vector.broadcast %cst_487 : f32 to vector<2x128xf32>
    %396 = arith.maximumf %394, %395 : vector<2x128xf32>
    %397 = arith.truncf %396 : vector<2x128xf32> to vector<2x128xbf16>
    %c0_488 = arith.constant 0 : index
    %c0_489 = arith.constant 0 : index
    %398 = vector.load %arg10[%c0_488, %c0_489] : memref<128x128xbf16, #tpu.memory_space<vmem>>, vector<128x128xbf16>
    %cst_490 = arith.constant dense<0.000000e+00> : vector<2x128xf32>
    %399 = tpu.matmul %397, %398, %cst_490 {dimension_numbers = #tpu.dot_dimension_numbers<[1], [0], [0], [1], [0, 0, 1, 1], [], []>} : vector<2x128xbf16>, vector<128x128xbf16>, vector<2x128xf32> -> vector<2x128xf32>
    %c0_491 = arith.constant 0 : index
    %c0_492 = arith.constant 0 : index
    %400 = vector.load %arg11[%c0_491, %c0_492] : memref<1x128xf32, #tpu.memory_space<vmem>>, vector<1x128xf32>
    %401 = vector.broadcast %400 : vector<1x128xf32> to vector<2x128xf32>
    %402 = arith.addf %399, %401 : vector<2x128xf32>
    %c0_493 = arith.constant 0 : index
    %c0_494 = arith.constant 0 : index
    %403 = vector.load %arg12[%c0_493, %c0_494] : memref<2x128xf32, #tpu.memory_space<vmem>>, vector<2x128xf32>
    tpu.vector_store %arg12[%c0_493, %c0_494], %402 {strides = array<i32>} : memref<2x128xf32, #tpu.memory_space<vmem>>, vector<2x128xf32>,
    return
  }
  func.func @transform_0(%arg0: i32) -> (i32, i32, i32) {
    %c0_i32 = arith.constant 0 : i32
    %c0_i32_0 = arith.constant 0 : i32
    %c0_i32_1 = arith.constant 0 : i32
    return %arg0, %c0_i32, %c0_i32_0 : i32, i32, i32
  }
  func.func @transform_1(%arg0: i32) -> (i32, i32) {
    %c0_i32 = arith.constant 0 : i32
    %c0_i32_0 = arith.constant 0 : i32
    %c0_i32_1 = arith.constant 0 : i32
    return %c0_i32, %c0_i32_0 : i32, i32
  }
  func.func @transform_2(%arg0: i32) -> (i32, i32) {
    %c0_i32 = arith.constant 0 : i32
    %c0_i32_0 = arith.constant 0 : i32
    %c0_i32_1 = arith.constant 0 : i32
    return %c0_i32, %c0_i32_0 : i32, i32
  }
  func.func @transform_3(%arg0: i32) -> (i32, i32) {
    %c0_i32 = arith.constant 0 : i32
    %c0_i32_0 = arith.constant 0 : i32
    %c0_i32_1 = arith.constant 0 : i32
    return %c0_i32, %c0_i32_0 : i32, i32
  }
  func.func @transform_4(%arg0: i32) -> (i32, i32) {
    %c0_i32 = arith.constant 0 : i32
    %c0_i32_0 = arith.constant 0 : i32
    %c0_i32_1 = arith.constant 0 : i32
    return %c0_i32, %c0_i32_0 : i32, i32
  }
  func.func @transform_5(%arg0: i32) -> (i32, i32) {
    %c0_i32 = arith.constant 0 : i32
    %c0_i32_0 = arith.constant 0 : i32
    %c0_i32_1 = arith.constant 0 : i32
    return %c0_i32, %c0_i32_0 : i32, i32
  }
  func.func @transform_6(%arg0: i32) -> (i32, i32) {
    %c0_i32 = arith.constant 0 : i32
    %c0_i32_0 = arith.constant 0 : i32
    %c0_i32_1 = arith.constant 0 : i32
    return %c0_i32, %c0_i32_0 : i32, i32
  }
  func.func @transform_7(%arg0: i32) -> (i32, i32) {
    %c0_i32 = arith.constant 0 : i32
    %c0_i32_0 = arith.constant 0 : i32
    %c0_i32_1 = arith.constant 0 : i32
    return %c0_i32, %c0_i32_0 : i32, i32
  }
  func.func @transform_8(%arg0: i32) -> (i32, i32) {
    %c0_i32 = arith.constant 0 : i32
    %c0_i32_0 = arith.constant 0 : i32
    %c0_i32_1 = arith.constant 0 : i32
    return %c0_i32, %c0_i32_0 : i32, i32
  }
  func.func @transform_9(%arg0: i32) -> (i32, i32) {
    %c0_i32 = arith.constant 0 : i32
    %c0_i32_0 = arith.constant 0 : i32
    %c0_i32_1 = arith.constant 0 : i32
    return %c0_i32, %c0_i32_0 : i32, i32
  }
  func.func @transform_10(%arg0: i32) -> (i32, i32) {
    %c0_i32 = arith.constant 0 : i32
    %c0_i32_0 = arith.constant 0 : i32
    %c0_i32_1 = arith.constant 0 : i32
    return %c0_i32, %c0_i32_0 : i32, i32
  }
  func.func @transform_11(%arg0: i32) -> (i32, i32) {
    %c0_i32 = arith.constant 0 : i32
    %c0_i32_0 = arith.constant 0 : i32
    return %arg0, %c0_i32 : i32, i32
  }
}

</mosaic_0001>

<bundles_post_ra>
// kernel: net_forward.1
= control target key start
LH: loop header
LB: loop body
LE: loop exit
PB: predicated region body
PF: predicated region fallthrough
CT: control target
= control target key end

     0   :  { %v10412_v1 = vmov 0.0   ;;  %vm13766_vm0 = vmmov 0   ;;  %s13720_s0 = inlined_call_operand.vmem [shape: bf16[2,832,128], index: 0, kind: input, shape index: {}]   ;;  %s13721_s1 = inlined_call_operand.vmem [shape: bf16[128,128], index: 1, kind: input, shape index: {}]   ;;  %s13722_s2 = inlined_call_operand.vmem [shape: f32[1,128], index: 2, kind: input, shape index: {}]   ;;  %s13723_s3 = inlined_call_operand.vmem [shape: bf16[256,128], index: 3, kind: input, shape index: {}]   ;;  %s13724_s4 = inlined_call_operand.vmem [shape: f32[1,128], index: 4, kind: input, shape index: {}]   ;;  %s13725_s5 = inlined_call_operand.vmem [shape: bf16[512,128], index: 5, kind: input, shape index: {}]   ;;  %s13726_s6 = inlined_call_operand.vmem [shape: f32[1,128], index: 6, kind: input, shape index: {}]   ;;  %s13727_s7 = inlined_call_operand.vmem [shape: bf16[128,128], index: 7, kind: input, shape index: {}]   ;;  %s13728_s8 = inlined_call_operand.vmem [shape: f32[1,128], index: 8, kind: input, shape index: {}]   ;;  %s13729_s9 = inlined_call_operand.vmem [shape: bf16[128,128], index: 9, kind: input, shape index: {}]   ;;  %s13730_s10 = inlined_call_operand.vmem [shape: f32[1,128], index: 10, kind: input, shape index: {}]   ;;  %s13731_s11 = inlined_call_operand.hbm [shape: f32[2,128], index: 11, kind: output, shape index: {}]  }
   0x1   :  { %v10128_v0 = vld [vmem:[%s13721_s1] sm:$0xff]   ;;  %9524 = vmatprep.subr.bf16.mxu0 %v10412_v1  ;;  %58 = vst [vmem:[#allocation6] sm:$0xff] %v10412_v1  ;;  %9592 = vmatprep.subr.bf16.mxu1 %v10412_v1  ;;  %v10129_v2 = vld [vmem:[%s13721_s1 + $0x8] sm:$0xff]   ;;  %v10130_v5 = vld [vmem:[%s13721_s1 + $0x10] sm:$0xff]  }
   0x2   :  { %9525 = vmatpush3.bf16.msra.mxu0 %v10128_v0  ;;  %9540 = vmatprep.mubr.msk.bf16.mxu0 %vm13766_vm0, %v10412_v1  ;;  %v10131_v3 = vld [vmem:[%s13721_s1] sm:$0xff]   ;;  %v10133_v4 = vld [vmem:[%s13721_s1 + $0x8] sm:$0xff]   ;;  %v10135_v6 = vld [vmem:[%s13721_s1 + $0x10] sm:$0xff]  }
   0x3   :  { %9526 = vmatprep.subr.bf16.mxu0 %v10412_v1  ;;  %9608 = vmatprep.mubr.msk.bf16.mxu1 %vm13766_vm0, %v10412_v1  ;;  %v10132_v7 = vld [vmem:[%s13721_s1 + $0x18] sm:$0xff]   ;;  %v10134_v9 = vld [vmem:[%s13721_s1 + $0x20] sm:$0xff]   ;;  %v10136_v11 = vld [vmem:[%s13721_s1 + $0x28] sm:$0xff]  }
   0x4   :  { %9593 = vmatpush3.bf16.msra.mxu1 %v10131_v3  ;;  %v10137_v8 = vld [vmem:[%s13721_s1 + $0x18] sm:$0xff]   ;;  %v10139_v10 = vld [vmem:[%s13721_s1 + $0x20] sm:$0xff]   ;;  %v10141_v12 = vld [vmem:[%s13721_s1 + $0x28] sm:$0xff]  }
   0x5   :  { %9594 = vmatprep.subr.bf16.mxu1 %v10412_v1  ;;  %v10138_v13 = vld [vmem:[%s13721_s1 + $0x30] sm:$0xff]   ;;  %v10140_v15 = vld [vmem:[%s13721_s1 + $0x38] sm:$0xff]   ;;  %v10142_v16 = vld [vmem:[%s13720_s0] sm:$0xff]  }
   0x6   :  { %9527 = vmatpush3.bf16.msra.mxu0 %v10129_v2  ;;  %v10143_v14 = vld [vmem:[%s13721_s1 + $0x30] sm:$0xff]   ;;  %v10145_v17 = vld [vmem:[%s13721_s1 + $0x38] sm:$0xff]   ;;  %v10144_v18 = vld [vmem:[%s13721_s1] sm:$0xff]  }
   0x7   :  { %9528 = vmatprep.subr.bf16.mxu0 %v10412_v1  ;;  %v10147_v19 = vld [vmem:[%s13720_s0 + $0x68] sm:$0xff]   ;;  %v10148_v20 = vld [vmem:[%s13721_s1] sm:$0xff]   ;;  %v10155_v24 = vld [vmem:[%s13721_s1 + $0x10] sm:$0xff]  }
   0x8   :  { %9595 = vmatpush3.bf16.msra.mxu1 %v10133_v4  ;;  %v10149_v21 = vld [vmem:[%s13721_s1 + $0x8] sm:$0xff]   ;;  %v10151_v25 = vld [vmem:[%s13720_s0 + $0x70] sm:$0xff]   ;;  %v10161_v27 = vld [vmem:[%s13721_s1 + $0x18] sm:$0xff]  }
   0x9   :  { %9596 = vmatprep.subr.bf16.mxu1 %v10412_v1  ;;  %v10146_v22 = vld [vmem:[%s13720_s0 + $0x8] sm:$0xff]   ;;  %v10158_v26 = vld [vmem:[%s13721_s1 + $0x10] sm:$0xff]   ;;  %v10164_v29 = vld [vmem:[%s13721_s1 + $0x18] sm:$0xff]  }
   0xa   :  { %9529 = vmatpush3.bf16.msra.mxu0 %v10130_v5  ;;  %v10154_v23 = vld [vmem:[%s13721_s1 + $0x8] sm:$0xff]   ;;  %v10150_v28 = vld [vmem:[%s13720_s0 + $0x10] sm:$0xff]   ;;  %v10165_v30 = vld [vmem:[%s13721_s1 + $0x20] sm:$0xff]  }
   0xb   :  { %9530 = vmatprep.subr.bf16.mxu0 %v10412_v1  ;;  %v10153_v31 = vld [vmem:[%s13720_s0 + $0x78] sm:$0xff]   ;;  %v10168_v32 = vld [vmem:[%s13721_s1 + $0x20] sm:$0xff]   ;;  %v10171_v33 = vld [vmem:[%s13721_s1 + $0x28] sm:$0xff]  }
   0xc   :  { %9597 = vmatpush3.bf16.msra.mxu1 %v10135_v6  ;;  %v10152_v34 = vld [vmem:[%s13720_s0 + $0x18] sm:$0xff]   ;;  %v10174_v35 = vld [vmem:[%s13721_s1 + $0x28] sm:$0xff]   ;;  %v10175_v36 = vld [vmem:[%s13721_s1 + $0x30] sm:$0xff]  }
   0xd   :  { %9598 = vmatprep.subr.bf16.mxu1 %v10412_v1  ;;  %v10157_v37 = vld [vmem:[%s13720_s0 + $0x80] sm:$0xff]   ;;  %v10180_v38 = vld [vmem:[%s13721_s1 + $0x30] sm:$0xff]   ;;  %v10181_v39 = vld [vmem:[%s13721_s1 + $0x38] sm:$0xff]  }
   0xe   :  { %9531 = vmatpush3.bf16.msra.mxu0 %v10132_v7  ;;  %v10156_v40 = vld [vmem:[%s13720_s0 + $0x20] sm:$0xff]   ;;  %v10184_v41 = vld [vmem:[%s13721_s1 + $0x38] sm:$0xff]   ;;  %v10160_v42 = vld [vmem:[%s13720_s0 + $0x88] sm:$0xff]  }
   0xf   :  { %9532 = vmatprep.subr.bf16.mxu0 %v10412_v1  ;;  %v10159_v43 = vld [vmem:[%s13720_s0 + $0x28] sm:$0xff]   ;;  %v10163_v44 = vld [vmem:[%s13720_s0 + $0x90] sm:$0xff]   ;;  %v10167_v46 = vld [vmem:[%s13720_s0 + $0x98] sm:$0xff]  }
  0x10   :  { %9599 = vmatpush3.bf16.msra.mxu1 %v10137_v8  ;;  %v10162_v45 = vld [vmem:[%s13720_s0 + $0x30] sm:$0xff]   ;;  %v10166_v47 = vld [vmem:[%s13720_s0 + $0x38] sm:$0xff]   ;;  %v10170_v48 = vld [vmem:[%s13720_s0 + $0xa0] sm:$0xff]  }
  0x11   :  { %9600 = vmatprep.subr.bf16.mxu1 %v10412_v1  ;;  %v10169_v49 = vld [vmem:[%s13720_s0 + $0x40] sm:$0xff]   ;;  %v10173_v50 = vld [vmem:[%s13720_s0 + $0xa8] sm:$0xff]   ;;  %v10177_v52 = vld [vmem:[%s13720_s0 + $0xb0] sm:$0xff]  }
  0x12   :  { %9533 = vmatpush3.bf16.msra.mxu0 %v10134_v9  ;;  %v10172_v51 = vld [vmem:[%s13720_s0 + $0x48] sm:$0xff]   ;;  %v10176_v53 = vld [vmem:[%s13720_s0 + $0x50] sm:$0xff]   ;;  %v10179_v54 = vld [vmem:[%s13720_s0 + $0xb8] sm:$0xff]  }
  0x13   :  { %9534 = vmatprep.subr.bf16.mxu0 %v10412_v1  ;;  %v10178_v55 = vld [vmem:[%s13720_s0 + $0x58] sm:$0xff]   ;;  %v10183_v56 = vld [vmem:[%s13720_s0 + $0xc0] sm:$0xff]   ;;  %v10185_v58 = vld [vmem:[%s13720_s0 + $0xc8] sm:$0xff]  }
  0x14   :  { %9601 = vmatpush3.bf16.msra.mxu1 %v10139_v10  ;;  %v10182_v57 = vld [vmem:[%s13720_s0 + $0x60] sm:$0xff]   ;;  %v10186_v59 = vld [vmem:[%s13720_s0 + $0xd0] sm:$0xff]   ;;  %v10188_v60 = vld [vmem:[%s13720_s0 + $0x138] sm:$0xff]  }
  0x15   :  { %9602 = vmatprep.subr.bf16.mxu1 %v10412_v1  ;;  %v10187_v61 = vld [vmem:[%s13720_s0 + $0xd8] sm:$0xff]   ;;  %v10767_v62 = vld [vmem:[#allocation6] sm:$0xff]  ;;  %v10190_v63 = vld [vmem:[%s13720_s0 + $0x140] sm:$0xff]  }
  0x16   :  { %9535 = vmatpush3.bf16.msra.mxu0 %v10136_v11  ;;  %v10189_v0 = vld [vmem:[%s13720_s0 + $0xe0] sm:$0xff]   ;;  %v10191_v2 = vld [vmem:[%s13720_s0 + $0xe8] sm:$0xff]   ;;  %v10194_v3 = vld [vmem:[%s13720_s0 + $0x150] sm:$0xff]  }
  0x17   :  { %9536 = vmatprep.subr.bf16.mxu0 %v10412_v1  ;;  %v10193_v4 = vld [vmem:[%s13720_s0 + $0xf0] sm:$0xff]   ;;  %v10196_v5 = vld [vmem:[%s13720_s0 + $0x158] sm:$0xff]   ;;  %v10198_v7 = vld [vmem:[%s13720_s0 + $0x160] sm:$0xff]  }
  0x18   :  { %9603 = vmatpush3.bf16.msra.mxu1 %v10141_v12  ;;  %v10195_v6 = vld [vmem:[%s13720_s0 + $0xf8] sm:$0xff]   ;;  %v10197_v8 = vld [vmem:[%s13720_s0 + $0x100] sm:$0xff]   ;;  %v10200_v9 = vld [vmem:[%s13720_s0 + $0x168] sm:$0xff]  }
  0x19   :  { %9604 = vmatprep.subr.bf16.mxu1 %v10412_v1  ;;  %v10199_v10 = vld [vmem:[%s13720_s0 + $0x108] sm:$0xff]   ;;  %v10202_v11 = vld [vmem:[%s13720_s0 + $0x170] sm:$0xff]  }
  0x1a   :  { %9537 = vmatpush3.bf16.msra.mxu0 %v10138_v13 }
  0x1b   :  { %9538 = vmatprep.subr.bf16.mxu0 %v10412_v1 }
  0x1c   :  { %9605 = vmatpush3.bf16.msra.mxu1 %v10143_v14 }
  0x1d   :  { %9606 = vmatprep.subr.bf16.mxu1 %v10412_v1 }
  0x1e   :  { %9539 = vmatpush3.bf16.msra.mxu0 %v10140_v15 }
  0x1f   :  { %9660 = vmatprep.subr.bf16.mxu0 %v10412_v1 }
  0x20   :  { %9607 = vmatpush3.bf16.msra.mxu1 %v10145_v17 }
  0x21   :  { %9541 = vmatmul.mubr.bf16.vlgmr.msra.gmra.mrb[0].mxu0 %v10142_v16  ;;  %9728 = vmatprep.subr.bf16.mxu1 %v10412_v1 }
  0x22   :  { %9661 = vmatpush3.bf16.msra.mxu0 %v10144_v18  ;;  %9544 = vmatprep.mubr.msk.bf16.mxu0 %vm13766_vm0, %v10412_v1 }
  0x23   :  { %9662 = vmatprep.subr.bf16.mxu0 %v10412_v1  ;;  %9609 = vmatmul.mubr.bf16.vlgmr.msra.gmra.mrb[0].mxu1 %v10147_v19 }
  0x24   :  { %9729 = vmatpush3.bf16.msra.mxu1 %v10148_v20  ;;  %9612 = vmatprep.mubr.msk.bf16.mxu1 %vm13766_vm0, %v10412_v1 }
  0x25   :  { %9730 = vmatprep.subr.bf16.mxu1 %v10412_v1 }
  0x26   :  { %9663 = vmatpush3.bf16.msra.mxu0 %v10149_v21 }
  0x27   :  { %9664 = vmatprep.subr.bf16.mxu0 %v10412_v1 }
  0x28   :  { %9731 = vmatpush3.bf16.msra.mxu1 %v10154_v23 }
  0x29   :  { %9545 = vmatmul.mubr.bf16.gmra.mrb[4].mxu0 %v10146_v22  ;;  %9732 = vmatprep.subr.bf16.mxu1 %v10412_v1 }
  0x2a   :  { %9548 = vmatprep.mubr.msk.bf16.mxu0 %vm13766_vm0, %v10412_v1  ;;  %9665 = vmatpush3.bf16.msra.mxu0 %v10155_v24 }
  0x2b   :  { %9666 = vmatprep.subr.bf16.mxu0 %v10412_v1  ;;  %9613 = vmatmul.mubr.bf16.gmra.mrb[4].mxu1 %v10151_v25 }
  0x2c   :  { %9616 = vmatprep.mubr.msk.bf16.mxu1 %vm13766_vm0, %v10412_v1  ;;  %9733 = vmatpush3.bf16.msra.mxu1 %v10158_v26 }
  0x2d   :  { %9734 = vmatprep.subr.bf16.mxu1 %v10412_v1 }
  0x2e   :  { %9667 = vmatpush3.bf16.msra.mxu0 %v10161_v27 }
  0x2f   :  { %9668 = vmatprep.subr.bf16.mxu0 %v10412_v1 }
  0x30   :  { %9735 = vmatpush3.bf16.msra.mxu1 %v10164_v29 }
  0x31   :  { %9549 = vmatmul.mubr.bf16.gmra.mrb[8].mxu0 %v10150_v28  ;;  %9736 = vmatprep.subr.bf16.mxu1 %v10412_v1 }
  0x32   :  { %9552 = vmatprep.mubr.msk.bf16.mxu0 %vm13766_vm0, %v10412_v1  ;;  %9669 = vmatpush3.bf16.msra.mxu0 %v10165_v30 }
  0x33   :  { %9670 = vmatprep.subr.bf16.mxu0 %v10412_v1  ;;  %9617 = vmatmul.mubr.bf16.gmra.mrb[8].mxu1 %v10153_v31 }
  0x34   :  { %9620 = vmatprep.mubr.msk.bf16.mxu1 %vm13766_vm0, %v10412_v1  ;;  %9737 = vmatpush3.bf16.msra.mxu1 %v10168_v32 }
  0x35   :  { %9738 = vmatprep.subr.bf16.mxu1 %v10412_v1 }
  0x36   :  { %9671 = vmatpush3.bf16.msra.mxu0 %v10171_v33 }
  0x37   :  { %9672 = vmatprep.subr.bf16.mxu0 %v10412_v1 }
  0x38   :  { %9739 = vmatpush3.bf16.msra.mxu1 %v10174_v35 }
  0x39   :  { %9553 = vmatmul.mubr.bf16.gmra.mrb[12].mxu0 %v10152_v34  ;;  %9740 = vmatprep.subr.bf16.mxu1 %v10412_v1 }
  0x3a   :  { %9556 = vmatprep.mubr.msk.bf16.mxu0 %vm13766_vm0, %v10412_v1  ;;  %9673 = vmatpush3.bf16.msra.mxu0 %v10175_v36 }
  0x3b   :  { %9674 = vmatprep.subr.bf16.mxu0 %v10412_v1  ;;  %9621 = vmatmul.mubr.bf16.gmra.mrb[12].mxu1 %v10157_v37 }
  0x3c   :  { %9624 = vmatprep.mubr.msk.bf16.mxu1 %vm13766_vm0, %v10412_v1  ;;  %9741 = vmatpush3.bf16.msra.mxu1 %v10180_v38 }
  0x3d   :  { %9742 = vmatprep.subr.bf16.mxu1 %v10412_v1 }
  0x3e   :  { %9675 = vmatpush3.bf16.msra.mxu0 %v10181_v39 }
  0x40   :  { %9743 = vmatpush3.bf16.msra.mxu1 %v10184_v41 }
  0x41   :  { %9557 = vmatmul.mubr.bf16.gmra.mrb[16].mxu0 %v10156_v40  ;;  %9796 = vmatprep.subr.bf16.mxu1 %v10412_v1 }
  0x42   :  { %9560 = vmatprep.mubr.msk.bf16.mxu0 %vm13766_vm0, %v10412_v1 }
  0x43   :  { %9625 = vmatmul.mubr.bf16.gmra.mrb[16].mxu1 %v10160_v42 }
  0x44   :  { %9628 = vmatprep.mubr.msk.bf16.mxu1 %vm13766_vm0, %v10412_v1 }
  0x49   :  { %9561 = vmatmul.mubr.bf16.gmra.mrb[20].mxu0 %v10159_v43 }
  0x4a   :  { %9564 = vmatprep.mubr.msk.bf16.mxu0 %vm13766_vm0, %v10412_v1 }
  0x4b   :  { %9629 = vmatmul.mubr.bf16.gmra.mrb[20].mxu1 %v10163_v44 }
  0x4c   :  { %9632 = vmatprep.mubr.msk.bf16.mxu1 %vm13766_vm0, %v10412_v1 }
  0x51   :  { %9565 = vmatmul.mubr.bf16.gmra.mrb[24].mxu0 %v10162_v45 }
  0x52   :  { %9568 = vmatprep.mubr.msk.bf16.mxu0 %vm13766_vm0, %v10412_v1 }
  0x53   :  { %9633 = vmatmul.mubr.bf16.gmra.mrb[24].mxu1 %v10167_v46 }
  0x54   :  { %9636 = vmatprep.mubr.msk.bf16.mxu1 %vm13766_vm0, %v10412_v1 }
  0x59   :  { %9569 = vmatmul.mubr.bf16.gmra.mrb[28].mxu0 %v10166_v47 }
  0x5a   :  { %9572 = vmatprep.mubr.msk.bf16.mxu0 %vm13766_vm0, %v10412_v1 }
  0x5b   :  { %9637 = vmatmul.mubr.bf16.gmra.mrb[28].mxu1 %v10170_v48 }
  0x5c   :  { %9640 = vmatprep.mubr.msk.bf16.mxu1 %vm13766_vm0, %v10412_v1 }
  0x61   :  { %9573 = vmatmul.mubr.bf16.gmra.mrb[32].mxu0 %v10169_v49 }
  0x62   :  { %9576 = vmatprep.mubr.msk.bf16.mxu0 %vm13766_vm0, %v10412_v1 }
  0x63   :  { %9641 = vmatmul.mubr.bf16.gmra.mrb[32].mxu1 %v10173_v50 }
  0x64   :  { %9644 = vmatprep.mubr.msk.bf16.mxu1 %vm13766_vm0, %v10412_v1 }
  0x69   :  { %9577 = vmatmul.mubr.bf16.gmra.mrb[36].mxu0 %v10172_v51 }
  0x6a   :  { %9580 = vmatprep.mubr.msk.bf16.mxu0 %vm13766_vm0, %v10412_v1 }
  0x6b   :  { %9645 = vmatmul.mubr.bf16.gmra.mrb[36].mxu1 %v10177_v52 }
  0x6c   :  { %9648 = vmatprep.mubr.msk.bf16.mxu1 %vm13766_vm0, %v10412_v1 }
  0x71   :  { %9581 = vmatmul.mubr.bf16.gmra.mrb[40].mxu0 %v10176_v53 }
  0x72   :  { %9584 = vmatprep.mubr.msk.bf16.mxu0 %vm13766_vm0, %v10412_v1 }
  0x73   :  { %9649 = vmatmul.mubr.bf16.gmra.mrb[40].mxu1 %v10179_v54 }
  0x74   :  { %9652 = vmatprep.mubr.msk.bf16.mxu1 %vm13766_vm0, %v10412_v1 }
  0x79   :  { %9585 = vmatmul.mubr.bf16.gmra.mrb[44].mxu0 %v10178_v55 }
  0x7a   :  { %9588 = vmatprep.mubr.msk.bf16.mxu0 %vm13766_vm0, %v10412_v1 }
  0x7b   :  { %9653 = vmatmul.mubr.bf16.gmra.mrb[44].mxu1 %v10183_v56 }
  0x7c   :  { %9656 = vmatprep.mubr.msk.bf16.mxu1 %vm13766_vm0, %v10412_v1 }
  0x81   :  { %9589 = vmatmul.mubr.bf16.gmra.mrb[48].mxu0 %v10182_v57 }
  0x82   :  { %9676 = vmatprep.mubr.msk.bf16.mxu0 %vm13766_vm0, %v10412_v1 }
  0x83   :  { %9657 = vmatmul.mubr.bf16.gmra.mrb[48].mxu1 %v10185_v58 }
  0x84   :  { %9744 = vmatprep.mubr.msk.bf16.mxu1 %vm13766_vm0, %v10412_v1 }
  0x89   :  { %9677 = vmatmul.mubr.bf16.vlgmr.msra.gmra.mrb[52].mxu0 %v10186_v59 }
  0x8a   :  { %9680 = vmatprep.mubr.msk.bf16.mxu0 %vm13766_vm0, %v10412_v1  ;;  %v10192_v1 = vld [vmem:[%s13720_s0 + $0x148] sm:$0xff]  }
  0x8b   :  { %9745 = vmatmul.mubr.bf16.vlgmr.msra.gmra.mrb[52].mxu1 %v10188_v60 }
  0x8c   :  { %9748 = vmatprep.mubr.msk.bf16.mxu1 %vm13766_vm0, %v10767_v62 }
  0x91   :  { %9681 = vmatmul.mubr.bf16.gmra.mrb[56].mxu0 %v10187_v61 }
  0x92   :  { %9684 = vmatprep.mubr.msk.bf16.mxu0 %vm13766_vm0, %v10767_v62 }
  0x93   :  { %9749 = vmatmul.mubr.bf16.gmra.mrb[56].mxu1 %v10190_v63 }
  0x94   :  { %9752 = vmatprep.mubr.msk.bf16.mxu1 %vm13766_vm0, %v10767_v62 }
  0x99   :  { %9685 = vmatmul.mubr.bf16.gmra.mrb[60].mxu0 %v10189_v0 }
  0x9a   :  { %9688 = vmatprep.mubr.msk.bf16.mxu0 %vm13766_vm0, %v10767_v62 }
  0x9b   :  { %9753 = vmatmul.mubr.bf16.gmra.mrb[60].mxu1 %v10192_v1 }
  0x9c   :  { %9756 = vmatprep.mubr.msk.bf16.mxu1 %vm13766_vm0, %v10767_v62 }
  0xa1   :  { %9689 = vmatmul.mubr.bf16.gmra.mrb[64].mxu0 %v10191_v2 }
  0xa2   :  { %9692 = vmatprep.mubr.msk.bf16.mxu0 %vm13766_vm0, %v10767_v62 }
  0xa3   :  { %9757 = vmatmul.mubr.bf16.gmra.mrb[64].mxu1 %v10194_v3 }
  0xa4   :  { %9760 = vmatprep.mubr.msk.bf16.mxu1 %vm13766_vm0, %v10767_v62 }
  0xa9   :  { %9693 = vmatmul.mubr.bf16.gmra.mrb[68].mxu0 %v10193_v4 }
  0xaa   :  { %9696 = vmatprep.mubr.msk.bf16.mxu0 %vm13766_vm0, %v10767_v62 }
  0xab   :  { %9761 = vmatmul.mubr.bf16.gmra.mrb[68].mxu1 %v10196_v5 }
  0xac   :  { %9764 = vmatprep.mubr.msk.bf16.mxu1 %vm13766_vm0, %v10767_v62 }
  0xb1   :  { %9697 = vmatmul.mubr.bf16.gmra.mrb[72].mxu0 %v10195_v6 }
  0xb2   :  { %9700 = vmatprep.mubr.msk.bf16.mxu0 %vm13766_vm0, %v10767_v62 }
  0xb3   :  { %9765 = vmatmul.mubr.bf16.gmra.mrb[72].mxu1 %v10198_v7 }
  0xb4   :  { %9768 = vmatprep.mubr.msk.bf16.mxu1 %vm13766_vm0, %v10767_v62 }
  0xb9   :  { %9701 = vmatmul.mubr.bf16.gmra.mrb[76].mxu0 %v10197_v8 }
  0xba   :  { %9704 = vmatprep.mubr.msk.bf16.mxu0 %vm13766_vm0, %v10767_v62 }
  0xbb   :  { %9769 = vmatmul.mubr.bf16.gmra.mrb[76].mxu1 %v10200_v9 }
  0xbc   :  { %9772 = vmatprep.mubr.msk.bf16.mxu1 %vm13766_vm0, %v10767_v62 }
  0xc1   :  { %9705 = vmatmul.mubr.bf16.gmra.mrb[80].mxu0 %v10199_v10 }
  0xc2   :  { %16 = vsyncpa [#allocation8], 0  ;;  %9708 = vmatprep.mubr.msk.bf16.mxu0 %vm13766_vm0, %v10767_v62  ;;  %v10201_v12 = vld [vmem:[%s13720_s0 + $0x110] sm:$0xff]   ;;  %v10204_v13 = vld [vmem:[%s13720_s0 + $0x178] sm:$0xff]   ;;  %v10414_v26 = vmov 0   ;;  %vm13741_vm1 = vcmask 64512  }
  0xc3   :  { %9773 = vmatmul.mubr.bf16.gmra.mrb[80].mxu1 %v10202_v11  ;;  %v10203_v14 = vld [vmem:[%s13720_s0 + $0x118] sm:$0xff]   ;;  %v10206_v15 = vld [vmem:[%s13720_s0 + $0x180] sm:$0xff]   ;;  %v10208_v17 = vld [vmem:[%s13720_s0 + $0x188] sm:$0xff]   ;;  %40 = vst [vmem:[#allocation3] sm:$0xff] %v10414_v26  ;;  %s10415_s16 = smov 24   ;;  %s10416_s17 = smov 8  }
  0xc4   :  { %9776 = vmatprep.mubr.msk.bf16.mxu1 %vm13766_vm0, %v10767_v62  ;;  %v10205_v16 = vld [vmem:[%s13720_s0 + $0x120] sm:$0xff]   ;;  %v10207_v18 = vld [vmem:[%s13720_s0 + $0x128] sm:$0xff]   ;;  %v10210_v19 = vld [vmem:[%s13720_s0 + $0x190] sm:$0xff]   ;;  %41 = vst [vmem:[#allocation3 + $0x8] sm:$0xff] %v10414_v26  ;;  %s10417_s18 = smov 32   ;;  %s10418_s19 = smov 16  }
  0xc5   :  { %v10209_v20 = vld [vmem:[%s13720_s0 + $0x130] sm:$0xff]   ;;  %v10211_v21 = vld [vmem:[%s13720_s0 + $0x198] sm:$0xff]   ;;  %v10889_v22 = vld [vmem:[%s13722_s2] ss:$0 sm:$0xff]  ;;  %42 = vst [vmem:[#allocation3 + $0x10] sm:$0xff] %v10414_v26  ;;  %s10419_s20 = smov 48  }
  0xc6   :  { %43 = vst [vmem:[#allocation3 + $0x18] sm:$0xff] %v10414_v26  ;;  %44 = vst [vmem:[#allocation3 + $0x20] sm:$0xff] %v10414_v26  ;;  %s10420_s21 = smov 40   ;;  %s10421_s22 = smov 56   ;;  %vm13740_vm2 = vcmask 60416   ;;  %vm1770_vm3 = vcmask 130112  }
  0xc7   :  { %45 = vst [vmem:[#allocation3 + $0x28] sm:$0xff] %v10414_v26  ;;  %46 = vst [vmem:[#allocation3 + $0x30] sm:$0xff] %v10414_v26  ;;  %s13736_s23 = smov 72   ;;  %s10423_s24 = smov 64   ;;  %vm1843_vm4 = vcmask 195712   ;;  %vm1916_vm5 = vcmask 261312  }
  0xc8   :  { %47 = vst [vmem:[#allocation3 + $0x38] sm:$0xff] %v10414_v26  ;;  %48 = vst [vmem:[#allocation3 + $0x40] sm:$0xff] %v10414_v26  ;;  %s13744_s25 = smov 88   ;;  %s13738_s26 = smov 104   ;;  %vm1989_vm6 = vcmask 326912   ;;  %vm2062_vm7 = vcmask 392512  }
  0xc9   :  { %9709 = vmatmul.mubr.bf16.gmra.mrb[84].mxu0 %v10201_v12  ;;  %49 = vst [vmem:[#allocation3 + $0x48] sm:$0xff] %v10414_v26  ;;  %50 = vst [vmem:[#allocation3 + $0x50] sm:$0xff] %v10414_v26  ;;  %s13742_s27 = smov 80   ;;  %s13734_s30 = smov 96   ;;  %vm2135_vm8 = vcmask 458112   ;;  %vm2208_vm9 = vcmask 523712  }
  0xca   :  { %9712 = vmatprep.mubr.msk.bf16.mxu0 %vm13766_vm0, %v10767_v62  ;;  %51 = vst [vmem:[#allocation3 + $0x58] sm:$0xff] %v10414_v26  ;;  %52 = vst [vmem:[#allocation3 + $0x60] sm:$0xff] %v10414_v26  ;;  %s13732_s12 = smov 112   ;;  %s13768_s13 = smov 120   ;;  %vm2281_vm10 = vcmask 589312   ;;  %vm13753_vm11 = vcmask 654912  }
  0xcb   :  { %9777 = vmatmul.mubr.bf16.gmra.mrb[84].mxu1 %v10204_v13  ;;  %53 = vst [vmem:[#allocation3 + $0x68] sm:$0xff] %v10414_v26  ;;  %54 = vst [vmem:[#allocation3 + $0x70] sm:$0xff] %v10414_v26  ;;  %s13774_s29 = smov 96   ;;  %s13775_s14 = smov 112   ;;  %vm13757_vm12 = vcmask 720512   ;;  %vm13748_vm13 = vcmask 786112  }
  0xcc   :  { %9780 = vmatprep.mubr.msk.bf16.mxu1 %vm13766_vm0, %v10767_v62  ;;  %55 = vst [vmem:[#allocation3 + $0x78] sm:$0xff] %v10414_v26  ;;  %56 = vst [vmem:[#allocation3 + $0x80] sm:$0xff] %v10414_v26  ;;  %s13776_s15 = smov 72   ;;  %vm13747_vm14 = vcmask 851712   ;;  %vm13746_vm15 = vcmask 917312   ;;  %s13810_s28 = smov 80  }
  0xcd   :  { %57 = vst [vmem:[#allocation3 + $0x88] sm:$0xff] %v10414_v26 }
  0xd1   :  { %9713 = vmatmul.mubr.bf16.gmra.mrb[88].mxu0 %v10203_v14 }
  0xd2   :  { %9716 = vmatprep.mubr.msk.bf16.mxu0 %vm13766_vm0, %v10767_v62 }
  0xd3   :  { %9781 = vmatmul.mubr.bf16.gmra.mrb[88].mxu1 %v10206_v15 }
  0xd4   :  { %9784 = vmatprep.mubr.msk.bf16.mxu1 %vm13766_vm0, %v10767_v62 }
  0xd9   :  { %9717 = vmatmul.mubr.bf16.gmra.mrb[92].mxu0 %v10205_v16 }
  0xda   :  { %9720 = vmatprep.mubr.msk.bf16.mxu0 %vm13766_vm0, %v10767_v62 }
  0xdb   :  { %9785 = vmatmul.mubr.bf16.gmra.mrb[92].mxu1 %v10208_v17 }
  0xdc   :  { %9788 = vmatprep.mubr.msk.bf16.mxu1 %vm13766_vm0, %v10767_v62 }
  0xe1   :  { %9721 = vmatmul.mubr.bf16.gmra.mrb[96].mxu0 %v10207_v18 }
  0xe2   :  { %9724 = vmatprep.mubr.msk.bf16.mxu0 %vm13766_vm0, %v10767_v62 }
  0xe3   :  { %9789 = vmatmul.mubr.bf16.gmra.mrb[96].mxu1 %v10210_v19 }
  0xe4   :  { %9792 = vmatprep.mubr.msk.bf16.mxu1 %vm13766_vm0, %v10767_v62 }
  0xe9   :  { %9725 = vmatmul.mubr.bf16.gmra.mrb[100].mxu0 %v10209_v20 }
  0xeb   :  { %9793 = vmatmul.mubr.bf16.gmra.mrb[100].mxu1 %v10211_v21 }
  0xec   :  { %9812 = vmatprep.mubr.msk.bf16.mxu1 %vm13766_vm0, %v10767_v62 }
  0xf4   :  { %v268_v23 = vpop.f32.mrb[0].mxu0 }
  0xf5   :  { %v269_v24 = vadd.f32 %v10889_v22, %v268_v23  ;;  %v9542_v25 = vpop.f32.mrb[1].mxu0 }
  0xf6   :  { %v271_v27 = vpop.f32.mrb[2].mxu0  ;;  %v632_v30 = vpop.f32.mrb[0].mxu1 }
  0xf7   :  { %v272_v28 = vadd.f32 %v10889_v22, %v271_v27  ;;  %v9543_v29 = vpop.f32.mrb[3].mxu0  ;;  %v371_v31 = vmax.f32 %v269_v24, 0.0  ;;  %v633_v32 = vadd.f32 %v10889_v22, %v632_v30  ;;  %v9610_v33 = vpop.f32.mrb[1].mxu1 }
  0xf8   :  { %v635_v34 = vpop.f32.mrb[2].mxu1 }
  0xf9   :  { %v372_v35 = vmax.f32 %v272_v28, 0.0  ;;  %v735_v36 = vmax.f32 %v633_v32, 0.0  ;;  %v636_v37 = vadd.f32 %v10889_v22, %v635_v34  ;;  %v9611_v38 = vpop.f32.mrb[3].mxu1 }
  0xfb   :  { %v10895_v40 = vmax.f32 %v371_v31, %v735_v36  ;;  %v736_v41 = vmax.f32 %v636_v37, 0.0 }
  0xfc   :  { %v276_v39 = vpop.f32.mrb[4].mxu0 }
  0xfd   :  { %v277_v42 = vadd.f32 %v10889_v22, %v276_v39  ;;  %v9546_v43 = vpop.f32.mrb[5].mxu0  ;;  %v10898_v45 = vmax.f32 %v372_v35, %v736_v41 }
  0xfe   :  { %v279_v44 = vpop.f32.mrb[6].mxu0  ;;  %v640_v48 = vpop.f32.mrb[4].mxu1 }
  0xff   :  { %v280_v46 = vadd.f32 %v10889_v22, %v279_v44  ;;  %v9547_v47 = vpop.f32.mrb[7].mxu0  ;;  %v373_v49 = vmax.f32 %v277_v42, 0.0  ;;  %v641_v50 = vadd.f32 %v10889_v22, %v640_v48  ;;  %v9614_v51 = vpop.f32.mrb[5].mxu1 }
 0x100   :  { %v643_v52 = vpop.f32.mrb[6].mxu1 }
 0x101   :  { %v374_v53 = vmax.f32 %v280_v46, 0.0  ;;  %v737_v54 = vmax.f32 %v641_v50, 0.0  ;;  %v644_v55 = vadd.f32 %v10889_v22, %v643_v52  ;;  %v9615_v56 = vpop.f32.mrb[7].mxu1 }
 0x103   :  { %v10903_v58 = vmax.f32 %v373_v49, %v737_v54  ;;  %v738_v59 = vmax.f32 %v644_v55, 0.0 }
 0x104   :  { %v284_v57 = vpop.f32.mrb[8].mxu0 }
 0x105   :  { %v285_v60 = vadd.f32 %v10889_v22, %v284_v57  ;;  %v9550_v61 = vpop.f32.mrb[9].mxu0  ;;  %v10906_v63 = vmax.f32 %v374_v53, %v738_v59 }
 0x106   :  { %v287_v62 = vpop.f32.mrb[10].mxu0  ;;  %v648_v2 = vpop.f32.mrb[8].mxu1 }
 0x107   :  { %v288_v0 = vadd.f32 %v10889_v22, %v287_v62  ;;  %v9551_v1 = vpop.f32.mrb[11].mxu0  ;;  %v375_v3 = vmax.f32 %v285_v60, 0.0  ;;  %v649_v4 = vadd.f32 %v10889_v22, %v648_v2  ;;  %v9618_v5 = vpop.f32.mrb[9].mxu1 }
 0x108   :  { %v651_v6 = vpop.f32.mrb[10].mxu1 }
 0x109   :  { %v376_v7 = vmax.f32 %v288_v0, 0.0  ;;  %v739_v8 = vmax.f32 %v649_v4, 0.0  ;;  %v652_v9 = vadd.f32 %v10889_v22, %v651_v6  ;;  %v9619_v10 = vpop.f32.mrb[11].mxu1 }
 0x10b   :  { %v10911_v12 = vmax.f32 %v375_v3, %v739_v8  ;;  %v740_v13 = vmax.f32 %v652_v9, 0.0 }
 0x10c   :  { %v292_v11 = vpop.f32.mrb[12].mxu0 }
 0x10d   :  { %v293_v14 = vadd.f32 %v10889_v22, %v292_v11  ;;  %v9554_v15 = vpop.f32.mrb[13].mxu0  ;;  %v10914_v17 = vmax.f32 %v376_v7, %v740_v13 }
 0x10e   :  { %v295_v16 = vpop.f32.mrb[14].mxu0  ;;  %v656_v20 = vpop.f32.mrb[12].mxu1 }
 0x10f   :  { %v296_v18 = vadd.f32 %v10889_v22, %v295_v16  ;;  %v9555_v19 = vpop.f32.mrb[15].mxu0  ;;  %v377_v21 = vmax.f32 %v293_v14, 0.0  ;;  %v657_v23 = vadd.f32 %v10889_v22, %v656_v20  ;;  %v9622_v24 = vpop.f32.mrb[13].mxu1 }
 0x110   :  { %v659_v25 = vpop.f32.mrb[14].mxu1 }
 0x111   :  { %v378_v26 = vmax.f32 %v296_v18, 0.0  ;;  %v741_v27 = vmax.f32 %v657_v23, 0.0  ;;  %v660_v28 = vadd.f32 %v10889_v22, %v659_v25  ;;  %v9623_v29 = vpop.f32.mrb[15].mxu1 }
 0x113   :  { %v10919_v31 = vmax.f32 %v377_v21, %v741_v27  ;;  %v742_v32 = vmax.f32 %v660_v28, 0.0 }
 0x114   :  { %v300_v30 = vpop.f32.mrb[16].mxu0 }
 0x115   :  { %v301_v33 = vadd.f32 %v10889_v22, %v300_v30  ;;  %v9558_v34 = vpop.f32.mrb[17].mxu0  ;;  %v10922_v36 = vmax.f32 %v378_v26, %v742_v32 }
 0x116   :  { %v303_v35 = vpop.f32.mrb[18].mxu0  ;;  %v664_v39 = vpop.f32.mrb[16].mxu1 }
 0x117   :  { %v304_v37 = vadd.f32 %v10889_v22, %v303_v35  ;;  %v9559_v38 = vpop.f32.mrb[19].mxu0  ;;  %v379_v41 = vmax.f32 %v301_v33, 0.0  ;;  %v665_v42 = vadd.f32 %v10889_v22, %v664_v39  ;;  %v9626_v43 = vpop.f32.mrb[17].mxu1 }
 0x118   :  { %v667_v44 = vpop.f32.mrb[18].mxu1 }
 0x119   :  { %v380_v46 = vmax.f32 %v304_v37, 0.0  ;;  %v743_v47 = vmax.f32 %v665_v42, 0.0  ;;  %v668_v48 = vadd.f32 %v10889_v22, %v667_v44  ;;  %v9627_v49 = vpop.f32.mrb[19].mxu1 }
 0x11b   :  { %v10927_v51 = vmax.f32 %v379_v41, %v743_v47  ;;  %v744_v52 = vmax.f32 %v668_v48, 0.0 }
 0x11c   :  { %v308_v50 = vpop.f32.mrb[20].mxu0 }
 0x11d   :  { %v309_v53 = vadd.f32 %v10889_v22, %v308_v50  ;;  %v9562_v54 = vpop.f32.mrb[21].mxu0  ;;  %v10930_v56 = vmax.f32 %v380_v46, %v744_v52 }
 0x11e   :  { %v311_v55 = vpop.f32.mrb[22].mxu0  ;;  %v672_v60 = vpop.f32.mrb[20].mxu1 }
 0x11f   :  { %v312_v57 = vadd.f32 %v10889_v22, %v311_v55  ;;  %v9563_v59 = vpop.f32.mrb[23].mxu0  ;;  %v381_v61 = vmax.f32 %v309_v53, 0.0  ;;  %v673_v62 = vadd.f32 %v10889_v22, %v672_v60  ;;  %v9630_v0 = vpop.f32.mrb[21].mxu1 }
 0x120   :  { %v675_v1 = vpop.f32.mrb[22].mxu1 }
 0x121   :  { %v382_v2 = vmax.f32 %v312_v57, 0.0  ;;  %v745_v3 = vmax.f32 %v673_v62, 0.0  ;;  %v676_v4 = vadd.f32 %v10889_v22, %v675_v1  ;;  %v9631_v5 = vpop.f32.mrb[23].mxu1 }
 0x123   :  { %v10935_v7 = vmax.f32 %v381_v61, %v745_v3  ;;  %v746_v8 = vmax.f32 %v676_v4, 0.0 }
 0x124   :  { %v316_v6 = vpop.f32.mrb[24].mxu0 }
 0x125   :  { %v317_v9 = vadd.f32 %v10889_v22, %v316_v6  ;;  %v9566_v10 = vpop.f32.mrb[25].mxu0  ;;  %v10938_v13 = vmax.f32 %v382_v2, %v746_v8 }
 0x126   :  { %v319_v11 = vpop.f32.mrb[26].mxu0  ;;  %v680_v16 = vpop.f32.mrb[24].mxu1 }
 0x127   :  { %v320_v14 = vadd.f32 %v10889_v22, %v319_v11  ;;  %v9567_v15 = vpop.f32.mrb[27].mxu0  ;;  %v383_v18 = vmax.f32 %v317_v9, 0.0  ;;  %v681_v19 = vadd.f32 %v10889_v22, %v680_v16  ;;  %v9634_v20 = vpop.f32.mrb[25].mxu1 }
 0x128   :  { %v683_v21 = vpop.f32.mrb[26].mxu1 }
 0x129   :  { %v384_v23 = vmax.f32 %v320_v14, 0.0  ;;  %v747_v24 = vmax.f32 %v681_v19, 0.0  ;;  %v684_v25 = vadd.f32 %v10889_v22, %v683_v21  ;;  %v9635_v26 = vpop.f32.mrb[27].mxu1 }
 0x12b   :  { %v10943_v28 = vmax.f32 %v383_v18, %v747_v24  ;;  %v748_v29 = vmax.f32 %v684_v25, 0.0 }
 0x12c   :  { %v324_v27 = vpop.f32.mrb[28].mxu0 }
 0x12d   :  { %v325_v30 = vadd.f32 %v10889_v22, %v324_v27  ;;  %v9570_v32 = vpop.f32.mrb[29].mxu0  ;;  %v10946_v34 = vmax.f32 %v384_v23, %v748_v29 }
 0x12e   :  { %v327_v33 = vpop.f32.mrb[30].mxu0  ;;  %v688_v38 = vpop.f32.mrb[28].mxu1 }
 0x12f   :  { %v328_v35 = vadd.f32 %v10889_v22, %v327_v33  ;;  %v9571_v37 = vpop.f32.mrb[31].mxu0  ;;  %v385_v39 = vmax.f32 %v325_v30, 0.0  ;;  %v689_v41 = vadd.f32 %v10889_v22, %v688_v38  ;;  %v9638_v42 = vpop.f32.mrb[29].mxu1 }
 0x130   :  { %v691_v43 = vpop.f32.mrb[30].mxu1 }
 0x131   :  { %v386_v44 = vmax.f32 %v328_v35, 0.0  ;;  %v749_v46 = vmax.f32 %v689_v41, 0.0  ;;  %v692_v47 = vadd.f32 %v10889_v22, %v691_v43  ;;  %v9639_v48 = vpop.f32.mrb[31].mxu1 }
 0x133   :  { %v10951_v50 = vmax.f32 %v385_v39, %v749_v46  ;;  %v750_v52 = vmax.f32 %v692_v47, 0.0 }
 0x134   :  { %v332_v49 = vpop.f32.mrb[32].mxu0 }
 0x135   :  { %v333_v53 = vadd.f32 %v10889_v22, %v332_v49  ;;  %v9574_v54 = vpop.f32.mrb[33].mxu0  ;;  %v10954_v57 = vmax.f32 %v386_v44, %v750_v52 }
 0x136   :  { %v335_v55 = vpop.f32.mrb[34].mxu0  ;;  %v696_v61 = vpop.f32.mrb[32].mxu1 }
 0x137   :  { %v336_v59 = vadd.f32 %v10889_v22, %v335_v55  ;;  %v9575_v60 = vpop.f32.mrb[35].mxu0  ;;  %v387_v62 = vmax.f32 %v333_v53, 0.0  ;;  %v697_v0 = vadd.f32 %v10889_v22, %v696_v61  ;;  %v9642_v1 = vpop.f32.mrb[33].mxu1 }
 0x138   :  { %v699_v2 = vpop.f32.mrb[34].mxu1 }
 0x139   :  { %v388_v3 = vmax.f32 %v336_v59, 0.0  ;;  %v751_v4 = vmax.f32 %v697_v0, 0.0  ;;  %v700_v5 = vadd.f32 %v10889_v22, %v699_v2  ;;  %v9643_v6 = vpop.f32.mrb[35].mxu1 }
 0x13b   :  { %v10959_v9 = vmax.f32 %v387_v62, %v751_v4  ;;  %v752_v10 = vmax.f32 %v700_v5, 0.0 }
 0x13c   :  { %v340_v8 = vpop.f32.mrb[36].mxu0 }
 0x13d   :  { %v341_v11 = vadd.f32 %v10889_v22, %v340_v8  ;;  %v9578_v14 = vpop.f32.mrb[37].mxu0  ;;  %v10962_v16 = vmax.f32 %v388_v3, %v752_v10 }
 0x13e   :  { %v343_v15 = vpop.f32.mrb[38].mxu0  ;;  %v704_v20 = vpop.f32.mrb[36].mxu1 }
 0x13f   :  { %v344_v18 = vadd.f32 %v10889_v22, %v343_v15  ;;  %v9579_v19 = vpop.f32.mrb[39].mxu0  ;;  %v389_v21 = vmax.f32 %v341_v11, 0.0  ;;  %v705_v23 = vadd.f32 %v10889_v22, %v704_v20  ;;  %v9646_v24 = vpop.f32.mrb[37].mxu1 }
 0x140   :  { %v707_v25 = vpop.f32.mrb[38].mxu1 }
 0x141   :  { %v390_v26 = vmax.f32 %v344_v18, 0.0  ;;  %v753_v27 = vmax.f32 %v705_v23, 0.0  ;;  %v708_v29 = vadd.f32 %v10889_v22, %v707_v25  ;;  %v9647_v30 = vpop.f32.mrb[39].mxu1 }
 0x143   :  { %v10967_v33 = vmax.f32 %v389_v21, %v753_v27  ;;  %v754_v35 = vmax.f32 %v708_v29, 0.0 }
 0x144   :  { %v348_v32 = vpop.f32.mrb[40].mxu0 }
 0x145   :  { %v349_v37 = vadd.f32 %v10889_v22, %v348_v32  ;;  %v9582_v38 = vpop.f32.mrb[41].mxu0  ;;  %v10970_v41 = vmax.f32 %v390_v26, %v754_v35 }
 0x146   :  { %v351_v39 = vpop.f32.mrb[42].mxu0  ;;  %v712_v44 = vpop.f32.mrb[40].mxu1 }
 0x147   :  { %v352_v42 = vadd.f32 %v10889_v22, %v351_v39  ;;  %v9583_v43 = vpop.f32.mrb[43].mxu0  ;;  %v391_v46 = vmax.f32 %v349_v37, 0.0  ;;  %v713_v47 = vadd.f32 %v10889_v22, %v712_v44  ;;  %v9650_v48 = vpop.f32.mrb[41].mxu1 }
 0x148   :  { %v715_v49 = vpop.f32.mrb[42].mxu1 }
 0x149   :  { %v392_v52 = vmax.f32 %v352_v42, 0.0  ;;  %v755_v53 = vmax.f32 %v713_v47, 0.0  ;;  %v716_v54 = vadd.f32 %v10889_v22, %v715_v49  ;;  %v9651_v55 = vpop.f32.mrb[43].mxu1 }
 0x14b   :  { %v10975_v60 = vmax.f32 %v391_v46, %v755_v53  ;;  %v756_v61 = vmax.f32 %v716_v54, 0.0 }
 0x14c   :  { %v356_v59 = vpop.f32.mrb[44].mxu0 }
 0x14d   :  { %v357_v62 = vadd.f32 %v10889_v22, %v356_v59  ;;  %v9586_v0 = vpop.f32.mrb[45].mxu0  ;;  %v10978_v2 = vmax.f32 %v392_v52, %v756_v61 }
 0x14e   :  { %v359_v1 = vpop.f32.mrb[46].mxu0  ;;  %v720_v5 = vpop.f32.mrb[44].mxu1 }
 0x14f   :  { %v360_v3 = vadd.f32 %v10889_v22, %v359_v1  ;;  %v9587_v4 = vpop.f32.mrb[47].mxu0  ;;  %v393_v6 = vmax.f32 %v357_v62, 0.0  ;;  %v721_v8 = vadd.f32 %v10889_v22, %v720_v5  ;;  %v9654_v10 = vpop.f32.mrb[45].mxu1 }
 0x150   :  { %v723_v11 = vpop.f32.mrb[46].mxu1 }
 0x151   :  { %v394_v14 = vmax.f32 %v360_v3, 0.0  ;;  %v757_v15 = vmax.f32 %v721_v8, 0.0  ;;  %v724_v18 = vadd.f32 %v10889_v22, %v723_v11  ;;  %v9655_v19 = vpop.f32.mrb[47].mxu1 }
 0x153   :  { %v10983_v21 = vmax.f32 %v393_v6, %v757_v15  ;;  %v758_v23 = vmax.f32 %v724_v18, 0.0 }
 0x154   :  { %v364_v20 = vpop.f32.mrb[48].mxu0 }
 0x155   :  { %v365_v24 = vadd.f32 %v10889_v22, %v364_v20  ;;  %v9590_v25 = vpop.f32.mrb[49].mxu0  ;;  %v10986_v27 = vmax.f32 %v394_v14, %v758_v23 }
 0x156   :  { %v367_v26 = vpop.f32.mrb[50].mxu0  ;;  %v728_v30 = vpop.f32.mrb[48].mxu1 }
 0x157   :  { %v9591_v29 = vpop.f32.mrb[51].mxu0  ;;  %v395_v32 = vmax.f32 %v365_v24, 0.0  ;;  %v729_v35 = vadd.f32 %v10889_v22, %v728_v30  ;;  %v9658_v37 = vpop.f32.mrb[49].mxu1 }
 0x158   :  { %v731_v38 = vpop.f32.mrb[50].mxu1 }
 0x159   :  { %v759_v39 = vmax.f32 %v729_v35, 0.0  ;;  %v9659_v42 = vpop.f32.mrb[51].mxu1 }
 0x15b   :  { %v10989_v43 = vmax.f32 %v395_v32, %v759_v39 }
 0x15c   :  { %v1048_v44 = vpop.f32.mrb[52].mxu0 }
 0x15d   :  { %v1049_v46 = vadd.f32 %v10889_v22, %v1048_v44  ;;  %v9678_v47 = vpop.f32.mrb[53].mxu0 }
 0x15e   :  { %v1051_v48 = vpop.f32.mrb[54].mxu0  ;;  %v1464_v54 = vpop.f32.mrb[52].mxu1 }
 0x15f   :  { %v1151_v49 = vmax.f32 %v1049_v46, 0.0  ;;  %v1052_v52 = vadd.f32 %v10889_v22, %v1051_v48  ;;  %v9679_v53 = vpop.f32.mrb[55].mxu0  ;;  %v1465_v55 = vadd.f32 %v10889_v22, %v1464_v54  ;;  %v9746_v59 = vpop.f32.mrb[53].mxu1 }
 0x160   :  { %v1467_v0 = vpop.f32.mrb[54].mxu1 }
 0x161   :  { %v1203_v61 = vmax.f32 %v10895_v40, %v1151_v49  ;;  %v1152_v62 = vmax.f32 %v1052_v52, 0.0  ;;  %v1567_v1 = vmax.f32 %v1465_v55, 0.0  ;;  %v1468_v3 = vadd.f32 %v10889_v22, %v1467_v0  ;;  %v9747_v4 = vpop.f32.mrb[55].mxu1 }
 0x163   :  { %v1204_v5 = vmax.f32 %v10898_v45, %v1152_v62  ;;  %v1619_v8 = vmax.f32 %v1203_v61, %v1567_v1  ;;  %v1568_v10 = vmax.f32 %v1468_v3, 0.0 }
 0x164   :  { %v1056_v6 = vpop.f32.mrb[56].mxu0 }
 0x165   :  { %v1057_v11 = vadd.f32 %v10889_v22, %v1056_v6  ;;  %v9682_v14 = vpop.f32.mrb[57].mxu0  ;;  %1645 = vst [vmem:[#allocation2] sm:$0xff] %v1619_v8  ;;  %v1620_v18 = vmax.f32 %v1204_v5, %v1568_v10 }
 0x166   :  { %v1059_v15 = vpop.f32.mrb[58].mxu0  ;;  %v1472_v23 = vpop.f32.mrb[56].mxu1 }
 0x167   :  { %v1153_v19 = vmax.f32 %v1057_v11, 0.0  ;;  %v1060_v40 = vadd.f32 %v10889_v22, %v1059_v15  ;;  %v9683_v20 = vpop.f32.mrb[59].mxu0  ;;  %1646 = vst [vmem:[#allocation2 + $0x8] sm:$0xff] %v1620_v18  ;;  %v1473_v24 = vadd.f32 %v10889_v22, %v1472_v23  ;;  %v9750_v25 = vpop.f32.mrb[57].mxu1 }
 0x168   :  { %v1475_v29 = vpop.f32.mrb[58].mxu1 }
 0x169   :  { %v1205_v45 = vmax.f32 %v10903_v58, %v1153_v19  ;;  %v1154_v26 = vmax.f32 %v1060_v40, 0.0  ;;  %v1569_v30 = vmax.f32 %v1473_v24, 0.0  ;;  %v1476_v32 = vadd.f32 %v10889_v22, %v1475_v29  ;;  %v9751_v35 = vpop.f32.mrb[59].mxu1 }
 0x16b   :  { %v1206_v37 = vmax.f32 %v10906_v63, %v1154_v26  ;;  %v11003_v39 = vmax.f32 %v1205_v45, %v1569_v30  ;;  %v1570_v42 = vmax.f32 %v1476_v32, 0.0 }
 0x16c   :  { %v1064_v38 = vpop.f32.mrb[60].mxu0  ;;  %v1671_v59 = vld [vmem:[#allocation2] sm:$0xff] }
 0x16d   :  { %v1065_v44 = vadd.f32 %v10889_v22, %v1064_v38  ;;  %v9686_v46 = vpop.f32.mrb[61].mxu0  ;;  %1647 = vst [vmem:[#allocation2 + $0x10] sm:$0xff] %v11003_v39  ;;  %v11007_v48 = vmax.f32 %v1206_v37, %v1570_v42 }
 0x16e   :  { %v1067_v47 = vpop.f32.mrb[62].mxu0  ;;  %v1480_v53 = vpop.f32.mrb[60].mxu1  ;;  %v1672_v61 = vld [vmem:[#allocation2 + $0x8] sm:$0xff] }
 0x16f   :  { %v1155_v58 = vmax.f32 %v1065_v44, 0.0  ;;  %v1068_v49 = vadd.f32 %v10889_v22, %v1067_v47  ;;  %v9687_v52 = vpop.f32.mrb[63].mxu0  ;;  %1648 = vst [vmem:[#allocation2 + $0x18] sm:$0xff] %v11007_v48  ;;  %v1481_v63 = vadd.f32 %v10889_v22, %v1480_v53  ;;  %v9754_v54 = vpop.f32.mrb[61].mxu1  ;;  %v2163_v55 = vpack.c.bf16 %v11007_v48, %v11003_v39  ;;  %v1854_v15 = vld [vmem:[#allocation2 + $0x3] sm:$0xff] }
 0x170   :  { %v1483_v1 = vpop.f32.mrb[62].mxu1  ;;  %v1688_v3 = vpack.c.bf16 %v1672_v61, %v1671_v59  ;;  %v1927_v42 = vld [vmem:[#allocation2 + $0x4] sm:$0xff] }
 0x171   :  { %v1207_v62 = vmax.f32 %v10911_v12, %v1155_v58  ;;  %v1156_v0 = vmax.f32 %v1068_v49, 0.0  ;;  %v1571_v4 = vmax.f32 %v1481_v63, 0.0  ;;  %v1484_v5 = vadd.f32 %v10889_v22, %v1483_v1  ;;  %v9755_v6 = vpop.f32.mrb[63].mxu1  ;;  %v1708_v12 = vld [vmem:[#allocation2 + $0x1] sm:$0xff] }
 0x172   :  { %1698 = vst.msk [vmem:[#allocation3] sm:$0xff] %vm13741_vm1, %v1688_v3  ;;  %v1781_v49 = vld [vmem:[#allocation2 + $0x2] sm:$0xff] }
 0x173   :  { %v1208_v8 = vmax.f32 %v10914_v17, %v1156_v0  ;;  %v1623_v11 = vmax.f32 %v1207_v62, %v1571_v4  ;;  %v1572_v14 = vmax.f32 %v1484_v5, 0.0 }
 0x174   :  { %v1072_v10 = vpop.f32.mrb[64].mxu0  ;;  %v1855_v40 = vld [vmem:[#allocation2 + $0xb] sm:$0xff] }
 0x175   :  { %v1073_v18 = vadd.f32 %v10889_v22, %v1072_v10  ;;  %v9690_v19 = vpop.f32.mrb[65].mxu0  ;;  %v1709_v20 = vld [vmem:[#allocation2 + $0x9] sm:$0xff]  ;;  %1649 = vst [vmem:[#allocation2 + $0x20] sm:$0xff] %v1623_v11  ;;  %v1624_v24 = vmax.f32 %v1208_v8, %v1572_v14  ;;  %v1871_v25 = vpack.c.bf16 %v1855_v40, %v1854_v15 }
 0x176   :  { %v1075_v23 = vpop.f32.mrb[66].mxu0  ;;  %v1725_v45 = vpack.c.bf16 %v1709_v20, %v1708_v12  ;;  %v1928_v26 = vld [vmem:[#allocation2 + $0xc] sm:$0xff]  ;;  %v1488_v32 = vpop.f32.mrb[64].mxu1  ;;  %v1674_v63 = vld [vmem:[#allocation2 + $0x18] sm:$0xff] }
 0x177   :  { %v1157_v29 = vmax.f32 %v1073_v18, 0.0  ;;  %v1076_v17 = vadd.f32 %v10889_v22, %v1075_v23  ;;  %v9691_v30 = vpop.f32.mrb[67].mxu0  ;;  %v1782_v35 = vld [vmem:[#allocation2 + $0xa] sm:$0xff]  ;;  %1650 = vst [vmem:[#allocation2 + $0x28] sm:$0xff] %v1624_v24  ;;  %v1489_v37 = vadd.f32 %v10889_v22, %v1488_v32  ;;  %v9758_v38 = vpop.f32.mrb[65].mxu1  ;;  %1889 = vrot.lane.b32.xlu1 %v1871_v25, %s10415_s16  ;;  %v1944_v58 = vpack.c.bf16 %v1928_v26, %v1927_v42  ;;  %v2074_v3 = vld [vmem:[#allocation2 + $0x17] sm:$0xff] }
 0x178   :  { %1743 = vrot.lane.b32.xlu0 %v1725_v45, %s10416_s17  ;;  %v1491_v47 = vpop.f32.mrb[66].mxu1  ;;  %v11024_v52 = vpack.c.bf16 %v1624_v24, %v1623_v11  ;;  %v1673_v53 = vld [vmem:[#allocation2 + $0x10] sm:$0xff]  ;;  %v1798_v61 = vpack.c.bf16 %v1782_v35, %v1781_v49 }
 0x179   :  { %v1209_v44 = vmax.f32 %v10919_v31, %v1157_v29  ;;  %v1158_v46 = vmax.f32 %v1076_v17, 0.0  ;;  %v1573_v54 = vmax.f32 %v1489_v37, 0.0  ;;  %v1492_v59 = vadd.f32 %v10889_v22, %v1491_v47  ;;  %v9759_v62 = vpop.f32.mrb[67].mxu1  ;;  %v2001_v4 = vld [vmem:[#allocation2 + $0x16] sm:$0xff]  ;;  %v2000_v14 = vld [vmem:[#allocation2 + $0xe] sm:$0xff] }
 0x17a   :  { %v1689_v0 = vpack.c.bf16 %v1674_v63, %v1673_v53  ;;  %v2073_v11 = vld [vmem:[#allocation2 + $0xf] sm:$0xff]  ;;  %v2017_v19 = vpack.c.bf16 %v2001_v4, %v2000_v14 }
 0x17b   :  { %v1210_v1 = vmax.f32 %v10922_v36, %v1158_v46  ;;  %v1625_v31 = vmax.f32 %v1209_v44, %v1573_v54  ;;  %v1574_v6 = vmax.f32 %v1492_v59, 0.0  ;;  %1962 = vrot.lane.b32.xlu1 %v1944_v58, %s10417_s18  ;;  %v2090_v18 = vpack.c.bf16 %v2074_v3, %v2073_v11  ;;  %v2292_v30 = vld [vmem:[#allocation2 + $0x12] sm:$0xff] }
 0x17c   :  { %v1080_v5 = vpop.f32.mrb[68].mxu0  ;;  %1816 = vrot.lane.b32.xlu0 %v1798_v61, %s10418_s19  ;;  %1699 = vst.msk [vmem:[#allocation3 + $0x10] sm:$0xff] %vm13741_vm1, %v1689_v0  ;;  %v2293_v24 = vld [vmem:[#allocation2 + $0x1a] sm:$0xff]  ;;  %v2219_v61 = vld [vmem:[#allocation2 + $0x11] sm:$0xff] }
 0x17d   :  { %v1081_v8 = vadd.f32 %v10889_v22, %v1080_v5  ;;  %v9694_v10 = vpop.f32.mrb[69].mxu0  ;;  %1651 = vst [vmem:[#allocation2 + $0x30] sm:$0xff] %v1625_v31  ;;  %v11032_v36 = vmax.f32 %v1210_v1, %v1574_v6  ;;  %v2309_v37 = vpack.c.bf16 %v2293_v24, %v2292_v30  ;;  %v1675_v44 = vld [vmem:[#allocation2 + $0x20] sm:$0xff]  ;;  %v1929_v11 = vld [vmem:[#allocation2 + $0x14] sm:$0xff] }
 0x17e   :  { %v1083_v15 = vpop.f32.mrb[70].mxu0  ;;  %v1496_v23 = vpop.f32.mrb[68].mxu1  ;;  %v1676_v46 = vld [vmem:[#allocation2 + $0x28] sm:$0xff]  ;;  %v2220_v58 = vld [vmem:[#allocation2 + $0x19] sm:$0xff] }
 0x17f   :  { %v1159_v40 = vmax.f32 %v1081_v8, 0.0  ;;  %v1084_v12 = vadd.f32 %v10889_v22, %v1083_v15  ;;  %v9695_v20 = vpop.f32.mrb[71].mxu0  ;;  %1652 = vst [vmem:[#allocation2 + $0x38] sm:$0xff] %v11032_v36  ;;  %v1497_v25 = vadd.f32 %v10889_v22, %v1496_v23  ;;  %v9762_v45 = vpop.f32.mrb[69].mxu1  ;;  %2108 = vrot.lane.b32.xlu1 %v2090_v18, %s10419_s20  ;;  %v11042_v42 = vpack.c.bf16 %v11032_v36, %v1625_v31  ;;  %v1857_v24 = vld [vmem:[#allocation2 + $0x1b] sm:$0xff] }
 0x180   :  { %2035 = vrot.lane.b32.xlu0 %v2017_v19, %s10420_s21  ;;  %v1499_v17 = vpop.f32.mrb[70].mxu1  ;;  %v1690_v49 = vpack.c.bf16 %v1676_v46, %v1675_v44  ;;  %v2236_v0 = vpack.c.bf16 %v2220_v58, %v2219_v61  ;;  %v11089_v61 = vld [vmem:[#allocation2 + $0x24] sm:$0xff] }
 0x181   :  { %v1211_v26 = vmax.f32 %v10927_v51, %v1159_v40  ;;  %v1160_v29 = vmax.f32 %v1084_v12, 0.0  ;;  %v1575_v32 = vmax.f32 %v1497_v25, 0.0  ;;  %v1500_v35 = vadd.f32 %v10889_v22, %v1499_v17  ;;  %v9763_v38 = vpop.f32.mrb[71].mxu1  ;;  %v2439_v25 = vld [vmem:[#allocation2 + $0x25] sm:$0xff] }
 0x182   :  { %1700 = vst.msk [vmem:[#allocation3 + $0x20] sm:$0xff] %vm13741_vm1, %v1690_v49  ;;  %v1856_v38 = vld [vmem:[#allocation2 + $0x13] sm:$0xff]  ;;  %v2585_v49 = vld [vmem:[#allocation2 + $0x27] sm:$0xff] }
 0x183   :  { %v1212_v47 = vmax.f32 %v10930_v56, %v1160_v29  ;;  %v11045_v63 = vmax.f32 %v1211_v26, %v1575_v32  ;;  %v1576_v51 = vmax.f32 %v1500_v35, 0.0  ;;  %2327 = vrot.lane.b32.xlu1 %v2309_v37, %s13736_s23 }
 0x184   :  { %v1088_v53 = vpop.f32.mrb[72].mxu0  ;;  %2181 = vrot.lane.b32.xlu0 %v2163_v55, %s10421_s22  ;;  %v11058_v55 = vld [vmem:[#allocation2 + $0x1c] sm:$0xff]  ;;  %v11071_v12 = vld [vmem:[#allocation2 + $0x2b] sm:$0xff] }
 0x185   :  { %v1089_v54 = vadd.f32 %v10889_v22, %v1088_v53  ;;  %v9698_v59 = vpop.f32.mrb[73].mxu0  ;;  %1653 = vst [vmem:[#allocation2 + $0x40] sm:$0xff] %v11045_v63  ;;  %v11055_v62 = vmax.f32 %v1212_v47, %v1576_v51  ;;  %v3068_v4 = vpack.c.bf16 %v11045_v63, %v11032_v36  ;;  %v1945_v19 = vpack.c.bf16 %v11058_v55, %v1929_v11  ;;  %v1677_v26 = vld [vmem:[#allocation2 + $0x30] sm:$0xff]  ;;  %v10222_v36 = vld [vmem:[%s13723_s3 + $0x68] sm:$0xff]  }
 0x186   :  { %v1091_v56 = vpop.f32.mrb[74].mxu0  ;;  %v1504_v48 = vpop.f32.mrb[72].mxu1  ;;  %v11067_v14 = vld [vmem:[#allocation2 + $0x33] sm:$0xff]  ;;  %v1872_v47 = vpack.c.bf16 %v1857_v24, %v1856_v38  ;;  %v2512_v24 = vld [vmem:[#allocation2 + $0x26] sm:$0xff]  ;;  %v11118_v38 = vld [vmem:[%s13722_s2] ss:$0 sm:$0xff] }
 0x187   :  { %v1161_v1 = vmax.f32 %v1089_v54, 0.0  ;;  %v1092_v3 = vadd.f32 %v10889_v22, %v1091_v56  ;;  %v9699_v39 = vpop.f32.mrb[75].mxu0  ;;  %1654 = vst [vmem:[#allocation2 + $0x48] sm:$0xff] %v11055_v62  ;;  %v1505_v5 = vadd.f32 %v10889_v22, %v1504_v48  ;;  %v9766_v31 = vpop.f32.mrb[73].mxu1  ;;  %1818 = vrot.lane.b32.xlu1 %v2309_v37, %s10418_s19  ;;  %v11075_v20 = vpack.c.bf16 %v11055_v62, %v11045_v63  ;;  %v1678_v23 = vld [vmem:[#allocation2 + $0x38] sm:$0xff]  ;;  %v10223_v63 = vld [vmem:[%s13723_s3 + $0x28] sm:$0xff]  }
 0x188   :  { %2254 = vrot.lane.b32.xlu0 %v2236_v0, %s10423_s24  ;;  %v1507_v10 = vpop.f32.mrb[74].mxu1  ;;  %v2820_v45 = vpack.c.bf16 %v11067_v14, %v11071_v12  ;;  %v1691_v32 = vpack.c.bf16 %v1678_v23, %v1677_v26 }
 0x189   :  { %v1213_v6 = vmax.f32 %v10935_v7, %v1161_v1  ;;  %v1162_v8 = vmax.f32 %v1092_v3, 0.0  ;;  %v1577_v15 = vmax.f32 %v1505_v5, 0.0  ;;  %v1508_v18 = vadd.f32 %v10889_v22, %v1507_v10  ;;  %v9767_v40 = vpop.f32.mrb[75].mxu1 }
 0x18a   :  { %2829 = vst.msk [vmem:[#allocation3 + $0x8] sm:$0xff] %vm13741_vm1, %v2820_v45  ;;  %1701 = vst.msk [vmem:[#allocation3 + $0x30] sm:$0xff] %vm13741_vm1, %v1691_v32 }
 0x18b   :  { %v1214_v7 = vmax.f32 %v10938_v13, %v1162_v8  ;;  %v11080_v17 = vmax.f32 %v1213_v6, %v1577_v15  ;;  %v1578_v30 = vmax.f32 %v1508_v18, 0.0  ;;  %1964 = vrot.lane.b32.xlu1 %v1945_v19, %s10417_s18  ;;  %v2438_v13 = vld [vmem:[#allocation2 + $0x1d] sm:$0xff]  ;;  %v2382_v18 = vpack.c.bf16 %v11089_v61, %v11058_v55 }
 0x18c   :  { %v1096_v29 = vpop.f32.mrb[76].mxu0  ;;  %1745 = vrot.lane.b32.xlu0 %v2236_v0, %s10416_s17  ;;  %v2455_v58 = vpack.c.bf16 %v2439_v25, %v2438_v13  ;;  %v11091_v56 = vld [vmem:[#allocation2 + $0x3b] sm:$0xff] }
 0x18d   :  { %v1097_v35 = vadd.f32 %v10889_v22, %v1096_v29  ;;  %v9702_v37 = vpop.f32.mrb[77].mxu0  ;;  %1655 = vst [vmem:[#allocation2 + $0x50] sm:$0xff] %v11080_v17  ;;  %v1630_v46 = vmax.f32 %v1214_v7, %v1578_v30  ;;  %v3069_v1 = vpack.c.bf16 %v11080_v17, %v11055_v62  ;;  %v2584_v8 = vld [vmem:[#allocation2 + $0x1f] sm:$0xff] }
 0x18e   :  { %v1099_v44 = vpop.f32.mrb[78].mxu0  ;;  %v1512_v59 = vpop.f32.mrb[76].mxu1  ;;  %v11093_v0 = vld [vmem:[#allocation2 + $0x43] sm:$0xff]  ;;  %v2601_v15 = vpack.c.bf16 %v2585_v49, %v2584_v8 }
 0x18f   :  { %v1163_v53 = vmax.f32 %v1097_v35, 0.0  ;;  %v1100_v51 = vadd.f32 %v10889_v22, %v1099_v44  ;;  %v9703_v54 = vpop.f32.mrb[79].mxu0  ;;  %1656 = vst [vmem:[#allocation2 + $0x58] sm:$0xff] %v1630_v46  ;;  %v1513_v3 = vadd.f32 %v10889_v22, %v1512_v59  ;;  %v9770_v39 = vpop.f32.mrb[77].mxu1  ;;  %2473 = vrot.lane.b32.xlu1 %v2455_v58, %s13744_s25  ;;  %v11102_v48 = vpack.c.bf16 %v11093_v0, %v11091_v56  ;;  %v1679_v40 = vld [vmem:[#allocation2 + $0x40] sm:$0xff]  ;;  %v1680_v23 = vld [vmem:[#allocation2 + $0x48] sm:$0xff] }
 0x190   :  { %1891 = vrot.lane.b32.xlu0 %v1872_v47, %s10415_s16  ;;  %v1515_v6 = vpop.f32.mrb[78].mxu1  ;;  %v2511_v30 = vld [vmem:[#allocation2 + $0x1e] sm:$0xff]  ;;  %v2222_v47 = vld [vmem:[#allocation2 + $0x29] sm:$0xff] }
 0x191   :  { %v1215_v5 = vmax.f32 %v10943_v28, %v1163_v53  ;;  %v1164_v31 = vmax.f32 %v1100_v51, 0.0  ;;  %v1579_v10 = vmax.f32 %v1513_v3, 0.0  ;;  %v1516_v11 = vadd.f32 %v10889_v22, %v1515_v6  ;;  %v9771_v19 = vpop.f32.mrb[79].mxu1  ;;  %2830 = vst.msk [vmem:[#allocation3 + $0x18] sm:$0xff] %vm13741_vm1, %v11102_v48  ;;  %v2221_v39 = vld [vmem:[#allocation2 + $0x21] sm:$0xff] }
 0x192   :  { %v1692_v28 = vpack.c.bf16 %v1680_v23, %v1679_v40  ;;  %v2528_v35 = vpack.c.bf16 %v2512_v24, %v2511_v30  ;;  %v2237_v6 = vpack.c.bf16 %v2222_v47, %v2221_v39  ;;  %v11170_v39 = vld [vmem:[#allocation2 + $0x34] sm:$0xff] }
 0x193   :  { %v1216_v7 = vmax.f32 %v10946_v34, %v1164_v31  ;;  %v1631_v45 = vmax.f32 %v1215_v5, %v1579_v10  ;;  %v1580_v26 = vmax.f32 %v1516_v11, 0.0  ;;  %2619 = vrot.lane.b32.xlu1 %v2601_v15, %s13738_s26 }
 0x194   :  { %v1104_v25 = vpop.f32.mrb[80].mxu0  ;;  %2400 = vrot.lane.b32.xlu0 %v2382_v18, %s13742_s27  ;;  %1702 = vst.msk [vmem:[#allocation3 + $0x40] sm:$0xff] %vm13741_vm1, %v1692_v28  ;;  %v2663_v10 = vld [vmem:[#allocation2 + $0x50] sm:$0xff] }
 0x195   :  { %v1105_v55 = vadd.f32 %v10889_v22, %v1104_v25  ;;  %v9706_v29 = vpop.f32.mrb[81].mxu0  ;;  %1657 = vst [vmem:[#allocation2 + $0x60] sm:$0xff] %v1631_v45  ;;  %v1632_v34 = vmax.f32 %v1216_v7, %v1580_v26  ;;  %v11121_v22 = vld [vmem:[#allocation2 + $0x4b] sm:$0xff] }
 0x196   :  { %v1107_v32 = vpop.f32.mrb[82].mxu0  ;;  %v1520_v46 = vpop.f32.mrb[80].mxu1  ;;  %v11123_v58 = vld [vmem:[#allocation2 + $0x53] sm:$0xff] }
 0x197   :  { %v1165_v37 = vmax.f32 %v1105_v55, 0.0  ;;  %v1108_v13 = vadd.f32 %v11118_v38, %v1107_v32  ;;  %v9707_v44 = vpop.f32.mrb[83].mxu0  ;;  %1658 = vst [vmem:[#allocation2 + $0x68] sm:$0xff] %v1632_v34  ;;  %v1521_v49 = vadd.f32 %v11118_v38, %v1520_v46  ;;  %v9774_v53 = vpop.f32.mrb[81].mxu1  ;;  %2110 = vrot.lane.b32.xlu1 %v2601_v15, %s10419_s20  ;;  %v11130_v51 = vpack.c.bf16 %v11123_v58, %v11121_v22  ;;  %v11134_v11 = vld [vmem:[#allocation2 + $0x58] sm:$0xff] }
 0x198   :  { %2546 = vrot.lane.b32.xlu0 %v2528_v35, %s13734_s30  ;;  %v1523_v3 = vpop.f32.mrb[82].mxu1  ;;  %v11140_v18 = vpack.c.bf16 %v11134_v11, %v2663_v10  ;;  %v1858_v44 = vld [vmem:[#allocation2 + $0x23] sm:$0xff] }
 0x199   :  { %v1217_v54 = vmax.f32 %v10951_v50, %v1165_v37  ;;  %v1166_v59 = vmax.f32 %v1108_v13, 0.0  ;;  %v1581_v5 = vmax.f32 %v1521_v49, 0.0  ;;  %v1524_v31 = vadd.f32 %v11118_v38, %v1523_v3  ;;  %v9775_v8 = vpop.f32.mrb[83].mxu1  ;;  %2831 = vst.msk [vmem:[#allocation3 + $0x28] sm:$0xff] %vm13741_vm1, %v11130_v51  ;;  %v11168_v3 = vld [vmem:[#allocation2 + $0x2a] sm:$0xff] }
 0x19a   :  { %1703 = vst.msk [vmem:[#allocation3 + $0x50] sm:$0xff] %vm13741_vm1, %v11140_v18  ;;  %v1873_v49 = vpack.c.bf16 %v11071_v12, %v1858_v44  ;;  %v2909_v44 = vld [vmem:[#allocation2 + $0x2d] sm:$0xff] }
 0x19b   :  { %v1218_v15 = vmax.f32 %v10954_v57, %v1166_v59  ;;  %v1633_v19 = vmax.f32 %v1217_v54, %v1581_v5  ;;  %v1582_v40 = vmax.f32 %v1524_v31, 0.0  ;;  %2256 = vrot.lane.b32.xlu1 %v2237_v6, %s10423_s24 }
 0x19c   :  { %v1112_v50 = vpop.f32.mrb[84].mxu0  ;;  %2037 = vrot.lane.b32.xlu0 %v2528_v35, %s10420_s21  ;;  %v11148_v55 = vld [vmem:[#allocation2 + $0x5b] sm:$0xff] }
 0x19d   :  { %v1113_v23 = vadd.f32 %v11118_v38, %v1112_v50  ;;  %v9710_v7 = vpop.f32.mrb[85].mxu0  ;;  %1659 = vst [vmem:[#allocation2 + $0x70] sm:$0xff] %v1633_v19  ;;  %v1634_v28 = vmax.f32 %v1218_v15, %v1582_v40  ;;  %v2294_v15 = vld [vmem:[#allocation2 + $0x22] sm:$0xff] }
 0x19e   :  { %v1115_v24 = vpop.f32.mrb[86].mxu0  ;;  %v1528_v26 = vpop.f32.mrb[84].mxu1  ;;  %v11150_v29 = vld [vmem:[#allocation2 + $0x63] sm:$0xff]  ;;  %v2310_v40 = vpack.c.bf16 %v11168_v3, %v2294_v15 }
 0x19f   :  { %v1167_v57 = vmax.f32 %v1113_v23, 0.0  ;;  %v1116_v25 = vadd.f32 %v11118_v38, %v1115_v24  ;;  %v9711_v45 = vpop.f32.mrb[87].mxu0  ;;  %1660 = vst [vmem:[#allocation2 + $0x78] sm:$0xff] %v1634_v28  ;;  %v1529_v30 = vadd.f32 %v11118_v38, %v1528_v26  ;;  %v9778_v32 = vpop.f32.mrb[85].mxu1  ;;  %1747 = vrot.lane.b32.xlu1 %v2237_v6, %s10416_s17  ;;  %v11158_v34 = vpack.c.bf16 %v11150_v29, %v11148_v55  ;;  %v11163_v54 = vld [vmem:[#allocation2 + $0x68] sm:$0xff] }
 0x1a0   :  { %2692 = vrot.lane.b32.xlu0 %v11024_v52, %s13732_s12  ;;  %v1531_v13 = vpop.f32.mrb[86].mxu1 }
 0x1a1   :  { %v1219_v35 = vmax.f32 %v10959_v9, %v1167_v57  ;;  %v1168_v37 = vmax.f32 %v1116_v25, 0.0  ;;  %v1583_v46 = vmax.f32 %v1529_v30, 0.0  ;;  %v1532_v47 = vadd.f32 %v11118_v38, %v1531_v13  ;;  %v9779_v53 = vpop.f32.mrb[87].mxu1  ;;  %2832 = vst.msk [vmem:[#allocation3 + $0x38] sm:$0xff] %vm13741_vm1, %v11158_v34  ;;  %v1683_v9 = vld [vmem:[#allocation2 + $0x60] sm:$0xff]  ;;  %v2910_v57 = vld [vmem:[#allocation2 + $0x35] sm:$0xff] }
 0x1a2   :  { %v1694_v12 = vpack.c.bf16 %v11163_v54, %v1683_v9 }
 0x1a3   :  { %v1220_v59 = vmax.f32 %v10962_v16, %v1168_v37  ;;  %v1635_v31 = vmax.f32 %v1219_v35, %v1583_v46  ;;  %v1584_v6 = vmax.f32 %v1532_v47, 0.0  ;;  %1893 = vrot.lane.b32.xlu1 %v1873_v49, %s10415_s16  ;;  %v2838_v16 = vld [vmem:[#allocation2 + $0x2c] sm:$0xff]  ;;  %v11194_v49 = vpack.c.bf16 %v2910_v57, %v2909_v44  ;;  %v2981_v57 = vld [vmem:[#allocation2 + $0x36] sm:$0xff] }
 0x1a4   :  { %v1120_v5 = vpop.f32.mrb[88].mxu0  ;;  %2183 = vrot.lane.b32.xlu0 %v11024_v52, %s10421_s22  ;;  %v11179_v23 = vpack.c.bf16 %v11170_v39, %v2838_v16  ;;  %1704 = vst.msk [vmem:[#allocation3 + $0x60] sm:$0xff] %vm13741_vm1, %v1694_v12  ;;  %v11183_v25 = vld [vmem:[#allocation2 + $0x6b] sm:$0xff] }
 0x1a5   :  { %v1121_v8 = vadd.f32 %v11118_v38, %v1120_v5  ;;  %v9714_v10 = vpop.f32.mrb[89].mxu0  ;;  %1661 = vst [vmem:[#allocation2 + $0x80] sm:$0xff] %v1635_v31  ;;  %v1636_v19 = vmax.f32 %v1220_v59, %v1584_v6  ;;  %v11196_v59 = vld [vmem:[#allocation2 + $0x70] sm:$0xff] }
 0x1a6   :  { %v1123_v50 = vpop.f32.mrb[90].mxu0  ;;  %v1536_v28 = vpop.f32.mrb[88].mxu1  ;;  %v3271_v45 = vld [vmem:[#allocation2 + $0x73] sm:$0xff] }
 0x1a7   :  { %v1169_v52 = vmax.f32 %v1121_v8, 0.0  ;;  %v1124_v7 = vadd.f32 %v11118_v38, %v1123_v50  ;;  %v9715_v24 = vpop.f32.mrb[91].mxu0  ;;  %1662 = vst [vmem:[#allocation2 + $0x88] sm:$0xff] %v1636_v19  ;;  %v1537_v26 = vadd.f32 %v11118_v38, %v1536_v28  ;;  %v9782_v30 = vpop.f32.mrb[89].mxu1  ;;  %2873 = vrot.lane.b32.xlu1 %v11179_v23, %s10416_s17  ;;  %v11190_v32 = vpack.c.bf16 %v3271_v45, %v11183_v25  ;;  %v11198_v9 = vld [vmem:[#allocation2 + $0x78] sm:$0xff] }
 0x1a8   :  { %2329 = vrot.lane.b32.xlu0 %v2310_v40, %s13736_s23  ;;  %v1539_v13 = vpop.f32.mrb[90].mxu1  ;;  %v11203_v31 = vld [vmem:[#allocation2 + $0x32] sm:$0xff]  ;;  %v1946_v19 = vpack.c.bf16 %v2838_v16, %v11089_v61 }
 0x1a9   :  { %v1221_v35 = vmax.f32 %v10967_v33, %v1169_v52  ;;  %v1170_v37 = vmax.f32 %v1124_v7, 0.0  ;;  %v1585_v46 = vmax.f32 %v1537_v26, 0.0  ;;  %v1540_v47 = vadd.f32 %v11118_v38, %v1539_v13  ;;  %v9783_v53 = vpop.f32.mrb[91].mxu1  ;;  %2833 = vst.msk [vmem:[#allocation3 + $0x48] sm:$0xff] %vm13741_vm1, %v11190_v32  ;;  %v2980_v13 = vld [vmem:[#allocation2 + $0x2e] sm:$0xff] }
 0x1aa   :  { %v11207_v33 = vpack.c.bf16 %v11198_v9, %v11196_v59  ;;  %v2747_v52 = vpack.c.bf16 %v11203_v31, %v11168_v3 }
 0x1ab   :  { %v1222_v5 = vmax.f32 %v10970_v41, %v1170_v37  ;;  %v1637_v12 = vmax.f32 %v1221_v35, %v1585_v46  ;;  %v1586_v8 = vmax.f32 %v1540_v47, 0.0  ;;  %2944 = vrot.lane.b32.xlu1 %v11194_v49, %s10418_s19  ;;  %v2997_v47 = vpack.c.bf16 %v2981_v57, %v2980_v13  ;;  %v2586_v13 = vld [vmem:[#allocation2 + $0x2f] sm:$0xff] }
 0x1ac   :  { %v1128_v6 = vpop.f32.mrb[92].mxu0  ;;  %1820 = vrot.lane.b32.xlu0 %v2310_v40, %s10418_s19  ;;  %1705 = vst.msk [vmem:[#allocation3 + $0x70] sm:$0xff] %vm13741_vm1, %v11207_v33  ;;  %v11219_v45 = vld [vmem:[#allocation2 + $0x7b] sm:$0xff] }
 0x1ad   :  { %v1129_v10 = vadd.f32 %v11118_v38, %v1128_v6  ;;  %v9718_v15 = vpop.f32.mrb[93].mxu0  ;;  %1663 = vst [vmem:[#allocation2 + $0x90] sm:$0xff] %v1637_v12  ;;  %v1638_v50 = vmax.f32 %v1222_v5, %v1586_v8  ;;  %v11229_v5 = vld [vmem:[#allocation2 + $0x80] sm:$0xff] }
 0x1ae   :  { %v1131_v41 = vpop.f32.mrb[94].mxu0  ;;  %v1544_v28 = vpop.f32.mrb[92].mxu1  ;;  %v3273_v26 = vld [vmem:[#allocation2 + $0x83] sm:$0xff] }
 0x1af   :  { %v1171_v7 = vmax.f32 %v1129_v10, 0.0  ;;  %v1132_v40 = vadd.f32 %v11118_v38, %v1131_v41  ;;  %v9719_v24 = vpop.f32.mrb[95].mxu0  ;;  %1664 = vst [vmem:[#allocation2 + $0x98] sm:$0xff] %v1638_v50  ;;  %v1545_v30 = vadd.f32 %v11118_v38, %v1544_v28  ;;  %v9786_v35 = vpop.f32.mrb[93].mxu1  ;;  %2765 = vrot.lane.b32.xlu1 %v2747_v52, %s13768_s13  ;;  %v11225_v61 = vpack.c.bf16 %v3273_v26, %v11219_v45  ;;  %v10212_v26 = vld [vmem:[%s13723_s3 + $0x40] sm:$0xff]  }
 0x1b0   :  { %1966 = vrot.lane.b32.xlu0 %v1946_v19, %s10417_s18  ;;  %v1547_v37 = vpop.f32.mrb[94].mxu1  ;;  %v1696_v41 = vpack.c.bf16 %v11229_v5, %v11229_v5  ;;  %v2587_v24 = vld [vmem:[#allocation2 + $0x37] sm:$0xff]  ;;  %9238 = vmatprep.subr.bf16.mxu0 %v10212_v26 }
 0x1b1   :  { %v1223_v3 = vmax.f32 %v10975_v60, %v1171_v7  ;;  %v1172_v16 = vmax.f32 %v1132_v40, 0.0  ;;  %v1587_v44 = vmax.f32 %v1545_v30, 0.0  ;;  %v1548_v46 = vadd.f32 %v11118_v38, %v1547_v37  ;;  %v9787_v53 = vpop.f32.mrb[95].mxu1  ;;  %2834 = vst.msk [vmem:[#allocation3 + $0x58] sm:$0xff] %vm13741_vm1, %v11225_v61  ;;  %v10213_v30 = vld [vmem:[%s13723_s3] sm:$0xff]  }
 0x1b2   :  { %1707 = vst.msk [vmem:[#allocation3 + $0x80] sm:$0xf] %vm13740_vm2, %v1696_v41  ;;  %v2602_v53 = vpack.c.bf16 %v2587_v24, %v2586_v13  ;;  %9239 = vmatpush3.bf16.msra.mxu0 %v10213_v30  ;;  %v2223_v30 = vld [vmem:[#allocation2 + $0x31] sm:$0xff] }
 0x1b3   :  { %v1224_v6 = vmax.f32 %v10978_v2, %v1172_v16  ;;  %v1639_v8 = vmax.f32 %v1223_v3, %v1587_v44  ;;  %v1588_v10 = vmax.f32 %v1548_v46, 0.0  ;;  %2402 = vrot.lane.b32.xlu1 %v11179_v23, %s13742_s27 }
 0x1b4   :  { %v1136_v12 = vpop.f32.mrb[96].mxu0  ;;  %3015 = vrot.lane.b32.xlu0 %v2997_v47, %s10415_s16  ;;  %v3274_v35 = vld [vmem:[#allocation2 + $0x8b] sm:$0xff] }
 0x1b5   :  { %v1137_v60 = vadd.f32 %v11118_v38, %v1136_v12  ;;  %v9722_v15 = vpop.f32.mrb[97].mxu0  ;;  %1665 = vst [vmem:[#allocation2 + $0xa0] sm:$0xff] %v1639_v8  ;;  %v1640_v19 = vmax.f32 %v1224_v6, %v1588_v10  ;;  %v10214_v8 = vld [vmem:[%s13723_s3 + $0x48] sm:$0xff]  }
 0x1b6   :  { %v1139_v50 = vpop.f32.mrb[98].mxu0  ;;  %v1552_v40 = vpop.f32.mrb[96].mxu1  ;;  %v3275_v28 = vld [vmem:[#allocation2 + $0x93] sm:$0xff]  ;;  %v10215_v15 = vld [vmem:[%s13723_s3 + $0x8] sm:$0xff]   ;;  %9240 = vmatprep.subr.bf16.mxu0 %v10214_v8  ;;  %v10221_v8 = vld [vmem:[%s13723_s3 + $0x20] sm:$0xff]  }
 0x1b7   :  { %v1173_v52 = vmax.f32 %v1137_v60, 0.0  ;;  %v1140_v2 = vadd.f32 %v11118_v38, %v1139_v50  ;;  %v9723_v7 = vpop.f32.mrb[99].mxu0  ;;  %1666 = vst [vmem:[#allocation2 + $0xa8] sm:$0xff] %v1640_v19  ;;  %v1553_v23 = vadd.f32 %v11118_v38, %v1552_v40  ;;  %v9790_v57 = vpop.f32.mrb[97].mxu1  ;;  %2548 = vrot.lane.b32.xlu1 %v2997_v47, %s13734_s30  ;;  %v11253_v44 = vpack.c.bf16 %v3275_v28, %v3274_v35  ;;  %v10216_v40 = vld [vmem:[%s13723_s3 + $0x50] sm:$0xff]  }
 0x1b8   :  { %2475 = vrot.lane.b32.xlu0 %v11194_v49, %s13744_s25  ;;  %v1555_v37 = vpop.f32.mrb[98].mxu1  ;;  %v2224_v7 = vld [vmem:[#allocation2 + $0x39] sm:$0xff]  ;;  %9241 = vmatpush3.bf16.msra.mxu0 %v10215_v15 }
 0x1b9   :  { %v1225_v3 = vmax.f32 %v10983_v21, %v1173_v52  ;;  %v1174_v16 = vmax.f32 %v1140_v2, 0.0  ;;  %v1589_v46 = vmax.f32 %v1553_v23, 0.0  ;;  %v1556_v49 = vadd.f32 %v11118_v38, %v1555_v37  ;;  %v9791_v6 = vpop.f32.mrb[99].mxu1  ;;  %2835 = vst.msk [vmem:[#allocation3 + $0x68] sm:$0xff] %vm13741_vm1, %v11253_v44  ;;  %v10217_v23 = vld [vmem:[%s13723_s3 + $0x10] sm:$0xff]   ;;  %9242 = vmatprep.subr.bf16.mxu0 %v10216_v40 }
 0x1ba   :  { %v2238_v37 = vpack.c.bf16 %v2224_v7, %v2223_v30  ;;  %v2297_v6 = vld [vmem:[#allocation2 + $0x3a] sm:$0xff]  ;;  %v11341_v40 = vld [vmem:[#allocation6] sm:$0xff] }
 0x1bb   :  { %v1226_v12 = vmax.f32 %v10986_v27, %v1174_v16  ;;  %v1641_v10 = vmax.f32 %v1225_v3, %v1589_v46  ;;  %v1590_v60 = vmax.f32 %v1556_v49, 0.0  ;;  %2039 = vrot.lane.b32.xlu1 %v2997_v47, %s10420_s21  ;;  %v10219_v49 = vld [vmem:[%s13723_s3 + $0x18] sm:$0xff]  }
 0x1bc   :  { %v1144_v21 = vpop.f32.mrb[100].mxu0  ;;  %2621 = vrot.lane.b32.xlu0 %v2602_v53, %s13738_s26  ;;  %v3276_v35 = vld [vmem:[#allocation2 + $0x9b] sm:$0xff]  ;;  %9243 = vmatpush3.bf16.msra.mxu0 %v10217_v23  ;;  %v2589_v23 = vld [vmem:[#allocation2 + $0x47] sm:$0xff]  ;;  %s13773_s26 = smov 104  }
 0x1bd   :  { %v1145_v27 = vadd.f32 %v11118_v38, %v1144_v21  ;;  %v9726_v41 = vpop.f32.mrb[101].mxu0  ;;  %1667 = vst [vmem:[#allocation2 + $0xb0] sm:$0xff] %v1641_v10  ;;  %v1642_v19 = vmax.f32 %v1226_v12, %v1590_v60  ;;  %v2311_v21 = vpack.c.bf16 %v2297_v6, %v11203_v31  ;;  %v1874_v10 = vpack.c.bf16 %v11091_v56, %v11067_v14  ;;  %v3123_v60 = vld [vmem:[#allocation2 + $0x41] sm:$0xff]  ;;  %v10224_v14 = vld [vmem:[%s13723_s3 + $0x70] sm:$0xff]  }
 0x1be   :  { %v1147_v50 = vpop.f32.mrb[102].mxu0  ;;  %v1560_v2 = vpop.f32.mrb[100].mxu1  ;;  %v3277_v3 = vld [vmem:[#allocation2 + $0xa3] sm:$0xff]  ;;  %v10225_v56 = vld [vmem:[%s13723_s3 + $0x30] sm:$0xff]  }
 0x1bf   :  { %v1175_v52 = vmax.f32 %v1145_v27, 0.0  ;;  %v9727_v47 = vpop.f32.mrb[103].mxu0  ;;  %1668 = vst [vmem:[#allocation2 + $0xb8] sm:$0xff] %v1642_v19  ;;  %v1561_v24 = vadd.f32 %v11118_v38, %v1560_v2  ;;  %v9794_v28 = vpop.f32.mrb[101].mxu1  ;;  %2694 = vrot.lane.b32.xlu1 %v11042_v42, %s13732_s12  ;;  %v11279_v38 = vpack.c.bf16 %v3277_v3, %v3276_v35  ;;  %v1934_v31 = vld [vmem:[#allocation2 + $0x3c] sm:$0xff]  ;;  %v11326_v41 = vld [vmem:[#allocation2 + $0x44] sm:$0xff] }
 0x1c0   :  { %2112 = vrot.lane.b32.xlu0 %v2602_v53, %s10419_s20  ;;  %v1563_v26 = vpop.f32.mrb[102].mxu1  ;;  %v1947_v15 = vpack.c.bf16 %v1934_v31, %v11170_v39  ;;  %v11324_v27 = vld [vmem:[#allocation2 + $0x42] sm:$0xff]  ;;  %v10226_v50 = vld [vmem:[%s13723_s3 + $0x78] sm:$0xff]  }
 0x1c1   :  { %v1227_v57 = vmax.f32 %v10989_v43, %v1175_v52  ;;  %v1591_v16 = vmax.f32 %v1561_v24, 0.0  ;;  %v9795_v13 = vpop.f32.mrb[103].mxu1  ;;  %v10218_v43 = vld [vmem:[%s13723_s3 + $0x58] sm:$0xff]   ;;  %2836 = vst.msk [vmem:[#allocation3 + $0x78] sm:$0xff] %vm13741_vm1, %v11279_v38  ;;  %v3210_v39 = vpack.c.bf16 %v11324_v27, %v2297_v6  ;;  %v2856_v52 = vpack.c.bf16 %v11326_v41, %v1934_v31  ;;  %v2912_v2 = vld [vmem:[#allocation2 + $0x45] sm:$0xff] }
 0x1c2   :  { %9244 = vmatprep.subr.bf16.mxu0 %v10218_v43  ;;  %v10227_v19 = vld [vmem:[%s13723_s3 + $0x38] sm:$0xff]   ;;  %v2983_v47 = vld [vmem:[#allocation2 + $0x46] sm:$0xff]  ;;  %v1875_v6 = vpack.c.bf16 %v11121_v22, %v11093_v0  ;;  %vm13756_vm1 = vcmask 1048512  }
 0x1c3   :  { %v1643_v46 = vmax.f32 %v1227_v57, %v1591_v16  ;;  %2185 = vrot.lane.b32.xlu1 %v11042_v42, %s10421_s22  ;;  %9245 = vmatpush3.bf16.msra.mxu0 %v10219_v49  ;;  %v10220_v42 = vld [vmem:[%s13723_s3 + $0x60] sm:$0xff]   ;;  %v2226_v3 = vld [vmem:[#allocation2 + $0x49] sm:$0xff]  ;;  %v11383_v22 = vld [vmem:[#allocation2 + $0x54] sm:$0xff] }
 0x1c4   :  { %2258 = vrot.lane.b32.xlu0 %v2238_v37, %s10423_s24  ;;  %v3278_v53 = vld [vmem:[#allocation2 + $0xab] sm:$0xff]  ;;  %9246 = vmatprep.subr.bf16.mxu0 %v10220_v42  ;;  %v2982_v24 = vld [vmem:[#allocation2 + $0x3e] sm:$0xff]  ;;  %v2239_v13 = vpack.c.bf16 %v2226_v3, %v3123_v60  ;;  %v2914_v31 = vld [vmem:[#allocation2 + $0x55] sm:$0xff] }
 0x1c5   :  { %1669 = vst [vmem:[#allocation2 + $0xc0] sm:$0xff] %v1643_v46  ;;  %v2828_v12 = vpack.c.bf16 %v3278_v53, %v3278_v53  ;;  %v2998_v28 = vpack.c.bf16 %v2983_v47, %v2982_v24  ;;  %v2588_v57 = vld [vmem:[#allocation2 + $0x3f] sm:$0xff]  ;;  %v2299_v42 = vld [vmem:[#allocation2 + $0x4a] sm:$0xff]  ;;  %v2591_v24 = vld [vmem:[#allocation2 + $0x57] sm:$0xff] }
 0x1c6   :  { %v2603_v26 = vpack.c.bf16 %v2589_v23, %v2588_v57 }
 0x1c7   :  { %3086 = vrot.lane.b32.xlu1 %v3068_v4, %s10417_s18  ;;  %2837 = vst.msk [vmem:[#allocation3 + $0x88] sm:$0xf] %vm13740_vm2, %v2828_v12  ;;  %9247 = vmatpush3.bf16.msra.mxu0 %v10221_v8  ;;  %v3139_v4 = vpack.c.bf16 %v3123_v60, %v2224_v7  ;;  %v2911_v7 = vld [vmem:[#allocation2 + $0x3d] sm:$0xff]  ;;  %v11369_v12 = vld [vmem:[#allocation2 + $0x51] sm:$0xff]  ;;  %vm13750_vm2 = vcmask 982912  }
 0x1c8   :  { %1749 = vrot.lane.b32.xlu0 %v2238_v37, %s10416_s17  ;;  %9248 = vmatprep.subr.bf16.mxu0 %v10222_v36  ;;  %v3140_v0 = vpack.c.bf16 %v11369_v12, %v2226_v3  ;;  %v2228_v3 = vld [vmem:[#allocation2 + $0x59] sm:$0xff] }
 0x1cb   :  { %2331 = vrot.lane.b32.xlu1 %v2311_v21, %s13736_s23  ;;  %9249 = vmatpush3.bf16.msra.mxu0 %v10223_v63 }
 0x1cc   :  { %1895 = vrot.lane.b32.xlu0 %v1874_v10, %s10415_s16  ;;  %9250 = vmatprep.subr.bf16.mxu0 %v10224_v14  ;;  %v2913_v14 = vld [vmem:[#allocation2 + $0x4d] sm:$0xff] }
 0x1cf   :  { %1822 = vrot.lane.b32.xlu1 %v2311_v21, %s10418_s19  ;;  %9251 = vmatpush3.bf16.msra.mxu0 %v10225_v56  ;;  %v2312_v21 = vpack.c.bf16 %v2299_v42, %v11324_v27  ;;  %v2928_v27 = vpack.c.bf16 %v2914_v31, %v2913_v14  ;;  %v2915_v31 = vld [vmem:[#allocation2 + $0x5d] sm:$0xff] }
 0x1d0   :  { %3157 = vrot.lane.b32.xlu0 %v3139_v4, %s10420_s21  ;;  %9252 = vmatprep.subr.bf16.mxu0 %v10226_v50  ;;  %v11392_v4 = vld [vmem:[#allocation2 + $0x52] sm:$0xff] }
 0x1d3   :  { %1968 = vrot.lane.b32.xlu1 %v1947_v15, %s10417_s18  ;;  %9253 = vmatpush3.bf16.msra.mxu0 %v10227_v19  ;;  %v3211_v15 = vpack.c.bf16 %v11392_v4, %v2299_v42  ;;  %v2985_v19 = vld [vmem:[#allocation2 + $0x56] sm:$0xff] }
 0x1d4   :  { %3299 = vrot.lane.b32.xlu0 %v11102_v48, %s10421_s22  ;;  %9864 = vmatprep.subr.bf16.mxu0 %v11341_v40  ;;  %v2927_v48 = vpack.c.bf16 %v2912_v2, %v2911_v7 }
 0x1d7   :  { %3228 = vrot.lane.b32.xlu1 %v3210_v39, %s10419_s20 }
 0x1d8   :  { %2875 = vrot.lane.b32.xlu0 %v2856_v52, %s10416_s17 }
 0x1db   :  { %3370 = vrot.lane.b32.xlu1 %v2856_v52, %s10423_s24 }
 0x1dc   :  { %2946 = vrot.lane.b32.xlu0 %v2927_v48, %s10418_s19 }
 0x1df   :  { %3017 = vrot.lane.b32.xlu1 %v2998_v28, %s10415_s16 }
 0x1e0   :  { %2767 = vrot.lane.b32.xlu0 %v3210_v39, %s13768_s13  ;;  %v2984_v39 = vld [vmem:[#allocation2 + $0x4e] sm:$0xff] }
 0x1e1   :  { %v2999_v7 = vpack.c.bf16 %v2985_v19, %v2984_v39 }
 0x1e3   :  { %2477 = vrot.lane.b32.xlu1 %v2927_v48, %s13744_s25 }
 0x1e4   :  { %2404 = vrot.lane.b32.xlu0 %v2856_v52, %s13742_s27 }
 0x1e7   :  { %2623 = vrot.lane.b32.xlu1 %v2603_v26, %s13773_s26 }
 0x1e8   :  { %2550 = vrot.lane.b32.xlu0 %v2998_v28, %s13774_s29 }
 0x1e9   :  { %v1890_v30 = vpop.permute.xlu1 %1889 }
 0x1ea   :  { %v1744_v35 = vpop.permute.xlu0 %1743 }
 0x1eb   :  { %1771 = vst.msk [vmem:[#allocation3] sm:$0xff] %vm1770_vm3, %v1744_v35  ;;  %2114 = vrot.lane.b32.xlu1 %v2603_v26, %s10419_s20 }
 0x1ec   :  { %2041 = vrot.lane.b32.xlu0 %v2998_v28, %s10420_s21  ;;  %v2590_v28 = vld [vmem:[#allocation2 + $0x4f] sm:$0xff] }
 0x1ed   :  { %v1963_v16 = vpop.permute.xlu1 %1962  ;;  %v2604_v26 = vpack.c.bf16 %v2591_v24, %v2590_v28 }
 0x1ee   :  { %v1817_v37 = vpop.permute.xlu0 %1816 }
 0x1ef   :  { %1844 = vst.msk [vmem:[#allocation3] sm:$0xff] %vm1843_vm4, %v1817_v37  ;;  %2260 = vrot.lane.b32.xlu1 %v2239_v13, %s10423_s24 }
 0x1f0   :  { %1917 = vst.msk [vmem:[#allocation3] sm:$0xff] %vm1916_vm5, %v1890_v30  ;;  %2696 = vrot.lane.b32.xlu0 %v11075_v20, %s13775_s14 }
 0x1f1   :  { %1990 = vst.msk [vmem:[#allocation3] sm:$0xff] %vm1989_vm6, %v1963_v16  ;;  %v2109_v46 = vpop.permute.xlu1 %2108 }
 0x1f2   :  { %v2036_v43 = vpop.permute.xlu0 %2035 }
 0x1f3   :  { %2063 = vst.msk [vmem:[#allocation3] sm:$0xff] %vm2062_vm7, %v2036_v43  ;;  %1751 = vrot.lane.b32.xlu1 %v2239_v13, %s10416_s17  ;;  %v2240_v13 = vpack.c.bf16 %v2228_v3, %v11369_v12 }
 0x1f4   :  { %2187 = vrot.lane.b32.xlu0 %v11075_v20, %s10421_s22  ;;  %2136 = vst.msk [vmem:[#allocation3] sm:$0xff] %vm2135_vm8, %v2109_v46  ;;  %v11426_v46 = vld [vmem:[#allocation2 + $0x60] sm:$0xff] }
 0x1f5   :  { %v2328_v53 = vpop.permute.xlu1 %2327 }
 0x1f6   :  { %v2182_v49 = vpop.permute.xlu0 %2181 }
 0x1f7   :  { %2209 = vst.msk [vmem:[#allocation3] sm:$0xff] %vm2208_vm9, %v2182_v49  ;;  %1897 = vrot.lane.b32.xlu1 %v1875_v6, %s10415_s16  ;;  %v2301_v6 = vld [vmem:[#allocation2 + $0x5a] sm:$0xff] }
 0x1f8   :  { %3088 = vrot.lane.b32.xlu0 %v3069_v1, %s10417_s18  ;;  %v1936_v1 = vld [vmem:[#allocation2 + $0x4c] sm:$0xff] }
 0x1f9   :  { %v1819_v8 = vpop.permute.xlu1 %1818  ;;  %v1948_v36 = vpack.c.bf16 %v1936_v1, %v11326_v41  ;;  %v2857_v63 = vpack.c.bf16 %v11383_v22, %v1936_v1  ;;  %v11455_v1 = vld [vmem:[#allocation2 + $0x62] sm:$0xff] }
 0x1fa   :  { %v2255_v20 = vpop.permute.xlu0 %2254 }
 0x1fb   :  { %2282 = vst.msk [vmem:[#allocation3] sm:$0xff] %vm2281_vm10, %v2255_v20  ;;  %3159 = vrot.lane.b32.xlu1 %v3140_v0, %s10420_s21  ;;  %v1876_v20 = vpack.c.bf16 %v11148_v55, %v11123_v58 }
 0x1fc   :  { %2333 = vrot.lane.b32.xlu0 %v2312_v21, %s13776_s15  ;;  %2355 = vst.msk [vmem:[#allocation3] sm:$0xff] %vm13753_vm11, %v2328_v53  ;;  %v3070_v53 = vpack.c.bf16 %v11426_v46, %v11134_v11  ;;  %v11443_v11 = vld [vmem:[#allocation2 + $0x61] sm:$0xff] }
 0x1fd   :  { %v1965_v62 = vpop.permute.xlu1 %1964  ;;  %v3141_v0 = vpack.c.bf16 %v11443_v11, %v2228_v3 }
 0x1fe   :  { %v1746_v17 = vpop.permute.xlu0 %1745 }
 0x1ff   :  { %1772 = vst.msk [vmem:[#allocation3 + $0x10] sm:$0xff] %vm1770_vm3, %v1746_v17  ;;  %3301 = vrot.lane.b32.xlu1 %v11130_v51, %s10421_s22 }
 0x200   :  { %1845 = vst.msk [vmem:[#allocation3 + $0x10] sm:$0xff] %vm1843_vm4, %v1819_v8  ;;  %1824 = vrot.lane.b32.xlu0 %v2312_v21, %s10418_s19 }
 0x201   :  { %v2474_v60 = vpop.permute.xlu1 %2473 }
 0x202   :  { %v1892_v10 = vpop.permute.xlu0 %1891 }
 0x203   :  { %1918 = vst.msk [vmem:[#allocation3 + $0x10] sm:$0xff] %vm1916_vm5, %v1892_v10  ;;  %2877 = vrot.lane.b32.xlu1 %v2857_v63, %s10416_s17  ;;  %v11457_v10 = vld [vmem:[#allocation2 + $0x64] sm:$0xff] }
 0x204   :  { %1991 = vst.msk [vmem:[#allocation3 + $0x10] sm:$0xff] %vm1989_vm6, %v1965_v62  ;;  %1970 = vrot.lane.b32.xlu0 %v1948_v36, %s10417_s18  ;;  %v1938_v62 = vld [vmem:[#allocation2 + $0x5c] sm:$0xff] }
 0x205   :  { %v2620_v51 = vpop.permute.xlu1 %2619  ;;  %v1949_v17 = vpack.c.bf16 %v1938_v62, %v11383_v22  ;;  %v2916_v22 = vld [vmem:[#allocation2 + $0x65] sm:$0xff] }
 0x206   :  { %v2401_v56 = vpop.permute.xlu0 %2400 }
 0x207   :  { %2428 = vst.msk [vmem:[#allocation3] sm:$0xff] %vm13757_vm12, %v2401_v56  ;;  %2948 = vrot.lane.b32.xlu1 %v2928_v27, %s10418_s19  ;;  %v2929_v56 = vpack.c.bf16 %v2916_v22, %v2915_v31  ;;  %v2988_v22 = vld [vmem:[#allocation2 + $0x6e] sm:$0xff] }
 0x208   :  { %3230 = vrot.lane.b32.xlu0 %v3211_v15, %s10419_s20  ;;  %2501 = vst.msk [vmem:[#allocation3] sm:$0xff] %vm13748_vm13, %v2474_v60 }
 0x209   :  { %v2111_v50 = vpop.permute.xlu1 %2110 }
 0x20a   :  { %v2547_v41 = vpop.permute.xlu0 %2546 }
 0x20b   :  { %2574 = vst.msk [vmem:[#allocation3] sm:$0xff] %vm13747_vm14, %v2547_v41  ;;  %2769 = vrot.lane.b32.xlu1 %v3211_v15, %s13768_s13  ;;  %v2986_v15 = vld [vmem:[#allocation2 + $0x5e] sm:$0xff] }
 0x20c   :  { %3372 = vrot.lane.b32.xlu0 %v2857_v63, %s10423_s24  ;;  %2647 = vst.msk [vmem:[#allocation3] sm:$0xff] %vm13746_vm15, %v2620_v51 }
 0x20d   :  { %v2257_v2 = vpop.permute.xlu1 %2256 }
 0x20e   :  { %v2038_v52 = vpop.permute.xlu0 %2037 }
 0x20f   :  { %2064 = vst.msk [vmem:[#allocation3 + $0x10] sm:$0xff] %vm2062_vm7, %v2038_v52  ;;  %2406 = vrot.lane.b32.xlu1 %v2857_v63, %s13742_s27  ;;  %v3212_v63 = vpack.c.bf16 %v11455_v1, %v2301_v6  ;;  %v2593_v52 = vld [vmem:[#allocation2 + $0x67] sm:$0xff] }
 0x210   :  { %2137 = vst.msk [vmem:[#allocation3 + $0x10] sm:$0xff] %vm2135_vm8, %v2111_v50  ;;  %3019 = vrot.lane.b32.xlu0 %v2999_v7, %s10415_s16 }
 0x211   :  { %v1748_v47 = vpop.permute.xlu1 %1747 }
 0x212   :  { %v2693_v48 = vpop.permute.xlu0 %2692  ;;  %1773 = vst.msk [vmem:[#allocation3 + $0x20] sm:$0xff] %vm1770_vm3, %v1748_v47 }
 0x213   :  { %2720 = vst.msk [vmem:[#allocation3] sm:$0xff] %vm13750_vm2, %v2693_v48  ;;  %2552 = vrot.lane.b32.xlu1 %v2999_v7, %s13774_s29 }
 0x214   :  { %2479 = vrot.lane.b32.xlu0 %v2928_v27, %s13744_s25 }
 0x215   :  { %v1894_v57 = vpop.permute.xlu1 %1893 }
 0x216   :  { %v2184_v23 = vpop.permute.xlu0 %2183 }
 0x217   :  { %2210 = vst.msk [vmem:[#allocation3 + $0x10] sm:$0xff] %vm2208_vm9, %v2184_v23  ;;  %2043 = vrot.lane.b32.xlu1 %v2999_v7, %s10420_s21  ;;  %v2230_v23 = vld [vmem:[#allocation2 + $0x69] sm:$0xff] }
 0x218   :  { %2283 = vst.msk [vmem:[#allocation3 + $0x10] sm:$0xff] %vm2281_vm10, %v2257_v2  ;;  %2625 = vrot.lane.b32.xlu0 %v2604_v26, %s13773_s26  ;;  %v2592_v2 = vld [vmem:[#allocation2 + $0x5f] sm:$0xff] }
 0x219   :  { %v2874_v35 = vpop.permute.xlu1 %2873  ;;  %v2605_v47 = vpack.c.bf16 %v2593_v52, %v2592_v2  ;;  %v2232_v2 = vld [vmem:[#allocation2 + $0x79] sm:$0xff] }
 0x21a   :  { %v2330_v30 = vpop.permute.xlu0 %2329  ;;  %2900 = vst.msk [vmem:[#allocation3 + $0x8] sm:$0xff] %vm1770_vm3, %v2874_v35  ;;  %v2241_v35 = vpack.c.bf16 %v2230_v23, %v11443_v11  ;;  %v11516_v11 = vld [vmem:[#allocation2 + $0x74] sm:$0xff] }
 0x21b   :  { %2356 = vst.msk [vmem:[#allocation3 + $0x10] sm:$0xff] %vm13753_vm11, %v2330_v30  ;;  %2698 = vrot.lane.b32.xlu1 %v11140_v18, %s13775_s14  ;;  %v2678_v30 = vpack.c.bf16 %v11163_v54, %v11426_v46  ;;  %v3071_v46 = vpack.c.bf16 %v11196_v59, %v11163_v54 }
 0x21c   :  { %2116 = vrot.lane.b32.xlu0 %v2604_v26, %s10419_s20 }
 0x21d   :  { %v2945_v37 = vpop.permute.xlu1 %2944 }
 0x21e   :  { %v1821_v16 = vpop.permute.xlu0 %1820  ;;  %2971 = vst.msk [vmem:[#allocation3 + $0x8] sm:$0xff] %vm1843_vm4, %v2945_v37 }
 0x21f   :  { %1846 = vst.msk [vmem:[#allocation3 + $0x20] sm:$0xff] %vm1843_vm4, %v1821_v16  ;;  %2189 = vrot.lane.b32.xlu1 %v11140_v18, %s10421_s22  ;;  %v2313_v18 = vpack.c.bf16 %v2301_v6, %v11392_v4  ;;  %v2858_v4 = vpack.c.bf16 %v11457_v10, %v1938_v62 }
 0x220   :  { %1919 = vst.msk [vmem:[#allocation3 + $0x20] sm:$0xff] %vm1916_vm5, %v1894_v57  ;;  %2262 = vrot.lane.b32.xlu0 %v2240_v13, %s10423_s24 }
 0x221   :  { %v2766_v49 = vpop.permute.xlu1 %2765 }
 0x222   :  { %v1967_v43 = vpop.permute.xlu0 %1966  ;;  %2793 = vst.msk [vmem:[#allocation3] sm:$0xff] %vm13756_vm1, %v2766_v49  ;;  %v2303_v49 = vld [vmem:[#allocation2 + $0x6a] sm:$0xff] }
 0x223   :  { %1992 = vst.msk [vmem:[#allocation3 + $0x20] sm:$0xff] %vm1989_vm6, %v1967_v43  ;;  %3090 = vrot.lane.b32.xlu1 %v3070_v53, %s10417_s18  ;;  %v1877_v43 = vpack.c.bf16 %v11183_v25, %v11150_v29  ;;  %v11505_v53 = vld [vmem:[#allocation2 + $0x71] sm:$0xff] }
 0x224   :  { %1753 = vrot.lane.b32.xlu0 %v2240_v13, %s10416_s17  ;;  %v3142_v54 = vpack.c.bf16 %v11505_v53, %v2230_v23  ;;  %v3072_v23 = vpack.c.bf16 %v11229_v5, %v11198_v9  ;;  %v11572_v9 = vld [vmem:[#allocation2 + $0x81] sm:$0xff] }
 0x225   :  { %v2403_v12 = vpop.permute.xlu1 %2402 }
 0x226   :  { %v3016_v42 = vpop.permute.xlu0 %3015  ;;  %2429 = vst.msk [vmem:[#allocation3 + $0x10] sm:$0xff] %vm13757_vm12, %v2403_v12 }
 0x227   :  { %3042 = vst.msk [vmem:[#allocation3 + $0x8] sm:$0xff] %vm1916_vm5, %v3016_v42  ;;  %2335 = vrot.lane.b32.xlu1 %v2313_v18, %s13776_s15 }
 0x228   :  { %1899 = vrot.lane.b32.xlu0 %v1876_v20, %s10415_s16  ;;  %v1940_v20 = vld [vmem:[#allocation2 + $0x6c] sm:$0xff] }
 0x229   :  { %v2549_v21 = vpop.permute.xlu1 %2548  ;;  %v3406_v29 = vld [vmem:[#allocation3] sm:$0xff]  ;;  %v2859_v62 = vpack.c.bf16 %v11516_v11, %v1940_v20 }
 0x22a   :  { %v2476_v8 = vpop.permute.xlu0 %2475 }
 0x22b   :  { %2502 = vst.msk [vmem:[#allocation3 + $0x10] sm:$0xff] %vm13748_vm13, %v2476_v8  ;;  %1826 = vrot.lane.b32.xlu1 %v2313_v18, %s10418_s19  ;;  %v2314_v18 = vpack.c.bf16 %v2303_v49, %v11455_v1 }
 0x22c   :  { %2575 = vst.msk [vmem:[#allocation3 + $0x10] sm:$0xff] %vm13747_vm14, %v2549_v21  ;;  %3161 = vrot.lane.b32.xlu0 %v3141_v0, %s10420_s21  ;;  %v1950_v0 = vpack.c.bf16 %v1940_v20, %v11457_v10 }
 0x22d   :  { %v2040_v55 = vpop.permute.xlu1 %2039 }
 0x22e   :  { %v2622_v58 = vpop.permute.xlu0 %2621  ;;  %2065 = vst.msk [vmem:[#allocation3 + $0x20] sm:$0xff] %vm2062_vm7, %v2040_v55  ;;  %v2918_v55 = vld [vmem:[#allocation2 + $0x75] sm:$0xff] }
 0x22f   :  { %2648 = vst.msk [vmem:[#allocation3 + $0x10] sm:$0xff] %vm13746_vm15, %v2622_v58  ;;  %1972 = vrot.lane.b32.xlu1 %v1949_v17, %s10417_s18  ;;  %v11525_v58 = vld [vmem:[#allocation2 + $0x72] sm:$0xff] }
 0x230   :  { %3303 = vrot.lane.b32.xlu0 %v11158_v34, %s10421_s22  ;;  %v2987_v34 = vld [vmem:[#allocation2 + $0x66] sm:$0xff] }
 0x231   :  { %v2695_v36 = vpop.permute.xlu1 %2694  ;;  %v3000_v50 = vpack.c.bf16 %v2987_v34, %v2986_v15  ;;  %v2917_v17 = vld [vmem:[#allocation2 + $0x6d] sm:$0xff]  ;;  %v2595_v15 = vld [vmem:[#allocation2 + $0x77] sm:$0xff] }
 0x232   :  { %v2113_v60 = vpop.permute.xlu0 %2112  ;;  %2721 = vst.msk [vmem:[#allocation3 + $0x10] sm:$0xff] %vm13750_vm2, %v2695_v36  ;;  %v2930_v36 = vpack.c.bf16 %v2918_v55, %v2917_v17 }
 0x233   :  { %2138 = vst.msk [vmem:[#allocation3 + $0x20] sm:$0xff] %vm2135_vm8, %v2113_v60  ;;  %3232 = vrot.lane.b32.xlu1 %v3212_v63, %s10419_s20  ;;  %v3213_v60 = vpack.c.bf16 %v11525_v58, %v2303_v49 }
 0x234   :  { %2879 = vrot.lane.b32.xlu0 %v2858_v4, %s10416_s17 }
 0x235   :  { %v2186_v14 = vpop.permute.xlu1 %2185 }
 0x236   :  { %v2259_v51 = vpop.permute.xlu0 %2258  ;;  %2211 = vst.msk [vmem:[#allocation3 + $0x20] sm:$0xff] %vm2208_vm9, %v2186_v14 }
 0x237   :  { %2284 = vst.msk [vmem:[#allocation3 + $0x20] sm:$0xff] %vm2281_vm10, %v2259_v51  ;;  %3374 = vrot.lane.b32.xlu1 %v2858_v4, %s10423_s24 }
 0x238   :  { %2950 = vrot.lane.b32.xlu0 %v2929_v56, %s10418_s19 }
 0x239   :  { %v3087_v27 = vpop.permute.xlu1 %3086 }
 0x23a   :  { %v1750_v41 = vpop.permute.xlu0 %1749  ;;  %3113 = vst.msk [vmem:[#allocation3 + $0x8] sm:$0xff] %vm1989_vm6, %v3087_v27  ;;  %v2594_v27 = vld [vmem:[#allocation2 + $0x6f] sm:$0xff] }
 0x23b   :  { %1774 = vst.msk [vmem:[#allocation3 + $0x30] sm:$0xff] %vm1770_vm3, %v1750_v41  ;;  %3021 = vrot.lane.b32.xlu1 %v3000_v50, %s10415_s16 }
 0x23c   :  { %2771 = vrot.lane.b32.xlu0 %v3212_v63, %s13768_s13 }
 0x23d   :  { %v2332_v19 = vpop.permute.xlu1 %2331 }
 0x23e   :  { %v1896_v39 = vpop.permute.xlu0 %1895  ;;  %2357 = vst.msk [vmem:[#allocation3 + $0x20] sm:$0xff] %vm13753_vm11, %v2332_v19  ;;  %v2606_v19 = vpack.c.bf16 %v2595_v15, %v2594_v27  ;;  %v10381_v27 = vld [vmem:[#allocation2 + $0x80] sm:$0xff] }
 0x23f   :  { %2481 = vrot.lane.b32.xlu1 %v2929_v56, %s13744_s25 }
 0x240   :  { %2408 = vrot.lane.b32.xlu0 %v2858_v4, %s13742_s27  ;;  %v2989_v4 = vld [vmem:[#allocation2 + $0x76] sm:$0xff] }
 0x241   :  { %v1823_v7 = vpop.permute.xlu1 %1822  ;;  %v3001_v51 = vpack.c.bf16 %v2989_v4, %v2988_v22  ;;  %v10230_v22 = vld [vmem:[%s13721_s1 + $0x10] sm:$0xff]  }
 0x242   :  { %v3158_v48 = vpop.permute.xlu0 %3157  ;;  %1847 = vst.msk [vmem:[#allocation3 + $0x30] sm:$0xff] %vm1843_vm4, %v1823_v7 }
 0x243   :  { %3184 = vst.msk [vmem:[#allocation3 + $0x8] sm:$0xff] %vm2062_vm7, %v3158_v48  ;;  %2627 = vrot.lane.b32.xlu1 %v2605_v47, %s13773_s26 }
 0x244   :  { %1920 = vst.msk [vmem:[#allocation3 + $0x30] sm:$0xff] %vm1916_vm5, %v1896_v39  ;;  %2554 = vrot.lane.b32.xlu0 %v3000_v50, %s13774_s29 }
 0x245   :  { %v1969_v24 = vpop.permute.xlu1 %1968 }
 0x246   :  { %v3300_v28 = vpop.permute.xlu0 %3299  ;;  %1993 = vst.msk [vmem:[#allocation3 + $0x30] sm:$0xff] %vm1989_vm6, %v1969_v24 }
 0x247   :  { %2118 = vrot.lane.b32.xlu1 %v2605_v47, %s10419_s20  ;;  %v2242_v47 = vpack.c.bf16 %v2232_v2, %v11505_v53 }
 0x248   :  { %2045 = vrot.lane.b32.xlu0 %v3000_v50, %s10420_s21 }
 0x249   :  { %v3229_v57 = vpop.permute.xlu1 %3228 }
 0x24a   :  { %v2876_v26 = vpop.permute.xlu0 %2875  ;;  %3255 = vst.msk [vmem:[#allocation3 + $0x8] sm:$0xff] %vm2135_vm8, %v3229_v57  ;;  %v2305_v57 = vld [vmem:[#allocation2 + $0x7a] sm:$0xff] }
 0x24b   :  { %2901 = vst.msk [vmem:[#allocation3 + $0x18] sm:$0xff] %vm1770_vm3, %v2876_v26  ;;  %2264 = vrot.lane.b32.xlu1 %v2241_v35, %s10423_s24 }
 0x24c   :  { %3326 = vst.msk [vmem:[#allocation3 + $0x8] sm:$0xff] %vm2208_vm9, %v3300_v28  ;;  %2700 = vrot.lane.b32.xlu0 %v2678_v30, %s13775_s14 }
 0x24d   :  { %v3371_v3 = vpop.permute.xlu1 %3370 }
 0x24e   :  { %v2947_v16 = vpop.permute.xlu0 %2946  ;;  %3397 = vst.msk [vmem:[#allocation3 + $0x8] sm:$0xff] %vm2281_vm10, %v3371_v3 }
 0x24f   :  { %2972 = vst.msk [vmem:[#allocation3 + $0x18] sm:$0xff] %vm1843_vm4, %v2947_v16  ;;  %1755 = vrot.lane.b32.xlu1 %v2241_v35, %s10416_s17  ;;  %v10380_v35 = vld [vmem:[#allocation2 + $0x73] sm:$0xff] }
 0x250   :  { %2191 = vrot.lane.b32.xlu0 %v2678_v30, %s10421_s22  ;;  %v1878_v3 = vpack.c.bf16 %v11219_v45, %v10380_v35 }
 0x251   :  { %v3018_v37 = vpop.permute.xlu1 %3017 }
 0x252   :  { %v2768_v13 = vpop.permute.xlu0 %2767  ;;  %3043 = vst.msk [vmem:[#allocation3 + $0x18] sm:$0xff] %vm1916_vm5, %v3018_v37 }
 0x253   :  { %2794 = vst.msk [vmem:[#allocation3 + $0x10] sm:$0xff] %vm13756_vm1, %v2768_v13  ;;  %1901 = vrot.lane.b32.xlu1 %v1877_v43, %s10415_s16  ;;  %v3143_v13 = vpack.c.bf16 %v11572_v9, %v2232_v2  ;;  %v10382_v2 = vld [vmem:[#allocation2 + $0x83] sm:$0xff] }
 0x254   :  { %3092 = vrot.lane.b32.xlu0 %v3071_v46, %s10417_s18  ;;  %v1942_v46 = vld [vmem:[#allocation2 + $0x7c] sm:$0xff] }
 0x255   :  { %v2478_v6 = vpop.permute.xlu1 %2477  ;;  %v3407_v12 = vld [vmem:[#allocation3 + $0x8] sm:$0xff]  ;;  %v1951_v53 = vpack.c.bf16 %v1942_v46, %v11516_v11 }
 0x256   :  { %v2405_v42 = vpop.permute.xlu0 %2404  ;;  %3591 = vmatprep.mubr.bf16.mxu0 %v3407_v12 }
 0x257   :  { %2430 = vst.msk [vmem:[#allocation3 + $0x20] sm:$0xff] %vm13757_vm12, %v2405_v42  ;;  %3163 = vrot.lane.b32.xlu1 %v3142_v54, %s10420_s21  ;;  %3592 = vmatmul.mubr.bf16.vlgmr.msra.gmra.mrb[104].mxu0 %v3406_v29  ;;  %v11586_v42 = vld [vmem:[#allocation2 + $0x84] sm:$0xff] }
 0x258   :  { %2503 = vst.msk [vmem:[#allocation3 + $0x20] sm:$0xff] %vm13748_vm13, %v2478_v6  ;;  %2337 = vrot.lane.b32.xlu0 %v2314_v18, %s13776_s15  ;;  %v11584_v6 = vld [vmem:[#allocation2 + $0x82] sm:$0xff]  ;;  %v2860_v29 = vpack.c.bf16 %v11586_v42, %v1942_v46 }
 0x259   :  { %v2624_v25 = vpop.permute.xlu1 %2623  ;;  %v3214_v54 = vpack.c.bf16 %v11584_v6, %v2305_v57 }
 0x25a   :  { %v2551_v59 = vpop.permute.xlu0 %2550  ;;  %v3408_v45 = vld [vmem:[#allocation3 + $0x10] sm:$0xff] }
 0x25b   :  { %2576 = vst.msk [vmem:[#allocation3 + $0x20] sm:$0xff] %vm13747_vm14, %v2551_v59  ;;  %3305 = vrot.lane.b32.xlu1 %v11190_v32, %s10421_s22  ;;  %v2919_v59 = vld [vmem:[#allocation2 + $0x7d] sm:$0xff] }
 0x25c   :  { %2649 = vst.msk [vmem:[#allocation3 + $0x20] sm:$0xff] %vm13746_vm15, %v2624_v25  ;;  %1828 = vrot.lane.b32.xlu0 %v2314_v18, %s10418_s19  ;;  %v2920_v25 = vld [vmem:[#allocation2 + $0x85] sm:$0xff] }
 0x25d   :  { %v2115_v8 = vpop.permute.xlu1 %2114 }
 0x25e   :  { %v2042_v21 = vpop.permute.xlu0 %2041 }
 0x25f   :  { %2066 = vst.msk [vmem:[#allocation3 + $0x30] sm:$0xff] %vm2062_vm7, %v2042_v21  ;;  %2881 = vrot.lane.b32.xlu1 %v2859_v62, %s10416_s17  ;;  %v2990_v21 = vld [vmem:[#allocation2 + $0x7e] sm:$0xff] }
 0x260   :  { %2139 = vst.msk [vmem:[#allocation3 + $0x30] sm:$0xff] %vm2135_vm8, %v2115_v8  ;;  %1974 = vrot.lane.b32.xlu0 %v1950_v0, %s10417_s18  ;;  %v2931_v8 = vpack.c.bf16 %v2920_v25, %v2919_v59  ;;  %v10228_v0 = vld [vmem:[%s13721_s1] sm:$0xff]   ;;  %v11699_v59 = vld [vmem:[#allocation2 + $0x8f] sm:$0xff] }
 0x261   :  { %v2261_v32 = vpop.permute.xlu1 %2260  ;;  %9797 = vmatpush3.bf16.msra.mxu1 %v10228_v0 }
 0x262   :  { %v2697_v1 = vpop.permute.xlu0 %2696  ;;  %9798 = vmatprep.subr.bf16.mxu1 %v11341_v40 }
 0x263   :  { %2722 = vst.msk [vmem:[#allocation3 + $0x20] sm:$0xff] %vm13750_vm2, %v2697_v1  ;;  %2952 = vrot.lane.b32.xlu1 %v2930_v36, %s10418_s19 }
 0x264   :  { %3234 = vrot.lane.b32.xlu0 %v3213_v60, %s10419_s20 }
 0x265   :  { %v1752_v63 = vpop.permute.xlu1 %1751 }
 0x266   :  { %v2188_v10 = vpop.permute.xlu0 %2187  ;;  %1775 = vst.msk [vmem:[#allocation3 + $0x40] sm:$0xff] %vm1770_vm3, %v1752_v63 }
 0x267   :  { %2212 = vst.msk [vmem:[#allocation3 + $0x30] sm:$0xff] %vm2208_vm9, %v2188_v10  ;;  %2773 = vrot.lane.b32.xlu1 %v3213_v60, %s13768_s13  ;;  %v10229_v60 = vld [vmem:[%s13721_s1 + $0x8] sm:$0xff]  }
 0x268   :  { %2285 = vst.msk [vmem:[#allocation3 + $0x30] sm:$0xff] %vm2281_vm10, %v2261_v32  ;;  %3376 = vrot.lane.b32.xlu0 %v2859_v62, %s10423_s24  ;;  %v2597_v32 = vld [vmem:[#allocation2 + $0x87] sm:$0xff]  ;;  %9799 = vmatpush3.bf16.msra.mxu1 %v10229_v60 }
 0x269   :  { %v1898_v14 = vpop.permute.xlu1 %1897  ;;  %9800 = vmatprep.subr.bf16.mxu1 %v11341_v40 }
 0x26a   :  { %v3089_v31 = vpop.permute.xlu0 %3088 }
 0x26b   :  { %3114 = vst.msk [vmem:[#allocation3 + $0x18] sm:$0xff] %vm1989_vm6, %v3089_v31  ;;  %2410 = vrot.lane.b32.xlu1 %v2859_v62, %s13742_s27 }
 0x26c   :  { %3023 = vrot.lane.b32.xlu0 %v3001_v51, %s10415_s16  ;;  %9801 = vmatpush3.bf16.msra.mxu1 %v10230_v22 }
 0x26d   :  { %v3160_v34 = vpop.permute.xlu1 %3159  ;;  %9802 = vmatprep.subr.bf16.mxu1 %v11341_v40 }
 0x26e   :  { %v2334_v56 = vpop.permute.xlu0 %2333  ;;  %3185 = vst.msk [vmem:[#allocation3 + $0x18] sm:$0xff] %vm2062_vm7, %v3160_v34 }
 0x26f   :  { %2358 = vst.msk [vmem:[#allocation3 + $0x30] sm:$0xff] %vm13753_vm11, %v2334_v56  ;;  %2556 = vrot.lane.b32.xlu1 %v3001_v51, %s13774_s29  ;;  %v10231_v56 = vld [vmem:[%s13721_s1 + $0x18] sm:$0xff]  }
 0x270   :  { %2483 = vrot.lane.b32.xlu0 %v2930_v36, %s13744_s25  ;;  %v2596_v36 = vld [vmem:[#allocation2 + $0x7f] sm:$0xff]  ;;  %9803 = vmatpush3.bf16.msra.mxu1 %v10231_v56 }
 0x271   :  { %v3302_v50 = vpop.permute.xlu1 %3301  ;;  %v2607_v4 = vpack.c.bf16 %v2597_v32, %v2596_v36  ;;  %9804 = vmatprep.subr.bf16.mxu1 %v11341_v40  ;;  %v10240_v56 = vld [vmem:[%s13720_s0 + $0x1b8] sm:$0xff]  }
 0x272   :  { %v1825_v41 = vpop.permute.xlu0 %1824 }
 0x273   :  { %1848 = vst.msk [vmem:[#allocation3 + $0x40] sm:$0xff] %vm1843_vm4, %v1825_v41  ;;  %2047 = vrot.lane.b32.xlu1 %v3001_v51, %s10420_s21  ;;  %v11626_v51 = vld [vmem:[#allocation2 + $0x88] sm:$0xff] }
 0x274   :  { %1921 = vst.msk [vmem:[#allocation3 + $0x40] sm:$0xff] %vm1916_vm5, %v1898_v14  ;;  %2629 = vrot.lane.b32.xlu0 %v2606_v19, %s13773_s26  ;;  %v2680_v41 = vpack.c.bf16 %v11626_v51, %v10381_v27 }
 0x275   :  { %v2878_v52 = vpop.permute.xlu1 %2877 }
 0x276   :  { %v1971_v39 = vpop.permute.xlu0 %1970  ;;  %2902 = vst.msk [vmem:[#allocation3 + $0x28] sm:$0xff] %vm1770_vm3, %v2878_v52 }
 0x277   :  { %1994 = vst.msk [vmem:[#allocation3 + $0x40] sm:$0xff] %vm1989_vm6, %v1971_v39  ;;  %2702 = vrot.lane.b32.xlu1 %v11207_v33, %s13775_s14 }
 0x278   :  { %2120 = vrot.lane.b32.xlu0 %v2606_v19, %s10419_s20  ;;  %v10232_v19 = vld [vmem:[%s13721_s1 + $0x20] sm:$0xff]  }
 0x279   :  { %v2949_v48 = vpop.permute.xlu1 %2948  ;;  %9805 = vmatpush3.bf16.msra.mxu1 %v10232_v19  ;;  %v2672_v19 = vld [vmem:[#allocation2 + $0x98] sm:$0xff] }
 0x27a   :  { %v3231_v7 = vpop.permute.xlu0 %3230  ;;  %2973 = vst.msk [vmem:[#allocation3 + $0x28] sm:$0xff] %vm1843_vm4, %v2949_v48  ;;  %9806 = vmatprep.subr.bf16.mxu1 %v11341_v40  ;;  %v2234_v48 = vld [vmem:[#allocation2 + $0x89] sm:$0xff] }
 0x27b   :  { %3256 = vst.msk [vmem:[#allocation3 + $0x18] sm:$0xff] %vm2135_vm8, %v3231_v7  ;;  %2193 = vrot.lane.b32.xlu1 %v11207_v33, %s10421_s22  ;;  %v2315_v33 = vpack.c.bf16 %v2305_v57, %v11525_v58  ;;  %v1879_v7 = vpack.c.bf16 %v10382_v2, %v10382_v2  ;;  %v2243_v57 = vpack.c.bf16 %v2234_v48, %v11572_v9 }
 0x27c   :  { %3327 = vst.msk [vmem:[#allocation3 + $0x18] sm:$0xff] %vm2208_vm9, %v3302_v50  ;;  %2266 = vrot.lane.b32.xlu0 %v2242_v47, %s10423_s24  ;;  %v1733_v50 = vpack.c.bf16 %v11572_v9, %v11572_v9  ;;  %v1952_v9 = vpack.c.bf16 %v11586_v42, %v11586_v42  ;;  %v2307_v42 = vld [vmem:[#allocation2 + $0x8a] sm:$0xff] }
 0x27d   :  { %v2770_v28 = vpop.permute.xlu1 %2769 }
 0x27e   :  { %v3373_v24 = vpop.permute.xlu0 %3372  ;;  %2795 = vst.msk [vmem:[#allocation3 + $0x20] sm:$0xff] %vm13756_vm1, %v2770_v28 }
 0x27f   :  { %3398 = vst.msk [vmem:[#allocation3 + $0x18] sm:$0xff] %vm2281_vm10, %v3373_v24  ;;  %3094 = vrot.lane.b32.xlu1 %v3072_v23, %s10417_s18  ;;  %v1806_v23 = vpack.c.bf16 %v11584_v6, %v11584_v6 }
 0x280   :  { %1757 = vrot.lane.b32.xlu0 %v2242_v47, %s10416_s17  ;;  %v10233_v47 = vld [vmem:[%s13721_s1 + $0x28] sm:$0xff]  }
 0x281   :  { %v2407_v30 = vpop.permute.xlu1 %2406  ;;  %9807 = vmatpush3.bf16.msra.mxu1 %v10233_v47  ;;  %v11764_v47 = vld [vmem:[#allocation2 + $0xa0] sm:$0xff] }
 0x282   :  { %v3020_v26 = vpop.permute.xlu0 %3019  ;;  %2431 = vst.msk [vmem:[#allocation3 + $0x30] sm:$0xff] %vm13757_vm12, %v2407_v30  ;;  %9808 = vmatprep.subr.bf16.mxu1 %v11341_v40  ;;  %v10234_v30 = vld [vmem:[%s13721_s1 + $0x30] sm:$0xff]  }
 0x283   :  { %3044 = vst.msk [vmem:[#allocation3 + $0x28] sm:$0xff] %vm1916_vm5, %v3020_v26  ;;  %2339 = vrot.lane.b32.xlu1 %v2315_v33, %s13776_s15  ;;  %v11659_v26 = vld [vmem:[#allocation2 + $0x8e] sm:$0xff] }
 0x284   :  { %1903 = vrot.lane.b32.xlu0 %v1878_v3, %s10415_s16 }
 0x285   :  { %v2553_v16 = vpop.permute.xlu1 %2552  ;;  %9809 = vmatpush3.bf16.msra.mxu1 %v10234_v30  ;;  %v2381_v30 = vld [vmem:[#allocation2 + $0x9c] sm:$0xff] }
 0x286   :  { %v2480_v5 = vpop.permute.xlu0 %2479  ;;  %v3409_v37 = vld [vmem:[#allocation3 + $0x18] sm:$0xff]  ;;  %9810 = vmatprep.subr.bf16.mxu1 %v11341_v40 }
 0x287   :  { %2504 = vst.msk [vmem:[#allocation3 + $0x30] sm:$0xff] %vm13748_vm13, %v2480_v5  ;;  %3599 = vmatprep.mubr.bf16.mxu0 %v3409_v37  ;;  %1830 = vrot.lane.b32.xlu1 %v2315_v33, %s10418_s19  ;;  %v2025_v5 = vpack.c.bf16 %v11659_v26, %v11659_v26  ;;  %v10235_v37 = vld [vmem:[%s13721_s1 + $0x38] sm:$0xff]  }
 0x288   :  { %2577 = vst.msk [vmem:[#allocation3 + $0x30] sm:$0xff] %vm13747_vm14, %v2553_v16  ;;  %3165 = vrot.lane.b32.xlu0 %v3143_v13, %s10420_s21  ;;  %3600 = vmatmul.mubr.bf16.gmra.mrb[108].mxu0 %v3408_v45  ;;  %v11672_v16 = vld [vmem:[#allocation2 + $0x90] sm:$0xff] }
 0x289   :  { %v2044_v49 = vpop.permute.xlu1 %2043  ;;  %v3410_v13 = vld [vmem:[#allocation3 + $0x20] sm:$0xff]  ;;  %9811 = vmatpush3.bf16.msra.mxu1 %v10235_v37  ;;  %v2681_v2 = vpack.c.bf16 %v2672_v19, %v11672_v16  ;;  %v10243_v37 = vld [vmem:[%s13720_s0 + $0x1c8] sm:$0xff]  }
 0x28a   :  { %v2626_v43 = vpop.permute.xlu0 %2625  ;;  %2067 = vst.msk [vmem:[#allocation3 + $0x40] sm:$0xff] %vm2062_vm7, %v2044_v49  ;;  %v2171_v49 = vpack.c.bf16 %v11672_v16, %v11672_v16  ;;  %9932 = vmatprep.subr.bf16.mxu1 %v11341_v40 }
 0x28b   :  { %2650 = vst.msk [vmem:[#allocation3 + $0x30] sm:$0xff] %vm13746_vm15, %v2626_v43  ;;  %1976 = vrot.lane.b32.xlu1 %v1951_v53, %s10417_s18  ;;  %v3073_v43 = vpack.c.bf16 %v11672_v16, %v11626_v51  ;;  %v10236_v53 = vld [vmem:[%s13720_s0 + $0x1a0] sm:$0xff]  }
 0x28c   :  { %3307 = vrot.lane.b32.xlu0 %v11225_v61, %s10421_s22  ;;  %v2991_v61 = vld [vmem:[#allocation2 + $0x86] sm:$0xff]  ;;  %9813 = vmatmul.mubr.bf16.vlgmr.msra.gmra.mrb[104].mxu1 %v10236_v53 }
 0x28d   :  { %v2699_v18 = vpop.permute.xlu1 %2698  ;;  %v3002_v55 = vpack.c.bf16 %v2991_v61, %v2990_v21  ;;  %9816 = vmatprep.mubr.msk.bf16.mxu1 %vm13766_vm0, %v11341_v40  ;;  %v11710_v40 = vld [vmem:[#allocation2 + $0x92] sm:$0xff] }
 0x28e   :  { %v2117_v12 = vpop.permute.xlu0 %2116  ;;  %2723 = vst.msk [vmem:[#allocation3 + $0x30] sm:$0xff] %vm13750_vm2, %v2699_v18  ;;  %v2851_v61 = vld [vmem:[#allocation2 + $0x94] sm:$0xff]  ;;  %v2850_v21 = vld [vmem:[#allocation2 + $0x8c] sm:$0xff] }
 0x28f   :  { %2140 = vst.msk [vmem:[#allocation3 + $0x40] sm:$0xff] %vm2135_vm8, %v2117_v12  ;;  %3236 = vrot.lane.b32.xlu1 %v3214_v54, %s10419_s20  ;;  %v11689_v12 = vld [vmem:[#allocation2 + $0x91] sm:$0xff] }
 0x290   :  { %2883 = vrot.lane.b32.xlu0 %v2860_v29, %s10416_s17  ;;  %v3144_v25 = vpack.c.bf16 %v11689_v12, %v2234_v48  ;;  %v10241_v48 = vld [vmem:[%s13720_s0 + $0x1c0] sm:$0xff]  }
 0x291   :  { %v2190_v20 = vpop.permute.xlu1 %2189 }
 0x292   :  { %v2263_v11 = vpop.permute.xlu0 %2262  ;;  %2213 = vst.msk [vmem:[#allocation3 + $0x40] sm:$0xff] %vm2208_vm9, %v2190_v20 }
 0x293   :  { %2286 = vst.msk [vmem:[#allocation3 + $0x40] sm:$0xff] %vm2281_vm10, %v2263_v11  ;;  %3378 = vrot.lane.b32.xlu1 %v2860_v29, %s10423_s24 }
 0x294   :  { %2954 = vrot.lane.b32.xlu0 %v2931_v8, %s10418_s19 }
 0x295   :  { %v3091_v62 = vpop.permute.xlu1 %3090 }
 0x296   :  { %v1754_v58 = vpop.permute.xlu0 %1753  ;;  %3115 = vst.msk [vmem:[#allocation3 + $0x28] sm:$0xff] %vm1989_vm6, %v3091_v62 }
 0x297   :  { %1776 = vst.msk [vmem:[#allocation3 + $0x50] sm:$0xff] %vm1770_vm3, %v1754_v58  ;;  %3025 = vrot.lane.b32.xlu1 %v3002_v55, %s10415_s16  ;;  %v3215_v58 = vpack.c.bf16 %v11710_v40, %v2307_v42 }
 0x298   :  { %2775 = vrot.lane.b32.xlu0 %v3214_v54, %s13768_s13 }
 0x299   :  { %v2336_v17 = vpop.permute.xlu1 %2335 }
 0x29a   :  { %v1900_v1 = vpop.permute.xlu0 %1899  ;;  %2359 = vst.msk [vmem:[#allocation3 + $0x40] sm:$0xff] %vm13753_vm11, %v2336_v17  ;;  %v11716_v17 = vld [vmem:[#allocation6] sm:$0xff] }
 0x29b   :  { %2485 = vrot.lane.b32.xlu1 %v2931_v8, %s13744_s25  ;;  %v10237_v8 = vld [vmem:[%s13720_s0 + $0x1a8] sm:$0xff]   ;;  %13777 = vst [vmem:[#allocation10_spill] sm:$0xff] %v11716_v17 }
 0x29c   :  { %2412 = vrot.lane.b32.xlu0 %v2860_v29, %s13742_s27  ;;  %v2316_v29 = vpack.c.bf16 %v2307_v42, %v11584_v6  ;;  %v2098_v6 = vpack.c.bf16 %v11699_v59, %v11699_v59  ;;  %9817 = vmatmul.mubr.bf16.gmra.mrb[108].mxu1 %v10237_v8  ;;  %v11807_v8 = vld [vmem:[#allocation2 + $0xac] sm:$0xff] }
 0x29d   :  { %v1827_v10 = vpop.permute.xlu1 %1826  ;;  %9820 = vmatprep.mubr.msk.bf16.mxu1 %vm13766_vm0, %v11716_v17 }
 0x29e   :  { %v3162_v63 = vpop.permute.xlu0 %3161  ;;  %1849 = vst.msk [vmem:[#allocation3 + $0x50] sm:$0xff] %vm1843_vm4, %v1827_v10  ;;  %v10238_v10 = vld [vmem:[%s13720_s0 + $0x1b0] sm:$0xff]  }
 0x29f   :  { %3186 = vst.msk [vmem:[#allocation3 + $0x28] sm:$0xff] %vm2062_vm7, %v3162_v63  ;;  %2631 = vrot.lane.b32.xlu1 %v2607_v4, %s13773_s26  ;;  %v2993_v63 = vld [vmem:[#allocation2 + $0x96] sm:$0xff] }
 0x2a0   :  { %1922 = vst.msk [vmem:[#allocation3 + $0x50] sm:$0xff] %vm1916_vm5, %v1900_v1  ;;  %2558 = vrot.lane.b32.xlu0 %v3002_v55, %s13774_s29  ;;  %v2922_v1 = vld [vmem:[#allocation2 + $0x95] sm:$0xff] }
 0x2a1   :  { %v1973_v31 = vpop.permute.xlu1 %1972 }
 0x2a2   :  { %v3304_v14 = vpop.permute.xlu0 %3303  ;;  %1995 = vst.msk [vmem:[#allocation3 + $0x50] sm:$0xff] %vm1989_vm6, %v1973_v31  ;;  %v3003_v31 = vpack.c.bf16 %v2993_v63, %v11659_v26  ;;  %v3074_v26 = vpack.c.bf16 %v11764_v47, %v2672_v19 }
 0x2a3   :  { %2122 = vrot.lane.b32.xlu1 %v2607_v4, %s10419_s20 }
 0x2a4   :  { %2049 = vrot.lane.b32.xlu0 %v3002_v55, %s10420_s21  ;;  %v2861_v55 = vpack.c.bf16 %v2851_v61, %v2850_v21  ;;  %9821 = vmatmul.mubr.bf16.gmra.mrb[112].mxu1 %v10238_v10  ;;  %v10246_v10 = vld [vmem:[%s13721_s1 + $0x18] sm:$0xff]  }
 0x2a5   :  { %v3233_v34 = vpop.permute.xlu1 %3232  ;;  %9824 = vmatprep.mubr.msk.bf16.mxu1 %vm13766_vm0, %v11716_v17 }
 0x2a6   :  { %v2880_v15 = vpop.permute.xlu0 %2879  ;;  %3257 = vst.msk [vmem:[#allocation3 + $0x28] sm:$0xff] %vm2135_vm8, %v3233_v34  ;;  %v2599_v34 = vld [vmem:[#allocation2 + $0x97] sm:$0xff] }
 0x2a7   :  { %2903 = vst.msk [vmem:[#allocation3 + $0x38] sm:$0xff] %vm1770_vm3, %v2880_v15  ;;  %1759 = vrot.lane.b32.xlu1 %v1733_v50, %s10416_s17  ;;  %v10239_v15 = vld [vmem:[%s13721_s1] sm:$0xff]   ;;  %v2608_v50 = vpack.c.bf16 %v2599_v34, %v11699_v59 }
 0x2a8   :  { %3328 = vst.msk [vmem:[#allocation3 + $0x28] sm:$0xff] %vm2208_vm9, %v3304_v14  ;;  %2704 = vrot.lane.b32.xlu0 %v2680_v41, %s13775_s14  ;;  %9865 = vmatpush3.bf16.msra.mxu0 %v10239_v15 }
 0x2a9   :  { %v3375_v39 = vpop.permute.xlu1 %3374  ;;  %9866 = vmatprep.subr.bf16.mxu0 %v11716_v17 }
 0x2aa   :  { %v2951_v52 = vpop.permute.xlu0 %2950  ;;  %3399 = vst.msk [vmem:[#allocation3 + $0x28] sm:$0xff] %vm2281_vm10, %v3375_v39 }
 0x2ab   :  { %2974 = vst.msk [vmem:[#allocation3 + $0x38] sm:$0xff] %vm1843_vm4, %v2951_v52  ;;  %1905 = vrot.lane.b32.xlu1 %v1879_v7, %s10415_s16  ;;  %v2244_v7 = vpack.c.bf16 %v11689_v12, %v11689_v12  ;;  %v2527_v12 = vld [vmem:[#allocation2 + $0x9e] sm:$0xff] }
 0x2ac   :  { %2195 = vrot.lane.b32.xlu0 %v2680_v41, %s10421_s22  ;;  %9825 = vmatmul.mubr.bf16.gmra.mrb[116].mxu1 %v10240_v56  ;;  %v2536_v59 = vpack.c.bf16 %v2527_v12, %v2527_v12 }
 0x2ad   :  { %v3022_v24 = vpop.permute.xlu1 %3021  ;;  %9828 = vmatprep.mubr.msk.bf16.mxu1 %vm13766_vm0, %v11716_v17 }
 0x2ae   :  { %v2772_v28 = vpop.permute.xlu0 %2771  ;;  %3045 = vst.msk [vmem:[#allocation3 + $0x38] sm:$0xff] %vm1916_vm5, %v3022_v24  ;;  %v10242_v24 = vld [vmem:[%s13721_s1 + $0x8] sm:$0xff]  }
 0x2af   :  { %2796 = vst.msk [vmem:[#allocation3 + $0x30] sm:$0xff] %vm13756_vm1, %v2772_v28  ;;  %2268 = vrot.lane.b32.xlu1 %v2243_v57, %s10423_s24  ;;  %9867 = vmatpush3.bf16.msra.mxu0 %v10242_v24  ;;  %v2317_v57 = vpack.c.bf16 %v11710_v40, %v11710_v40  ;;  %v3134_v40 = vld [vmem:[#allocation2 + $0x99] sm:$0xff]  ;;  %v10250_v24 = vld [vmem:[%s13721_s1 + $0x28] sm:$0xff]  }
 0x2b0   :  { %1832 = vrot.lane.b32.xlu0 %v1806_v23, %s10418_s19  ;;  %9868 = vmatprep.subr.bf16.mxu0 %v11716_v17 }
 0x2b1   :  { %v2482_v33 = vpop.permute.xlu1 %2481  ;;  %v3411_v3 = vld [vmem:[#allocation3 + $0x28] sm:$0xff] }
 0x2b2   :  { %v2409_v35 = vpop.permute.xlu0 %2408  ;;  %3607 = vmatprep.mubr.bf16.mxu0 %v3411_v3 }
 0x2b3   :  { %2432 = vst.msk [vmem:[#allocation3 + $0x40] sm:$0xff] %vm13757_vm12, %v2409_v35  ;;  %2051 = vrot.lane.b32.xlu1 %v2025_v5, %s10420_s21  ;;  %3608 = vmatmul.mubr.bf16.gmra.mrb[112].mxu0 %v3410_v13  ;;  %v3205_v35 = vld [vmem:[#allocation2 + $0x9a] sm:$0xff]  ;;  %v2390_v5 = vpack.c.bf16 %v2381_v30, %v2381_v30 }
 0x2b4   :  { %2505 = vst.msk [vmem:[#allocation3 + $0x40] sm:$0xff] %vm13748_vm13, %v2482_v33  ;;  %1978 = vrot.lane.b32.xlu0 %v1952_v9, %s10417_s18  ;;  %9829 = vmatmul.mubr.bf16.gmra.mrb[120].mxu1 %v10241_v48  ;;  %v3206_v33 = vld [vmem:[#allocation2 + $0xa2] sm:$0xff]  ;;  %v3067_v48 = vld [vmem:[#allocation2 + $0xb8] sm:$0xff] }
 0x2b5   :  { %v2628_v46 = vpop.permute.xlu1 %2627  ;;  %9832 = vmatprep.mubr.msk.bf16.mxu1 %vm13766_vm0, %v11716_v17  ;;  %v11782_v16 = vpack.c.bf16 %v3206_v33, %v3205_v35  ;;  %v11789_v13 = vld [vmem:[#allocation2 + $0x9d] sm:$0xff]  ;;  %v10251_v33 = vld [vmem:[%s13720_s0 + $0x1e8] sm:$0xff]   ;;  %v3208_v35 = vld [vmem:[#allocation2 + $0xb2] sm:$0xff] }
 0x2b6   :  { %v2555_v45 = vpop.permute.xlu0 %2554  ;;  %v2463_v53 = vpack.c.bf16 %v11789_v13, %v11789_v13 }
 0x2b7   :  { %2578 = vst.msk [vmem:[#allocation3 + $0x40] sm:$0xff] %vm13747_vm14, %v2555_v45  ;;  %2197 = vrot.lane.b32.xlu1 %v2171_v49, %s10421_s22 }
 0x2b8   :  { %2651 = vst.msk [vmem:[#allocation3 + $0x40] sm:$0xff] %vm13746_vm15, %v2628_v46  ;;  %3096 = vrot.lane.b32.xlu0 %v3073_v43, %s10417_s18  ;;  %v3348_v46 = vld [vmem:[#allocation2 + $0xa4] sm:$0xff] }
 0x2b9   :  { %v2119_v18 = vpop.permute.xlu1 %2118  ;;  %v3358_v42 = vpack.c.bf16 %v3348_v46, %v2381_v30  ;;  %v3076_v30 = vpack.c.bf16 %v3067_v48, %v3067_v48 }
 0x2ba   :  { %v2046_v54 = vpop.permute.xlu0 %2045 }
 0x2bb   :  { %2068 = vst.msk [vmem:[#allocation3 + $0x50] sm:$0xff] %vm2062_vm7, %v2046_v54  ;;  %3167 = vrot.lane.b32.xlu1 %v3144_v25, %s10420_s21  ;;  %v3412_v54 = vld [vmem:[#allocation3 + $0x30] sm:$0xff] }
 0x2bc   :  { %2141 = vst.msk [vmem:[#allocation3 + $0x50] sm:$0xff] %vm2135_vm8, %v2119_v18  ;;  %2341 = vrot.lane.b32.xlu0 %v2316_v29, %s13776_s15  ;;  %9833 = vmatmul.mubr.bf16.gmra.mrb[124].mxu1 %v10243_v37  ;;  %v2995_v18 = vld [vmem:[#allocation2 + $0xa6] sm:$0xff] }
 0x2bd   :  { %v2265_v11 = vpop.permute.xlu1 %2264  ;;  %9836 = vmatprep.mubr.msk.bf16.mxu1 %vm13766_vm0, %v11716_v17 }
 0x2be   :  { %v2701_v20 = vpop.permute.xlu0 %2700 }
 0x2bf   :  { %2724 = vst.msk [vmem:[#allocation3 + $0x40] sm:$0xff] %vm13750_vm2, %v2701_v20  ;;  %3309 = vrot.lane.b32.xlu1 %v11253_v44, %s10421_s22  ;;  %v2921_v44 = vld [vmem:[#allocation2 + $0x8d] sm:$0xff]  ;;  %v3004_v20 = vpack.c.bf16 %v2995_v18, %v2527_v12 }
 0x2c0   :  { %2124 = vrot.lane.b32.xlu0 %v2098_v6, %s10419_s20  ;;  %v2932_v36 = vpack.c.bf16 %v2922_v1, %v2921_v44  ;;  %v3135_v6 = vld [vmem:[#allocation2 + $0xa1] sm:$0xff] }
 0x2c1   :  { %v1756_v62 = vpop.permute.xlu1 %1755 }
 0x2c2   :  { %v2192_v0 = vpop.permute.xlu0 %2191  ;;  %1777 = vst.msk [vmem:[#allocation3 + $0x60] sm:$0xff] %vm1770_vm3, %v1756_v62  ;;  %v2863_v62 = vpack.c.bf16 %v11807_v8, %v11807_v8 }
 0x2c3   :  { %2214 = vst.msk [vmem:[#allocation3 + $0x50] sm:$0xff] %vm2208_vm9, %v2192_v0  ;;  %2885 = vrot.lane.b32.xlu1 %v2861_v55, %s10416_s17  ;;  %v3145_v0 = vpack.c.bf16 %v3135_v6, %v3134_v40  ;;  %v3351_v40 = vld [vmem:[#allocation2 + $0xbc] sm:$0xff] }
 0x2c4   :  { %2287 = vst.msk [vmem:[#allocation3 + $0x50] sm:$0xff] %vm2281_vm10, %v2265_v11  ;;  %3238 = vrot.lane.b32.xlu0 %v3215_v58, %s10419_s20  ;;  %v10245_v11 = vld [vmem:[%s13720_s0 + $0x1d0] sm:$0xff]  }
 0x2c5   :  { %v1902_v60 = vpop.permute.xlu1 %1901  ;;  %9837 = vmatmul.mubr.bf16.gmra.mrb[128].mxu1 %v10245_v11 }
 0x2c6   :  { %v3093_v32 = vpop.permute.xlu0 %3092  ;;  %9840 = vmatprep.mubr.msk.bf16.mxu1 %vm13766_vm0, %v11716_v17 }
 0x2c7   :  { %3116 = vst.msk [vmem:[#allocation3 + $0x38] sm:$0xff] %vm1989_vm6, %v3093_v32  ;;  %2956 = vrot.lane.b32.xlu1 %v2932_v36, %s10418_s19  ;;  %v10244_v32 = vld [vmem:[%s13721_s1 + $0x10] sm:$0xff]  }
 0x2c8   :  { %3380 = vrot.lane.b32.xlu0 %v2861_v55, %s10423_s24  ;;  %9869 = vmatpush3.bf16.msra.mxu0 %v10244_v32  ;;  %v10260_v32 = vld [vmem:[%s13721_s1 + $0x20] sm:$0xff]  }
 0x2c9   :  { %v3164_v22 = vpop.permute.xlu1 %3163  ;;  %9870 = vmatprep.subr.bf16.mxu0 %v11716_v17 }
 0x2ca   :  { %v2338_v4 = vpop.permute.xlu0 %2337  ;;  %3187 = vst.msk [vmem:[#allocation3 + $0x38] sm:$0xff] %vm2062_vm7, %v3164_v22 }
 0x2cb   :  { %2360 = vst.msk [vmem:[#allocation3 + $0x50] sm:$0xff] %vm13753_vm11, %v2338_v4  ;;  %2777 = vrot.lane.b32.xlu1 %v3215_v58, %s13768_s13  ;;  %v2925_v58 = vld [vmem:[#allocation2 + $0xad] sm:$0xff] }
 0x2cc   :  { %3027 = vrot.lane.b32.xlu0 %v3003_v31, %s10415_s16  ;;  %v2934_v44 = vpack.c.bf16 %v2925_v58, %v2925_v58  ;;  %9871 = vmatpush3.bf16.msra.mxu0 %v10246_v10  ;;  %v2682_v58 = vpack.c.bf16 %v11764_v47, %v11764_v47 }
 0x2cd   :  { %v3306_v51 = vpop.permute.xlu1 %3305  ;;  %9872 = vmatprep.subr.bf16.mxu0 %v11716_v17 }
 0x2ce   :  { %v1829_v14 = vpop.permute.xlu0 %1828 }
 0x2cf   :  { %1850 = vst.msk [vmem:[#allocation3 + $0x60] sm:$0xff] %vm1843_vm4, %v1829_v14  ;;  %2414 = vrot.lane.b32.xlu1 %v2861_v55, %s13742_s27  ;;  %v3136_v14 = vld [vmem:[#allocation2 + $0xa9] sm:$0xff] }
 0x2d0   :  { %1923 = vst.msk [vmem:[#allocation3 + $0x60] sm:$0xff] %vm1916_vm5, %v1902_v60  ;;  %2487 = vrot.lane.b32.xlu0 %v2932_v36, %s13744_s25  ;;  %v10247_v60 = vld [vmem:[%s13720_s0 + $0x1d8] sm:$0xff]   ;;  %v2996_v36 = vld [vmem:[#allocation2 + $0xae] sm:$0xff] }
 0x2d1   :  { %v2882_v41 = vpop.permute.xlu1 %2881  ;;  %9841 = vmatmul.mubr.bf16.gmra.mrb[132].mxu1 %v10247_v60  ;;  %v3005_v22 = vpack.c.bf16 %v2996_v36, %v2996_v36 }
 0x2d2   :  { %v1975_v27 = vpop.permute.xlu0 %1974  ;;  %2904 = vst.msk [vmem:[#allocation3 + $0x48] sm:$0xff] %vm1770_vm3, %v2882_v41  ;;  %9844 = vmatprep.mubr.msk.bf16.mxu1 %vm13766_vm0, %v11716_v17  ;;  %v10249_v41 = vld [vmem:[%s13720_s0 + $0x1e0] sm:$0xff]  }
 0x2d3   :  { %1996 = vst.msk [vmem:[#allocation3 + $0x60] sm:$0xff] %vm1989_vm6, %v1975_v27  ;;  %2560 = vrot.lane.b32.xlu1 %v3003_v31, %s13774_s29  ;;  %v3137_v31 = vld [vmem:[#allocation2 + $0xb1] sm:$0xff] }
 0x2d4   :  { %2633 = vrot.lane.b32.xlu0 %v2608_v50, %s13773_s26  ;;  %v3146_v27 = vpack.c.bf16 %v3137_v31, %v3136_v14  ;;  %v3279_v50 = vld [vmem:[#allocation2 + $0xb3] sm:$0xff] }
 0x2d5   :  { %v2953_v52 = vpop.permute.xlu1 %2952  ;;  %v10265_v31 = vld [vmem:[%s13721_s1 + $0x30] sm:$0xff]   ;;  %v10258_v14 = vld [vmem:[%s13721_s1 + $0x38] sm:$0xff]  }
 0x2d6   :  { %v3235_v39 = vpop.permute.xlu0 %3234  ;;  %2975 = vst.msk [vmem:[#allocation3 + $0x48] sm:$0xff] %vm1843_vm4, %v2953_v52  ;;  %v10384_v52 = vld [vmem:[#allocation2 + $0xab] sm:$0xff] }
 0x2d7   :  { %3258 = vst.msk [vmem:[#allocation3 + $0x38] sm:$0xff] %vm2135_vm8, %v3235_v39  ;;  %2706 = vrot.lane.b32.xlu1 %v2681_v2, %s13775_s14  ;;  %v3288_v2 = vpack.c.bf16 %v3279_v50, %v10384_v52 }
 0x2d8   :  { %3329 = vst.msk [vmem:[#allocation3 + $0x38] sm:$0xff] %vm2208_vm9, %v3306_v51  ;;  %2270 = vrot.lane.b32.xlu0 %v2244_v7, %s10423_s24  ;;  %v10248_v51 = vld [vmem:[%s13721_s1 + $0x20] sm:$0xff]   ;;  %v3066_v7 = vld [vmem:[#allocation2 + $0xb0] sm:$0xff] }
 0x2d9   :  { %v2774_v23 = vpop.permute.xlu1 %2773  ;;  %9873 = vmatpush3.bf16.msra.mxu0 %v10248_v51  ;;  %9845 = vmatmul.mubr.bf16.gmra.mrb[136].mxu1 %v10249_v41  ;;  %v10268_v41 = vld [vmem:[%s13720_s0 + $0x270] sm:$0xff]  }
 0x2da   :  { %v3377_v28 = vpop.permute.xlu0 %3376  ;;  %2797 = vst.msk [vmem:[#allocation3 + $0x40] sm:$0xff] %vm13756_vm1, %v2774_v23  ;;  %9874 = vmatprep.subr.bf16.mxu0 %v11716_v17  ;;  %9848 = vmatprep.mubr.msk.bf16.mxu1 %vm13766_vm0, %v11716_v17 }
 0x2db   :  { %3400 = vst.msk [vmem:[#allocation3 + $0x38] sm:$0xff] %vm2281_vm10, %v3377_v28  ;;  %3098 = vrot.lane.b32.xlu1 %v3074_v26, %s10417_s18  ;;  %v3065_v28 = vld [vmem:[#allocation2 + $0xa8] sm:$0xff] }
 0x2dc   :  { %2343 = vrot.lane.b32.xlu0 %v2317_v57, %s13776_s15  ;;  %v3075_v26 = vpack.c.bf16 %v3066_v7, %v3065_v28  ;;  %v11978_v28 = vld [vmem:[%s13724_s4] ss:$0 sm:$0xff] }
 0x2dd   :  { %v2411_v9 = vpop.permute.xlu1 %2410  ;;  %9875 = vmatpush3.bf16.msra.mxu0 %v10250_v24 }
 0x2de   :  { %v3024_v3 = vpop.permute.xlu0 %3023  ;;  %2433 = vst.msk [vmem:[#allocation3 + $0x50] sm:$0xff] %vm13757_vm12, %v2411_v9  ;;  %v10252_v9 = vld [vmem:[%s13721_s1] sm:$0xff]   ;;  %9876 = vmatprep.subr.bf16.mxu0 %v11716_v17 }
 0x2df   :  { %3046 = vst.msk [vmem:[#allocation3 + $0x48] sm:$0xff] %vm1916_vm5, %v3024_v3  ;;  %3240 = vrot.lane.b32.xlu1 %v11782_v16, %s10419_s20  ;;  %v3138_v3 = vld [vmem:[#allocation2 + $0xb9] sm:$0xff]  ;;  %9933 = vmatpush3.bf16.msra.mxu1 %v10252_v9 }
 0x2e0   :  { %2416 = vrot.lane.b32.xlu0 %v2390_v5, %s13742_s27  ;;  %v11873_v5 = vld [vmem:[#allocation2 + $0xaa] sm:$0xff]  ;;  %v3147_v46 = vpack.c.bf16 %v3138_v3, %v3138_v3  ;;  %9934 = vmatprep.subr.bf16.mxu1 %v11716_v17 }
 0x2e1   :  { %v2557_v43 = vpop.permute.xlu1 %2556  ;;  %9849 = vmatmul.mubr.bf16.gmra.mrb[140].mxu1 %v10251_v33  ;;  %v3414_v47 = vld [vmem:[#allocation3 + $0x40] sm:$0xff]  ;;  %v2755_v10 = vpack.c.bf16 %v11873_v5, %v11873_v5  ;;  %v10273_v33 = vld [vmem:[%s13720_s0 + $0x280] sm:$0xff]  }
 0x2e2   :  { %v2484_v45 = vpop.permute.xlu0 %2483  ;;  %v3413_v49 = vld [vmem:[#allocation3 + $0x38] sm:$0xff]  ;;  %9852 = vmatprep.mubr.msk.bf16.mxu1 %vm13766_vm0, %v11716_v17 }
 0x2e3   :  { %2506 = vst.msk [vmem:[#allocation3 + $0x50] sm:$0xff] %vm13748_vm13, %v2484_v45  ;;  %3615 = vmatprep.mubr.bf16.mxu0 %v3413_v49  ;;  %3382 = vrot.lane.b32.xlu1 %v3358_v42, %s10423_s24  ;;  %v3350_v45 = vld [vmem:[#allocation2 + $0xb4] sm:$0xff]  ;;  %v10253_v49 = vld [vmem:[%s13721_s1 + $0x8] sm:$0xff]  }
 0x2e4   :  { %2579 = vst.msk [vmem:[#allocation3 + $0x50] sm:$0xff] %vm13747_vm14, %v2557_v43  ;;  %2489 = vrot.lane.b32.xlu0 %v2463_v53, %s13744_s25  ;;  %3616 = vmatmul.mubr.bf16.gmra.mrb[116].mxu0 %v3412_v54  ;;  %v3209_v43 = vld [vmem:[#allocation2 + $0xba] sm:$0xff]  ;;  %v3359_v12 = vpack.c.bf16 %v3350_v45, %v11807_v8  ;;  %v10255_v54 = vld [vmem:[%s13720_s0 + $0x1f0] sm:$0xff]  }
 0x2e5   :  { %v2048_v25 = vpop.permute.xlu1 %2047  ;;  %v3218_v18 = vpack.c.bf16 %v3209_v43, %v3209_v43  ;;  %9935 = vmatpush3.bf16.msra.mxu1 %v10253_v49  ;;  %v10276_v49 = vld [vmem:[%s13720_s0 + $0x288] sm:$0xff]  }
 0x2e6   :  { %v2630_v29 = vpop.permute.xlu0 %2629  ;;  %2069 = vst.msk [vmem:[#allocation3 + $0x60] sm:$0xff] %vm2062_vm7, %v2048_v25  ;;  %v3280_v25 = vld [vmem:[#allocation2 + $0xbb] sm:$0xff]  ;;  %9936 = vmatprep.subr.bf16.mxu1 %v11716_v17 }
 0x2e7   :  { %2652 = vst.msk [vmem:[#allocation3 + $0x50] sm:$0xff] %vm13746_vm15, %v2630_v29  ;;  %3029 = vrot.lane.b32.xlu1 %v3004_v20, %s10415_s16  ;;  %v2600_v29 = vld [vmem:[#allocation2 + $0x9f] sm:$0xff]  ;;  %v3289_v8 = vpack.c.bf16 %v3280_v25, %v3280_v25 }
 0x2e8   :  { %2562 = vrot.lane.b32.xlu0 %v2536_v59, %s13774_s29  ;;  %v10256_v59 = vld [vmem:[%s13721_s1 + $0x10] sm:$0xff]   ;;  %v2609_v6 = vpack.c.bf16 %v2600_v29, %v2600_v29 }
 0x2e9   :  { %v2703_v21 = vpop.permute.xlu1 %2702  ;;  %9853 = vmatmul.mubr.bf16.gmra.mrb[144].mxu1 %v10255_v54  ;;  %v10279_v54 = vld [vmem:[%s13720_s0 + $0x290] sm:$0xff]  }
 0x2ea   :  { %v2121_v61 = vpop.permute.xlu0 %2120  ;;  %2725 = vst.msk [vmem:[#allocation3 + $0x50] sm:$0xff] %vm13750_vm2, %v2703_v21  ;;  %9937 = vmatpush3.bf16.msra.mxu1 %v10256_v59  ;;  %9856 = vmatprep.mubr.msk.bf16.mxu1 %vm13766_vm0, %v11716_v17 }
 0x2eb   :  { %2142 = vst.msk [vmem:[#allocation3 + $0x60] sm:$0xff] %vm2135_vm8, %v2121_v61  ;;  %2889 = vrot.lane.b32.xlu1 %v2863_v62, %s10416_s17  ;;  %9938 = vmatprep.subr.bf16.mxu1 %v11716_v17  ;;  %v10257_v61 = vld [vmem:[%s13721_s1 + $0x18] sm:$0xff]  }
 0x2ec   :  { %3169 = vrot.lane.b32.xlu0 %v3145_v0, %s10420_s21 }
 0x2ed   :  { %v2194_v55 = vpop.permute.xlu1 %2193 }
 0x2ee   :  { %v2267_v1 = vpop.permute.xlu0 %2266  ;;  %2215 = vst.msk [vmem:[#allocation3 + $0x60] sm:$0xff] %vm2208_vm9, %v2194_v55  ;;  %v3360_v55 = vpack.c.bf16 %v3351_v40, %v3351_v40  ;;  %9939 = vmatpush3.bf16.msra.mxu1 %v10257_v61 }
 0x2ef   :  { %2288 = vst.msk [vmem:[#allocation3 + $0x60] sm:$0xff] %vm2281_vm10, %v2267_v1  ;;  %2960 = vrot.lane.b32.xlu1 %v2934_v44, %s10418_s19  ;;  %v10254_v1 = vld [vmem:[%s13721_s1 + $0x30] sm:$0xff]   ;;  %v10259_v44 = vld [vmem:[%s13720_s0 + $0x1f8] sm:$0xff]   ;;  %9940 = vmatprep.subr.bf16.mxu1 %v11716_v17 }
 0x2f0   :  { %3311 = vrot.lane.b32.xlu0 %v11279_v38, %s10421_s22  ;;  %v2924_v38 = vld [vmem:[#allocation2 + $0xa5] sm:$0xff]  ;;  %9877 = vmatpush3.bf16.msra.mxu0 %v10254_v1 }
 0x2f1   :  { %v3095_v63 = vpop.permute.xlu1 %3094  ;;  %v2933_v15 = vpack.c.bf16 %v2924_v38, %v11789_v13  ;;  %v3217_v13 = vpack.c.bf16 %v3208_v35, %v11873_v5  ;;  %9857 = vmatmul.mubr.bf16.gmra.mrb[148].mxu1 %v10259_v44  ;;  %9878 = vmatprep.subr.bf16.mxu0 %v11716_v17  ;;  %v10264_v38 = vld [vmem:[%s13720_s0 + $0x200] sm:$0xff]  }
 0x2f2   :  { %v1758_v4 = vpop.permute.xlu0 %1757  ;;  %3117 = vst.msk [vmem:[#allocation3 + $0x48] sm:$0xff] %vm1989_vm6, %v3095_v63  ;;  %9941 = vmatpush3.bf16.msra.mxu1 %v10260_v32  ;;  %v10261_v63 = vld [vmem:[%s13721_s1 + $0x28] sm:$0xff]   ;;  %9860 = vmatprep.mubr.msk.bf16.mxu1 %vm13766_vm0, %v11716_v17 }
 0x2f3   :  { %1778 = vst.msk [vmem:[#allocation3 + $0x70] sm:$0xff] %vm1770_vm3, %v1758_v4  ;;  %3031 = vrot.lane.b32.xlu1 %v3005_v22, %s10415_s16  ;;  %9942 = vmatprep.subr.bf16.mxu1 %v11716_v17  ;;  %v10286_v32 = vld [vmem:[%s13720_s0 + $0x2a8] sm:$0xff]  }
 0x2f4   :  { %2887 = vrot.lane.b32.xlu0 %v3358_v42, %s10416_s17  ;;  %9879 = vmatpush3.bf16.msra.mxu0 %v10258_v14 }
 0x2f5   :  { %v2340_v56 = vpop.permute.xlu1 %2339  ;;  %10000 = vmatprep.subr.bf16.mxu0 %v11716_v17 }
 0x2f6   :  { %v1904_v34 = vpop.permute.xlu0 %1903  ;;  %2361 = vst.msk [vmem:[#allocation3 + $0x60] sm:$0xff] %vm13753_vm11, %v2340_v56  ;;  %9943 = vmatpush3.bf16.msra.mxu1 %v10261_v63 }
 0x2f7   :  { %3171 = vrot.lane.b32.xlu1 %v3146_v27, %s10420_s21  ;;  %9944 = vmatprep.subr.bf16.mxu1 %v11716_v17 }
 0x2f8   :  { %2958 = vrot.lane.b32.xlu0 %v2933_v15, %s10418_s19 }
 0x2f9   :  { %v1831_v19 = vpop.permute.xlu1 %1830  ;;  %9861 = vmatmul.mubr.bf16.gmra.mrb[152].mxu1 %v10264_v38 }
 0x2fa   :  { %v3166_v39 = vpop.permute.xlu0 %3165  ;;  %1851 = vst.msk [vmem:[#allocation3 + $0x70] sm:$0xff] %vm1843_vm4, %v1831_v19  ;;  %9945 = vmatpush3.bf16.msra.mxu1 %v10265_v31  ;;  %9948 = vmatprep.mubr.msk.bf16.mxu1 %vm13766_vm0, %v11716_v17  ;;  %v10289_v31 = vld [vmem:[%s13720_s0 + $0x2b0] sm:$0xff]  }
 0x2fb   :  { %3188 = vst.msk [vmem:[#allocation3 + $0x48] sm:$0xff] %vm2062_vm7, %v3166_v39  ;;  %3313 = vrot.lane.b32.xlu1 %v3288_v2, %s10421_s22  ;;  %9946 = vmatprep.subr.bf16.mxu1 %v11716_v17  ;;  %v10271_v2 = vld [vmem:[%s13720_s0 + $0x278] sm:$0xff]  }
 0x2fc   :  { %1924 = vst.msk [vmem:[#allocation3 + $0x70] sm:$0xff] %vm1916_vm5, %v1904_v34  ;;  %2779 = vrot.lane.b32.xlu0 %v11782_v16, %s13768_s13  ;;  %v10266_v34 = vld [vmem:[%s13721_s1 + $0x38] sm:$0xff]  }
 0x2fd   :  { %v1977_v23 = vpop.permute.xlu1 %1976 }
 0x2fe   :  { %v3308_v57 = vpop.permute.xlu0 %3307  ;;  %1997 = vst.msk [vmem:[#allocation3 + $0x70] sm:$0xff] %vm1989_vm6, %v1977_v23  ;;  %9947 = vmatpush3.bf16.msra.mxu1 %v10266_v34 }
 0x2ff   :  { %3102 = vrot.lane.b32.xlu1 %v3076_v30, %s10417_s18 }
 0x300   :  { %3100 = vrot.lane.b32.xlu0 %v3075_v26, %s10417_s18 }
 0x301   :  { %v3237_v16 = vpop.permute.xlu1 %3236  ;;  %9949 = vmatmul.mubr.bf16.vlgmr.msra.gmra.mrb[156].mxu1 %v10268_v41 }
 0x302   :  { %v2884_v37 = vpop.permute.xlu0 %2883  ;;  %3259 = vst.msk [vmem:[#allocation3 + $0x48] sm:$0xff] %vm2135_vm8, %v3237_v16  ;;  %9952 = vmatprep.mubr.msk.bf16.mxu1 %vm13766_vm0, %v11716_v17 }
 0x303   :  { %2905 = vst.msk [vmem:[#allocation3 + $0x58] sm:$0xff] %vm1770_vm3, %v2884_v37  ;;  %3173 = vrot.lane.b32.xlu1 %v3147_v46, %s10420_s21 }
 0x304   :  { %3330 = vst.msk [vmem:[#allocation3 + $0x48] sm:$0xff] %vm2208_vm9, %v3308_v57  ;;  %3242 = vrot.lane.b32.xlu0 %v3217_v13, %s10419_s20 }
 0x305   :  { %v3379_v53 = vpop.permute.xlu1 %3378 }
 0x306   :  { %v2955_v42 = vpop.permute.xlu0 %2954  ;;  %3401 = vst.msk [vmem:[#allocation3 + $0x48] sm:$0xff] %vm2281_vm10, %v3379_v53 }
 0x307   :  { %2976 = vst.msk [vmem:[#allocation3 + $0x58] sm:$0xff] %vm1843_vm4, %v2955_v42  ;;  %3244 = vrot.lane.b32.xlu1 %v3218_v18, %s10419_s20 }
 0x308   :  { %3384 = vrot.lane.b32.xlu0 %v3359_v12, %s10423_s24 }
 0x309   :  { %v3026_v20 = vpop.permute.xlu1 %3025  ;;  %9953 = vmatmul.mubr.bf16.gmra.mrb[160].mxu1 %v10271_v2 }
 0x30a   :  { %v2776_v11 = vpop.permute.xlu0 %2775  ;;  %3047 = vst.msk [vmem:[#allocation3 + $0x58] sm:$0xff] %vm1916_vm5, %v3026_v20  ;;  %9956 = vmatprep.mubr.msk.bf16.mxu1 %vm13766_vm0, %v11716_v17 }
 0x30b   :  { %2798 = vst.msk [vmem:[#allocation3 + $0x50] sm:$0xff] %vm13756_vm1, %v2776_v11  ;;  %3315 = vrot.lane.b32.xlu1 %v3289_v8, %s10421_s22  ;;  %v10281_v8 = vld [vmem:[%s13720_s0 + $0x298] sm:$0xff]  }
 0x30c   :  { %2635 = vrot.lane.b32.xlu0 %v2609_v6, %s13773_s26 }
 0x30d   :  { %v2486_v21 = vpop.permute.xlu1 %2485  ;;  %v3415_v62 = vld [vmem:[#allocation3 + $0x48] sm:$0xff] }
 0x30e   :  { %v2413_v0 = vpop.permute.xlu0 %2412  ;;  %3623 = vmatprep.mubr.bf16.mxu0 %v3415_v62  ;;  %v10284_v62 = vld [vmem:[%s13720_s0 + $0x2a0] sm:$0xff]  }
 0x30f   :  { %2434 = vst.msk [vmem:[#allocation3 + $0x60] sm:$0xff] %vm13757_vm12, %v2413_v0  ;;  %3386 = vrot.lane.b32.xlu1 %v3360_v55, %s10423_s24  ;;  %3624 = vmatmul.mubr.bf16.gmra.mrb[120].mxu0 %v3414_v47 }
 0x310   :  { %2507 = vst.msk [vmem:[#allocation3 + $0x60] sm:$0xff] %vm13748_vm13, %v2486_v21  ;;  %2708 = vrot.lane.b32.xlu0 %v2682_v58, %s13775_s14  ;;  %vm13762_vm13 = vcmask 257216  }
 0x311   :  { %v2632_v60 = vpop.permute.xlu1 %2631  ;;  %9957 = vmatmul.mubr.bf16.gmra.mrb[164].mxu1 %v10273_v33 }
 0x312   :  { %v2559_v36 = vpop.permute.xlu0 %2558  ;;  %9960 = vmatprep.mubr.msk.bf16.mxu1 %vm13766_vm0, %v11716_v17  ;;  %v3416_v11 = vld [vmem:[#allocation3 + $0x50] sm:$0xff] }
 0x313   :  { %2580 = vst.msk [vmem:[#allocation3 + $0x60] sm:$0xff] %vm13747_vm14, %v2559_v36  ;;  %vm1852_vm14 = vcmask 191616  }
 0x314   :  { %2653 = vst.msk [vmem:[#allocation3 + $0x60] sm:$0xff] %vm13746_vm15, %v2632_v60  ;;  %2781 = vrot.lane.b32.xlu0 %v2755_v10, %s13768_s13  ;;  %vm13749_vm15 = vcmask 126016  }
 0x315   :  { %v2123_v4 = vpop.permute.xlu1 %2122 }
 0x316   :  { %v2050_v22 = vpop.permute.xlu0 %2049 }
 0x317   :  { %2070 = vst.msk [vmem:[#allocation3 + $0x70] sm:$0xff] %vm2062_vm7, %v2050_v22 }
 0x318   :  { %2143 = vst.msk [vmem:[#allocation3 + $0x70] sm:$0xff] %vm2135_vm8, %v2123_v4 }
 0x319   :  { %v1760_v56 = vpop.permute.xlu1 %1759  ;;  %9961 = vmatmul.mubr.bf16.gmra.mrb[168].mxu1 %v10276_v49 }
 0x31a   :  { %v2705_v51 = vpop.permute.xlu0 %2704  ;;  %1780 = vst.msk [vmem:[#allocation3 + $0x80] sm:$0xf] %vm13749_vm15, %v1760_v56  ;;  %vm13752_vm15 = vcmask 322816   ;;  %9964 = vmatprep.mubr.msk.bf16.mxu1 %vm13766_vm0, %v11716_v17 }
 0x31b   :  { %2726 = vst.msk [vmem:[#allocation3 + $0x60] sm:$0xff] %vm13750_vm2, %v2705_v51  ;;  %vm13751_vm2 = vcmask 388416  }
 0x31d   :  { %v1906_v27 = vpop.permute.xlu1 %1905 }
 0x31e   :  { %v2196_v15 = vpop.permute.xlu0 %2195 }
 0x31f   :  { %2216 = vst.msk [vmem:[#allocation3 + $0x70] sm:$0xff] %vm2208_vm9, %v2196_v15 }
 0x321   :  { %v2269_v19 = vpop.permute.xlu1 %2268  ;;  %9965 = vmatmul.mubr.bf16.gmra.mrb[172].mxu1 %v10279_v54  ;;  %v10297_v54 = vld [vmem:[%s13720_s0 + $0x2c8] sm:$0xff]  }
 0x322   :  { %v1833_v50 = vpop.permute.xlu0 %1832  ;;  %2289 = vst.msk [vmem:[#allocation3 + $0x70] sm:$0xff] %vm2281_vm10, %v2269_v19  ;;  %9968 = vmatprep.mubr.msk.bf16.mxu1 %vm13766_vm0, %v11716_v17 }
 0x323   :  { %1853 = vst.msk [vmem:[#allocation3 + $0x80] sm:$0xf] %vm1852_vm14, %v1833_v50 }
 0x324   :  { %1926 = vst.msk [vmem:[#allocation3 + $0x80] sm:$0xf] %vm13762_vm13, %v1906_v27 }
 0x325   :  { %v2052_v52 = vpop.permute.xlu1 %2051 }
 0x326   :  { %v1979_v39 = vpop.permute.xlu0 %1978 }
 0x327   :  { %1999 = vst.msk [vmem:[#allocation3 + $0x80] sm:$0xf] %vm13752_vm15, %v1979_v39  ;;  %vm13754_vm15 = vcmask 519616  }
 0x328   :  { %2072 = vst.msk [vmem:[#allocation3 + $0x80] sm:$0xf] %vm13751_vm2, %v2052_v52  ;;  %vm13755_vm2 = vcmask 454016   ;;  %v10292_v52 = vld [vmem:[%s13720_s0 + $0x2b8] sm:$0xff]  }
 0x329   :  { %v2198_v48 = vpop.permute.xlu1 %2197  ;;  %9969 = vmatmul.mubr.bf16.gmra.mrb[176].mxu1 %v10281_v8 }
 0x32a   :  { %v3097_v7 = vpop.permute.xlu0 %3096  ;;  %v9254_v24 = vpop.f32.mrb[104].mxu0  ;;  %9972 = vmatprep.mubr.msk.bf16.mxu1 %vm13766_vm0, %v11716_v17 }
 0x32b   :  { %3118 = vst.msk [vmem:[#allocation3 + $0x58] sm:$0xff] %vm1989_vm6, %v3097_v7  ;;  %v9255_v23 = vpop.f32.mrb[105].mxu0 }
 0x32c   :  { %v9256_v57 = vadd.f32 %v9255_v23, %v9254_v24  ;;  %v9257_v26 = vpop.f32.mrb[106].mxu0 }
 0x32d   :  { %v3168_v35 = vpop.permute.xlu1 %3167  ;;  %v9258_v3 = vpop.f32.mrb[107].mxu0 }
 0x32e   :  { %v2342_v30 = vpop.permute.xlu0 %2341  ;;  %v11985_v9 = vadd.f32 %v9256_v57, %v11978_v28  ;;  %3189 = vst.msk [vmem:[#allocation3 + $0x58] sm:$0xff] %vm2062_vm7, %v3168_v35  ;;  %v9259_v5 = vadd.f32 %v9258_v3, %v9257_v26 }
 0x32f   :  { %2362 = vst.msk [vmem:[#allocation3 + $0x70] sm:$0xff] %vm13753_vm11, %v2342_v30  ;;  %vm13778_vm11 = vcmask 786112  }
 0x330   :  { %v3664_v16 = vmax.f32 %v11985_v9, 0.0  ;;  %v11990_v37 = vadd.f32 %v9259_v5, %v11978_v28 }
 0x331   :  { %v3310_v46 = vpop.permute.xlu1 %3309  ;;  %9973 = vmatmul.mubr.bf16.gmra.mrb[180].mxu1 %v10284_v62 }
 0x332   :  { %v2125_v13 = vpop.permute.xlu0 %2124  ;;  %3682 = vst [vmem:[#allocation4] sm:$0xff] %v3664_v16  ;;  %v3665_v45 = vmax.f32 %v11990_v37, 0.0  ;;  %9976 = vmatprep.mubr.msk.bf16.mxu1 %vm13766_vm0, %v11716_v17 }
 0x333   :  { %2145 = vst.msk [vmem:[#allocation3 + $0x80] sm:$0xf] %vm13755_vm2, %v2125_v13  ;;  %vm2290_vm2 = vcmask 585216  }
 0x334   :  { %2218 = vst.msk [vmem:[#allocation3 + $0x80] sm:$0xf] %vm13754_vm15, %v2198_v48  ;;  %3683 = vst [vmem:[#allocation4 + $0x8] sm:$0xff] %v3665_v45  ;;  %vm13779_vm15 = vcmask 851712  }
 0x335   :  { %v2886_v53 = vpop.permute.xlu1 %2885 }
 0x336   :  { %v3239_v43 = vpop.permute.xlu0 %3238  ;;  %2906 = vst.msk [vmem:[#allocation3 + $0x68] sm:$0xff] %vm1770_vm3, %v2886_v53  ;;  %v10294_v53 = vld [vmem:[%s13720_s0 + $0x2c0] sm:$0xff]  }
 0x337   :  { %3260 = vst.msk [vmem:[#allocation3 + $0x58] sm:$0xff] %vm2135_vm8, %v3239_v43 }
 0x338   :  { %3331 = vst.msk [vmem:[#allocation3 + $0x58] sm:$0xff] %vm2208_vm9, %v3310_v46 }
 0x339   :  { %v2957_v12 = vpop.permute.xlu1 %2956  ;;  %9977 = vmatmul.mubr.bf16.gmra.mrb[184].mxu1 %v10286_v32 }
 0x33a   :  { %v3381_v42 = vpop.permute.xlu0 %3380  ;;  %2977 = vst.msk [vmem:[#allocation3 + $0x68] sm:$0xff] %vm1843_vm4, %v2957_v12  ;;  %9980 = vmatprep.mubr.msk.bf16.mxu1 %vm13766_vm0, %v11716_v17 }
 0x33b   :  { %3402 = vst.msk [vmem:[#allocation3 + $0x58] sm:$0xff] %vm2281_vm10, %v3381_v42  ;;  %v3716_v7 = vld [vmem:[#allocation4 + $0x1] sm:$0xff] }
 0x33c   :  { %v3732_v30 = vmax.f32 %v3664_v16, %v3716_v7  ;;  %v10272_v7 = vld [vmem:[%s13720_s0 + $0x220] sm:$0xff]  }
 0x33d   :  { %v2778_v29 = vpop.permute.xlu1 %2777 }
 0x33e   :  { %v3028_v18 = vpop.permute.xlu0 %3027  ;;  %2799 = vst.msk [vmem:[#allocation3 + $0x60] sm:$0xff] %vm13756_vm1, %v2778_v29  ;;  %vm13780_vm1 = vcmask 917312  }
 0x33f   :  { %3048 = vst.msk [vmem:[#allocation3 + $0x68] sm:$0xff] %vm1916_vm5, %v3028_v18 }
 0x341   :  { %v2415_v20 = vpop.permute.xlu1 %2414  ;;  %9981 = vmatmul.mubr.bf16.gmra.mrb[188].mxu1 %v10289_v31 }
 0x342   :  { %v2488_v25 = vpop.permute.xlu0 %2487  ;;  %v3417_v59 = vld [vmem:[#allocation3 + $0x58] sm:$0xff]  ;;  %2435 = vst.msk [vmem:[#allocation3 + $0x70] sm:$0xff] %vm13757_vm12, %v2415_v20  ;;  %vm13761_vm12 = vcmask 650816   ;;  %9984 = vmatprep.mubr.msk.bf16.mxu1 %vm13766_vm0, %v11716_v17 }
 0x343   :  { %3631 = vmatprep.mubr.bf16.mxu0 %v3417_v59  ;;  %2508 = vst.msk [vmem:[#allocation3 + $0x70] sm:$0xff] %vm13778_vm11, %v2488_v25  ;;  %vm13781_vm11 = vcmask 982912  }
 0x344   :  { %3632 = vmatmul.mubr.bf16.gmra.mrb[124].mxu0 %v3416_v11  ;;  %v10299_v11 = vld [vmem:[%s13720_s0 + $0x2d0] sm:$0xff]  }
 0x345   :  { %v2561_v40 = vpop.permute.xlu1 %2560  ;;  %v3418_v13 = vld [vmem:[#allocation3 + $0x60] sm:$0xff] }
 0x346   :  { %v2634_v6 = vpop.permute.xlu0 %2633  ;;  %2581 = vst.msk [vmem:[#allocation3 + $0x70] sm:$0xff] %vm13779_vm15, %v2561_v40  ;;  %vm13758_vm15 = vcmask 782016  }
 0x347   :  { %2654 = vst.msk [vmem:[#allocation3 + $0x70] sm:$0xff] %vm13780_vm1, %v2634_v6  ;;  %vm13760_vm1 = vcmask 716416  }
 0x349   :  { %v2707_v21 = vpop.permute.xlu1 %2706  ;;  %9985 = vmatmul.mubr.bf16.gmra.mrb[192].mxu1 %v10292_v52  ;;  %v10282_v52 = vld [vmem:[%s13721_s1 + $0x20] sm:$0xff]  }
 0x34a   :  { %v2271_v61 = vpop.permute.xlu0 %2270  ;;  %2727 = vst.msk [vmem:[#allocation3 + $0x70] sm:$0xff] %vm13781_vm11, %v2707_v21  ;;  %vm13759_vm11 = vcmask 847616   ;;  %9988 = vmatprep.mubr.msk.bf16.mxu1 %vm13766_vm0, %v11716_v17 }
 0x34b   :  { %2291 = vst.msk [vmem:[#allocation3 + $0x80] sm:$0xf] %vm2290_vm2, %v2271_v61 }
 0x34d   :  { %v3099_v58 = vpop.permute.xlu1 %3098 }
 0x34e   :  { %v2344_v0 = vpop.permute.xlu0 %2343  ;;  %3119 = vst.msk [vmem:[#allocation3 + $0x68] sm:$0xff] %vm1989_vm6, %v3099_v58 }
 0x34f   :  { %2364 = vst.msk [vmem:[#allocation3 + $0x80] sm:$0xf] %vm13761_vm12, %v2344_v0  ;;  %vm13772_vm12 = vcmask 913216  }
 0x351   :  { %v3241_v1 = vpop.permute.xlu1 %3240  ;;  %9989 = vmatmul.mubr.bf16.gmra.mrb[196].mxu1 %v10294_v53 }
 0x352   :  { %v2417_v55 = vpop.permute.xlu0 %2416  ;;  %9992 = vmatprep.mubr.msk.bf16.mxu1 %vm13766_vm0, %v11716_v17 }
 0x353   :  { %2437 = vst.msk [vmem:[#allocation3 + $0x80] sm:$0xf] %vm13760_vm1, %v2417_v55  ;;  %vm13785_vm1 = vcmask 388416  }
 0x355   :  { %v3383_v47 = vpop.permute.xlu1 %3382 }
 0x356   :  { %v2490_v44 = vpop.permute.xlu0 %2489 }
 0x357   :  { %2510 = vst.msk [vmem:[#allocation3 + $0x80] sm:$0xf] %vm13758_vm15, %v2490_v44  ;;  %vm13782_vm15 = vcmask 126016  }
 0x359   :  { %v3030_v36 = vpop.permute.xlu1 %3029  ;;  %9993 = vmatmul.mubr.bf16.gmra.mrb[200].mxu1 %v10297_v54 }
 0x35a   :  { %v2563_v60 = vpop.permute.xlu0 %2562  ;;  %9996 = vmatprep.mubr.msk.bf16.mxu1 %vm13766_vm0, %v11716_v17 }
 0x35b   :  { %2583 = vst.msk [vmem:[#allocation3 + $0x80] sm:$0xf] %vm13759_vm11, %v2563_v60  ;;  %v9260_v10 = vpop.f32.mrb[108].mxu0  ;;  %vm13784_vm11 = vcmask 322816  }
 0x35c   :  { %v9261_v63 = vpop.f32.mrb[109].mxu0 }
 0x35d   :  { %v9262_v4 = vadd.f32 %v9261_v63, %v9260_v10  ;;  %v9263_v22 = vpop.f32.mrb[110].mxu0  ;;  %v2890_v14 = vpop.permute.xlu1 %2889 }
 0x35e   :  { %v3170_v38 = vpop.permute.xlu0 %3169  ;;  %v9264_v51 = vpop.f32.mrb[111].mxu0  ;;  %2908 = vst.msk [vmem:[#allocation3 + $0x88] sm:$0xf] %vm13782_vm15, %v2890_v14  ;;  %vm13783_vm15 = vcmask 1048512   ;;  %v10269_v14 = vld [vmem:[%s13721_s1 + $0x8] sm:$0xff]  }
 0x35f   :  { %3190 = vst.msk [vmem:[#allocation3 + $0x68] sm:$0xff] %vm2062_vm7, %v3170_v38  ;;  %v3602_v56 = vadd.f32 %v9262_v4, %v11978_v28  ;;  %v9265_v34 = vadd.f32 %v9264_v51, %v9263_v22  ;;  %v10262_v22 = vld [vmem:[%s13720_s0 + $0x208] sm:$0xff]   ;;  %v10263_v38 = vld [vmem:[%s13721_s1] sm:$0xff]  }
 0x360   :  { %3261 = vst.msk [vmem:[#allocation3 + $0x68] sm:$0xff] %vm2135_vm8, %v3241_v1 }
 0x361   :  { %v3666_v15 = vmax.f32 %v3602_v56, 0.0  ;;  %v12052_v27 = vadd.f32 %v9265_v34, %v11978_v28  ;;  %v2961_v50 = vpop.permute.xlu1 %2960  ;;  %9997 = vmatmul.mubr.bf16.gmra.mrb[204].mxu1 %v10299_v11 }
 0x362   :  { %v3312_v41 = vpop.permute.xlu0 %3311  ;;  %2979 = vst.msk [vmem:[#allocation3 + $0x88] sm:$0xf] %vm1852_vm14, %v2961_v50  ;;  %v10274_v50 = vld [vmem:[%s13721_s1 + $0x10] sm:$0xff]  }
 0x363   :  { %3332 = vst.msk [vmem:[#allocation3 + $0x68] sm:$0xff] %vm2208_vm9, %v3312_v41  ;;  %3684 = vst [vmem:[#allocation4 + $0x10] sm:$0xff] %v3666_v15  ;;  %v3667_v19 = vmax.f32 %v12052_v27, 0.0  ;;  %v10267_v41 = vld [vmem:[%s13720_s0 + $0x210] sm:$0xff]   ;;  %v10278_v27 = vld [vmem:[%s13721_s1 + $0x18] sm:$0xff]  }
 0x364   :  { %3403 = vst.msk [vmem:[#allocation3 + $0x68] sm:$0xff] %vm2281_vm10, %v3383_v47 }
 0x365   :  { %3685 = vst [vmem:[#allocation4 + $0x18] sm:$0xff] %v3667_v19  ;;  %v3032_v2 = vpop.permute.xlu1 %3031 }
 0x366   :  { %v2888_v39 = vpop.permute.xlu0 %2887  ;;  %3050 = vst.msk [vmem:[#allocation3 + $0x88] sm:$0xf] %vm13762_vm13, %v3032_v2  ;;  %vm13771_vm13 = vcmask 978816   ;;  %v10287_v2 = vld [vmem:[%s13721_s1 + $0x28] sm:$0xff]  }
 0x367   :  { %2907 = vst.msk [vmem:[#allocation3 + $0x78] sm:$0xff] %vm1770_vm3, %v2888_v39 }
 0x369   :  { %v3172_v26 = vpop.permute.xlu1 %3171 }
 0x36a   :  { %v2959_v48 = vpop.permute.xlu0 %2958  ;;  %v3717_v24 = vld [vmem:[#allocation4 + $0x9] sm:$0xff] }
 0x36b   :  { %v3748_v23 = vld [vmem:[#allocation4 + $0xe] sm:$0xff]  ;;  %2978 = vst.msk [vmem:[#allocation3 + $0x78] sm:$0xff] %vm1843_vm4, %v2959_v48  ;;  %v3419_v35 = vld [vmem:[#allocation3 + $0x68] sm:$0xff]  ;;  %v3733_v46 = vmax.f32 %v3665_v45, %v3717_v24 }
 0x36c   :  { %v3764_v57 = vld [vmem:[#allocation4 + $0xf] sm:$0xff]  ;;  %3049 = vst.msk [vmem:[#allocation3 + $0x78] sm:$0xff] %vm1916_vm5, %v3030_v36  ;;  %v3765_v5 = vld [vmem:[#allocation4 + $0x17] sm:$0xff]  ;;  %3639 = vmatprep.mubr.bf16.mxu0 %v3419_v35 }
 0x36d   :  { %v3780_v33 = vmax.f32 %v3748_v23, %v3764_v57  ;;  %v3749_v3 = vld [vmem:[#allocation4 + $0x16] sm:$0xff]  ;;  %3640 = vmatmul.mubr.bf16.gmra.mrb[128].mxu0 %v3418_v13  ;;  %v3314_v16 = vpop.permute.xlu1 %3313  ;;  %v10275_v23 = vld [vmem:[%s13720_s0 + $0x228] sm:$0xff]  }
 0x36e   :  { %v3781_v43 = vmax.f32 %v3749_v3, %v3765_v5  ;;  %v2780_v49 = vpop.permute.xlu0 %2779  ;;  %v10290_v48 = vld [vmem:[%s13721_s1 + $0x30] sm:$0xff]   ;;  %v10295_v24 = vld [vmem:[%s13721_s1 + $0x38] sm:$0xff]  }
 0x36f   :  { %v3796_v9 = vmax.f32 %v3732_v30, %v3780_v33  ;;  %2800 = vst.msk [vmem:[#allocation3 + $0x70] sm:$0xff] %vm13783_vm15, %v2780_v49  ;;  %vm3829_vm15 = vcmask 122880   ;;  %v10277_v3 = vld [vmem:[%s13720_s0 + $0x230] sm:$0xff]   ;;  %v12177_v49 = vpop.f32.mrb[104].mxu1 }
 0x370   :  { %v3797_v42 = vmax.f32 %v3733_v46, %v3781_v43 }
 0x371   :  { %3812 = vst [vmem:[#allocation5] sm:$0xff] %v3796_v9  ;;  %v3103_v37 = vpop.permute.xlu1 %3102  ;;  %v9814_v9 = vpop.f32.mrb[105].mxu1 }
 0x372   :  { %v3101_v12 = vpop.permute.xlu0 %3100  ;;  %3813 = vst [vmem:[#allocation5 + $0x8] sm:$0xff] %v3797_v42  ;;  %3121 = vst.msk [vmem:[#allocation3 + $0x88] sm:$0xf] %vm13784_vm11, %v3103_v37  ;;  %vm13786_vm11 = vcmask 454016  }
 0x373   :  { %3120 = vst.msk [vmem:[#allocation3 + $0x78] sm:$0xff] %vm1989_vm6, %v3101_v12  ;;  %v10280_v12 = vld [vmem:[%s13720_s0 + $0x238] sm:$0xff]  }
 0x374   :  { %3191 = vst.msk [vmem:[#allocation3 + $0x78] sm:$0xff] %vm2062_vm7, %v3172_v26 }
 0x375   :  { %v3174_v18 = vpop.permute.xlu1 %3173 }
 0x376   :  { %v3243_v45 = vpop.permute.xlu0 %3242  ;;  %3192 = vst.msk [vmem:[#allocation3 + $0x88] sm:$0xf] %vm13785_vm1, %v3174_v18  ;;  %vm13787_vm1 = vcmask 519616   ;;  %v3420_v21 = vld [vmem:[#allocation3 + $0x70] sm:$0xff] }
 0x377   :  { %3262 = vst.msk [vmem:[#allocation3 + $0x78] sm:$0xff] %vm2135_vm8, %v3243_v45 }
 0x378   :  { %3333 = vst.msk [vmem:[#allocation3 + $0x78] sm:$0xff] %vm2208_vm9, %v3314_v16  ;;  %v3828_v29 = vld [vmem:[#allocation5] sm:$0x1]  ;;  %v12182_v16 = vpop.f32.mrb[106].mxu1 }
 0x379   :  { %3830 = vst.msk [vmem:[#allocation6] sm:$0x1] %vm3829_vm15, %v3828_v29  ;;  %v3245_v59 = vpop.permute.xlu1 %3244  ;;  %v9815_v42 = vpop.f32.mrb[107].mxu1 }
 0x37a   :  { %v3385_v25 = vpop.permute.xlu0 %3384  ;;  %3263 = vst.msk [vmem:[#allocation3 + $0x88] sm:$0xf] %vm13786_vm11, %v3245_v59  ;;  %vm13770_vm11 = vcmask 1044416   ;;  %v12189_v37 = vpop.f32.mrb[108].mxu1 }
 0x37b   :  { %3404 = vst.msk [vmem:[#allocation3 + $0x78] sm:$0xff] %vm2281_vm10, %v3385_v25  ;;  %v9818_v45 = vpop.f32.mrb[109].mxu1 }
 0x37c   :  { %v12191_v54 = vpop.f32.mrb[110].mxu1 }
 0x37d   :  { %v3316_v6 = vpop.permute.xlu1 %3315  ;;  %v9819_v29 = vpop.f32.mrb[111].mxu1 }
 0x37e   :  { %v2636_v20 = vpop.permute.xlu0 %2635  ;;  %3334 = vst.msk [vmem:[#allocation3 + $0x88] sm:$0xf] %vm13787_vm1, %v3316_v6  ;;  %v10293_v29 = vld [vmem:[%s13720_s0 + $0x260] sm:$0xff]   ;;  %vm13805_vm1 = vcmask 64512  }
 0x37f   :  { %2656 = vst.msk [vmem:[#allocation3 + $0x80] sm:$0xf] %vm13772_vm12, %v2636_v20  ;;  %v12193_v20 = vpop.f32.mrb[112].mxu1  ;;  %vm13879_vm12 = vcmask 650816  }
 0x381   :  { %v3387_v61 = vpop.permute.xlu1 %3386 }
 0x382   :  { %v2709_v8 = vpop.permute.xlu0 %2708  ;;  %v3421_v40 = vld [vmem:[#allocation3 + $0x78] sm:$0xff]  ;;  %3405 = vst.msk [vmem:[#allocation3 + $0x88] sm:$0xf] %vm2290_vm2, %v3387_v61 }
 0x383   :  { %2729 = vst.msk [vmem:[#allocation3 + $0x80] sm:$0xf] %vm13771_vm13, %v2709_v8  ;;  %3647 = vmatprep.mubr.bf16.mxu0 %v3421_v40  ;;  %v9822_v8 = vpop.f32.mrb[113].mxu1  ;;  %vm13822_vm13 = vcmask 917312  }
 0x384   :  { %3648 = vmatmul.mubr.bf16.gmra.mrb[132].mxu0 %v3420_v21  ;;  %v12199_v40 = vpop.f32.mrb[114].mxu1 }
 0x385   :  { %v9823_v61 = vpop.f32.mrb[115].mxu1 }
 0x386   :  { %v2782_v0 = vpop.permute.xlu0 %2781  ;;  %v9266_v62 = vpop.f32.mrb[112].mxu0 }
 0x387   :  { %2802 = vst.msk [vmem:[#allocation3 + $0x80] sm:$0xf] %vm13770_vm11, %v2782_v0  ;;  %v9267_v58 = vpop.f32.mrb[113].mxu0  ;;  %v10283_v0 = vld [vmem:[%s13720_s0 + $0x240] sm:$0xff]   ;;  %vm13821_vm11 = vcmask 851712  }
 0x388   :  { %v9268_v55 = vadd.f32 %v9267_v58, %v9266_v62  ;;  %v9269_v1 = vpop.f32.mrb[114].mxu0  ;;  %v12204_v62 = vpop.f32.mrb[116].mxu1 }
 0x389   :  { %v9270_v44 = vpop.f32.mrb[115].mxu0  ;;  %v3423_v32 = vld [vmem:[#allocation3 + $0x88] sm:$0xff]  ;;  %v9826_v58 = vpop.f32.mrb[117].mxu1 }
 0x38a   :  { %v12104_v47 = vadd.f32 %v9268_v55, %v11978_v28  ;;  %v9271_v60 = vadd.f32 %v9270_v44, %v9269_v1  ;;  %3655 = vmatprep.mubr.bf16.mxu0 %v3423_v32  ;;  %v12206_v55 = vpop.f32.mrb[118].mxu1 }
 0x38b   :  { %v9827_v1 = vpop.f32.mrb[119].mxu1 }
 0x38c   :  { %v3668_v10 = vmax.f32 %v12104_v47, 0.0  ;;  %v3613_v63 = vadd.f32 %v9271_v60, %v11978_v28  ;;  %v12208_v44 = vpop.f32.mrb[120].mxu1 }
 0x38d   :  { %v9830_v32 = vpop.f32.mrb[121].mxu1 }
 0x38e   :  { %v3422_v36 = vld [vmem:[#allocation3 + $0x80] sm:$0xff]  ;;  %3686 = vst [vmem:[#allocation4 + $0x20] sm:$0xff] %v3668_v10  ;;  %v3669_v4 = vmax.f32 %v3613_v63, 0.0  ;;  %v12212_v47 = vpop.f32.mrb[122].mxu1  ;;  %v10296_v32 = vld [vmem:[%s13720_s0 + $0x268] sm:$0xff]  }
 0x38f   :  { %3656 = vmatmul.mubr.bf16.gmra.mrb[136].mxu0 %v3422_v36  ;;  %v9831_v60 = vpop.f32.mrb[123].mxu1  ;;  %v10285_v36 = vld [vmem:[%s13720_s0 + $0x248] sm:$0xff]  }
 0x390   :  { %9880 = vmatprep.mubr.msk.bf16.mxu0 %vm13766_vm0, %v11716_v17  ;;  %3687 = vst [vmem:[#allocation4 + $0x28] sm:$0xff] %v3669_v4 }
 0x395   :  { %v3719_v31 = vld [vmem:[#allocation4 + $0x19] sm:$0xff] }
 0x396   :  { %v3735_v34 = vmax.f32 %v3667_v19, %v3719_v31  ;;  %v10270_v19 = vld [vmem:[%s13720_s0 + $0x218] sm:$0xff]  }
 0x397   :  { %9881 = vmatmul.mubr.bf16.vlgmr.msra.gmra.mrb[140].mxu0 %v10262_v22  ;;  %v3751_v51 = vld [vmem:[#allocation4 + $0x26] sm:$0xff] }
 0x398   :  { %10001 = vmatpush3.bf16.msra.mxu0 %v10263_v38  ;;  %9884 = vmatprep.mubr.msk.bf16.mxu0 %vm13766_vm0, %v11716_v17  ;;  %v3767_v56 = vld [vmem:[#allocation4 + $0x27] sm:$0xff] }
 0x399   :  { %10002 = vmatprep.subr.bf16.mxu0 %v11716_v17  ;;  %v3783_v15 = vmax.f32 %v3751_v51, %v3767_v56  ;;  %v3720_v18 = vld [vmem:[#allocation4 + $0x21] sm:$0xff] }
 0x39a   :  { %v3736_v11 = vmax.f32 %v3668_v10, %v3720_v18  ;;  %v12217_v10 = vpop.f32.mrb[124].mxu1 }
 0x39b   :  { %v3799_v39 = vmax.f32 %v3735_v34, %v3783_v15  ;;  %v9834_v4 = vpop.f32.mrb[125].mxu1  ;;  %v10288_v34 = vld [vmem:[%s13720_s0 + $0x250] sm:$0xff]  }
 0x39c   :  { %10003 = vmatpush3.bf16.msra.mxu0 %v10269_v14  ;;  %v12220_v22 = vpop.f32.mrb[126].mxu1 }
 0x39d   :  { %10004 = vmatprep.subr.bf16.mxu0 %v11716_v17  ;;  %3815 = vst [vmem:[#allocation5 + $0x18] sm:$0xff] %v3799_v39  ;;  %v9835_v38 = vpop.f32.mrb[127].mxu1 }
 0x39e   :  { %v12222_v31 = vpop.f32.mrb[128].mxu1 }
 0x39f   :  { %9885 = vmatmul.mubr.bf16.gmra.mrb[144].mxu0 %v10267_v41  ;;  %v9838_v14 = vpop.f32.mrb[129].mxu1 }
 0x3a0   :  { %9888 = vmatprep.mubr.msk.bf16.mxu0 %vm13766_vm0, %v11716_v17  ;;  %10005 = vmatpush3.bf16.msra.mxu0 %v10274_v50  ;;  %v12226_v51 = vpop.f32.mrb[130].mxu1 }
 0x3a1   :  { %10006 = vmatprep.subr.bf16.mxu0 %v11716_v17  ;;  %v9839_v56 = vpop.f32.mrb[131].mxu1 }
 0x3a4   :  { %10007 = vmatpush3.bf16.msra.mxu0 %v10278_v27  ;;  %v12231_v15 = vpop.f32.mrb[132].mxu1 }
 0x3a5   :  { %10008 = vmatprep.subr.bf16.mxu0 %v11716_v17  ;;  %v9842_v41 = vpop.f32.mrb[133].mxu1 }
 0x3a6   :  { %v12233_v50 = vpop.f32.mrb[134].mxu1 }
 0x3a7   :  { %9889 = vmatmul.mubr.bf16.gmra.mrb[148].mxu0 %v10270_v19  ;;  %v9843_v39 = vpop.f32.mrb[135].mxu1 }
 0x3a8   :  { %9892 = vmatprep.mubr.msk.bf16.mxu0 %vm13766_vm0, %v11716_v17  ;;  %10009 = vmatpush3.bf16.msra.mxu0 %v10282_v52  ;;  %v10298_v39 = vld [vmem:[%s13720_s0 + $0x2d8] sm:$0xff]  }
 0x3a9   :  { %10010 = vmatprep.subr.bf16.mxu0 %v11716_v17 }
 0x3ac   :  { %10011 = vmatpush3.bf16.msra.mxu0 %v10287_v2  ;;  %v12235_v27 = vpop.f32.mrb[136].mxu1 }
 0x3ad   :  { %10012 = vmatprep.subr.bf16.mxu0 %v11716_v17  ;;  %v9846_v19 = vpop.f32.mrb[137].mxu1 }
 0x3ae   :  { %v12239_v52 = vpop.f32.mrb[138].mxu1 }
 0x3af   :  { %9893 = vmatmul.mubr.bf16.gmra.mrb[152].mxu0 %v10272_v7  ;;  %v9847_v2 = vpop.f32.mrb[139].mxu1  ;;  %v10291_v7 = vld [vmem:[%s13720_s0 + $0x258] sm:$0xff]  }
 0x3b0   :  { %9896 = vmatprep.mubr.msk.bf16.mxu0 %vm13766_vm0, %v11716_v17  ;;  %10013 = vmatpush3.bf16.msra.mxu0 %v10290_v48 }
 0x3b1   :  { %10014 = vmatprep.subr.bf16.mxu0 %v11716_v17 }
 0x3b4   :  { %10015 = vmatpush3.bf16.msra.mxu0 %v10295_v24  ;;  %v12244_v48 = vpop.f32.mrb[140].mxu1 }
 0x3b7   :  { %9897 = vmatmul.mubr.bf16.gmra.mrb[156].mxu0 %v10275_v23  ;;  %v9272_v57 = vpop.f32.mrb[116].mxu0  ;;  %v9850_v23 = vpop.f32.mrb[141].mxu1 }
 0x3b8   :  { %9900 = vmatprep.mubr.msk.bf16.mxu0 %vm13766_vm0, %v11716_v17  ;;  %v9273_v26 = vpop.f32.mrb[117].mxu0 }
 0x3b9   :  { %v9274_v30 = vadd.f32 %v9273_v26, %v9272_v57  ;;  %v9275_v33 = vpop.f32.mrb[118].mxu0  ;;  %v12246_v26 = vpop.f32.mrb[142].mxu1 }
 0x3ba   :  { %v9276_v35 = vpop.f32.mrb[119].mxu0 }
 0x3bb   :  { %v3618_v5 = vadd.f32 %v9274_v30, %v11978_v28  ;;  %v9277_v13 = vadd.f32 %v9276_v35, %v9275_v33  ;;  %v9851_v35 = vpop.f32.mrb[143].mxu1 }
 0x3bd   :  { %v3670_v46 = vmax.f32 %v3618_v5, 0.0  ;;  %v12175_v43 = vadd.f32 %v9277_v13, %v11978_v28  ;;  %v12248_v5 = vpop.f32.mrb[144].mxu1 }
 0x3be   :  { %v9854_v9 = vpop.f32.mrb[145].mxu1 }
 0x3bf   :  { %9901 = vmatmul.mubr.bf16.gmra.mrb[160].mxu0 %v10277_v3  ;;  %3688 = vst [vmem:[#allocation4 + $0x30] sm:$0xff] %v3670_v46  ;;  %v3671_v53 = vmax.f32 %v12175_v43, 0.0  ;;  %v12255_v42 = vpop.f32.mrb[146].mxu1 }
 0x3c0   :  { %9904 = vmatprep.mubr.msk.bf16.mxu0 %vm13766_vm0, %v11716_v17  ;;  %13788 = vst [vmem:[#allocation11_spill] sm:$0xff] %v12255_v42  ;;  %v9855_v18 = vpop.f32.mrb[147].mxu1 }
 0x3c1   :  { %3689 = vst [vmem:[#allocation4 + $0x38] sm:$0xff] %v3671_v53 }
 0x3c6   :  { %v3752_v25 = vld [vmem:[#allocation4 + $0x2e] sm:$0xff] }
 0x3c7   :  { %v3768_v59 = vld [vmem:[#allocation4 + $0x2f] sm:$0xff]  ;;  %9905 = vmatmul.mubr.bf16.gmra.mrb[164].mxu0 %v10280_v12 }
 0x3c8   :  { %v3784_v6 = vmax.f32 %v3752_v25, %v3768_v59  ;;  %9908 = vmatprep.mubr.msk.bf16.mxu0 %vm13766_vm0, %v11716_v17  ;;  %v12262_v25 = vpop.f32.mrb[148].mxu1 }
 0x3c9   :  { %13789 = vst [vmem:[#allocation12_spill] sm:$0xff] %v12262_v25 }
 0x3ca   :  { %v3800_v21 = vmax.f32 %v3736_v11, %v3784_v6  ;;  %v9858_v11 = vpop.f32.mrb[149].mxu1 }
 0x3cb   :  { %v12266_v6 = vpop.f32.mrb[150].mxu1 }
 0x3cc   :  { %3816 = vst [vmem:[#allocation5 + $0x20] sm:$0xff] %v3800_v21  ;;  %13790 = vst [vmem:[#allocation13_spill] sm:$0xff] %v12266_v6  ;;  %v9859_v8 = vpop.f32.mrb[151].mxu1 }
 0x3cd   :  { %v12268_v61 = vpop.f32.mrb[152].mxu1 }
 0x3ce   :  { %13791 = vst [vmem:[#allocation14_spill] sm:$0xff] %v12268_v61  ;;  %v9862_v21 = vpop.f32.mrb[153].mxu1 }
 0x3cf   :  { %9909 = vmatmul.mubr.bf16.gmra.mrb[168].mxu0 %v10283_v0  ;;  %v4426_v0 = vpop.f32.mrb[154].mxu1 }
 0x3d0   :  { %9912 = vmatprep.mubr.msk.bf16.mxu0 %vm13766_vm0, %v11716_v17  ;;  %v9863_v58 = vpop.f32.mrb[155].mxu1 }
 0x3d3   :  { %v3929_v63 = vld [vmem:[#allocation5 + $0x22] sm:$0x1] }
 0x3d4   :  { %3930 = vst.msk [vmem:[#allocation6 + $0x2] sm:$0x1] %vm3829_vm15, %v3929_v63  ;;  %v12275_v60 = vpop.f32.mrb[156].mxu1 }
 0x3d5   :  { %v9950_v14 = vpop.f32.mrb[157].mxu1 }
 0x3d6   :  { %v12279_v56 = vpop.f32.mrb[158].mxu1 }
 0x3d7   :  { %9913 = vmatmul.mubr.bf16.gmra.mrb[172].mxu0 %v10285_v36 }
 0x3d8   :  { %9916 = vmatprep.mubr.msk.bf16.mxu0 %vm13766_vm0, %v11716_v17 }
 0x3df   :  { %9917 = vmatmul.mubr.bf16.gmra.mrb[176].mxu0 %v10288_v34  ;;  %v9951_v34 = vpop.f32.mrb[159].mxu1 }
 0x3e0   :  { %9920 = vmatprep.mubr.msk.bf16.mxu0 %vm13766_vm0, %v11716_v17  ;;  %v12286_v19 = vpop.f32.mrb[160].mxu1 }
 0x3e1   :  { %v9954_v2 = vpop.f32.mrb[161].mxu1 }
 0x3e2   :  { %v9278_v24 = vpop.f32.mrb[120].mxu0  ;;  %v12288_v43 = vpop.f32.mrb[162].mxu1 }
 0x3e3   :  { %v9279_v57 = vpop.f32.mrb[121].mxu0 }
 0x3e4   :  { %v9280_v30 = vadd.f32 %v9279_v57, %v9278_v24  ;;  %v9281_v33 = vpop.f32.mrb[122].mxu0 }
 0x3e5   :  { %v9282_v3 = vpop.f32.mrb[123].mxu0 }
 0x3e6   :  { %v12251_v13 = vadd.f32 %v9280_v30, %v11978_v28  ;;  %v9283_v46 = vadd.f32 %v9282_v3, %v9281_v33  ;;  %v10301_v33 = vld [vmem:[%s13720_s0 + $0x2e8] sm:$0xff]  }
 0x3e7   :  { %9921 = vmatmul.mubr.bf16.gmra.mrb[180].mxu0 %v10291_v7  ;;  %v10300_v7 = vld [vmem:[%s13720_s0 + $0x2e0] sm:$0xff]  }
 0x3e8   :  { %9924 = vmatprep.mubr.msk.bf16.mxu0 %vm13766_vm0, %v11716_v17  ;;  %v3672_v12 = vmax.f32 %v12251_v13, 0.0  ;;  %v3629_v45 = vadd.f32 %v9283_v46, %v11978_v28 }
 0x3ea   :  { %3690 = vst [vmem:[#allocation4 + $0x40] sm:$0xff] %v3672_v12  ;;  %v3673_v59 = vmax.f32 %v3629_v45, 0.0  ;;  %v10302_v45 = vld [vmem:[%s13720_s0 + $0x2f0] sm:$0xff]  }
 0x3ec   :  { %3691 = vst [vmem:[#allocation4 + $0x48] sm:$0xff] %v3673_v59 }
 0x3ef   :  { %9925 = vmatmul.mubr.bf16.gmra.mrb[184].mxu0 %v10293_v29 }
 0x3f0   :  { %9928 = vmatprep.mubr.msk.bf16.mxu0 %vm13766_vm0, %v11716_v17 }
 0x3f1   :  { %v3723_v1 = vld [vmem:[#allocation4 + $0x39] sm:$0xff] }
 0x3f2   :  { %v3739_v4 = vmax.f32 %v3671_v53, %v3723_v1  ;;  %v9955_v53 = vpop.f32.mrb[163].mxu1 }
 0x3f3   :  { %v3755_v36 = vld [vmem:[#allocation4 + $0x46] sm:$0xff]  ;;  %v12295_v24 = vpop.f32.mrb[164].mxu1 }
 0x3f4   :  { %v3771_v63 = vld [vmem:[#allocation4 + $0x47] sm:$0xff]  ;;  %v9958_v23 = vpop.f32.mrb[165].mxu1 }
 0x3f5   :  { %v3787_v38 = vmax.f32 %v3755_v36, %v3771_v63  ;;  %v12297_v57 = vpop.f32.mrb[166].mxu1  ;;  %v10303_v63 = vld [vmem:[%s13720_s0 + $0x2f8] sm:$0xff]   ;;  %v10304_v53 = vld [vmem:[%s13720_s0 + $0x300] sm:$0xff]  }
 0x3f6   :  { %v9959_v30 = vpop.f32.mrb[167].mxu1 }
 0x3f7   :  { %9929 = vmatmul.mubr.bf16.gmra.mrb[188].mxu0 %v10296_v32  ;;  %v3803_v41 = vmax.f32 %v3739_v4, %v3787_v38  ;;  %v12304_v35 = vpop.f32.mrb[168].mxu1 }
 0x3f8   :  { %10016 = vmatprep.mubr.msk.bf16.mxu0 %vm13766_vm0, %v11716_v17  ;;  %v9962_v3 = vpop.f32.mrb[169].mxu1 }
 0x3f9   :  { %3819 = vst [vmem:[#allocation5 + $0x38] sm:$0xff] %v3803_v41  ;;  %v12306_v46 = vpop.f32.mrb[170].mxu1 }
 0x3fa   :  { %v9963_v9 = vpop.f32.mrb[171].mxu1 }
 0x3fb   :  { %v12313_v18 = vpop.f32.mrb[172].mxu1 }
 0x3fc   :  { %v9966_v29 = vpop.f32.mrb[173].mxu1 }
 0x3fd   :  { %v12315_v59 = vpop.f32.mrb[174].mxu1 }
 0x3fe   :  { %v9967_v8 = vpop.f32.mrb[175].mxu1 }
 0x3ff   :  { %10017 = vmatmul.mubr.bf16.vlgmr.msra.gmra.mrb[192].mxu0 %v10298_v39  ;;  %v12325_v4 = vpop.f32.mrb[176].mxu1 }
 0x400   :  { %10020 = vmatprep.mubr.msk.bf16.mxu0 %vm13766_vm0, %v11716_v17  ;;  %v9970_v34 = vpop.f32.mrb[177].mxu1 }
 0x401   :  { %v12331_v41 = vpop.f32.mrb[178].mxu1 }
 0x402   :  { %v9971_v2 = vpop.f32.mrb[179].mxu1 }
 0x404   :  { %v12343_v23 = vpop.f32.mrb[180].mxu1 }
 0x405   :  { %v9974_v30 = vpop.f32.mrb[181].mxu1 }
 0x406   :  { %v12345_v9 = vpop.f32.mrb[182].mxu1 }
 0x407   :  { %10021 = vmatmul.mubr.bf16.gmra.mrb[196].mxu0 %v10300_v7  ;;  %v3724_v7 = vld [vmem:[#allocation4 + $0x41] sm:$0xff] }
 0x408   :  { %10024 = vmatprep.mubr.msk.bf16.mxu0 %vm13766_vm0, %v11716_v17 }
 0x40f   :  { %10025 = vmatmul.mubr.bf16.gmra.mrb[200].mxu0 %v10301_v33 }
 0x410   :  { %10028 = vmatprep.mubr.msk.bf16.mxu0 %vm13766_vm0, %v11716_v17 }
 0x417   :  { %v9284_v11 = vpop.f32.mrb[124].mxu0  ;;  %10029 = vmatmul.mubr.bf16.gmra.mrb[204].mxu0 %v10302_v45  ;;  %v3740_v45 = vmax.f32 %v3672_v12, %v3724_v7  ;;  %v10306_v12 = vld [vmem:[%s13720_s0 + $0x310] sm:$0xff]  }
 0x418   :  { %v9285_v21 = vpop.f32.mrb[125].mxu0  ;;  %10032 = vmatprep.mubr.msk.bf16.mxu0 %vm13766_vm0, %v11716_v17 }
 0x419   :  { %v9286_v0 = vadd.f32 %v9285_v21, %v9284_v11  ;;  %v9287_v58 = vpop.f32.mrb[126].mxu0  ;;  %v9975_v11 = vpop.f32.mrb[183].mxu1  ;;  %v10305_v21 = vld [vmem:[%s13720_s0 + $0x308] sm:$0xff]  }
 0x41a   :  { %v9288_v1 = vpop.f32.mrb[127].mxu0 }
 0x41b   :  { %v12320_v32 = vadd.f32 %v9286_v0, %v11978_v28  ;;  %v9289_v36 = vadd.f32 %v9288_v1, %v9287_v58  ;;  %v12354_v0 = vpop.f32.mrb[184].mxu1 }
 0x41c   :  { %v9978_v58 = vpop.f32.mrb[185].mxu1 }
 0x41d   :  { %v3674_v38 = vmax.f32 %v12320_v32, 0.0  ;;  %v12329_v14 = vadd.f32 %v9289_v36, %v11978_v28  ;;  %v12356_v1 = vpop.f32.mrb[186].mxu1 }
 0x41e   :  { %v9979_v13 = vpop.f32.mrb[187].mxu1 }
 0x41f   :  { %3692 = vst [vmem:[#allocation4 + $0x50] sm:$0xff] %v3674_v38  ;;  %v13763_v39 = vmax.f32 %v12329_v14, 0.0  ;;  %10033 = vmatmul.mubr.bf16.gmra.mrb[208].mxu0 %v10303_v63  ;;  %v12363_v36 = vpop.f32.mrb[188].mxu1  ;;  %v13795_v6 = vmax.f32 %v12329_v14, 0.0 }
 0x420   :  { %10036 = vmatprep.mubr.msk.bf16.mxu0 %vm13766_vm0, %v11716_v17  ;;  %v9982_v63 = vpop.f32.mrb[189].mxu1 }
 0x421   :  { %3693 = vst [vmem:[#allocation4 + $0x58] sm:$0xff] %v13763_v39  ;;  %v12365_v34 = vpop.f32.mrb[190].mxu1 }
 0x422   :  { %v9983_v2 = vpop.f32.mrb[191].mxu1 }
 0x423   :  { %v12372_v7 = vpop.f32.mrb[192].mxu1 }
 0x424   :  { %v9986_v30 = vpop.f32.mrb[193].mxu1 }
 0x426   :  { %v3756_v33 = vld [vmem:[#allocation4 + $0x4e] sm:$0xff] }
 0x427   :  { %v3772_v3 = vld [vmem:[#allocation4 + $0x4f] sm:$0xff]  ;;  %10037 = vmatmul.mubr.bf16.gmra.mrb[212].mxu0 %v10304_v53  ;;  %v10307_v53 = vld [vmem:[%s13720_s0 + $0x318] sm:$0xff]  }
 0x428   :  { %v3788_v29 = vmax.f32 %v3756_v33, %v3772_v3  ;;  %10040 = vmatprep.mubr.msk.bf16.mxu0 %vm13766_vm0, %v11716_v17  ;;  %v12374_v33 = vpop.f32.mrb[194].mxu1 }
 0x429   :  { %v9987_v3 = vpop.f32.mrb[195].mxu1 }
 0x42a   :  { %v3804_v8 = vmax.f32 %v3740_v45, %v3788_v29  ;;  %v12381_v13 = vpop.f32.mrb[196].mxu1 }
 0x42b   :  { %v9990_v2 = vpop.f32.mrb[197].mxu1 }
 0x42c   :  { %3820 = vst [vmem:[#allocation5 + $0x40] sm:$0xff] %v3804_v8 }
 0x42f   :  { %10041 = vmatmul.mubr.bf16.gmra.mrb[216].mxu0 %v10305_v21  ;;  %v10308_v21 = vld [vmem:[%s13720_s0 + $0x320] sm:$0xff]  }
 0x430   :  { %10044 = vmatprep.mubr.msk.bf16.mxu0 %vm13766_vm0, %v11716_v17 }
 0x437   :  { %10045 = vmatmul.mubr.bf16.gmra.mrb[220].mxu0 %v10306_v12 }
 0x438   :  { %10048 = vmatprep.mubr.msk.bf16.mxu0 %vm13766_vm0, %v11716_v17 }
 0x43f   :  { %10049 = vmatmul.mubr.bf16.gmra.mrb[224].mxu0 %v10307_v53  ;;  %v12384_v53 = vpop.f32.mrb[198].mxu1 }
 0x440   :  { %10052 = vmatprep.mubr.msk.bf16.mxu0 %vm13766_vm0, %v11716_v17  ;;  %v9290_v45 = vpop.f32.mrb[128].mxu0  ;;  %13792 = vst [vmem:[#allocation15_spill] sm:$0xff] %v12384_v53  ;;  %v9991_v39 = vpop.f32.mrb[199].mxu1 }
 0x441   :  { %v9291_v29 = vpop.f32.mrb[129].mxu0 }
 0x442   :  { %v9292_v11 = vadd.f32 %v9291_v29, %v9290_v45  ;;  %v9293_v8 = vpop.f32.mrb[130].mxu0  ;;  %v10309_v29 = vld [vmem:[%s13720_s0 + $0x328] sm:$0xff]  }
 0x443   :  { %v9294_v58 = vpop.f32.mrb[131].mxu0 }
 0x444   :  { %v3642_v12 = vadd.f32 %v9292_v11, %v11978_v28  ;;  %v9295_v63 = vadd.f32 %v9294_v58, %v9293_v8  ;;  %v12392_v11 = vpop.f32.mrb[200].mxu1  ;;  %v3726_v58 = vld [vmem:[#allocation4 + $0x51] sm:$0xff] }
 0x445   :  { %13793 = vst [vmem:[#allocation16_spill] sm:$0xff] %v12392_v11  ;;  %v9994_v8 = vpop.f32.mrb[201].mxu1 }
 0x446   :  { %v3676_v30 = vmax.f32 %v3642_v12, 0.0  ;;  %v3645_v3 = vadd.f32 %v9295_v63, %v11978_v28  ;;  %v12394_v2 = vpop.f32.mrb[202].mxu1 }
 0x447   :  { %10053 = vmatmul.mubr.bf16.gmra.mrb[228].mxu0 %v10308_v21  ;;  %13794 = vst [vmem:[#allocation17_spill] sm:$0xff] %v12394_v2  ;;  %v9995_v12 = vpop.f32.mrb[203].mxu1 }
 0x448   :  { %10056 = vmatprep.mubr.msk.bf16.mxu0 %vm13766_vm0, %v11716_v17  ;;  %3694 = vst [vmem:[#allocation4 + $0x60] sm:$0xff] %v3676_v30  ;;  %v3677_v45 = vmax.f32 %v3645_v3, 0.0  ;;  %v3742_v30 = vmax.f32 %v3674_v38, %v3726_v58  ;;  %v12405_v2 = vpop.f32.mrb[204].mxu1 }
 0x449   :  { %v9998_v25 = vpop.f32.mrb[205].mxu1 }
 0x44a   :  { %3695 = vst [vmem:[#allocation4 + $0x68] sm:$0xff] %v3677_v45  ;;  %v5206_v42 = vpop.f32.mrb[206].mxu1  ;;  %v10311_v25 = vld [vmem:[%s13720_s0 + $0x338] sm:$0xff]  }
 0x44b   :  { %v9999_v38 = vpop.f32.mrb[207].mxu1 }
 0x44f   :  { %10057 = vmatmul.mubr.bf16.gmra.mrb[232].mxu0 %v10309_v29  ;;  %v3727_v21 = vld [vmem:[#allocation4 + $0x59] sm:$0xff]  ;;  %v10310_v29 = vld [vmem:[%s13720_s0 + $0x330] sm:$0xff]  }
 0x450   :  { %v3758_v39 = vld [vmem:[#allocation4 + $0x5e] sm:$0xff]  ;;  %10060 = vmatprep.mubr.msk.bf16.mxu0 %vm13766_vm0, %v11716_v17  ;;  %v3743_v8 = vmax.f32 %v13795_v6, %v3727_v21 }
 0x451   :  { %v3774_v63 = vld [vmem:[#allocation4 + $0x5f] sm:$0xff]  ;;  %v3775_v61 = vld [vmem:[#allocation4 + $0x67] sm:$0xff] }
 0x452   :  { %v3790_v3 = vmax.f32 %v3758_v39, %v3774_v63  ;;  %v3759_v45 = vld [vmem:[#allocation4 + $0x66] sm:$0xff] }
 0x453   :  { %v3791_v11 = vmax.f32 %v3759_v45, %v3775_v61 }
 0x454   :  { %v3806_v12 = vmax.f32 %v3742_v30, %v3790_v3 }
 0x455   :  { %v3807_v53 = vmax.f32 %v3743_v8, %v3791_v11 }
 0x456   :  { %3822 = vst [vmem:[#allocation5 + $0x50] sm:$0xff] %v3806_v12  ;;  %v12418_v12 = vld [vmem:[%s13722_s2] ss:$0 sm:$0xff] }
 0x457   :  { %v9296_v32 = vpop.f32.mrb[132].mxu0  ;;  %10061 = vmatmul.mubr.bf16.gmra.mrb[236].mxu0 %v10310_v29  ;;  %3823 = vst [vmem:[#allocation5 + $0x58] sm:$0xff] %v3807_v53 }
 0x458   :  { %v9297_v58 = vpop.f32.mrb[133].mxu0  ;;  %10064 = vmatprep.mubr.msk.bf16.mxu0 %vm13766_vm0, %v11716_v17  ;;  %vm13806_vm0 = vmmov %vm13805_vm1 }
 0x459   :  { %v9298_v6 = vadd.f32 %v9297_v58, %v9296_v32  ;;  %v9299_v61 = vpop.f32.mrb[134].mxu0 }
 0x45a   :  { %v9300_v14 = vpop.f32.mrb[135].mxu0 }
 0x45b   :  { %v3650_v21 = vadd.f32 %v9298_v6, %v11978_v28  ;;  %v9301_v39 = vadd.f32 %v9300_v14, %v9299_v61  ;;  %v4328_v61 = vadd.f32 %v12418_v12, %v12177_v49  ;;  %v5108_v14 = vadd.f32 %v12418_v12, %v12275_v60 }
 0x45d   :  { %v4022_v11 = vld [vmem:[#allocation5 + $0x56] sm:$0x1]  ;;  %v3678_v42 = vmax.f32 %v3650_v21, 0.0  ;;  %v3653_v63 = vadd.f32 %v9301_v39, %v11978_v28  ;;  %v10385_v28 = vld [vmem:[%s13724_s4] ss:$0 sm:$0xff]  ;;  %v5210_v60 = vmax.f32 %v5108_v14, 0.0 }
 0x45e   :  { %4023 = vst.msk [vmem:[#allocation6 + $0x4] sm:$0x1] %vm3829_vm15, %v4022_v11 }
 0x45f   :  { %3696 = vst [vmem:[#allocation4 + $0x70] sm:$0xff] %v3678_v42  ;;  %v3679_v53 = vmax.f32 %v3653_v63, 0.0  ;;  %10065 = vmatmul.mubr.bf16.gmra.mrb[240].mxu0 %v10311_v25  ;;  %v4331_v25 = vadd.f32 %v12418_v12, %v12182_v16  ;;  %v4336_v16 = vadd.f32 %v12418_v12, %v12189_v37  ;;  %v5119_v37 = vadd.f32 %v12418_v12, %v12288_v43 }
 0x460   :  { %v4344_v43 = vadd.f32 %v12418_v12, %v12193_v20 }
 0x461   :  { %3697 = vst [vmem:[#allocation4 + $0x78] sm:$0xff] %v3679_v53  ;;  %v5111_v53 = vadd.f32 %v12418_v12, %v12279_v56  ;;  %v5213_v17 = vmax.f32 %v5119_v37, 0.0  ;;  %v5127_v37 = vadd.f32 %v12418_v12, %v12297_v57  ;;  %v5132_v57 = vadd.f32 %v12418_v12, %v12304_v35 }
 0x462   :  { %v9302_v30 = vpop.f32.mrb[136].mxu0  ;;  %v4434_v20 = vmax.f32 %v4344_v43, 0.0 }
 0x463   :  { %v9303_v3 = vpop.f32.mrb[137].mxu0 }
 0x464   :  { %v9304_v45 = vadd.f32 %v9303_v3, %v9302_v30  ;;  %v9305_v8 = vpop.f32.mrb[138].mxu0  ;;  %v4430_v3 = vmax.f32 %v4328_v61, 0.0  ;;  %v5116_v61 = vadd.f32 %v12418_v12, %v12286_v19 }
 0x465   :  { %v9306_v29 = vpop.f32.mrb[139].mxu0 }
 0x466   :  { %v3658_v32 = vadd.f32 %v10385_v28, %v9304_v45  ;;  %v9307_v38 = vadd.f32 %v9306_v29, %v9305_v8  ;;  %v4431_v29 = vmax.f32 %v4331_v25, 0.0  ;;  %v4339_v25 = vadd.f32 %v12418_v12, %v12191_v54 }
 0x468   :  { %v3680_v58 = vmax.f32 %v3658_v32, 0.0  ;;  %v3661_v6 = vadd.f32 %v10385_v28, %v9307_v38  ;;  %v3730_v28 = vld [vmem:[#allocation4 + $0x71] sm:$0xff] }
 0x46a   :  { %3698 = vst [vmem:[#allocation4 + $0x80] sm:$0xff] %v3680_v58  ;;  %v3681_v21 = vmax.f32 %v3661_v6, 0.0  ;;  %v4691_v39 = vpop.f32.mrb[140].mxu0  ;;  %v5211_v58 = vmax.f32 %v5111_v53, 0.0 }
 0x46b   :  { %v4692_v11 = vadd.f32 %v12418_v12, %v4691_v39  ;;  %v9882_v63 = vpop.f32.mrb[141].mxu0 }
 0x46c   :  { %3699 = vst [vmem:[#allocation4 + $0x88] sm:$0xff] %v3681_v21  ;;  %v4694_v30 = vpop.f32.mrb[142].mxu0 }
 0x46d   :  { %v4794_v45 = vmax.f32 %v4692_v11, 0.0  ;;  %v4695_v49 = vadd.f32 %v12418_v12, %v4694_v30  ;;  %v9883_v8 = vpop.f32.mrb[143].mxu0  ;;  %v3746_v11 = vmax.f32 %v3678_v42, %v3730_v28  ;;  %v4432_v28 = vmax.f32 %v4336_v16, 0.0 }
 0x46e   :  { %v5124_v16 = vadd.f32 %v12418_v12, %v12295_v24 }
 0x46f   :  { %v4846_v32 = vmax.f32 %v4430_v3, %v4794_v45  ;;  %v4795_v38 = vmax.f32 %v4695_v49, 0.0  ;;  %v3715_v49 = vld [vmem:[#allocation4 + $0x78] sm:$0xff] }
 0x471   :  { %v3762_v6 = vld [vmem:[#allocation4 + $0x7e] sm:$0xff]  ;;  %v4847_v63 = vmax.f32 %v4431_v29, %v4795_v38  ;;  %v12435_v56 = vmax.f32 %v4846_v32, %v5210_v60 }
 0x472   :  { %v3778_v39 = vld [vmem:[#allocation4 + $0x7f] sm:$0xff]  ;;  %v4699_v14 = vpop.f32.mrb[144].mxu0 }
 0x473   :  { %v3731_v21 = vld [vmem:[#allocation4 + $0x79] sm:$0xff]  ;;  %v3794_v30 = vmax.f32 %v3762_v6, %v3778_v39  ;;  %v4700_v53 = vadd.f32 %v12418_v12, %v4699_v14  ;;  %v9886_v3 = vpop.f32.mrb[145].mxu0  ;;  %v12442_v45 = vmax.f32 %v4847_v63, %v5211_v58  ;;  %v3763_v8 = vld [vmem:[#allocation4 + $0x86] sm:$0xff]  ;;  %v5212_v39 = vmax.f32 %v5116_v61, 0.0 }
 0x474   :  { %v3779_v60 = vld [vmem:[#allocation4 + $0x87] sm:$0xff]  ;;  %v4702_v29 = vpop.f32.mrb[146].mxu0  ;;  %v3747_v32 = vmax.f32 %v3715_v49, %v3731_v21  ;;  %v4433_v58 = vmax.f32 %v4339_v25, 0.0  ;;  %v4347_v61 = vadd.f32 %v12418_v12, %v12199_v40 }
 0x475   :  { %13796 = vst [vmem:[#allocation18_spill] sm:$0xff] %v12442_v45  ;;  %v3810_v19 = vmax.f32 %v3746_v11, %v3794_v30  ;;  %v3795_v42 = vmax.f32 %v3763_v8, %v3779_v60  ;;  %v4796_v38 = vmax.f32 %v4700_v53, 0.0  ;;  %v4703_v6 = vadd.f32 %v12418_v12, %v4702_v29  ;;  %v9887_v54 = vpop.f32.mrb[147].mxu0 }
 0x476   :  { %v4435_v24 = vmax.f32 %v4347_v61, 0.0  ;;  %v4355_v54 = vadd.f32 %v12418_v12, %v12206_v55  ;;  %v4360_v55 = vadd.f32 %v12418_v12, %v12208_v44 }
 0x477   :  { %3826 = vst [vmem:[#allocation5 + $0x70] sm:$0xff] %v3810_v19  ;;  %v3811_v14 = vmax.f32 %v3747_v32, %v3795_v42  ;;  %v4848_v63 = vmax.f32 %v4432_v28, %v4796_v38  ;;  %v4797_v3 = vmax.f32 %v4703_v6, 0.0  ;;  %v5214_v19 = vmax.f32 %v5124_v16, 0.0 }
 0x478   :  { %v5215_v28 = vmax.f32 %v5127_v37, 0.0  ;;  %v4352_v38 = vadd.f32 %v12418_v12, %v12204_v62  ;;  %v5135_v62 = vadd.f32 %v12418_v12, %v12306_v46  ;;  %v4437_v61 = vmax.f32 %v4355_v54, 0.0 }
 0x479   :  { %3827 = vst [vmem:[#allocation5 + $0x78] sm:$0xff] %v3811_v14  ;;  %v4849_v45 = vmax.f32 %v4433_v58, %v4797_v3  ;;  %v12449_v11 = vmax.f32 %v4848_v63, %v5212_v39  ;;  %v5140_v46 = vadd.f32 %v12418_v12, %v12313_v18  ;;  %v4438_v44 = vmax.f32 %v4360_v55, 0.0 }
 0x47a   :  { %v4707_v21 = vpop.f32.mrb[148].mxu0  ;;  %v4436_v3 = vmax.f32 %v4352_v38, 0.0  ;;  %v5217_v37 = vmax.f32 %v5135_v62, 0.0 }
 0x47b   :  { %v4708_v30 = vadd.f32 %v12418_v12, %v4707_v21  ;;  %v9890_v25 = vpop.f32.mrb[149].mxu0  ;;  %v12456_v53 = vmax.f32 %v4849_v45, %v5213_v17  ;;  %v5216_v21 = vmax.f32 %v5132_v57, 0.0 }
 0x47c   :  { %v4710_v49 = vpop.f32.mrb[150].mxu0 }
 0x47d   :  { %v4798_v8 = vmax.f32 %v4708_v30, 0.0  ;;  %v4711_v60 = vadd.f32 %v12418_v12, %v4710_v49  ;;  %v9891_v29 = vpop.f32.mrb[151].mxu0 }
 0x47f   :  { %v4850_v32 = vmax.f32 %v4434_v20, %v4798_v8  ;;  %v4799_v42 = vmax.f32 %v4711_v60, 0.0  ;;  %v4363_v60 = vadd.f32 %v12418_v12, %v12212_v47  ;;  %v4368_v47 = vadd.f32 %v12418_v12, %v12217_v10 }
 0x480   :  { %v4115_v40 = vld [vmem:[#allocation5 + $0x78] sm:$0x1] }
 0x481   :  { %v4851_v17 = vmax.f32 %v4435_v24, %v4799_v42  ;;  %v12463_v45 = vmax.f32 %v4850_v32, %v5214_v19  ;;  %4116 = vst.msk [vmem:[#allocation6 + $0x6] sm:$0x1] %vm3829_vm15, %v4115_v40  ;;  %v5143_v32 = vadd.f32 %v12418_v12, %v12315_v59  ;;  %v4439_v18 = vmax.f32 %v4363_v60, 0.0 }
 0x482   :  { %v4715_v6 = vpop.f32.mrb[152].mxu0  ;;  %v5148_v59 = vadd.f32 %v12418_v12, %v12325_v4  ;;  %v4440_v10 = vmax.f32 %v4368_v47, 0.0 }
 0x483   :  { %v4716_v39 = vadd.f32 %v12418_v12, %v4715_v6  ;;  %v9894_v14 = vpop.f32.mrb[153].mxu0  ;;  %v12471_v58 = vmax.f32 %v4851_v17, %v5215_v28  ;;  %v5218_v17 = vmax.f32 %v5140_v46, 0.0  ;;  %v5219_v54 = vmax.f32 %v5143_v32, 0.0 }
 0x484   :  { %v4718_v63 = vpop.f32.mrb[154].mxu0 }
 0x485   :  { %v4800_v43 = vmax.f32 %v4716_v39, 0.0  ;;  %v4719_v16 = vadd.f32 %v12418_v12, %v4718_v63  ;;  %v9895_v35 = vpop.f32.mrb[155].mxu0  ;;  %v4371_v63 = vadd.f32 %v12418_v12, %v12220_v22  ;;  %v4376_v22 = vadd.f32 %v12418_v12, %v12222_v31 }
 0x486   :  { %v5151_v35 = vadd.f32 %v12418_v12, %v12331_v41  ;;  %v5156_v41 = vadd.f32 %v12418_v12, %v12343_v23 }
 0x487   :  { %v4852_v30 = vmax.f32 %v4436_v3, %v4800_v43  ;;  %v4801_v25 = vmax.f32 %v4719_v16, 0.0  ;;  %v4441_v4 = vmax.f32 %v4371_v63, 0.0  ;;  %v4442_v31 = vmax.f32 %v4376_v22, 0.0 }
 0x488   :  { %v5221_v46 = vmax.f32 %v5151_v35, 0.0  ;;  %v4387_v63 = vadd.f32 %v12418_v12, %v12233_v50  ;;  %v4392_v50 = vadd.f32 %v12418_v12, %v12235_v27 }
 0x489   :  { %v4853_v49 = vmax.f32 %v4437_v61, %v4801_v25  ;;  %v12478_v20 = vmax.f32 %v4852_v30, %v5216_v21 }
 0x48a   :  { %v4723_v8 = vpop.f32.mrb[156].mxu0  ;;  %v4446_v27 = vmax.f32 %v4392_v50, 0.0 }
 0x48b   :  { %v4724_v29 = vadd.f32 %v12418_v12, %v4723_v8  ;;  %v9898_v19 = vpop.f32.mrb[157].mxu0  ;;  %v12485_v24 = vmax.f32 %v4853_v49, %v5217_v37  ;;  %v5220_v37 = vmax.f32 %v5148_v59, 0.0 }
 0x48c   :  { %v4726_v42 = vpop.f32.mrb[158].mxu0  ;;  %v4379_v19 = vadd.f32 %v12418_v12, %v12226_v51  ;;  %v4384_v51 = vadd.f32 %v12418_v12, %v12231_v15 }
 0x48d   :  { %v4802_v28 = vmax.f32 %v4724_v29, 0.0  ;;  %v4727_v40 = vadd.f32 %v12418_v12, %v4726_v42  ;;  %v9899_v38 = vpop.f32.mrb[159].mxu0 }
 0x48e   :  { %v4443_v23 = vmax.f32 %v4379_v19, 0.0  ;;  %v4444_v15 = vmax.f32 %v4384_v51, 0.0  ;;  %v4403_v51 = vadd.f32 %v12418_v12, %v12246_v26  ;;  %v4408_v26 = vadd.f32 %v12418_v12, %v12248_v5 }
 0x48f   :  { %v4854_v57 = vmax.f32 %v4438_v44, %v4802_v28  ;;  %v4803_v6 = vmax.f32 %v4727_v40, 0.0  ;;  %v5159_v28 = vadd.f32 %v12418_v12, %v12345_v9  ;;  %v5164_v9 = vadd.f32 %v12418_v12, %v12354_v0 }
 0x490   :  { %v4445_v0 = vmax.f32 %v4387_v63, 0.0  ;;  %v5183_v63 = vadd.f32 %v12418_v12, %v12374_v33  ;;  %v5188_v33 = vadd.f32 %v12418_v12, %v12381_v13  ;;  %v4450_v5 = vmax.f32 %v4408_v26, 0.0 }
 0x491   :  { %v4855_v39 = vmax.f32 %v4439_v18, %v4803_v6  ;;  %v12492_v14 = vmax.f32 %v4854_v57, %v5218_v17  ;;  %v5222_v57 = vmax.f32 %v5156_v41, 0.0  ;;  %v5223_v47 = vmax.f32 %v5159_v28, 0.0 }
 0x492   :  { %v4731_v62 = vpop.f32.mrb[160].mxu0  ;;  %v4395_v41 = vadd.f32 %v12418_v12, %v12239_v52  ;;  %v4400_v52 = vadd.f32 %v12418_v12, %v12244_v48 }
 0x493   :  { %v4732_v3 = vadd.f32 %v12418_v12, %v4731_v62  ;;  %v9902_v43 = vpop.f32.mrb[161].mxu0  ;;  %v12499_v16 = vmax.f32 %v4855_v39, %v5219_v54 }
 0x494   :  { %v4734_v21 = vpop.f32.mrb[162].mxu0  ;;  %v4448_v48 = vmax.f32 %v4400_v52, 0.0 }
 0x495   :  { %v4804_v61 = vmax.f32 %v4732_v3, 0.0  ;;  %v4735_v30 = vadd.f32 %v12418_v12, %v4734_v21  ;;  %v9903_v25 = vpop.f32.mrb[163].mxu0  ;;  %v5167_v21 = vadd.f32 %v12418_v12, %v12356_v1  ;;  %v5172_v1 = vadd.f32 %v12418_v12, %v12363_v36 }
 0x496   :  { %v4447_v36 = vmax.f32 %v4395_v41, 0.0 }
 0x497   :  { %v4856_v55 = vmax.f32 %v4440_v10, %v4804_v61  ;;  %v4805_v49 = vmax.f32 %v4735_v30, 0.0 }
 0x499   :  { %v4857_v8 = vmax.f32 %v4441_v4, %v4805_v49  ;;  %v12506_v60 = vmax.f32 %v4856_v55, %v5220_v37  ;;  %v5224_v37 = vmax.f32 %v5164_v9, 0.0  ;;  %v5225_v49 = vmax.f32 %v5167_v21, 0.0 }
 0x49a   :  { %v4739_v29 = vpop.f32.mrb[164].mxu0 }
 0x49b   :  { %v4740_v32 = vadd.f32 %v12418_v12, %v4739_v29  ;;  %v9906_v42 = vpop.f32.mrb[165].mxu0  ;;  %v12513_v44 = vmax.f32 %v4857_v8, %v5221_v46 }
 0x49c   :  { %v4742_v40 = vpop.f32.mrb[166].mxu0  ;;  %v5175_v42 = vadd.f32 %v12418_v12, %v12365_v34  ;;  %v5180_v34 = vadd.f32 %v12418_v12, %v12372_v7  ;;  %v4449_v7 = vmax.f32 %v4403_v51, 0.0 }
 0x49d   :  { %v4806_v38 = vmax.f32 %v4740_v32, 0.0  ;;  %v4743_v17 = vadd.f32 %v12418_v12, %v4742_v40  ;;  %v9907_v18 = vpop.f32.mrb[167].mxu0 }
 0x49f   :  { %v4858_v6 = vmax.f32 %v4442_v31, %v4806_v38  ;;  %v4807_v54 = vmax.f32 %v4743_v17, 0.0  ;;  %v5226_v17 = vmax.f32 %v5172_v1, 0.0 }
 0x4a1   :  { %v4859_v39 = vmax.f32 %v4443_v23, %v4807_v54  ;;  %v12520_v59 = vmax.f32 %v4858_v6, %v5222_v57  ;;  %v5227_v23 = vmax.f32 %v5175_v42, 0.0 }
 0x4a2   :  { %v4747_v62 = vpop.f32.mrb[168].mxu0 }
 0x4a3   :  { %v4748_v3 = vadd.f32 %v12418_v12, %v4747_v62  ;;  %v9910_v43 = vpop.f32.mrb[169].mxu0  ;;  %v12527_v35 = vmax.f32 %v4859_v39, %v5223_v47 }
 0x4a4   :  { %v4750_v10 = vpop.f32.mrb[170].mxu0 }
 0x4a5   :  { %v4808_v61 = vmax.f32 %v4748_v3, 0.0  ;;  %v4751_v30 = vadd.f32 %v12418_v12, %v4750_v10  ;;  %v9911_v25 = vpop.f32.mrb[171].mxu0 }
 0x4a6   :  { %v5229_v25 = vmax.f32 %v5183_v63, 0.0  ;;  %v13802_v63 = vld [vmem:[#allocation17_spill] sm:$0xff] }
 0x4a7   :  { %v4860_v4 = vmax.f32 %v4444_v15, %v4808_v61  ;;  %v4809_v55 = vmax.f32 %v4751_v30, 0.0  ;;  %v5228_v15 = vmax.f32 %v5180_v34, 0.0  ;;  %v13801_v34 = vld [vmem:[#allocation13_spill] sm:$0xff] }
 0x4a9   :  { %v4861_v46 = vmax.f32 %v4445_v0, %v4809_v55  ;;  %v12534_v22 = vmax.f32 %v4860_v4, %v5224_v37  ;;  %v13797_v55 = vld [vmem:[#allocation11_spill] sm:$0xff] }
 0x4aa   :  { %v4755_v8 = vpop.f32.mrb[172].mxu0 }
 0x4ab   :  { %v4756_v29 = vadd.f32 %v12418_v12, %v4755_v8  ;;  %v9914_v19 = vpop.f32.mrb[173].mxu0  ;;  %v12541_v32 = vmax.f32 %v4861_v46, %v5225_v49  ;;  %v4411_v49 = vadd.f32 %v12418_v12, %v13797_v55  ;;  %v13798_v8 = vld [vmem:[#allocation15_spill] sm:$0xff] }
 0x4ac   :  { %v4758_v28 = vpop.f32.mrb[174].mxu0  ;;  %v5191_v41 = vadd.f32 %v12418_v12, %v13798_v8 }
 0x4ad   :  { %v4810_v40 = vmax.f32 %v4756_v29, 0.0  ;;  %v4759_v31 = vadd.f32 %v12418_v12, %v4758_v28  ;;  %v9915_v38 = vpop.f32.mrb[175].mxu0  ;;  %v4451_v13 = vmax.f32 %v4411_v49, 0.0  ;;  %v5204_v49 = vadd.f32 %v12418_v12, %v12405_v2 }
 0x4ae   :  { %v5231_v38 = vmax.f32 %v5191_v41, 0.0 }
 0x4af   :  { %v4862_v18 = vmax.f32 %v4446_v27, %v4810_v40  ;;  %v4811_v57 = vmax.f32 %v4759_v31, 0.0  ;;  %v5230_v27 = vmax.f32 %v5188_v33, 0.0 }
 0x4b1   :  { %v4863_v6 = vmax.f32 %v4447_v36, %v4811_v57  ;;  %v12548_v54 = vmax.f32 %v4862_v18, %v5226_v17  ;;  %v13799_v17 = vld [vmem:[#allocation12_spill] sm:$0xff] }
 0x4b2   :  { %v4763_v47 = vpop.f32.mrb[176].mxu0  ;;  %v4416_v36 = vadd.f32 %v12418_v12, %v13799_v17 }
 0x4b3   :  { %v4764_v39 = vadd.f32 %v12418_v12, %v4763_v47  ;;  %v9918_v9 = vpop.f32.mrb[177].mxu0  ;;  %v12555_v62 = vmax.f32 %v4863_v6, %v5227_v23  ;;  %v13800_v23 = vld [vmem:[#allocation16_spill] sm:$0xff]  ;;  %v4419_v47 = vadd.f32 %v12418_v12, %v13801_v34 }
 0x4b4   :  { %v4766_v3 = vpop.f32.mrb[178].mxu0  ;;  %v5196_v52 = vadd.f32 %v12418_v12, %v13800_v23 }
 0x4b5   :  { %v4812_v43 = vmax.f32 %v4764_v39, 0.0  ;;  %v4767_v21 = vadd.f32 %v12418_v12, %v4766_v3  ;;  %v9919_v10 = vpop.f32.mrb[179].mxu0  ;;  %v5199_v3 = vadd.f32 %v12418_v12, %v13802_v63 }
 0x4b7   :  { %v4864_v61 = vmax.f32 %v4448_v48, %v4812_v43  ;;  %v4813_v30 = vmax.f32 %v4767_v21, 0.0  ;;  %v4452_v43 = vmax.f32 %v4416_v36, 0.0  ;;  %v5233_v26 = vmax.f32 %v5199_v3, 0.0 }
 0x4b9   :  { %v4865_v37 = vmax.f32 %v4449_v7, %v4813_v30  ;;  %v12562_v0 = vmax.f32 %v4864_v61, %v5228_v15  ;;  %v5232_v7 = vmax.f32 %v5196_v52, 0.0  ;;  %v4453_v61 = vmax.f32 %v4419_v47, 0.0 }
 0x4ba   :  { %v4771_v4 = vpop.f32.mrb[180].mxu0 }
 0x4bb   :  { %v4772_v50 = vadd.f32 %v12418_v12, %v4771_v4  ;;  %v9922_v46 = vpop.f32.mrb[181].mxu0  ;;  %v12569_v1 = vmax.f32 %v4865_v37, %v5229_v25  ;;  %v13803_v37 = vld [vmem:[#allocation14_spill] sm:$0xff] }
 0x4bc   :  { %v4774_v29 = vpop.f32.mrb[182].mxu0  ;;  %v4424_v33 = vadd.f32 %v12418_v12, %v13803_v37 }
 0x4bd   :  { %v4814_v19 = vmax.f32 %v4772_v50, 0.0  ;;  %v4775_v42 = vadd.f32 %v12418_v12, %v4774_v29  ;;  %v9923_v28 = vpop.f32.mrb[183].mxu0 }
 0x4be   :  { %v5234_v28 = vmax.f32 %v5204_v49, 0.0 }
 0x4bf   :  { %v4866_v40 = vmax.f32 %v4450_v5, %v4814_v19  ;;  %v4815_v31 = vmax.f32 %v4775_v42, 0.0  ;;  %v4454_v5 = vmax.f32 %v4424_v33, 0.0 }
 0x4c1   :  { %v4867_v18 = vmax.f32 %v4451_v13, %v4815_v31  ;;  %v12576_v57 = vmax.f32 %v4866_v40, %v5230_v27  ;;  %v12600_v13 = vld [vmem:[%s13722_s2] ss:$0 sm:$0xff]  ;;  %s13808_s2 = smov 88  }
 0x4c2   :  { %v4779_v6 = vpop.f32.mrb[184].mxu0 }
 0x4c3   :  { %v4780_v51 = vadd.f32 %v12418_v12, %v4779_v6  ;;  %v9926_v39 = vpop.f32.mrb[185].mxu0  ;;  %v12583_v9 = vmax.f32 %v4867_v18, %v5231_v38  ;;  %v13804_v6 = vld [vmem:[#allocation18_spill] sm:$0xff] }
 0x4c4   :  { %v4782_v48 = vpop.f32.mrb[186].mxu0 }
 0x4c5   :  { %v4816_v21 = vmax.f32 %v4780_v51, 0.0  ;;  %v4783_v10 = vadd.f32 %v12418_v12, %v4782_v48  ;;  %v9927_v15 = vpop.f32.mrb[187].mxu0 }
 0x4c7   :  { %v4868_v30 = vmax.f32 %v4452_v43, %v4816_v21  ;;  %v4817_v25 = vmax.f32 %v4783_v10, 0.0 }
 0x4c9   :  { %v4869_v4 = vmax.f32 %v4453_v61, %v4817_v25  ;;  %v12590_v55 = vmax.f32 %v4868_v30, %v5232_v7 }
 0x4ca   :  { %v4787_v50 = vpop.f32.mrb[188].mxu0 }
 0x4cb   :  { %v4788_v46 = vadd.f32 %v12418_v12, %v4787_v50  ;;  %v9930_v8 = vpop.f32.mrb[189].mxu0  ;;  %v12595_v41 = vmax.f32 %v4869_v4, %v5233_v26 }
 0x4cc   :  { %v4790_v29 = vpop.f32.mrb[190].mxu0 }
 0x4cd   :  { %v4818_v19 = vmax.f32 %v4788_v46, 0.0  ;;  %v9931_v42 = vpop.f32.mrb[191].mxu0 }
 0x4cf   :  { %v4870_v27 = vmax.f32 %v4454_v5, %v4818_v19 }
 0x4d1   :  { %v12602_v40 = vmax.f32 %v4870_v27, %v5234_v28 }
 0x4d2   :  { %v5523_v2 = vpop.f32.mrb[192].mxu0 }
 0x4d3   :  { %v5524_v31 = vadd.f32 %v12600_v13, %v5523_v2  ;;  %v10018_v12 = vpop.f32.mrb[193].mxu0 }
 0x4d4   :  { %v5526_v38 = vpop.f32.mrb[194].mxu0 }
 0x4d5   :  { %v5626_v17 = vmax.f32 %v5524_v31, 0.0  ;;  %v5527_v36 = vadd.f32 %v12600_v13, %v5526_v38  ;;  %v10019_v18 = vpop.f32.mrb[195].mxu0 }
 0x4d7   :  { %v5678_v23 = vmax.f32 %v12435_v56, %v5626_v17  ;;  %v5627_v52 = vmax.f32 %v5527_v36, 0.0 }
 0x4d9   :  { %5704 = vst [vmem:[#allocation2] sm:$0xff] %v5678_v23  ;;  %v5679_v34 = vmax.f32 %v13804_v6, %v5627_v52 }
 0x4da   :  { %v5531_v47 = vpop.f32.mrb[196].mxu0 }
 0x4db   :  { %5705 = vst [vmem:[#allocation2 + $0x8] sm:$0xff] %v5679_v34  ;;  %v5532_v51 = vadd.f32 %v12600_v13, %v5531_v47  ;;  %v10022_v39 = vpop.f32.mrb[197].mxu0  ;;  %v5747_v63 = vpack.c.bf16 %v5679_v34, %v5678_v23 }
 0x4dc   :  { %v5534_v3 = vpop.f32.mrb[198].mxu0 }
 0x4dd   :  { %v5628_v48 = vmax.f32 %v5532_v51, 0.0  ;;  %v5535_v43 = vadd.f32 %v12600_v13, %v5534_v3  ;;  %v10023_v21 = vpop.f32.mrb[199].mxu0  ;;  %5756 = vst.msk [vmem:[#allocation3] sm:$0xff] %vm13805_vm1, %v5747_v63  ;;  %vm13807_vm1 = vmmov %vm13806_vm0 }
 0x4df   :  { %v5680_v10 = vmax.f32 %v12449_v11, %v5628_v48  ;;  %v5629_v56 = vmax.f32 %v5535_v43, 0.0 }
 0x4e1   :  { %5706 = vst [vmem:[#allocation2 + $0x10] sm:$0xff] %v5680_v10  ;;  %v5681_v15 = vmax.f32 %v12456_v53, %v5629_v56 }
 0x4e2   :  { %v5539_v7 = vpop.f32.mrb[200].mxu0  ;;  %v5836_v50 = vld [vmem:[#allocation2 + $0x2] sm:$0xff] }
 0x4e3   :  { %5707 = vst [vmem:[#allocation2 + $0x18] sm:$0xff] %v5681_v15  ;;  %v5540_v61 = vadd.f32 %v12600_v13, %v5539_v7  ;;  %v10026_v30 = vpop.f32.mrb[201].mxu0  ;;  %v6208_v25 = vpack.c.bf16 %v5681_v15, %v5680_v10  ;;  %v5765_v8 = vld [vmem:[#allocation2 + $0x1] sm:$0xff] }
 0x4e4   :  { %v5542_v26 = vpop.f32.mrb[202].mxu0  ;;  %v5978_v12 = vld [vmem:[#allocation2 + $0x4] sm:$0xff] }
 0x4e5   :  { %v5630_v37 = vmax.f32 %v5540_v61, 0.0  ;;  %v5543_v33 = vadd.f32 %v12600_v13, %v5542_v26  ;;  %v10027_v4 = vpop.f32.mrb[203].mxu0  ;;  %5757 = vst.msk [vmem:[#allocation3 + $0x10] sm:$0xff] %vm13806_vm0, %v6208_v25  ;;  %v5907_v38 = vld [vmem:[#allocation2 + $0x3] sm:$0xff] }
 0x4e7   :  { %v5682_v49 = vmax.f32 %v12463_v45, %v5630_v37  ;;  %v5631_v11 = vmax.f32 %v5543_v33, 0.0 }
 0x4e8   :  { %v5837_v46 = vld [vmem:[#allocation2 + $0xa] sm:$0xff] }
 0x4e9   :  { %v5766_v53 = vld [vmem:[#allocation2 + $0x9] sm:$0xff]  ;;  %5708 = vst [vmem:[#allocation2 + $0x20] sm:$0xff] %v5682_v49  ;;  %v5683_v29 = vmax.f32 %v12471_v58, %v5631_v11  ;;  %v5853_v5 = vpack.c.bf16 %v5837_v46, %v5836_v50 }
 0x4ea   :  { %v5782_v19 = vpack.c.bf16 %v5766_v53, %v5765_v8  ;;  %v5547_v42 = vpop.f32.mrb[204].mxu0  ;;  %v5979_v28 = vld [vmem:[#allocation2 + $0xc] sm:$0xff]  ;;  %v6121_v6 = vld [vmem:[#allocation2 + $0x17] sm:$0xff] }
 0x4eb   :  { %v5908_v27 = vld [vmem:[#allocation2 + $0xb] sm:$0xff]  ;;  %5709 = vst [vmem:[#allocation2 + $0x28] sm:$0xff] %v5683_v29  ;;  %v5548_v2 = vadd.f32 %v12600_v13, %v5547_v42  ;;  %5871 = vrot.lane.b32.xlu0 %v5853_v5, %s10418_s19  ;;  %v10030_v45 = vpop.f32.mrb[205].mxu0  ;;  %v12621_v17 = vpack.c.bf16 %v5683_v29, %v5682_v49  ;;  %v5995_v18 = vpack.c.bf16 %v5979_v28, %v5978_v12  ;;  %v6050_v34 = vld [vmem:[#allocation2 + $0x16] sm:$0xff] }
 0x4ec   :  { %5800 = vrot.lane.b32.xlu1 %v5782_v19, %s10416_s17  ;;  %v5550_v31 = vpop.f32.mrb[206].mxu0  ;;  %v5924_v23 = vpack.c.bf16 %v5908_v27, %v5907_v38  ;;  %v6120_v39 = vld [vmem:[#allocation2 + $0xf] sm:$0xff] }
 0x4ed   :  { %v5632_v36 = vmax.f32 %v5548_v2, 0.0  ;;  %v5551_v58 = vadd.f32 %v12600_v13, %v5550_v31  ;;  %v10031_v52 = vpop.f32.mrb[207].mxu0  ;;  %5758 = vst.msk [vmem:[#allocation3 + $0x20] sm:$0xff] %vm13806_vm0, %v12621_v17  ;;  %v6049_v63 = vld [vmem:[#allocation2 + $0xe] sm:$0xff]  ;;  %v6137_v48 = vpack.c.bf16 %v6121_v6, %v6120_v39 }
 0x4ee   :  { %v6066_v43 = vpack.c.bf16 %v6050_v34, %v6049_v63  ;;  %v6333_v7 = vld [vmem:[#allocation2 + $0x12] sm:$0xff] }
 0x4ef   :  { %v5684_v47 = vmax.f32 %v12478_v20, %v5632_v36  ;;  %v5633_v51 = vmax.f32 %v5551_v58, 0.0  ;;  %6013 = vrot.lane.b32.xlu0 %v5995_v18, %s10417_s18  ;;  %v6262_v11 = vld [vmem:[#allocation2 + $0x11] sm:$0xff] }
 0x4f0   :  { %5942 = vrot.lane.b32.xlu1 %v5924_v23, %s10415_s16  ;;  %v6334_v10 = vld [vmem:[#allocation2 + $0x1a] sm:$0xff] }
 0x4f1   :  { %5710 = vst [vmem:[#allocation2 + $0x30] sm:$0xff] %v5684_v47  ;;  %v12630_v3 = vmax.f32 %v12485_v24, %v5633_v51  ;;  %v6350_v26 = vpack.c.bf16 %v6334_v10, %v6333_v7  ;;  %v6263_v33 = vld [vmem:[#allocation2 + $0x19] sm:$0xff] }
 0x4f2   :  { %v5555_v21 = vpop.f32.mrb[208].mxu0  ;;  %v6279_v46 = vpack.c.bf16 %v6263_v33, %v6262_v11  ;;  %v5981_v53 = vld [vmem:[#allocation2 + $0x1c] sm:$0xff]  ;;  %v5980_v19 = vld [vmem:[#allocation2 + $0x14] sm:$0xff]  ;;  %v6476_v18 = vld [vmem:[#allocation2 + $0x25] sm:$0xff] }
 0x4f3   :  { %5711 = vst [vmem:[#allocation2 + $0x38] sm:$0xff] %v12630_v3  ;;  %v5556_v56 = vadd.f32 %v12600_v13, %v5555_v21  ;;  %6155 = vrot.lane.b32.xlu0 %v6137_v48, %s10419_s20  ;;  %v10034_v20 = vpop.f32.mrb[209].mxu0  ;;  %v12637_v61 = vpack.c.bf16 %v12630_v3, %v5684_v47  ;;  %v5996_v45 = vpack.c.bf16 %v5981_v53, %v5980_v19  ;;  %v5910_v58 = vld [vmem:[#allocation2 + $0x1b] sm:$0xff]  ;;  %v5909_v34 = vld [vmem:[#allocation2 + $0x13] sm:$0xff] }
 0x4f4   :  { %6084 = vrot.lane.b32.xlu1 %v6066_v43, %s10420_s21  ;;  %v5558_v15 = vpop.f32.mrb[210].mxu0  ;;  %v6475_v47 = vld [vmem:[#allocation2 + $0x1d] sm:$0xff]  ;;  %v5925_v39 = vpack.c.bf16 %v5910_v58, %v5909_v34 }
 0x4f5   :  { %v5634_v24 = vmax.f32 %v5556_v56, 0.0  ;;  %v5559_v30 = vadd.f32 %v12600_v13, %v5558_v15  ;;  %v10035_v37 = vpop.f32.mrb[211].mxu0  ;;  %v6492_v63 = vpack.c.bf16 %v6476_v18, %v6475_v47  ;;  %v12677_v43 = vld [vmem:[#allocation2 + $0x24] sm:$0xff] }
 0x4f6   :  { %v6617_v15 = vld [vmem:[#allocation2 + $0x1f] sm:$0xff]  ;;  %v6421_v33 = vpack.c.bf16 %v12677_v43, %v5981_v53 }
 0x4f7   :  { %v12641_v4 = vmax.f32 %v12492_v14, %v5634_v24  ;;  %v5635_v49 = vmax.f32 %v5559_v30, 0.0  ;;  %6368 = vrot.lane.b32.xlu0 %v6350_v26, %s13776_s15  ;;  %v6546_v53 = vld [vmem:[#allocation2 + $0x1e] sm:$0xff] }
 0x4f8   :  { %6226 = vrot.lane.b32.xlu1 %v6208_v25, %s10421_s22  ;;  %v12655_v42 = vld [vmem:[#allocation2 + $0x2b] sm:$0xff] }
 0x4f9   :  { %5712 = vst [vmem:[#allocation2 + $0x40] sm:$0xff] %v12641_v4  ;;  %v12647_v50 = vmax.f32 %v12499_v16, %v5635_v49  ;;  %v7095_v29 = vpack.c.bf16 %v12641_v4, %v12630_v3  ;;  %v5736_v38 = vld [vmem:[#allocation2 + $0x30] sm:$0xff]  ;;  %v10322_v3 = vld [vmem:[%s13723_s3 + $0x68] sm:$0xff]  }
 0x4fa   :  { %v5563_v8 = vpop.f32.mrb[212].mxu0  ;;  %v12657_v16 = vld [vmem:[#allocation2 + $0x33] sm:$0xff] }
 0x4fb   :  { %5713 = vst [vmem:[#allocation2 + $0x48] sm:$0xff] %v12647_v50  ;;  %v5564_v14 = vadd.f32 %v12600_v13, %v5563_v8  ;;  %5873 = vrot.lane.b32.xlu0 %v6350_v26, %s10418_s19  ;;  %v10038_v25 = vpop.f32.mrb[213].mxu0  ;;  %v12661_v28 = vpack.c.bf16 %v12647_v50, %v12641_v4  ;;  %v6847_v12 = vpack.c.bf16 %v12657_v16, %v12655_v42  ;;  %v5737_v36 = vld [vmem:[#allocation2 + $0x38] sm:$0xff]  ;;  %v10323_v4 = vld [vmem:[%s13723_s3 + $0x28] sm:$0xff]  }
 0x4fc   :  { %6297 = vrot.lane.b32.xlu1 %v6279_v46, %s10423_s24  ;;  %v5566_v5 = vpop.f32.mrb[214].mxu0  ;;  %v5750_v23 = vpack.c.bf16 %v5737_v36, %v5736_v38 }
 0x4fd   :  { %v5636_v27 = vmax.f32 %v5564_v14, 0.0  ;;  %v5567_v2 = vadd.f32 %v12600_v13, %v5566_v5  ;;  %v10039_v31 = vpop.f32.mrb[215].mxu0  ;;  %6856 = vst.msk [vmem:[#allocation3 + $0x8] sm:$0xff] %vm13807_vm1, %v6847_v12  ;;  %vm13809_vm1 = vmmov %vm13806_vm0  ;;  %v6547_v14 = vld [vmem:[#allocation2 + $0x26] sm:$0xff] }
 0x4fe   :  { %5759 = vst.msk [vmem:[#allocation3 + $0x30] sm:$0xff] %vm13806_vm0, %v5750_v23  ;;  %v6265_v12 = vld [vmem:[#allocation2 + $0x29] sm:$0xff] }
 0x4ff   :  { %v12667_v52 = vmax.f32 %v12506_v60, %v5636_v27  ;;  %v5637_v6 = vmax.f32 %v5567_v2, 0.0  ;;  %6015 = vrot.lane.b32.xlu0 %v5996_v45, %s10417_s18  ;;  %v6618_v60 = vld [vmem:[#allocation2 + $0x27] sm:$0xff]  ;;  %v6563_v45 = vpack.c.bf16 %v6547_v14, %v6546_v53 }
 0x500   :  { %5802 = vrot.lane.b32.xlu1 %v6279_v46, %s10416_s17  ;;  %v12679_v21 = vld [vmem:[#allocation2 + $0x3b] sm:$0xff]  ;;  %v6634_v30 = vpack.c.bf16 %v6618_v60, %v6617_v15 }
 0x501   :  { %5714 = vst [vmem:[#allocation2 + $0x50] sm:$0xff] %v12667_v52  ;;  %v12675_v51 = vmax.f32 %v12513_v44, %v5637_v6  ;;  %v7096_v56 = vpack.c.bf16 %v12667_v52, %v12647_v50  ;;  %v5738_v46 = vld [vmem:[#allocation2 + $0x40] sm:$0xff] }
 0x502   :  { %v5571_v48 = vpop.f32.mrb[216].mxu0  ;;  %v12681_v10 = vld [vmem:[#allocation2 + $0x43] sm:$0xff] }
 0x503   :  { %5715 = vst [vmem:[#allocation2 + $0x58] sm:$0xff] %v12675_v51  ;;  %v5572_v20 = vadd.f32 %v12600_v13, %v5571_v48  ;;  %6510 = vrot.lane.b32.xlu0 %v6492_v63, %s13808_s2  ;;  %v10042_v44 = vpop.f32.mrb[217].mxu0  ;;  %v12691_v7 = vpack.c.bf16 %v12681_v10, %v12679_v21  ;;  %v12697_v11 = vpack.c.bf16 %v12675_v51, %v12667_v52  ;;  %v5739_v8 = vld [vmem:[#allocation2 + $0x48] sm:$0xff] }
 0x504   :  { %5944 = vrot.lane.b32.xlu1 %v5925_v39, %s10415_s16  ;;  %v5574_v24 = vpop.f32.mrb[218].mxu0  ;;  %v5751_v25 = vpack.c.bf16 %v5739_v8, %v5738_v46  ;;  %v6264_v6 = vld [vmem:[#allocation2 + $0x21] sm:$0xff] }
 0x505   :  { %v5638_v26 = vmax.f32 %v5572_v20, 0.0  ;;  %v5575_v37 = vadd.f32 %v12600_v13, %v5574_v24  ;;  %v10043_v49 = vpop.f32.mrb[219].mxu0  ;;  %6857 = vst.msk [vmem:[#allocation3 + $0x18] sm:$0xff] %vm13809_vm1, %v12691_v7  ;;  %v6280_v39 = vpack.c.bf16 %v6265_v12, %v6264_v6  ;;  %vm13811_vm1 = vmmov %vm13806_vm0  ;;  %v5911_v8 = vld [vmem:[#allocation2 + $0x23] sm:$0xff]  ;;  %v12752_v12 = vld [vmem:[#allocation2 + $0x34] sm:$0xff] }
 0x506   :  { %5760 = vst.msk [vmem:[#allocation3 + $0x40] sm:$0xff] %vm13806_vm0, %v5751_v25 }
 0x507   :  { %v12702_v5 = vmax.f32 %v12520_v59, %v5638_v26  ;;  %v5639_v19 = vmax.f32 %v5575_v37, 0.0  ;;  %6652 = vrot.lane.b32.xlu0 %v6634_v30, %s13773_s26 }
 0x508   :  { %6439 = vrot.lane.b32.xlu1 %v6421_v33, %s13810_s28  ;;  %v12706_v27 = vld [vmem:[#allocation2 + $0x4b] sm:$0xff] }
 0x509   :  { %5716 = vst [vmem:[#allocation2 + $0x60] sm:$0xff] %v12702_v5  ;;  %v5691_v2 = vmax.f32 %v12527_v35, %v5639_v19  ;;  %v5928_v31 = vpack.c.bf16 %v12706_v27, %v12681_v10  ;;  %v7097_v36 = vpack.c.bf16 %v12702_v5, %v12675_v51  ;;  %v5740_v60 = vld [vmem:[#allocation2 + $0x50] sm:$0xff]  ;;  %v5926_v19 = vpack.c.bf16 %v12655_v42, %v5911_v8  ;;  %v6335_v42 = vld [vmem:[#allocation2 + $0x22] sm:$0xff] }
 0x50a   :  { %v5579_v59 = vpop.f32.mrb[220].mxu0  ;;  %v12713_v38 = vld [vmem:[#allocation2 + $0x53] sm:$0xff] }
 0x50b   :  { %5717 = vst [vmem:[#allocation2 + $0x68] sm:$0xff] %v5691_v2  ;;  %v5580_v58 = vadd.f32 %v12600_v13, %v5579_v59  ;;  %6157 = vrot.lane.b32.xlu0 %v6634_v30, %s10419_s20  ;;  %v10046_v18 = vpop.f32.mrb[221].mxu0  ;;  %v12722_v35 = vpack.c.bf16 %v12713_v38, %v12706_v27  ;;  %v5741_v48 = vld [vmem:[#allocation2 + $0x58] sm:$0xff]  ;;  %v6336_v2 = vld [vmem:[#allocation2 + $0x2a] sm:$0xff] }
 0x50c   :  { %6581 = vrot.lane.b32.xlu1 %v6563_v45, %s13774_s29  ;;  %v5582_v23 = vpop.f32.mrb[222].mxu0  ;;  %v5752_v20 = vpack.c.bf16 %v5741_v48, %v5740_v60  ;;  %v6351_v6 = vpack.c.bf16 %v6336_v2, %v6335_v42  ;;  %v12952_v10 = vld [vmem:[#allocation2 + $0x54] sm:$0xff] }
 0x50d   :  { %v5640_v34 = vmax.f32 %v5580_v58, 0.0  ;;  %v5583_v47 = vadd.f32 %v12600_v13, %v5582_v23  ;;  %v10047_v63 = vpop.f32.mrb[223].mxu0  ;;  %6858 = vst.msk [vmem:[#allocation3 + $0x28] sm:$0xff] %vm13811_vm1, %v12722_v35  ;;  %vm13812_vm1 = vmmov %vm13806_vm0 }
 0x50e   :  { %5761 = vst.msk [vmem:[#allocation3 + $0x50] sm:$0xff] %vm13806_vm0, %v5752_v20  ;;  %v6937_v20 = vld [vmem:[#allocation2 + $0x35] sm:$0xff] }
 0x50f   :  { %v5692_v44 = vmax.f32 %v12534_v22, %v5640_v34  ;;  %v5641_v15 = vmax.f32 %v5583_v47, 0.0  ;;  %6299 = vrot.lane.b32.xlu0 %v6280_v39, %s10423_s24  ;;  %v6865_v34 = vld [vmem:[#allocation2 + $0x2c] sm:$0xff] }
 0x510   :  { %6086 = vrot.lane.b32.xlu1 %v6563_v45, %s10420_s21  ;;  %v12730_v24 = vld [vmem:[#allocation2 + $0x5b] sm:$0xff]  ;;  %v6882_v60 = vpack.c.bf16 %v12752_v12, %v6865_v34 }
 0x511   :  { %5718 = vst [vmem:[#allocation2 + $0x70] sm:$0xff] %v5692_v44  ;;  %v5693_v30 = vmax.f32 %v12541_v32, %v5641_v15  ;;  %v5929_v26 = vpack.c.bf16 %v12730_v24, %v12713_v38  ;;  %v6696_v45 = vld [vmem:[#allocation2 + $0x60] sm:$0xff] }
 0x512   :  { %v5587_v37 = vpop.f32.mrb[224].mxu0  ;;  %v12736_v33 = vld [vmem:[#allocation2 + $0x63] sm:$0xff] }
 0x513   :  { %5719 = vst [vmem:[#allocation2 + $0x78] sm:$0xff] %v5693_v30  ;;  %v5588_v22 = vadd.f32 %v12600_v13, %v5587_v37  ;;  %5804 = vrot.lane.b32.xlu0 %v6280_v39, %s10416_s17  ;;  %v10050_v49 = vpop.f32.mrb[225].mxu0  ;;  %v12744_v46 = vpack.c.bf16 %v12736_v33, %v12730_v24  ;;  %v12748_v59 = vld [vmem:[#allocation2 + $0x68] sm:$0xff] }
 0x514   :  { %6723 = vrot.lane.b32.xlu1 %v12621_v17, %s13775_s14  ;;  %v5590_v32 = vpop.f32.mrb[226].mxu0  ;;  %v12755_v58 = vpack.c.bf16 %v12748_v59, %v6696_v45  ;;  %v6936_v49 = vld [vmem:[#allocation2 + $0x2d] sm:$0xff]  ;;  %v13024_v38 = vld [vmem:[#allocation2 + $0x62] sm:$0xff] }
 0x515   :  { %v5642_v14 = vmax.f32 %v5588_v22, 0.0  ;;  %v5591_v25 = vadd.f32 %v12600_v13, %v5590_v32  ;;  %v10051_v53 = vpop.f32.mrb[227].mxu0  ;;  %6859 = vst.msk [vmem:[#allocation3 + $0x38] sm:$0xff] %vm13812_vm1, %v12744_v46  ;;  %vm13813_vm1 = vcmask 60416   ;;  %v13026_v24 = vld [vmem:[#allocation2 + $0x64] sm:$0xff] }
 0x516   :  { %5762 = vst.msk [vmem:[#allocation3 + $0x60] sm:$0xff] %vm13806_vm0, %v12755_v58  ;;  %v12788_v53 = vld [vmem:[#allocation2 + $0x32] sm:$0xff] }
 0x517   :  { %v5694_v18 = vmax.f32 %v12548_v54, %v5642_v14  ;;  %v5643_v23 = vmax.f32 %v5591_v25, 0.0  ;;  %5946 = vrot.lane.b32.xlu0 %v5926_v19, %s10415_s16  ;;  %v6953_v14 = vpack.c.bf16 %v6937_v20, %v6936_v49 }
 0x518   :  { %6228 = vrot.lane.b32.xlu1 %v12621_v17, %s10421_s22  ;;  %v12761_v47 = vld [vmem:[#allocation2 + $0x70] sm:$0xff] }
 0x519   :  { %v12763_v39 = vld [vmem:[#allocation2 + $0x6b] sm:$0xff]  ;;  %5720 = vst [vmem:[#allocation2 + $0x80] sm:$0xff] %v5694_v18  ;;  %v5755_v63 = vpack.c.bf16 %v5694_v18, %v5694_v18  ;;  %v5695_v54 = vmax.f32 %v12555_v62, %v5643_v23  ;;  %v7098_v17 = vpack.c.bf16 %v12761_v47, %v12748_v59 }
 0x51a   :  { %v5595_v48 = vpop.f32.mrb[228].mxu0  ;;  %v5930_v44 = vpack.c.bf16 %v12763_v39, %v12736_v33  ;;  %v12773_v15 = vld [vmem:[#allocation2 + $0x73] sm:$0xff] }
 0x51b   :  { %5764 = vst.msk [vmem:[#allocation3 + $0x80] sm:$0xf] %vm13813_vm1, %v5755_v63  ;;  %5721 = vst [vmem:[#allocation2 + $0x88] sm:$0xff] %v5695_v54  ;;  %v5596_v30 = vadd.f32 %v12600_v13, %v5595_v48  ;;  %6900 = vrot.lane.b32.xlu0 %v6882_v60, %s10416_s17  ;;  %v10054_v62 = vpop.f32.mrb[229].mxu0  ;;  %v12781_v37 = vpack.c.bf16 %v12773_v15, %v12763_v39  ;;  %v12784_v19 = vld [vmem:[#allocation2 + $0x78] sm:$0xff]  ;;  %v5997_v63 = vpack.c.bf16 %v6865_v34, %v12677_v43  ;;  %v7007_v34 = vld [vmem:[#allocation2 + $0x2e] sm:$0xff] }
 0x51c   :  { %6370 = vrot.lane.b32.xlu1 %v6351_v6, %s13776_s15  ;;  %v5598_v22 = vpop.f32.mrb[230].mxu0  ;;  %v12792_v45 = vpack.c.bf16 %v12784_v19, %v12761_v47  ;;  %vm13814_vm1 = vmmov %vm13806_vm0  ;;  %v6776_v54 = vpack.c.bf16 %v12788_v53, %v6336_v2  ;;  %v5991_v47 = vld [vmem:[#allocation2 + $0x6c] sm:$0xff]  ;;  %v13089_v39 = vld [vmem:[#allocation2 + $0x74] sm:$0xff] }
 0x51d   :  { %v5644_v32 = vmax.f32 %v5596_v30, 0.0  ;;  %v5599_v8 = vadd.f32 %v12600_v13, %v5598_v22  ;;  %v10055_v25 = vpop.f32.mrb[231].mxu0  ;;  %6860 = vst.msk [vmem:[#allocation3 + $0x48] sm:$0xff] %vm13806_vm0, %v12781_v37  ;;  %v7008_v30 = vld [vmem:[#allocation2 + $0x36] sm:$0xff] }
 0x51e   :  { %5763 = vst.msk [vmem:[#allocation3 + $0x70] sm:$0xff] %vm13814_vm1, %v12792_v45  ;;  %vm13815_vm1 = vmmov %vm13806_vm0 }
 0x51f   :  { %v5696_v18 = vmax.f32 %v12562_v0, %v5644_v32  ;;  %v5645_v23 = vmax.f32 %v5599_v8, 0.0  ;;  %6971 = vrot.lane.b32.xlu0 %v6953_v14, %s10418_s19  ;;  %v7024_v32 = vpack.c.bf16 %v7008_v30, %v7007_v34 }
 0x520   :  { %5875 = vrot.lane.b32.xlu1 %v6351_v6, %s10418_s19  ;;  %v12802_v48 = vld [vmem:[#allocation2 + $0x7b] sm:$0xff] }
 0x521   :  { %5722 = vst [vmem:[#allocation2 + $0x90] sm:$0xff] %v5696_v18  ;;  %v5697_v42 = vmax.f32 %v12569_v1, %v5645_v23  ;;  %v5931_v0 = vpack.c.bf16 %v12802_v48, %v12773_v15 }
 0x522   :  { %v5603_v20 = vpop.f32.mrb[232].mxu0  ;;  %v7300_v6 = vld [vmem:[#allocation2 + $0x83] sm:$0xff] }
 0x523   :  { %5723 = vst [vmem:[#allocation2 + $0x98] sm:$0xff] %v5697_v42  ;;  %v5604_v62 = vadd.f32 %v12600_v13, %v5603_v20  ;;  %6794 = vrot.lane.b32.xlu0 %v6776_v54, %s13768_s13  ;;  %v10058_v1 = vpop.f32.mrb[233].mxu0  ;;  %v12810_v43 = vpack.c.bf16 %v7300_v6, %v12802_v48  ;;  %v10312_v6 = vld [vmem:[%s13723_s3 + $0x40] sm:$0xff]  }
 0x524   :  { %6017 = vrot.lane.b32.xlu1 %v5997_v63, %s10417_s18  ;;  %v5606_v2 = vpop.f32.mrb[234].mxu0  ;;  %v6620_v63 = vld [vmem:[#allocation2 + $0x37] sm:$0xff]  ;;  %v6619_v1 = vld [vmem:[#allocation2 + $0x2f] sm:$0xff]  ;;  %9392 = vmatprep.subr.bf16.mxu1 %v10312_v6 }
 0x525   :  { %v5646_v22 = vmax.f32 %v5604_v62, 0.0  ;;  %v5607_v49 = vadd.f32 %v12600_v13, %v5606_v2  ;;  %v10059_v8 = vpop.f32.mrb[235].mxu0  ;;  %6861 = vst.msk [vmem:[#allocation3 + $0x58] sm:$0xff] %vm13806_vm0, %v12810_v43 }
 0x527   :  { %v5698_v25 = vmax.f32 %v12576_v57, %v5646_v22  ;;  %v5647_v18 = vmax.f32 %v5607_v49, 0.0  ;;  %6441 = vrot.lane.b32.xlu0 %v6882_v60, %s13810_s28  ;;  %v6635_v22 = vpack.c.bf16 %v6620_v63, %v6619_v1  ;;  %v10314_v49 = vld [vmem:[%s13723_s3 + $0x48] sm:$0xff]   ;;  %v6267_v63 = vld [vmem:[#allocation2 + $0x39] sm:$0xff] }
 0x528   :  { %7042 = vrot.lane.b32.xlu1 %v7024_v32, %s10415_s16  ;;  %v7301_v54 = vld [vmem:[#allocation2 + $0x8b] sm:$0xff] }
 0x529   :  { %5724 = vst [vmem:[#allocation2 + $0xa0] sm:$0xff] %v5698_v25  ;;  %v5699_v23 = vmax.f32 %v12583_v9, %v5647_v18  ;;  %v10313_v9 = vld [vmem:[%s13723_s3] sm:$0xff]   ;;  %v10315_v18 = vld [vmem:[%s13723_s3 + $0x8] sm:$0xff]  }
 0x52a   :  { %v5611_v42 = vpop.f32.mrb[236].mxu0  ;;  %v7302_v20 = vld [vmem:[#allocation2 + $0x93] sm:$0xff]  ;;  %9393 = vmatpush3.bf16.msra.mxu1 %v10313_v9 }
 0x52b   :  { %5725 = vst [vmem:[#allocation2 + $0xa8] sm:$0xff] %v5699_v23  ;;  %v5612_v30 = vadd.f32 %v12600_v13, %v5611_v42  ;;  %6583 = vrot.lane.b32.xlu0 %v7024_v32, %s13774_s29  ;;  %v10062_v57 = vpop.f32.mrb[237].mxu0  ;;  %v12828_v60 = vpack.c.bf16 %v7302_v20, %v7301_v54  ;;  %9394 = vmatprep.subr.bf16.mxu1 %v10314_v49 }
 0x52c   :  { %6512 = vrot.lane.b32.xlu1 %v6953_v14, %s13808_s2  ;;  %v5614_v62 = vpop.f32.mrb[238].mxu0 }
 0x52d   :  { %v5648_v2 = vmax.f32 %v5612_v30, 0.0  ;;  %v5615_v34 = vadd.f32 %v12600_v13, %v5614_v62  ;;  %v10063_v14 = vpop.f32.mrb[239].mxu0  ;;  %6862 = vst.msk [vmem:[#allocation3 + $0x68] sm:$0xff] %vm13815_vm1, %v12828_v60  ;;  %v6266_v30 = vld [vmem:[#allocation2 + $0x31] sm:$0xff]  ;;  %vm13816_vm1 = vcmask 60416  }
 0x52e   :  { %9395 = vmatpush3.bf16.msra.mxu1 %v10315_v18  ;;  %v6281_v62 = vpack.c.bf16 %v6267_v63, %v6266_v30  ;;  %v5927_v18 = vpack.c.bf16 %v12679_v21, %v12657_v16  ;;  %v10324_v16 = vld [vmem:[%s13723_s3 + $0x70] sm:$0xff]   ;;  %v6938_v30 = vld [vmem:[#allocation2 + $0x3d] sm:$0xff] }
 0x52f   :  { %v5700_v8 = vmax.f32 %v12590_v55, %v5648_v2  ;;  %v5649_v25 = vmax.f32 %v5615_v34, 0.0  ;;  %6088 = vrot.lane.b32.xlu0 %v7024_v32, %s10420_s21  ;;  %v10316_v55 = vld [vmem:[%s13723_s3 + $0x50] sm:$0xff]   ;;  %v10318_v34 = vld [vmem:[%s13723_s3 + $0x58] sm:$0xff]  }
 0x530   :  { %6654 = vrot.lane.b32.xlu1 %v6635_v22, %s13773_s26  ;;  %9396 = vmatprep.subr.bf16.mxu1 %v10316_v55  ;;  %v7303_v57 = vld [vmem:[#allocation2 + $0x9b] sm:$0xff]  ;;  %v10325_v21 = vld [vmem:[%s13723_s3 + $0x30] sm:$0xff]  }
 0x531   :  { %5726 = vst [vmem:[#allocation2 + $0xb0] sm:$0xff] %v5700_v8  ;;  %v5701_v23 = vmax.f32 %v12595_v41, %v5649_v25  ;;  %v10317_v41 = vld [vmem:[%s13723_s3 + $0x10] sm:$0xff]   ;;  %v10321_v8 = vld [vmem:[%s13723_s3 + $0x20] sm:$0xff]  }
 0x532   :  { %v5619_v42 = vpop.f32.mrb[240].mxu0  ;;  %v7304_v6 = vld [vmem:[#allocation2 + $0xa3] sm:$0xff]  ;;  %9397 = vmatpush3.bf16.msra.mxu1 %v10317_v41 }
 0x533   :  { %5727 = vst [vmem:[#allocation2 + $0xb8] sm:$0xff] %v5701_v23  ;;  %v5620_v54 = vadd.f32 %v12600_v13, %v5619_v42  ;;  %6725 = vrot.lane.b32.xlu0 %v12637_v61, %s13775_s14  ;;  %v10066_v32 = vpop.f32.mrb[241].mxu0  ;;  %v12853_v1 = vpack.c.bf16 %v7304_v6, %v7303_v57  ;;  %9398 = vmatprep.subr.bf16.mxu1 %v10318_v34  ;;  %v7150_v23 = vld [vmem:[#allocation2 + $0x41] sm:$0xff] }
 0x534   :  { %6159 = vrot.lane.b32.xlu1 %v6635_v22, %s10419_s20  ;;  %v5622_v20 = vpop.f32.mrb[242].mxu0  ;;  %v10319_v22 = vld [vmem:[%s13723_s3 + $0x18] sm:$0xff]   ;;  %v7221_v55 = vld [vmem:[#allocation2 + $0x42] sm:$0xff] }
 0x535   :  { %v5650_v9 = vmax.f32 %v5620_v54, 0.0  ;;  %v10067_v13 = vpop.f32.mrb[243].mxu0  ;;  %6863 = vst.msk [vmem:[#allocation3 + $0x78] sm:$0xff] %vm13806_vm0, %v12853_v1  ;;  %v10326_v54 = vld [vmem:[%s13723_s3 + $0x78] sm:$0xff]   ;;  %v6939_v20 = vld [vmem:[#allocation2 + $0x45] sm:$0xff]  ;;  %vm13818_vm0 = vcmask 654912  }
 0x536   :  { %9399 = vmatpush3.bf16.msra.mxu1 %v10319_v22  ;;  %v10327_v32 = vld [vmem:[%s13723_s3 + $0x38] sm:$0xff]   ;;  %v6954_v57 = vpack.c.bf16 %v6939_v20, %v6938_v30  ;;  %v7010_v6 = vld [vmem:[#allocation2 + $0x46] sm:$0xff] }
 0x537   :  { %v5702_v2 = vmax.f32 %v12602_v40, %v5650_v9  ;;  %6230 = vrot.lane.b32.xlu0 %v12637_v61, %s10421_s22  ;;  %v6338_v40 = vld [vmem:[#allocation2 + $0x3a] sm:$0xff] }
 0x538   :  { %6301 = vrot.lane.b32.xlu1 %v6281_v62, %s10423_s24  ;;  %v7305_v14 = vld [vmem:[#allocation2 + $0xab] sm:$0xff]  ;;  %v10320_v61 = vld [vmem:[%s13723_s3 + $0x60] sm:$0xff]   ;;  %v6352_v25 = vpack.c.bf16 %v6338_v40, %v12788_v53  ;;  %v7237_v41 = vpack.c.bf16 %v7221_v55, %v6338_v40  ;;  %s13817_s3 = smov 120  }
 0x539   :  { %5728 = vst [vmem:[#allocation2 + $0xc0] sm:$0xff] %v5702_v2  ;;  %v6855_v49 = vpack.c.bf16 %v7305_v14, %v7305_v14  ;;  %9400 = vmatprep.subr.bf16.mxu1 %v10320_v61  ;;  %v5985_v53 = vld [vmem:[#allocation2 + $0x3c] sm:$0xff]  ;;  %v6269_v14 = vld [vmem:[#allocation2 + $0x49] sm:$0xff] }
 0x53a   :  { %9401 = vmatpush3.bf16.msra.mxu1 %v10321_v8  ;;  %v5998_v42 = vpack.c.bf16 %v5985_v53, %v12752_v12  ;;  %v6621_v13 = vld [vmem:[#allocation2 + $0x3f] sm:$0xff] }
 0x53b   :  { %7113 = vrot.lane.b32.xlu0 %v7095_v29, %s10417_s18  ;;  %6864 = vst.msk [vmem:[#allocation3 + $0x88] sm:$0xf] %vm13816_vm1, %v6855_v49  ;;  %v7166_v29 = vpack.c.bf16 %v7150_v23, %v6267_v63  ;;  %9402 = vmatprep.subr.bf16.mxu1 %v10322_v3  ;;  %v12899_v63 = vld [vmem:[#allocation2 + $0x44] sm:$0xff]  ;;  %v6282_v49 = vpack.c.bf16 %v6269_v14, %v7150_v23  ;;  %vm13819_vm1 = vcmask 720512  }
 0x53c   :  { %5806 = vrot.lane.b32.xlu1 %v6281_v62, %s10416_s17  ;;  %v6883_v12 = vpack.c.bf16 %v12899_v63, %v5985_v53  ;;  %v6622_v62 = vld [vmem:[#allocation2 + $0x47] sm:$0xff] }
 0x53d   :  { %v6636_v2 = vpack.c.bf16 %v6622_v62, %v6621_v13  ;;  %v6340_v3 = vld [vmem:[#allocation2 + $0x4a] sm:$0xff] }
 0x53e   :  { %9403 = vmatpush3.bf16.msra.mxu1 %v10323_v4  ;;  %v12936_v4 = vld [vmem:[#allocation2 + $0x51] sm:$0xff]  ;;  %v6353_v53 = vpack.c.bf16 %v6340_v3, %v7221_v55 }
 0x53f   :  { %6372 = vrot.lane.b32.xlu0 %v6352_v25, %s13776_s15  ;;  %9404 = vmatprep.subr.bf16.mxu1 %v10324_v16  ;;  %v7167_v16 = vpack.c.bf16 %v12936_v4, %v6269_v14  ;;  %v12961_v55 = vld [vmem:[#allocation2 + $0x52] sm:$0xff] }
 0x540   :  { %5948 = vrot.lane.b32.xlu1 %v5927_v18, %s10415_s16 }
 0x542   :  { %9405 = vmatpush3.bf16.msra.mxu1 %v10325_v21 }
 0x543   :  { %5877 = vrot.lane.b32.xlu0 %v6352_v25, %s10418_s19  ;;  %9406 = vmatprep.subr.bf16.mxu1 %v10326_v54  ;;  %v6941_v54 = vld [vmem:[#allocation2 + $0x55] sm:$0xff] }
 0x544   :  { %7184 = vrot.lane.b32.xlu1 %v7166_v29, %s10420_s21 }
 0x546   :  { %9407 = vmatpush3.bf16.msra.mxu1 %v10327_v32  ;;  %v6940_v32 = vld [vmem:[#allocation2 + $0x4d] sm:$0xff] }
 0x547   :  { %6019 = vrot.lane.b32.xlu0 %v5998_v42, %s10417_s18  ;;  %v6955_v20 = vpack.c.bf16 %v6941_v54, %v6940_v32  ;;  %v6942_v54 = vld [vmem:[#allocation2 + $0x5d] sm:$0xff] }
 0x548   :  { %7326 = vrot.lane.b32.xlu1 %v12691_v7, %s10421_s22  ;;  %v7009_v7 = vld [vmem:[#allocation2 + $0x3e] sm:$0xff] }
 0x549   :  { %v7025_v9 = vpack.c.bf16 %v7010_v6, %v7009_v7  ;;  %v7011_v6 = vld [vmem:[#allocation2 + $0x4e] sm:$0xff] }
 0x54b   :  { %7255 = vrot.lane.b32.xlu0 %v7237_v41, %s10419_s20 }
 0x54c   :  { %6902 = vrot.lane.b32.xlu1 %v6883_v12, %s10416_s17 }
 0x54f   :  { %7397 = vrot.lane.b32.xlu0 %v6883_v12, %s10423_s24 }
 0x550   :  { %6973 = vrot.lane.b32.xlu1 %v6954_v57, %s10418_s19 }
 0x553   :  { %7044 = vrot.lane.b32.xlu0 %v7025_v9, %s10415_s16 }
 0x554   :  { %6796 = vrot.lane.b32.xlu1 %v7237_v41, %s13817_s3 }
 0x557   :  { %6514 = vrot.lane.b32.xlu0 %v6954_v57, %s13808_s2  ;;  %v7012_v57 = vld [vmem:[#allocation2 + $0x56] sm:$0xff] }
 0x558   :  { %6443 = vrot.lane.b32.xlu1 %v6883_v12, %s13810_s28  ;;  %v7238_v12 = vpack.c.bf16 %v12961_v55, %v6340_v3  ;;  %v7026_v62 = vpack.c.bf16 %v7012_v57, %v7011_v6 }
 0x55b   :  { %6656 = vrot.lane.b32.xlu0 %v6636_v2, %s13773_s26 }
 0x55c   :  { %6585 = vrot.lane.b32.xlu1 %v7025_v9, %s13774_s29 }
 0x55d   :  { %v5872_v34 = vpop.permute.xlu0 %5871 }
 0x55e   :  { %v5801_v22 = vpop.permute.xlu1 %5800 }
 0x55f   :  { %5827 = vst.msk [vmem:[#allocation3] sm:$0xff] %vm1770_vm3, %v5801_v22  ;;  %6161 = vrot.lane.b32.xlu0 %v6636_v2, %s10419_s20  ;;  %v6623_v22 = vld [vmem:[#allocation2 + $0x4f] sm:$0xff] }
 0x560   :  { %5898 = vst.msk [vmem:[#allocation3] sm:$0xff] %vm1843_vm4, %v5872_v34  ;;  %6090 = vrot.lane.b32.xlu1 %v7025_v9, %s10420_s21  ;;  %v6624_v34 = vld [vmem:[#allocation2 + $0x57] sm:$0xff] }
 0x561   :  { %v6014_v40 = vpop.permute.xlu0 %6013 }
 0x562   :  { %v5943_v61 = vpop.permute.xlu1 %5942 }
 0x563   :  { %5969 = vst.msk [vmem:[#allocation3] sm:$0xff] %vm1916_vm5, %v5943_v61  ;;  %6303 = vrot.lane.b32.xlu0 %v6282_v49, %s10423_s24  ;;  %v6637_v61 = vpack.c.bf16 %v6624_v34, %v6623_v22 }
 0x564   :  { %6040 = vst.msk [vmem:[#allocation3] sm:$0xff] %vm1989_vm6, %v6014_v40  ;;  %6727 = vrot.lane.b32.xlu1 %v12661_v28, %s13775_s14 }
 0x565   :  { %v6156_v8 = vpop.permute.xlu0 %6155 }
 0x566   :  { %v6085_v25 = vpop.permute.xlu1 %6084 }
 0x567   :  { %6111 = vst.msk [vmem:[#allocation3] sm:$0xff] %vm2062_vm7, %v6085_v25  ;;  %5808 = vrot.lane.b32.xlu0 %v6282_v49, %s10416_s17  ;;  %v6271_v25 = vld [vmem:[#allocation2 + $0x59] sm:$0xff] }
 0x568   :  { %6182 = vst.msk [vmem:[#allocation3] sm:$0xff] %vm2135_vm8, %v6156_v8  ;;  %6232 = vrot.lane.b32.xlu1 %v12661_v28, %s10421_s22  ;;  %v6283_v3 = vpack.c.bf16 %v6271_v25, %v12936_v4 }
 0x569   :  { %v6369_v23 = vpop.permute.xlu0 %6368 }
 0x56a   :  { %v6227_v18 = vpop.permute.xlu1 %6226 }
 0x56b   :  { %6253 = vst.msk [vmem:[#allocation3] sm:$0xff] %vm2208_vm9, %v6227_v18  ;;  %5950 = vrot.lane.b32.xlu0 %v5928_v31, %s10415_s16 }
 0x56c   :  { %7115 = vrot.lane.b32.xlu1 %v7096_v56, %s10417_s18  ;;  %v5987_v56 = vld [vmem:[#allocation2 + $0x4c] sm:$0xff] }
 0x56d   :  { %v5874_v29 = vpop.permute.xlu0 %5873  ;;  %v5999_v21 = vpack.c.bf16 %v5987_v56, %v12899_v63  ;;  %v6884_v42 = vpack.c.bf16 %v12952_v10, %v5987_v56 }
 0x56e   :  { %v6298_v28 = vpop.permute.xlu1 %6297 }
 0x56f   :  { %6324 = vst.msk [vmem:[#allocation3] sm:$0xff] %vm2281_vm10, %v6298_v28  ;;  %7186 = vrot.lane.b32.xlu0 %v7167_v16, %s10420_s21 }
 0x570   :  { %6395 = vst.msk [vmem:[#allocation3] sm:$0xff] %vm13818_vm0, %v6369_v23  ;;  %6374 = vrot.lane.b32.xlu1 %v6353_v53, %s13776_s15  ;;  %vm13820_vm0 = vcmask 786112  }
 0x571   :  { %v6016_v50 = vpop.permute.xlu0 %6015 }
 0x572   :  { %v5803_v52 = vpop.permute.xlu1 %5802 }
 0x573   :  { %5828 = vst.msk [vmem:[#allocation3 + $0x10] sm:$0xff] %vm1770_vm3, %v5803_v52  ;;  %7328 = vrot.lane.b32.xlu0 %v12722_v35, %s10421_s22  ;;  %v5989_v52 = vld [vmem:[#allocation2 + $0x5c] sm:$0xff] }
 0x574   :  { %5899 = vst.msk [vmem:[#allocation3 + $0x10] sm:$0xff] %vm1843_vm4, %v5874_v29  ;;  %5879 = vrot.lane.b32.xlu1 %v6353_v53, %s10418_s19  ;;  %v6342_v53 = vld [vmem:[#allocation2 + $0x5a] sm:$0xff] }
 0x575   :  { %v6511_v31 = vpop.permute.xlu0 %6510 }
 0x576   :  { %v5945_v27 = vpop.permute.xlu1 %5944 }
 0x577   :  { %5970 = vst.msk [vmem:[#allocation3 + $0x10] sm:$0xff] %vm1916_vm5, %v5945_v27  ;;  %6904 = vrot.lane.b32.xlu0 %v6884_v42, %s10416_s17 }
 0x578   :  { %6041 = vst.msk [vmem:[#allocation3 + $0x10] sm:$0xff] %vm1989_vm6, %v6016_v50  ;;  %6021 = vrot.lane.b32.xlu1 %v5999_v21, %s10417_s18  ;;  %v13009_v50 = vld [vmem:[#allocation2 + $0x61] sm:$0xff] }
 0x579   :  { %v6653_v41 = vpop.permute.xlu0 %6652 }
 0x57a   :  { %v6440_v35 = vpop.permute.xlu1 %6439 }
 0x57b   :  { %6466 = vst.msk [vmem:[#allocation3] sm:$0xff] %vm13819_vm1, %v6440_v35  ;;  %6975 = vrot.lane.b32.xlu0 %v6955_v20, %s10418_s19  ;;  %vm13825_vm1 = vcmask 1048512  }
 0x57c   :  { %6537 = vst.msk [vmem:[#allocation3] sm:$0xff] %vm13820_vm0, %v6511_v31  ;;  %7257 = vrot.lane.b32.xlu1 %v7238_v12, %s10419_s20  ;;  %vm13826_vm0 = vcmask 720512   ;;  %v6000_v31 = vpack.c.bf16 %v5989_v52, %v12952_v10  ;;  %v6943_v10 = vld [vmem:[#allocation2 + $0x65] sm:$0xff] }
 0x57d   :  { %v6158_v30 = vpop.permute.xlu0 %6157  ;;  %v6956_v35 = vpack.c.bf16 %v6943_v10, %v6942_v54 }
 0x57e   :  { %v6582_v63 = vpop.permute.xlu1 %6581 }
 0x57f   :  { %6608 = vst.msk [vmem:[#allocation3] sm:$0xff] %vm13821_vm11, %v6582_v63  ;;  %6798 = vrot.lane.b32.xlu0 %v7238_v12, %s13817_s3  ;;  %vm13823_vm11 = vcmask 982912   ;;  %v7013_v12 = vld [vmem:[#allocation2 + $0x5e] sm:$0xff] }
 0x580   :  { %6679 = vst.msk [vmem:[#allocation3] sm:$0xff] %vm13822_vm13, %v6653_v41  ;;  %7399 = vrot.lane.b32.xlu1 %v6884_v42, %s10423_s24  ;;  %vm13824_vm13 = vcmask 654912  }
 0x581   :  { %v6300_v9 = vpop.permute.xlu0 %6299 }
 0x582   :  { %v6087_v7 = vpop.permute.xlu1 %6086 }
 0x583   :  { %6112 = vst.msk [vmem:[#allocation3 + $0x10] sm:$0xff] %vm2062_vm7, %v6087_v7  ;;  %6445 = vrot.lane.b32.xlu0 %v6884_v42, %s13810_s28  ;;  %v7239_v42 = vpack.c.bf16 %v13024_v38, %v6342_v53  ;;  %v6626_v7 = vld [vmem:[#allocation2 + $0x67] sm:$0xff] }
 0x584   :  { %6183 = vst.msk [vmem:[#allocation3 + $0x10] sm:$0xff] %vm2135_vm8, %v6158_v30  ;;  %7046 = vrot.lane.b32.xlu1 %v7026_v62, %s10415_s16 }
 0x585   :  { %v5805_v2 = vpop.permute.xlu0 %5804 }
 0x586   :  { %v6724_v13 = vpop.permute.xlu1 %6723  ;;  %5829 = vst.msk [vmem:[#allocation3 + $0x20] sm:$0xff] %vm1770_vm3, %v5805_v2 }
 0x587   :  { %6750 = vst.msk [vmem:[#allocation3] sm:$0xff] %vm13823_vm11, %v6724_v13  ;;  %6587 = vrot.lane.b32.xlu0 %v7026_v62, %s13774_s29  ;;  %vm13827_vm11 = vcmask 786112  }
 0x588   :  { %6516 = vrot.lane.b32.xlu1 %v6955_v20, %s13808_s2 }
 0x589   :  { %v5947_v40 = vpop.permute.xlu0 %5946 }
 0x58a   :  { %v6229_v14 = vpop.permute.xlu1 %6228 }
 0x58b   :  { %6254 = vst.msk [vmem:[#allocation3 + $0x10] sm:$0xff] %vm2208_vm9, %v6229_v14  ;;  %6092 = vrot.lane.b32.xlu0 %v7026_v62, %s10420_s21  ;;  %v6273_v14 = vld [vmem:[#allocation2 + $0x69] sm:$0xff] }
 0x58c   :  { %6325 = vst.msk [vmem:[#allocation3 + $0x10] sm:$0xff] %vm2281_vm10, %v6300_v9  ;;  %6658 = vrot.lane.b32.xlu1 %v6637_v61, %s13773_s26  ;;  %v6625_v9 = vld [vmem:[#allocation2 + $0x5f] sm:$0xff] }
 0x58d   :  { %v6901_v8 = vpop.permute.xlu0 %6900  ;;  %v6638_v2 = vpack.c.bf16 %v6626_v7, %v6625_v9 }
 0x58e   :  { %v6371_v49 = vpop.permute.xlu1 %6370  ;;  %6927 = vst.msk [vmem:[#allocation3 + $0x8] sm:$0xff] %vm1770_vm3, %v6901_v8 }
 0x58f   :  { %6396 = vst.msk [vmem:[#allocation3 + $0x10] sm:$0xff] %vm13824_vm13, %v6371_v49  ;;  %6729 = vrot.lane.b32.xlu0 %v12697_v11, %s13775_s14  ;;  %vm13828_vm13 = vcmask 851712   ;;  %v6284_v49 = vpack.c.bf16 %v6273_v14, %v13009_v50 }
 0x590   :  { %6163 = vrot.lane.b32.xlu1 %v6637_v61, %s10419_s20 }
 0x591   :  { %v6972_v23 = vpop.permute.xlu0 %6971 }
 0x592   :  { %v5876_v18 = vpop.permute.xlu1 %5875  ;;  %6998 = vst.msk [vmem:[#allocation3 + $0x8] sm:$0xff] %vm1843_vm4, %v6972_v23 }
 0x593   :  { %5900 = vst.msk [vmem:[#allocation3 + $0x20] sm:$0xff] %vm1843_vm4, %v5876_v18  ;;  %6234 = vrot.lane.b32.xlu0 %v12697_v11, %s10421_s22  ;;  %v6354_v11 = vpack.c.bf16 %v6342_v53, %v12961_v55  ;;  %v6885_v55 = vpack.c.bf16 %v13026_v24, %v5989_v52 }
 0x594   :  { %5971 = vst.msk [vmem:[#allocation3 + $0x20] sm:$0xff] %vm1916_vm5, %v5947_v40  ;;  %6305 = vrot.lane.b32.xlu1 %v6283_v3, %s10423_s24 }
 0x595   :  { %v6795_v29 = vpop.permute.xlu0 %6794 }
 0x596   :  { %v6018_v28 = vpop.permute.xlu1 %6017  ;;  %6821 = vst.msk [vmem:[#allocation3] sm:$0xff] %vm13825_vm1, %v6795_v29  ;;  %vm13829_vm1 = vcmask 917312  }
 0x597   :  { %6042 = vst.msk [vmem:[#allocation3 + $0x20] sm:$0xff] %vm1989_vm6, %v6018_v28  ;;  %7117 = vrot.lane.b32.xlu0 %v7097_v36, %s10417_s18  ;;  %v7168_v36 = vpack.c.bf16 %v13009_v50, %v6271_v25  ;;  %v6001_v50 = vpack.c.bf16 %v5991_v47, %v13026_v24 }
 0x598   :  { %5810 = vrot.lane.b32.xlu1 %v6283_v3, %s10416_s17  ;;  %v6344_v3 = vld [vmem:[#allocation2 + $0x6a] sm:$0xff] }
 0x599   :  { %v6442_v16 = vpop.permute.xlu0 %6441 }
 0x59a   :  { %v7043_v4 = vpop.permute.xlu1 %7042  ;;  %6467 = vst.msk [vmem:[#allocation3 + $0x10] sm:$0xff] %vm13826_vm0, %v6442_v16  ;;  %vm13830_vm0 = vcmask 982912  }
 0x59b   :  { %7069 = vst.msk [vmem:[#allocation3 + $0x8] sm:$0xff] %vm1916_vm5, %v7043_v4  ;;  %6376 = vrot.lane.b32.xlu0 %v6354_v11, %s13776_s15  ;;  %v6355_v4 = vpack.c.bf16 %v6344_v3, %v13024_v38 }
 0x59c   :  { %5952 = vrot.lane.b32.xlu1 %v5929_v26, %s10415_s16 }
 0x59d   :  { %v6584_v5 = vpop.permute.xlu0 %6583  ;;  %v7433_v16 = vld [vmem:[#allocation3] sm:$0xff] }
 0x59e   :  { %v6513_v51 = vpop.permute.xlu1 %6512 }
 0x59f   :  { %6538 = vst.msk [vmem:[#allocation3 + $0x10] sm:$0xff] %vm13827_vm11, %v6513_v51  ;;  %5881 = vrot.lane.b32.xlu0 %v6354_v11, %s10418_s19  ;;  %vm13831_vm11 = vcmask 654912   ;;  %v6886_v51 = vpack.c.bf16 %v13089_v39, %v5991_v47  ;;  %v7018_v47 = vld [vmem:[#allocation2 + $0x86] sm:$0xff] }
 0x5a0   :  { %6609 = vst.msk [vmem:[#allocation3 + $0x10] sm:$0xff] %vm13828_vm13, %v6584_v5  ;;  %7188 = vrot.lane.b32.xlu1 %v7168_v36, %s10420_s21  ;;  %vm13832_vm13 = vcmask 1048512   ;;  %v13096_v5 = vld [vmem:[#allocation2 + $0x72] sm:$0xff] }
 0x5a1   :  { %v6089_v27 = vpop.permute.xlu0 %6088  ;;  %v6945_v36 = vld [vmem:[#allocation2 + $0x75] sm:$0xff] }
 0x5a2   :  { %v6655_v56 = vpop.permute.xlu1 %6654  ;;  %6113 = vst.msk [vmem:[#allocation3 + $0x20] sm:$0xff] %vm2062_vm7, %v6089_v27  ;;  %v6944_v27 = vld [vmem:[#allocation2 + $0x6d] sm:$0xff] }
 0x5a3   :  { %6680 = vst.msk [vmem:[#allocation3 + $0x10] sm:$0xff] %vm13829_vm1, %v6655_v56  ;;  %6023 = vrot.lane.b32.xlu0 %v6000_v31, %s10417_s18  ;;  %vm13833_vm1 = vcmask 720512   ;;  %v6957_v31 = vpack.c.bf16 %v6945_v36, %v6944_v27  ;;  %v6630_v36 = vld [vmem:[#allocation2 + $0x87] sm:$0xff] }
 0x5a4   :  { %7330 = vrot.lane.b32.xlu1 %v12744_v46, %s10421_s22  ;;  %v7014_v46 = vld [vmem:[#allocation2 + $0x66] sm:$0xff] }
 0x5a5   :  { %v6726_v21 = vpop.permute.xlu0 %6725  ;;  %v7027_v30 = vpack.c.bf16 %v7014_v46, %v7013_v12 }
 0x5a6   :  { %v6160_v26 = vpop.permute.xlu1 %6159  ;;  %6751 = vst.msk [vmem:[#allocation3 + $0x10] sm:$0xff] %vm13830_vm0, %v6726_v21  ;;  %vm13834_vm0 = vcmask 786112   ;;  %v7015_v21 = vld [vmem:[#allocation2 + $0x6e] sm:$0xff] }
 0x5a7   :  { %6184 = vst.msk [vmem:[#allocation3 + $0x20] sm:$0xff] %vm2135_vm8, %v6160_v26  ;;  %7259 = vrot.lane.b32.xlu0 %v7239_v42, %s10419_s20  ;;  %v7016_v26 = vld [vmem:[#allocation2 + $0x76] sm:$0xff] }
 0x5a8   :  { %6906 = vrot.lane.b32.xlu1 %v6885_v55, %s10416_s17  ;;  %v7028_v10 = vpack.c.bf16 %v7016_v26, %v7015_v21 }
 0x5a9   :  { %v6231_v32 = vpop.permute.xlu0 %6230 }
 0x5aa   :  { %v6302_v41 = vpop.permute.xlu1 %6301  ;;  %6255 = vst.msk [vmem:[#allocation3 + $0x20] sm:$0xff] %vm2208_vm9, %v6231_v32 }
 0x5ab   :  { %6326 = vst.msk [vmem:[#allocation3 + $0x20] sm:$0xff] %vm2281_vm10, %v6302_v41  ;;  %7401 = vrot.lane.b32.xlu0 %v6885_v55, %s10423_s24  ;;  %v6628_v41 = vld [vmem:[#allocation2 + $0x77] sm:$0xff] }
 0x5ac   :  { %6977 = vrot.lane.b32.xlu1 %v6956_v35, %s10418_s19 }
 0x5ad   :  { %v7114_v20 = vpop.permute.xlu0 %7113 }
 0x5ae   :  { %v5807_v63 = vpop.permute.xlu1 %5806  ;;  %7140 = vst.msk [vmem:[#allocation3 + $0x8] sm:$0xff] %vm1989_vm6, %v7114_v20 }
 0x5af   :  { %5830 = vst.msk [vmem:[#allocation3 + $0x30] sm:$0xff] %vm1770_vm3, %v5807_v63  ;;  %7048 = vrot.lane.b32.xlu0 %v7027_v30, %s10415_s16 }
 0x5b0   :  { %6800 = vrot.lane.b32.xlu1 %v7239_v42, %s13817_s3 }
 0x5b1   :  { %v6373_v57 = vpop.permute.xlu0 %6372 }
 0x5b2   :  { %v5949_v6 = vpop.permute.xlu1 %5948  ;;  %6397 = vst.msk [vmem:[#allocation3 + $0x20] sm:$0xff] %vm13831_vm11, %v6373_v57  ;;  %vm13835_vm11 = vcmask 851712   ;;  %v6275_v57 = vld [vmem:[#allocation2 + $0x79] sm:$0xff] }
 0x5b3   :  { %6518 = vrot.lane.b32.xlu0 %v6956_v35, %s13808_s2  ;;  %v6627_v35 = vld [vmem:[#allocation2 + $0x6f] sm:$0xff] }
 0x5b4   :  { %6447 = vrot.lane.b32.xlu1 %v6885_v55, %s13810_s28  ;;  %v6639_v20 = vpack.c.bf16 %v6628_v41, %v6627_v35  ;;  %v6277_v35 = vld [vmem:[#allocation2 + $0x89] sm:$0xff] }
 0x5b5   :  { %v5878_v62 = vpop.permute.xlu0 %5877 }
 0x5b6   :  { %v7185_v13 = vpop.permute.xlu1 %7184  ;;  %5901 = vst.msk [vmem:[#allocation3 + $0x30] sm:$0xff] %vm1843_vm4, %v5878_v62  ;;  %v13131_v62 = vld [vmem:[#allocation2 + $0x80] sm:$0xff] }
 0x5b7   :  { %7211 = vst.msk [vmem:[#allocation3 + $0x8] sm:$0xff] %vm2062_vm7, %v7185_v13  ;;  %6660 = vrot.lane.b32.xlu0 %v6638_v2, %s13773_s26 }
 0x5b8   :  { %5972 = vst.msk [vmem:[#allocation3 + $0x30] sm:$0xff] %vm1916_vm5, %v5949_v6  ;;  %6589 = vrot.lane.b32.xlu1 %v7027_v30, %s13774_s29 }
 0x5b9   :  { %v6020_v34 = vpop.permute.xlu0 %6019 }
 0x5ba   :  { %v7327_v22 = vpop.permute.xlu1 %7326  ;;  %6043 = vst.msk [vmem:[#allocation3 + $0x30] sm:$0xff] %vm1989_vm6, %v6020_v34  ;;  %v7099_v34 = vpack.c.bf16 %v13131_v62, %v12784_v19 }
 0x5bb   :  { %6165 = vrot.lane.b32.xlu0 %v6638_v2, %s10419_s20 }
 0x5bc   :  { %6094 = vrot.lane.b32.xlu1 %v7027_v30, %s10420_s21 }
 0x5bd   :  { %v7256_v40 = vpop.permute.xlu0 %7255 }
 0x5be   :  { %v6903_v61 = vpop.permute.xlu1 %6902  ;;  %7282 = vst.msk [vmem:[#allocation3 + $0x8] sm:$0xff] %vm2135_vm8, %v7256_v40 }
 0x5bf   :  { %6928 = vst.msk [vmem:[#allocation3 + $0x18] sm:$0xff] %vm1770_vm3, %v6903_v61  ;;  %6307 = vrot.lane.b32.xlu0 %v6284_v49, %s10423_s24  ;;  %v13144_v61 = vld [vmem:[#allocation2 + $0x81] sm:$0xff] }
 0x5c0   :  { %7353 = vst.msk [vmem:[#allocation3 + $0x8] sm:$0xff] %vm2208_vm9, %v7327_v22  ;;  %6731 = vrot.lane.b32.xlu1 %v12755_v58, %s13775_s14  ;;  %v6346_v22 = vld [vmem:[#allocation2 + $0x7a] sm:$0xff] }
 0x5c1   :  { %v7398_v8 = vpop.permute.xlu0 %7397 }
 0x5c2   :  { %v6974_v25 = vpop.permute.xlu1 %6973  ;;  %7424 = vst.msk [vmem:[#allocation3 + $0x8] sm:$0xff] %vm2281_vm10, %v7398_v8 }
 0x5c3   :  { %6999 = vst.msk [vmem:[#allocation3 + $0x18] sm:$0xff] %vm1843_vm4, %v6974_v25  ;;  %5812 = vrot.lane.b32.xlu0 %v6284_v49, %s10416_s17  ;;  %v7170_v25 = vpack.c.bf16 %v13144_v61, %v6275_v57 }
 0x5c4   :  { %6236 = vrot.lane.b32.xlu1 %v12755_v58, %s10421_s22  ;;  %v13078_v58 = vld [vmem:[#allocation2 + $0x71] sm:$0xff] }
 0x5c5   :  { %v7045_v18 = vpop.permute.xlu0 %7044  ;;  %v7169_v11 = vpack.c.bf16 %v13078_v58, %v6273_v14  ;;  %v6285_v9 = vpack.c.bf16 %v6275_v57, %v13078_v58  ;;  %v13163_v58 = vld [vmem:[#allocation2 + $0x82] sm:$0xff] }
 0x5c6   :  { %v6797_v23 = vpop.permute.xlu1 %6796  ;;  %7070 = vst.msk [vmem:[#allocation3 + $0x18] sm:$0xff] %vm1916_vm5, %v7045_v18 }
 0x5c7   :  { %6822 = vst.msk [vmem:[#allocation3 + $0x10] sm:$0xff] %vm13832_vm13, %v6797_v23  ;;  %5954 = vrot.lane.b32.xlu0 %v5930_v44, %s10415_s16  ;;  %vm13836_vm13 = vcmask 917312   ;;  %v5993_v23 = vld [vmem:[#allocation2 + $0x7c] sm:$0xff] }
 0x5c8   :  { %7119 = vrot.lane.b32.xlu1 %v7098_v17, %s10417_s18 }
 0x5c9   :  { %v6515_v28 = vpop.permute.xlu0 %6514  ;;  %v7434_v53 = vld [vmem:[#allocation3 + $0x8] sm:$0xff] }
 0x5ca   :  { %v6444_v29 = vpop.permute.xlu1 %6443  ;;  %7618 = vmatprep.mubr.bf16.mxu1 %v7434_v53 }
 0x5cb   :  { %6468 = vst.msk [vmem:[#allocation3 + $0x20] sm:$0xff] %vm13833_vm1, %v6444_v29  ;;  %7619 = vmatmul.mubr.bf16.vlgmr.msra.gmra.mrb[208].mxu1 %v7433_v16  ;;  %7190 = vrot.lane.b32.xlu0 %v7169_v11, %s10420_s21  ;;  %vm13837_vm1 = vcmask 982912   ;;  %v6947_v16 = vld [vmem:[#allocation2 + $0x85] sm:$0xff] }
 0x5cc   :  { %6539 = vst.msk [vmem:[#allocation3 + $0x20] sm:$0xff] %vm13834_vm0, %v6515_v28  ;;  %6378 = vrot.lane.b32.xlu1 %v6355_v4, %s13776_s15  ;;  %vm13838_vm0 = vcmask 654912  }
 0x5cd   :  { %v6657_v33 = vpop.permute.xlu0 %6656 }
 0x5ce   :  { %v6586_v59 = vpop.permute.xlu1 %6585  ;;  %v7435_v18 = vld [vmem:[#allocation3 + $0x10] sm:$0xff] }
 0x5cf   :  { %6610 = vst.msk [vmem:[#allocation3 + $0x20] sm:$0xff] %vm13835_vm11, %v6586_v59  ;;  %7332 = vrot.lane.b32.xlu0 %v12781_v37, %s10421_s22  ;;  %v7240_v37 = vpack.c.bf16 %v13096_v5, %v6344_v3  ;;  %vm13839_vm11 = vcmask 1048512   ;;  %v13159_v3 = vld [vmem:[#allocation2 + $0x84] sm:$0xff] }
 0x5d0   :  { %6681 = vst.msk [vmem:[#allocation3 + $0x20] sm:$0xff] %vm13836_vm13, %v6657_v33  ;;  %5883 = vrot.lane.b32.xlu1 %v6355_v4, %s10418_s19  ;;  %vm13840_vm13 = vcmask 720512   ;;  %v6887_v53 = vpack.c.bf16 %v13159_v3, %v5993_v23  ;;  %v7241_v4 = vpack.c.bf16 %v13163_v58, %v6346_v22 }
 0x5d1   :  { %v6162_v17 = vpop.permute.xlu0 %6161 }
 0x5d2   :  { %v6091_v44 = vpop.permute.xlu1 %6090 }
 0x5d3   :  { %6114 = vst.msk [vmem:[#allocation3 + $0x30] sm:$0xff] %vm2062_vm7, %v6091_v44  ;;  %6908 = vrot.lane.b32.xlu0 %v6886_v51, %s10416_s17  ;;  %v7017_v44 = vld [vmem:[#allocation2 + $0x7e] sm:$0xff] }
 0x5d4   :  { %6185 = vst.msk [vmem:[#allocation3 + $0x30] sm:$0xff] %vm2135_vm8, %v6162_v17  ;;  %6025 = vrot.lane.b32.xlu1 %v6001_v50, %s10417_s18  ;;  %v7029_v50 = vpack.c.bf16 %v7018_v47, %v7017_v44 }
 0x5d5   :  { %v6304_v56 = vpop.permute.xlu0 %6303 }
 0x5d6   :  { %v6728_v52 = vpop.permute.xlu1 %6727 }
 0x5d7   :  { %6752 = vst.msk [vmem:[#allocation3 + $0x20] sm:$0xff] %vm13837_vm1, %v6728_v52  ;;  %6979 = vrot.lane.b32.xlu0 %v6957_v31, %s10418_s19  ;;  %vm13841_vm1 = vcmask 786112  }
 0x5d8   :  { %7261 = vrot.lane.b32.xlu1 %v7240_v37, %s10419_s20 }
 0x5d9   :  { %v5809_v24 = vpop.permute.xlu0 %5808 }
 0x5da   :  { %v6233_v38 = vpop.permute.xlu1 %6232  ;;  %5831 = vst.msk [vmem:[#allocation3 + $0x40] sm:$0xff] %vm1770_vm3, %v5809_v24  ;;  %v6701_v24 = vld [vmem:[#allocation2 + $0x88] sm:$0xff] }
 0x5db   :  { %6256 = vst.msk [vmem:[#allocation3 + $0x30] sm:$0xff] %vm2208_vm9, %v6233_v38  ;;  %6802 = vrot.lane.b32.xlu0 %v7240_v37, %s13817_s3  ;;  %v6629_v37 = vld [vmem:[#allocation2 + $0x7f] sm:$0xff] }
 0x5dc   :  { %6327 = vst.msk [vmem:[#allocation3 + $0x30] sm:$0xff] %vm2281_vm10, %v6304_v56  ;;  %7403 = vrot.lane.b32.xlu1 %v6886_v51, %s10423_s24  ;;  %v6640_v27 = vpack.c.bf16 %v6630_v36, %v6629_v37 }
 0x5dd   :  { %v5951_v55 = vpop.permute.xlu0 %5950 }
 0x5de   :  { %v7116_v42 = vpop.permute.xlu1 %7115 }
 0x5df   :  { %7141 = vst.msk [vmem:[#allocation3 + $0x18] sm:$0xff] %vm1989_vm6, %v7116_v42  ;;  %6449 = vrot.lane.b32.xlu0 %v6886_v51, %s13810_s28  ;;  %v6711_v42 = vpack.c.bf16 %v6701_v24, %v13131_v62 }
 0x5e0   :  { %7050 = vrot.lane.b32.xlu1 %v7028_v10, %s10415_s16 }
 0x5e1   :  { %v7187_v32 = vpop.permute.xlu0 %7186 }
 0x5e2   :  { %v6375_v54 = vpop.permute.xlu1 %6374  ;;  %7212 = vst.msk [vmem:[#allocation3 + $0x18] sm:$0xff] %vm2062_vm7, %v7187_v32  ;;  %v10386_v32 = vld [vmem:[#allocation2 + $0x83] sm:$0xff] }
 0x5e3   :  { %6398 = vst.msk [vmem:[#allocation3 + $0x30] sm:$0xff] %vm13838_vm0, %v6375_v54  ;;  %6591 = vrot.lane.b32.xlu0 %v7028_v10, %s13774_s29  ;;  %vm13842_vm0 = vcmask 851712   ;;  %v5932_v41 = vpack.c.bf16 %v10386_v32, %v10386_v32 }
 0x5e4   :  { %6520 = vrot.lane.b32.xlu1 %v6957_v31, %s13808_s2 }
 0x5e5   :  { %v7329_v12 = vpop.permute.xlu0 %7328 }
 0x5e6   :  { %v5880_v46 = vpop.permute.xlu1 %5879 }
 0x5e7   :  { %5902 = vst.msk [vmem:[#allocation3 + $0x40] sm:$0xff] %vm1843_vm4, %v5880_v46  ;;  %6096 = vrot.lane.b32.xlu0 %v7028_v10, %s10420_s21 }
 0x5e8   :  { %5973 = vst.msk [vmem:[#allocation3 + $0x40] sm:$0xff] %vm1916_vm5, %v5951_v55  ;;  %6662 = vrot.lane.b32.xlu1 %v6639_v20, %s13773_s26  ;;  %v5790_v55 = vpack.c.bf16 %v13144_v61, %v13144_v61 }
 0x5e9   :  { %v6905_v30 = vpop.permute.xlu0 %6904 }
 0x5ea   :  { %v6022_v63 = vpop.permute.xlu1 %6021  ;;  %6929 = vst.msk [vmem:[#allocation3 + $0x28] sm:$0xff] %vm1770_vm3, %v6905_v30  ;;  %v6065_v30 = vld [vmem:[#allocation2 + $0x8e] sm:$0xff] }
 0x5eb   :  { %6044 = vst.msk [vmem:[#allocation3 + $0x40] sm:$0xff] %vm1989_vm6, %v6022_v63  ;;  %6733 = vrot.lane.b32.xlu0 %v12792_v45, %s13775_s14  ;;  %v6286_v63 = vpack.c.bf16 %v6277_v35, %v13144_v61  ;;  %v13224_v61 = vld [vmem:[#allocation2 + $0x91] sm:$0xff] }
 0x5ec   :  { %6167 = vrot.lane.b32.xlu1 %v6639_v20, %s10419_s20  ;;  %v5861_v20 = vpack.c.bf16 %v13163_v58, %v13163_v58 }
 0x5ed   :  { %v6976_v7 = vpop.permute.xlu0 %6975 }
 0x5ee   :  { %v7258_v6 = vpop.permute.xlu1 %7257  ;;  %7000 = vst.msk [vmem:[#allocation3 + $0x28] sm:$0xff] %vm1843_vm4, %v6976_v7 }
 0x5ef   :  { %7283 = vst.msk [vmem:[#allocation3 + $0x18] sm:$0xff] %vm2135_vm8, %v7258_v6  ;;  %6238 = vrot.lane.b32.xlu0 %v12792_v45, %s10421_s22  ;;  %v6356_v45 = vpack.c.bf16 %v6346_v22, %v13096_v5 }
 0x5f0   :  { %7354 = vst.msk [vmem:[#allocation3 + $0x18] sm:$0xff] %vm2208_vm9, %v7329_v12  ;;  %6309 = vrot.lane.b32.xlu1 %v6285_v9, %s10423_s24 }
 0x5f1   :  { %v6799_v2 = vpop.permute.xlu0 %6798 }
 0x5f2   :  { %v7400_v13 = vpop.permute.xlu1 %7399  ;;  %6823 = vst.msk [vmem:[#allocation3 + $0x20] sm:$0xff] %vm13839_vm11, %v6799_v2  ;;  %vm13843_vm11 = vcmask 917312   ;;  %v13213_v2 = vld [vmem:[#allocation2 + $0x90] sm:$0xff] }
 0x5f3   :  { %7425 = vst.msk [vmem:[#allocation3 + $0x18] sm:$0xff] %vm2281_vm10, %v7400_v13  ;;  %7121 = vrot.lane.b32.xlu0 %v7099_v34, %s10417_s18  ;;  %v6074_v13 = vpack.c.bf16 %v6065_v30, %v6065_v30 }
 0x5f4   :  { %5814 = vrot.lane.b32.xlu1 %v6285_v9, %s10416_s17  ;;  %v6003_v9 = vpack.c.bf16 %v13159_v3, %v13159_v3  ;;  %v6878_v3 = vld [vmem:[#allocation2 + $0x94] sm:$0xff] }
 0x5f5   :  { %v6446_v40 = vpop.permute.xlu0 %6445 }
 0x5f6   :  { %v7047_v14 = vpop.permute.xlu1 %7046  ;;  %6469 = vst.msk [vmem:[#allocation3 + $0x30] sm:$0xff] %vm13840_vm13, %v6446_v40  ;;  %vm13844_vm13 = vcmask 982912   ;;  %v6216_v40 = vpack.c.bf16 %v13213_v2, %v13213_v2 }
 0x5f7   :  { %7071 = vst.msk [vmem:[#allocation3 + $0x28] sm:$0xff] %vm1916_vm5, %v7047_v14  ;;  %6380 = vrot.lane.b32.xlu0 %v6356_v45, %s13776_s15  ;;  %v7100_v14 = vpack.c.bf16 %v13213_v2, %v6701_v24  ;;  %v13264_v24 = vld [vmem:[#allocation2 + $0xa0] sm:$0xff] }
 0x5f8   :  { %5956 = vrot.lane.b32.xlu1 %v5931_v0, %s10415_s16  ;;  %v6002_v0 = vpack.c.bf16 %v5993_v23, %v13089_v39 }
 0x5f9   :  { %v6588_v49 = vpop.permute.xlu0 %6587  ;;  %v7437_v62 = vld [vmem:[#allocation3 + $0x20] sm:$0xff] }
 0x5fa   :  { %v6517_v19 = vpop.permute.xlu1 %6516  ;;  %v7436_v8 = vld [vmem:[#allocation3 + $0x18] sm:$0xff] }
 0x5fb   :  { %6540 = vst.msk [vmem:[#allocation3 + $0x30] sm:$0xff] %vm13841_vm1, %v6517_v19  ;;  %7626 = vmatprep.mubr.bf16.mxu1 %v7436_v8  ;;  %5885 = vrot.lane.b32.xlu0 %v6356_v45, %s10418_s19  ;;  %vm13845_vm1 = vcmask 654912   ;;  %v6348_v45 = vld [vmem:[#allocation2 + $0x8a] sm:$0xff] }
 0x5fc   :  { %6611 = vst.msk [vmem:[#allocation3 + $0x30] sm:$0xff] %vm13842_vm0, %v6588_v49  ;;  %7627 = vmatmul.mubr.bf16.gmra.mrb[212].mxu1 %v7435_v18  ;;  %7192 = vrot.lane.b32.xlu1 %v7170_v25, %s10420_s21  ;;  %vm13846_vm0 = vcmask 1048512   ;;  %v6357_v8 = vpack.c.bf16 %v6348_v45, %v13163_v58  ;;  %v7171_v25 = vpack.c.bf16 %v13224_v61, %v6277_v35  ;;  %v6136_v18 = vld [vmem:[#allocation2 + $0x8f] sm:$0xff]  ;;  %v7232_v35 = vld [vmem:[#allocation2 + $0x9a] sm:$0xff] }
 0x5fd   :  { %v6093_v48 = vpop.permute.xlu0 %6092 }
 0x5fe   :  { %v6659_v15 = vpop.permute.xlu1 %6658  ;;  %6115 = vst.msk [vmem:[#allocation3 + $0x40] sm:$0xff] %vm2062_vm7, %v6093_v48  ;;  %v6145_v48 = vpack.c.bf16 %v6136_v18, %v6136_v18 }
 0x5ff   :  { %6682 = vst.msk [vmem:[#allocation3 + $0x30] sm:$0xff] %vm13843_vm11, %v6659_v15  ;;  %6027 = vrot.lane.b32.xlu0 %v6002_v0, %s10417_s18  ;;  %vm13847_vm11 = vcmask 720512   ;;  %v7231_v0 = vld [vmem:[#allocation2 + $0x92] sm:$0xff] }
 0x600   :  { %7334 = vrot.lane.b32.xlu1 %v12810_v43, %s10421_s22  ;;  %v6946_v43 = vld [vmem:[#allocation2 + $0x7d] sm:$0xff] }
 0x601   :  { %v6730_v29 = vpop.permute.xlu0 %6729  ;;  %v6958_v59 = vpack.c.bf16 %v6947_v16, %v6946_v43  ;;  %v6949_v16 = vld [vmem:[#allocation2 + $0x95] sm:$0xff] }
 0x602   :  { %v6164_v28 = vpop.permute.xlu1 %6163  ;;  %6753 = vst.msk [vmem:[#allocation3 + $0x30] sm:$0xff] %vm13844_vm13, %v6730_v29  ;;  %vm13848_vm13 = vcmask 786112   ;;  %v7242_v29 = vpack.c.bf16 %v7231_v0, %v6348_v45  ;;  %v7162_v45 = vld [vmem:[#allocation2 + $0xa1] sm:$0xff] }
 0x603   :  { %6186 = vst.msk [vmem:[#allocation3 + $0x40] sm:$0xff] %vm2135_vm8, %v6164_v28  ;;  %7263 = vrot.lane.b32.xlu0 %v7241_v4, %s10419_s20 }
 0x604   :  { %6910 = vrot.lane.b32.xlu1 %v6887_v53, %s10416_s17 }
 0x605   :  { %v6235_v11 = vpop.permute.xlu0 %6234 }
 0x606   :  { %v6306_v33 = vpop.permute.xlu1 %6305  ;;  %6257 = vst.msk [vmem:[#allocation3 + $0x40] sm:$0xff] %vm2208_vm9, %v6235_v11 }
 0x607   :  { %6328 = vst.msk [vmem:[#allocation3 + $0x40] sm:$0xff] %vm2281_vm10, %v6306_v33  ;;  %7405 = vrot.lane.b32.xlu0 %v6887_v53, %s10423_s24  ;;  %v6948_v33 = vld [vmem:[#allocation2 + $0x8d] sm:$0xff] }
 0x608   :  { %6981 = vrot.lane.b32.xlu1 %v6958_v59, %s10418_s19 }
 0x609   :  { %v7118_v39 = vpop.permute.xlu0 %7117 }
 0x60a   :  { %v5811_v17 = vpop.permute.xlu1 %5810  ;;  %7142 = vst.msk [vmem:[#allocation3 + $0x28] sm:$0xff] %vm1989_vm6, %v7118_v39 }
 0x60b   :  { %5832 = vst.msk [vmem:[#allocation3 + $0x50] sm:$0xff] %vm1770_vm3, %v5811_v17  ;;  %7052 = vrot.lane.b32.xlu0 %v7029_v50, %s10415_s16 }
 0x60c   :  { %6804 = vrot.lane.b32.xlu1 %v7241_v4, %s13817_s3 }
 0x60d   :  { %v6377_v51 = vpop.permute.xlu0 %6376 }
 0x60e   :  { %v5953_v5 = vpop.permute.xlu1 %5952  ;;  %6399 = vst.msk [vmem:[#allocation3 + $0x40] sm:$0xff] %vm13845_vm1, %v6377_v51  ;;  %vm13849_vm1 = vcmask 851712   ;;  %v6632_v51 = vld [vmem:[#allocation2 + $0x97] sm:$0xff] }
 0x60f   :  { %6522 = vrot.lane.b32.xlu0 %v6958_v59, %s13808_s2  ;;  %v7020_v59 = vld [vmem:[#allocation2 + $0x96] sm:$0xff]  ;;  %v6641_v36 = vpack.c.bf16 %v6632_v51, %v6136_v18  ;;  %v7092_v51 = vld [vmem:[#allocation2 + $0xa8] sm:$0xff] }
 0x610   :  { %6451 = vrot.lane.b32.xlu1 %v6887_v53, %s13810_s28  ;;  %v6877_v53 = vld [vmem:[#allocation2 + $0x8c] sm:$0xff]  ;;  %v7030_v39 = vpack.c.bf16 %v7020_v59, %v6065_v30 }
 0x611   :  { %v5882_v52 = vpop.permute.xlu0 %5881  ;;  %v6888_v4 = vpack.c.bf16 %v6878_v3, %v6877_v53  ;;  %v7023_v3 = vld [vmem:[#allocation2 + $0xae] sm:$0xff]  ;;  %v6951_v53 = vld [vmem:[#allocation2 + $0xa5] sm:$0xff] }
 0x612   :  { %v7189_v56 = vpop.permute.xlu1 %7188  ;;  %5903 = vst.msk [vmem:[#allocation3 + $0x50] sm:$0xff] %vm1843_vm4, %v5882_v52 }
 0x613   :  { %7213 = vst.msk [vmem:[#allocation3 + $0x28] sm:$0xff] %vm2062_vm7, %v7189_v56  ;;  %6664 = vrot.lane.b32.xlu0 %v6640_v27, %s13773_s26  ;;  %v6703_v56 = vld [vmem:[#allocation2 + $0x98] sm:$0xff] }
 0x614   :  { %5974 = vst.msk [vmem:[#allocation3 + $0x50] sm:$0xff] %vm1916_vm5, %v5953_v5  ;;  %6593 = vrot.lane.b32.xlu1 %v7029_v50, %s13774_s29 }
 0x615   :  { %v6024_v31 = vpop.permute.xlu0 %6023 }
 0x616   :  { %v7331_v38 = vpop.permute.xlu1 %7330  ;;  %6045 = vst.msk [vmem:[#allocation3 + $0x50] sm:$0xff] %vm1989_vm6, %v6024_v31 }
 0x617   :  { %6169 = vrot.lane.b32.xlu0 %v6640_v27, %s10419_s20  ;;  %v6287_v27 = vpack.c.bf16 %v13224_v61, %v13224_v61  ;;  %v13286_v61 = vld [vmem:[#allocation2 + $0xac] sm:$0xff] }
 0x618   :  { %6098 = vrot.lane.b32.xlu1 %v7029_v50, %s10420_s21  ;;  %v6890_v18 = vpack.c.bf16 %v13286_v61, %v13286_v61 }
 0x619   :  { %v7260_v26 = vpop.permute.xlu0 %7259 }
 0x61a   :  { %v6907_v21 = vpop.permute.xlu1 %6906  ;;  %7284 = vst.msk [vmem:[#allocation3 + $0x28] sm:$0xff] %vm2135_vm8, %v7260_v26 }
 0x61b   :  { %6930 = vst.msk [vmem:[#allocation3 + $0x38] sm:$0xff] %vm1770_vm3, %v6907_v21  ;;  %5816 = vrot.lane.b32.xlu0 %v5790_v55, %s10416_s17  ;;  %v6358_v21 = vpack.c.bf16 %v7231_v0, %v7231_v0  ;;  %v7101_v55 = vpack.c.bf16 %v13264_v24, %v6703_v56 }
 0x61c   :  { %7355 = vst.msk [vmem:[#allocation3 + $0x28] sm:$0xff] %vm2208_vm9, %v7331_v38  ;;  %6735 = vrot.lane.b32.xlu1 %v6711_v42, %s13775_s14  ;;  %v6712_v38 = vpack.c.bf16 %v6703_v56, %v13213_v2  ;;  %v7022_v2 = vld [vmem:[#allocation2 + $0xa6] sm:$0xff] }
 0x61d   :  { %v7402_v10 = vpop.permute.xlu0 %7401 }
 0x61e   :  { %v6978_v54 = vpop.permute.xlu1 %6977  ;;  %7426 = vst.msk [vmem:[#allocation3 + $0x28] sm:$0xff] %vm2281_vm10, %v7402_v10  ;;  %v6420_v10 = vld [vmem:[#allocation2 + $0x9c] sm:$0xff] }
 0x61f   :  { %7001 = vst.msk [vmem:[#allocation3 + $0x38] sm:$0xff] %vm1843_vm4, %v6978_v54  ;;  %5958 = vrot.lane.b32.xlu0 %v5932_v41, %s10415_s16  ;;  %v7233_v54 = vld [vmem:[#allocation2 + $0xa2] sm:$0xff]  ;;  %v6429_v41 = vpack.c.bf16 %v6420_v10, %v6420_v10 }
 0x620   :  { %6240 = vrot.lane.b32.xlu1 %v6711_v42, %s10421_s22 }
 0x621   :  { %v7049_v46 = vpop.permute.xlu0 %7048 }
 0x622   :  { %v6801_v12 = vpop.permute.xlu1 %6800  ;;  %7072 = vst.msk [vmem:[#allocation3 + $0x38] sm:$0xff] %vm1916_vm5, %v7049_v46 }
 0x623   :  { %6824 = vst.msk [vmem:[#allocation3 + $0x30] sm:$0xff] %vm13846_vm0, %v6801_v12  ;;  %6311 = vrot.lane.b32.xlu0 %v6286_v63, %s10423_s24  ;;  %vm13850_vm0 = vcmask 917312   ;;  %v13273_v12 = vpack.c.bf16 %v7233_v54, %v7232_v35  ;;  %v7375_v63 = vld [vmem:[#allocation2 + $0xa4] sm:$0xff] }
 0x624   :  { %5887 = vrot.lane.b32.xlu1 %v5861_v20, %s10418_s19  ;;  %v6491_v20 = vld [vmem:[#allocation2 + $0x9d] sm:$0xff] }
 0x625   :  { %v6519_v57 = vpop.permute.xlu0 %6518  ;;  %v7438_v7 = vld [vmem:[#allocation3 + $0x28] sm:$0xff] }
 0x626   :  { %v6448_v6 = vpop.permute.xlu1 %6447  ;;  %7634 = vmatprep.mubr.bf16.mxu1 %v7438_v7 }
 0x627   :  { %6470 = vst.msk [vmem:[#allocation3 + $0x40] sm:$0xff] %vm13847_vm11, %v6448_v6  ;;  %7635 = vmatmul.mubr.bf16.gmra.mrb[216].mxu1 %v7437_v62  ;;  %6100 = vrot.lane.b32.xlu0 %v6074_v13, %s10420_s21  ;;  %vm13851_vm11 = vcmask 982912   ;;  %v6500_v6 = vpack.c.bf16 %v6491_v20, %v6491_v20  ;;  %v7385_v62 = vpack.c.bf16 %v7375_v63, %v6420_v10  ;;  %v6562_v13 = vld [vmem:[#allocation2 + $0x9e] sm:$0xff] }
 0x628   :  { %6541 = vst.msk [vmem:[#allocation3 + $0x40] sm:$0xff] %vm13848_vm13, %v6519_v57  ;;  %6029 = vrot.lane.b32.xlu1 %v6003_v9, %s10417_s18  ;;  %vm13852_vm13 = vcmask 654912   ;;  %v7236_v10 = vld [vmem:[#allocation2 + $0xba] sm:$0xff] }
 0x629   :  { %v6661_v34 = vpop.permute.xlu0 %6660  ;;  %v7245_v35 = vpack.c.bf16 %v7236_v10, %v7236_v10 }
 0x62a   :  { %v6590_v22 = vpop.permute.xlu1 %6589  ;;  %v7439_v9 = vld [vmem:[#allocation3 + $0x30] sm:$0xff] }
 0x62b   :  { %6612 = vst.msk [vmem:[#allocation3 + $0x40] sm:$0xff] %vm13849_vm1, %v6590_v22  ;;  %6242 = vrot.lane.b32.xlu0 %v6216_v40, %s10421_s22  ;;  %vm13853_vm1 = vcmask 1048512   ;;  %v6571_v22 = vpack.c.bf16 %v6562_v13, %v6562_v13  ;;  %v7031_v40 = vpack.c.bf16 %v7022_v2, %v6562_v13 }
 0x62c   :  { %6683 = vst.msk [vmem:[#allocation3 + $0x40] sm:$0xff] %vm13850_vm0, %v6661_v34  ;;  %7123 = vrot.lane.b32.xlu1 %v7100_v14, %s10417_s18  ;;  %vm13854_vm0 = vcmask 720512  }
 0x62d   :  { %v6166_v19 = vpop.permute.xlu0 %6165 }
 0x62e   :  { %v6095_v49 = vpop.permute.xlu1 %6094 }
 0x62f   :  { %6116 = vst.msk [vmem:[#allocation3 + $0x50] sm:$0xff] %vm2062_vm7, %v6095_v49  ;;  %7194 = vrot.lane.b32.xlu0 %v7171_v25, %s10420_s21 }
 0x630   :  { %6187 = vst.msk [vmem:[#allocation3 + $0x50] sm:$0xff] %vm2135_vm8, %v6166_v19  ;;  %6382 = vrot.lane.b32.xlu1 %v6357_v8, %s13776_s15  ;;  %v7161_v19 = vld [vmem:[#allocation2 + $0x99] sm:$0xff] }
 0x631   :  { %v6308_v15 = vpop.permute.xlu0 %6307  ;;  %v7172_v8 = vpack.c.bf16 %v7162_v45, %v7161_v19  ;;  %v8859_v19 = vld.sshfl [vmem:[#allocation5 + $0x24] sm:$0x1 pattern:$0x76325410] }
 0x632   :  { %v6732_v23 = vpop.permute.xlu1 %6731 }
 0x633   :  { %6754 = vst.msk [vmem:[#allocation3 + $0x40] sm:$0xff] %vm13851_vm11, %v6732_v23  ;;  %7336 = vrot.lane.b32.xlu0 %v12828_v60, %s10421_s22  ;;  %v6959_v60 = vpack.c.bf16 %v6949_v16, %v6948_v33  ;;  %vm13855_vm11 = vcmask 786112   ;;  %v6952_v23 = vld [vmem:[#allocation2 + $0xad] sm:$0xff] }
 0x634   :  { %6171 = vrot.lane.b32.xlu1 %v6145_v48, %s10419_s20  ;;  %v6961_v0 = vpack.c.bf16 %v6952_v23, %v6952_v23  ;;  %v8853_v23 = vld.sshfl [vmem:[#allocation5 + $0x4] sm:$0x1 pattern:$0x76325410] }
 0x635   :  { %v5813_v28 = vpop.permute.xlu0 %5812 }
 0x636   :  { %v6237_v58 = vpop.permute.xlu1 %6236  ;;  %5833 = vst.msk [vmem:[#allocation3 + $0x60] sm:$0xff] %vm1770_vm3, %v5813_v28 }
 0x637   :  { %6258 = vst.msk [vmem:[#allocation3 + $0x50] sm:$0xff] %vm2208_vm9, %v6237_v58  ;;  %6912 = vrot.lane.b32.xlu0 %v6888_v4, %s10416_s17 }
 0x638   :  { %6329 = vst.msk [vmem:[#allocation3 + $0x50] sm:$0xff] %vm2281_vm10, %v6308_v15  ;;  %7265 = vrot.lane.b32.xlu1 %v7242_v29, %s10419_s20 }
 0x639   :  { %v5955_v11 = vpop.permute.xlu0 %5954 }
 0x63a   :  { %v7120_v43 = vpop.permute.xlu1 %7119 }
 0x63b   :  { %7143 = vst.msk [vmem:[#allocation3 + $0x38] sm:$0xff] %vm1989_vm6, %v7120_v43  ;;  %6983 = vrot.lane.b32.xlu0 %v6959_v60, %s10418_s19  ;;  %v7163_v43 = vld [vmem:[#allocation2 + $0xa9] sm:$0xff] }
 0x63c   :  { %7407 = vrot.lane.b32.xlu1 %v6888_v4, %s10423_s24 }
 0x63d   :  { %v7191_v17 = vpop.permute.xlu0 %7190 }
 0x63e   :  { %v6379_v47 = vpop.permute.xlu1 %6378  ;;  %7214 = vst.msk [vmem:[#allocation3 + $0x38] sm:$0xff] %vm2062_vm7, %v7191_v17 }
 0x63f   :  { %6400 = vst.msk [vmem:[#allocation3 + $0x50] sm:$0xff] %vm13852_vm13, %v6379_v47  ;;  %6806 = vrot.lane.b32.xlu0 %v7242_v29, %s13817_s3  ;;  %vm13856_vm13 = vcmask 851712   ;;  %v7032_v29 = vpack.c.bf16 %v7023_v3, %v7023_v3  ;;  %v8867_v3 = vld.sshfl [vmem:[#allocation5 + $0x5a] sm:$0x1 pattern:$0x76325410] }
 0x640   :  { %7054 = vrot.lane.b32.xlu1 %v7030_v39, %s10415_s16 }
 0x641   :  { %v7333_v50 = vpop.permute.xlu0 %7332 }
 0x642   :  { %v5884_v44 = vpop.permute.xlu1 %5883 }
 0x643   :  { %5904 = vst.msk [vmem:[#allocation3 + $0x60] sm:$0xff] %vm1843_vm4, %v5884_v44  ;;  %6453 = vrot.lane.b32.xlu0 %v6888_v4, %s13810_s28  ;;  %v7164_v4 = vld [vmem:[#allocation2 + $0xb1] sm:$0xff] }
 0x644   :  { %5975 = vst.msk [vmem:[#allocation3 + $0x60] sm:$0xff] %vm1916_vm5, %v5955_v11  ;;  %6524 = vrot.lane.b32.xlu1 %v6959_v60, %s13808_s2  ;;  %v7173_v33 = vpack.c.bf16 %v7164_v4, %v7163_v43  ;;  %v7306_v60 = vld [vmem:[#allocation2 + $0xb3] sm:$0xff]  ;;  %v8868_v43 = vld.sshfl [vmem:[#allocation5 + $0x5c] sm:$0x1 pattern:$0x76325410] }
 0x645   :  { %v6909_v52 = vpop.permute.xlu0 %6908  ;;  %v7093_v44 = vld [vmem:[#allocation2 + $0xb0] sm:$0xff] }
 0x646   :  { %v6026_v5 = vpop.permute.xlu1 %6025  ;;  %6931 = vst.msk [vmem:[#allocation3 + $0x48] sm:$0xff] %vm1770_vm3, %v6909_v52 }
 0x647   :  { %6046 = vst.msk [vmem:[#allocation3 + $0x60] sm:$0xff] %vm1989_vm6, %v6026_v5  ;;  %6595 = vrot.lane.b32.xlu0 %v7030_v39, %s13774_s29  ;;  %v10387_v39 = vld [vmem:[#allocation2 + $0xab] sm:$0xff] }
 0x648   :  { %6666 = vrot.lane.b32.xlu1 %v6641_v36, %s13773_s26  ;;  %v7315_v17 = vpack.c.bf16 %v7306_v60, %v10387_v39  ;;  %v7102_v36 = vpack.c.bf16 %v7093_v44, %v7092_v51  ;;  %v13364_v39 = vld [vmem:[%s13724_s4] ss:$0 sm:$0xff] }
 0x649   :  { %v6980_v31 = vpop.permute.xlu0 %6979 }
 0x64a   :  { %v7262_v37 = vpop.permute.xlu1 %7261  ;;  %7002 = vst.msk [vmem:[#allocation3 + $0x48] sm:$0xff] %vm1843_vm4, %v6980_v31  ;;  %v7234_v31 = vld [vmem:[#allocation2 + $0xaa] sm:$0xff] }
 0x64b   :  { %7285 = vst.msk [vmem:[#allocation3 + $0x38] sm:$0xff] %vm2135_vm8, %v7262_v37  ;;  %6737 = vrot.lane.b32.xlu0 %v6712_v38, %s13775_s14  ;;  %v7235_v37 = vld [vmem:[#allocation2 + $0xb2] sm:$0xff] }
 0x64c   :  { %7356 = vst.msk [vmem:[#allocation3 + $0x38] sm:$0xff] %vm2208_vm9, %v7333_v50  ;;  %6313 = vrot.lane.b32.xlu1 %v6287_v27, %s10423_s24  ;;  %v7094_v50 = vld [vmem:[#allocation2 + $0xb8] sm:$0xff] }
 0x64d   :  { %v6803_v42 = vpop.permute.xlu0 %6802  ;;  %v7103_v56 = vpack.c.bf16 %v7094_v50, %v7094_v50  ;;  %v7165_v27 = vld [vmem:[#allocation2 + $0xb9] sm:$0xff] }
 0x64e   :  { %v7404_v26 = vpop.permute.xlu1 %7403  ;;  %6825 = vst.msk [vmem:[#allocation3 + $0x40] sm:$0xff] %vm13853_vm1, %v6803_v42  ;;  %vm13857_vm1 = vcmask 917312   ;;  %v7174_v42 = vpack.c.bf16 %v7165_v27, %v7165_v27  ;;  %v8869_v27 = vld.sshfl [vmem:[#allocation5 + $0x70] sm:$0x1 pattern:$0x76325410] }
 0x64f   :  { %7427 = vst.msk [vmem:[#allocation3 + $0x38] sm:$0xff] %vm2281_vm10, %v7404_v26  ;;  %7125 = vrot.lane.b32.xlu0 %v7101_v55, %s10417_s18  ;;  %v7244_v26 = vpack.c.bf16 %v7235_v37, %v7234_v31  ;;  %v7377_v55 = vld [vmem:[#allocation2 + $0xb4] sm:$0xff]  ;;  %v8865_v37 = vld.sshfl [vmem:[#allocation5 + $0x54] sm:$0x1 pattern:$0x76325410] }
 0x650   :  { %6384 = vrot.lane.b32.xlu1 %v6358_v21, %s13776_s15 }
 0x651   :  { %v6450_v46 = vpop.permute.xlu0 %6449 }
 0x652   :  { %v7051_v32 = vpop.permute.xlu1 %7050  ;;  %6471 = vst.msk [vmem:[#allocation3 + $0x50] sm:$0xff] %vm13854_vm0, %v6450_v46  ;;  %vm13858_vm0 = vcmask 982912   ;;  %v6633_v46 = vld [vmem:[#allocation2 + $0x9f] sm:$0xff] }
 0x653   :  { %7073 = vst.msk [vmem:[#allocation3 + $0x48] sm:$0xff] %vm1916_vm5, %v7051_v32  ;;  %7267 = vrot.lane.b32.xlu0 %v13273_v12, %s10419_s20  ;;  %v7386_v32 = vpack.c.bf16 %v7377_v55, %v13286_v61  ;;  %v6642_v63 = vpack.c.bf16 %v6633_v46, %v6633_v46  ;;  %v8856_v55 = vld.sshfl [vmem:[#allocation5 + $0x1c] sm:$0x1 pattern:$0x76325410] }
 0x654   :  { %6455 = vrot.lane.b32.xlu1 %v6429_v41, %s13810_s28  ;;  %v8857_v46 = vld.sshfl [vmem:[#allocation5 + $0x1e] sm:$0x1 pattern:$0x76325410] }
 0x655   :  { %v6592_v7 = vpop.permute.xlu0 %6591 }
 0x656   :  { %v6521_v30 = vpop.permute.xlu1 %6520  ;;  %v7440_v57 = vld [vmem:[#allocation3 + $0x38] sm:$0xff] }
 0x657   :  { %6542 = vst.msk [vmem:[#allocation3 + $0x50] sm:$0xff] %vm13855_vm11, %v6521_v30  ;;  %7642 = vmatprep.mubr.bf16.mxu1 %v7440_v57  ;;  %7409 = vrot.lane.b32.xlu0 %v7385_v62, %s10423_s24  ;;  %vm13859_vm11 = vcmask 654912  }
 0x658   :  { %6613 = vst.msk [vmem:[#allocation3 + $0x50] sm:$0xff] %vm13856_vm13, %v6592_v7  ;;  %7643 = vmatmul.mubr.bf16.gmra.mrb[220].mxu1 %v7439_v9  ;;  %6526 = vrot.lane.b32.xlu1 %v6500_v6, %s13808_s2  ;;  %vm13860_vm13 = vcmask 1048512   ;;  %v7378_v6 = vld [vmem:[#allocation2 + $0xbc] sm:$0xff]  ;;  %v6713_v9 = vpack.c.bf16 %v13264_v24, %v13264_v24 }
 0x659   :  { %v6097_v14 = vpop.permute.xlu0 %6096  ;;  %v7387_v2 = vpack.c.bf16 %v7378_v6, %v7378_v6  ;;  %v8852_v24 = vld.sshfl [vmem:[#allocation5 + $0x2] sm:$0x1 pattern:$0x76325410] }
 0x65a   :  { %v6663_v34 = vpop.permute.xlu1 %6662  ;;  %6117 = vst.msk [vmem:[#allocation3 + $0x60] sm:$0xff] %vm2062_vm7, %v6097_v14  ;;  %v6784_v14 = vpack.c.bf16 %v7234_v31, %v7234_v31 }
 0x65b   :  { %6684 = vst.msk [vmem:[#allocation3 + $0x50] sm:$0xff] %vm13857_vm1, %v6663_v34  ;;  %7056 = vrot.lane.b32.xlu0 %v7031_v40, %s10415_s16  ;;  %vm13861_vm1 = vcmask 720512   ;;  %v7441_v34 = vld [vmem:[#allocation3 + $0x40] sm:$0xff] }
 0x65c   :  { %6597 = vrot.lane.b32.xlu1 %v6571_v22, %s13774_s29 }
 0x65d   :  { %v6734_v25 = vpop.permute.xlu0 %6733 }
 0x65e   :  { %v6168_v49 = vpop.permute.xlu1 %6167  ;;  %6755 = vst.msk [vmem:[#allocation3 + $0x50] sm:$0xff] %vm13858_vm0, %v6734_v25  ;;  %vm13862_vm0 = vcmask 786112  }
 0x65f   :  { %6188 = vst.msk [vmem:[#allocation3 + $0x60] sm:$0xff] %vm2135_vm8, %v6168_v49  ;;  %6916 = vrot.lane.b32.xlu0 %v6890_v18, %s10416_s17  ;;  %v8866_v49 = vld.sshfl [vmem:[#allocation5 + $0x58] sm:$0x1 pattern:$0x76325410] }
 0x660   :  { %7196 = vrot.lane.b32.xlu1 %v7172_v8, %s10420_s21  ;;  %v8860_v18 = vld.sshfl [vmem:[#allocation5 + $0x38] sm:$0x1 pattern:$0x76325410] }
 0x661   :  { %v6239_v48 = vpop.permute.xlu0 %6238 }
 0x662   :  { %v6310_v15 = vpop.permute.xlu1 %6309  ;;  %6259 = vst.msk [vmem:[#allocation3 + $0x60] sm:$0xff] %vm2208_vm9, %v6239_v48 }
 0x663   :  { %6330 = vst.msk [vmem:[#allocation3 + $0x60] sm:$0xff] %vm2281_vm10, %v6310_v15  ;;  %6987 = vrot.lane.b32.xlu0 %v6961_v0, %s10418_s19  ;;  %v8861_v0 = vld.sshfl [vmem:[#allocation5 + $0x3a] sm:$0x1 pattern:$0x76325410] }
 0x664   :  { %7338 = vrot.lane.b32.xlu1 %v12853_v1, %s10421_s22  ;;  %v6960_v1 = vpack.c.bf16 %v6951_v53, %v6491_v20  ;;  %v8854_v53 = vld.sshfl [vmem:[#allocation5 + $0x6] sm:$0x1 pattern:$0x76325410] }
 0x665   :  { %v7122_v28 = vpop.permute.xlu0 %7121 }
 0x666   :  { %v5815_v58 = vpop.permute.xlu1 %5814  ;;  %7144 = vst.msk [vmem:[#allocation3 + $0x48] sm:$0xff] %vm1989_vm6, %v7122_v28 }
 0x667   :  { %5834 = vst.msk [vmem:[#allocation3 + $0x70] sm:$0xff] %vm1770_vm3, %v5815_v58  ;;  %7058 = vrot.lane.b32.xlu0 %v7032_v29, %s10415_s16  ;;  %v8862_v29 = vld.sshfl [vmem:[#allocation5 + $0x3c] sm:$0x1 pattern:$0x76325410] }
 0x668   :  { %6914 = vrot.lane.b32.xlu1 %v7385_v62, %s10416_s17 }
 0x669   :  { %v6381_v11 = vpop.permute.xlu0 %6380 }
 0x66a   :  { %v5957_v16 = vpop.permute.xlu1 %5956  ;;  %6401 = vst.msk [vmem:[#allocation3 + $0x60] sm:$0xff] %vm13859_vm11, %v6381_v11  ;;  %vm13863_vm11 = vcmask 851712  }
 0x66b   :  { %7198 = vrot.lane.b32.xlu0 %v7173_v33, %s10420_s21  ;;  %v8855_v33 = vld.sshfl [vmem:[#allocation5 + $0x8] sm:$0x1 pattern:$0x76325410] }
 0x66c   :  { %6985 = vrot.lane.b32.xlu1 %v6960_v1, %s10418_s19  ;;  %v8863_v1 = vld.sshfl [vmem:[#allocation5 + $0x3e] sm:$0x1 pattern:$0x76325410] }
 0x66d   :  { %v5886_v47 = vpop.permute.xlu0 %5885 }
 0x66e   :  { %v7193_v59 = vpop.permute.xlu1 %7192  ;;  %5905 = vst.msk [vmem:[#allocation3 + $0x70] sm:$0xff] %vm1843_vm4, %v5886_v47  ;;  %v8864_v47 = vld.sshfl [vmem:[#allocation5 + $0x40] sm:$0x1 pattern:$0x76325410] }
 0x66f   :  { %7215 = vst.msk [vmem:[#allocation3 + $0x48] sm:$0xff] %vm2062_vm7, %v7193_v59  ;;  %7340 = vrot.lane.b32.xlu0 %v7315_v17, %s10421_s22 }
 0x670   :  { %6808 = vrot.lane.b32.xlu1 %v13273_v12, %s13817_s3  ;;  %5976 = vst.msk [vmem:[#allocation3 + $0x70] sm:$0xff] %vm1916_vm5, %v5957_v16  ;;  %v7307_v12 = vld [vmem:[#allocation2 + $0xbb] sm:$0xff] }
 0x671   :  { %v6028_v52 = vpop.permute.xlu0 %6027  ;;  %v7316_v57 = vpack.c.bf16 %v7307_v12, %v7307_v12 }
 0x672   :  { %v7335_v5 = vpop.permute.xlu1 %7334  ;;  %6047 = vst.msk [vmem:[#allocation3 + $0x70] sm:$0xff] %vm1989_vm6, %v6028_v52 }
 0x673   :  { %7129 = vrot.lane.b32.xlu0 %v7103_v56, %s10417_s18 }
 0x674   :  { %7127 = vrot.lane.b32.xlu1 %v7102_v36, %s10417_s18 }
 0x675   :  { %v7264_v21 = vpop.permute.xlu0 %7263 }
 0x676   :  { %v6911_v38 = vpop.permute.xlu1 %6910  ;;  %7286 = vst.msk [vmem:[#allocation3 + $0x48] sm:$0xff] %vm2135_vm8, %v7264_v21 }
 0x677   :  { %6932 = vst.msk [vmem:[#allocation3 + $0x58] sm:$0xff] %vm1770_vm3, %v6911_v38  ;;  %7200 = vrot.lane.b32.xlu0 %v7174_v42, %s10420_s21 }
 0x678   :  { %7269 = vrot.lane.b32.xlu1 %v7244_v26, %s10419_s20  ;;  %7357 = vst.msk [vmem:[#allocation3 + $0x48] sm:$0xff] %vm2208_vm9, %v7335_v5 }
 0x679   :  { %v7406_v41 = vpop.permute.xlu0 %7405 }
 0x67a   :  { %v6982_v54 = vpop.permute.xlu1 %6981  ;;  %7428 = vst.msk [vmem:[#allocation3 + $0x48] sm:$0xff] %vm2281_vm10, %v7406_v41 }
 0x67b   :  { %7003 = vst.msk [vmem:[#allocation3 + $0x58] sm:$0xff] %vm1843_vm4, %v6982_v54  ;;  %7271 = vrot.lane.b32.xlu0 %v7245_v35, %s10419_s20 }
 0x67c   :  { %7411 = vrot.lane.b32.xlu1 %v7386_v32, %s10423_s24  ;;  %v8870_v32 = vld.sshfl [vmem:[#allocation5 + $0x72] sm:$0x1 pattern:$0x76325410] }
 0x67d   :  { %v7053_v30 = vpop.permute.xlu0 %7052 }
 0x67e   :  { %v6805_v20 = vpop.permute.xlu1 %6804  ;;  %7074 = vst.msk [vmem:[#allocation3 + $0x58] sm:$0xff] %vm1916_vm5, %v7053_v30 }
 0x67f   :  { %6826 = vst.msk [vmem:[#allocation3 + $0x50] sm:$0xff] %vm13860_vm13, %v6805_v20  ;;  %7342 = vrot.lane.b32.xlu0 %v7316_v57, %s10421_s22  ;;  %vm13864_vm13 = vcmask 917312  }
 0x680   :  { %6668 = vrot.lane.b32.xlu1 %v6642_v63, %s13773_s26  ;;  %v8871_v63 = vld.sshfl [vmem:[#allocation5 + $0x74] sm:$0x1 pattern:$0x76325410] }
 0x681   :  { %v6523_v62 = vpop.permute.xlu0 %6522  ;;  %v7442_v13 = vld [vmem:[#allocation3 + $0x48] sm:$0xff] }
 0x682   :  { %v6452_v7 = vpop.permute.xlu1 %6451  ;;  %7650 = vmatprep.mubr.bf16.mxu1 %v7442_v13 }
 0x683   :  { %6472 = vst.msk [vmem:[#allocation3 + $0x60] sm:$0xff] %vm13861_vm1, %v6452_v7  ;;  %7651 = vmatmul.mubr.bf16.gmra.mrb[224].mxu1 %v7441_v34  ;;  %7413 = vrot.lane.b32.xlu0 %v7387_v2, %s10423_s24  ;;  %vm13865_vm1 = vcmask 982912   ;;  %v8872_v2 = vld.sshfl [vmem:[#allocation5 + $0x76] sm:$0x1 pattern:$0x76325410] }
 0x684   :  { %6543 = vst.msk [vmem:[#allocation3 + $0x60] sm:$0xff] %vm13862_vm0, %v6523_v62  ;;  %6739 = vrot.lane.b32.xlu1 %v6713_v9, %s13775_s14  ;;  %vm13866_vm0 = vcmask 126016   ;;  %v8858_v9 = vld.sshfl [vmem:[#allocation5 + $0x20] sm:$0x1 pattern:$0x76325410] }
 0x685   :  { %v6665_v40 = vpop.permute.xlu0 %6664 }
 0x686   :  { %v6594_v22 = vpop.permute.xlu1 %6593  ;;  %v7443_v7 = vld [vmem:[#allocation3 + $0x50] sm:$0xff] }
 0x687   :  { %6614 = vst.msk [vmem:[#allocation3 + $0x60] sm:$0xff] %vm13863_vm11, %v6594_v22  ;;  %3840 = vrot.lane.b32.xlu0 %v8852_v24, %s10418_s19  ;;  %vm13867_vm11 = vcmask 257216  }
 0x688   :  { %6685 = vst.msk [vmem:[#allocation3 + $0x60] sm:$0xff] %vm13864_vm13, %v6665_v40  ;;  %6810 = vrot.lane.b32.xlu1 %v6784_v14, %s13817_s3  ;;  %vm13868_vm13 = vcmask 322816  }
 0x689   :  { %v6170_v61 = vpop.permute.xlu0 %6169 }
 0x68a   :  { %v6099_v45 = vpop.permute.xlu1 %6098 }
 0x68b   :  { %6118 = vst.msk [vmem:[#allocation3 + $0x70] sm:$0xff] %vm2062_vm7, %v6099_v45  ;;  %4033 = vrot.lane.b32.xlu0 %v8866_v49, %s10418_s19 }
 0x68c   :  { %6189 = vst.msk [vmem:[#allocation3 + $0x70] sm:$0xff] %vm2135_vm8, %v6170_v61  ;;  %3940 = vrot.lane.b32.xlu1 %v8859_v19, %s10418_s19 }
 0x68d   :  { %v5817_v25 = vpop.permute.xlu0 %5816 }
 0x68e   :  { %v6736_v8 = vpop.permute.xlu1 %6735  ;;  %5835 = vst.msk [vmem:[#allocation3 + $0x80] sm:$0xf] %vm13866_vm0, %v5817_v25  ;;  %vm13870_vm0 = vcmask 654912  }
 0x68f   :  { %6756 = vst.msk [vmem:[#allocation3 + $0x60] sm:$0xff] %vm13865_vm1, %v6736_v8  ;;  %3854 = vrot.lane.b32.xlu0 %v8853_v23, %s10417_s18  ;;  %vm13869_vm1 = vcmask 388416  }
 0x690   :  { %3953 = vrot.lane.b32.xlu1 %v8860_v18, %s10417_s18 }
 0x691   :  { %v5959_v48 = vpop.permute.xlu0 %5958 }
 0x692   :  { %v6241_v15 = vpop.permute.xlu1 %6240 }
 0x693   :  { %6260 = vst.msk [vmem:[#allocation3 + $0x70] sm:$0xff] %vm2208_vm9, %v6241_v15  ;;  %4046 = vrot.lane.b32.xlu0 %v8867_v3, %s10417_s18 }
 0x694   :  { %3966 = vrot.lane.b32.xlu1 %v8861_v0, %s10419_s20 }
 0x695   :  { %v6312_v28 = vpop.permute.xlu0 %6311 }
 0x696   :  { %v5888_v58 = vpop.permute.xlu1 %5887  ;;  %6331 = vst.msk [vmem:[#allocation3 + $0x70] sm:$0xff] %vm2281_vm10, %v6312_v28 }
 0x697   :  { %5906 = vst.msk [vmem:[#allocation3 + $0x80] sm:$0xf] %vm1852_vm14, %v5888_v58  ;;  %3868 = vrot.lane.b32.xlu0 %v8854_v53, %s10419_s20 }
 0x698   :  { %5977 = vst.msk [vmem:[#allocation3 + $0x80] sm:$0xf] %vm13867_vm11, %v5959_v48  ;;  %3979 = vrot.lane.b32.xlu1 %v8862_v29, %s10423_s24  ;;  %vm13871_vm11 = vcmask 454016  }
 0x699   :  { %v6101_v16 = vpop.permute.xlu0 %6100 }
 0x69a   :  { %v6030_v4 = vpop.permute.xlu1 %6029 }
 0x69b   :  { %6048 = vst.msk [vmem:[#allocation3 + $0x80] sm:$0xf] %vm13868_vm13, %v6030_v4  ;;  %4059 = vrot.lane.b32.xlu0 %v8868_v43, %s10419_s20  ;;  %vm13872_vm13 = vcmask 519616  }
 0x69c   :  { %6119 = vst.msk [vmem:[#allocation3 + $0x80] sm:$0xf] %vm13869_vm1, %v6101_v16  ;;  %3992 = vrot.lane.b32.xlu1 %v8863_v1, %s13810_s28  ;;  %vm13873_vm1 = vcmask 1048512  }
 0x69d   :  { %v6243_v60 = vpop.permute.xlu0 %6242 }
 0x69e   :  { %v7124_v11 = vpop.permute.xlu1 %7123  ;;  %v9408_v59 = vpop.f32.mrb[208].mxu1 }
 0x69f   :  { %7145 = vst.msk [vmem:[#allocation3 + $0x58] sm:$0xff] %vm1989_vm6, %v7124_v11  ;;  %v9409_v17 = vpop.f32.mrb[209].mxu1  ;;  %3882 = vrot.lane.b32.xlu0 %v8855_v33, %s10423_s24 }
 0x6a0   :  { %4005 = vrot.lane.b32.xlu1 %v8864_v47, %s13774_s29  ;;  %v9410_v44 = vadd.f32 %v9409_v17, %v9408_v59  ;;  %v9411_v50 = vpop.f32.mrb[210].mxu1 }
 0x6a1   :  { %v9412_v51 = vpop.f32.mrb[211].mxu1  ;;  %v7195_v56 = vpop.permute.xlu0 %7194 }
 0x6a2   :  { %v6383_v5 = vpop.permute.xlu1 %6382  ;;  %v13369_v36 = vadd.f32 %v9410_v44, %v13364_v39  ;;  %v9413_v52 = vadd.f32 %v9412_v51, %v9411_v50  ;;  %7216 = vst.msk [vmem:[#allocation3 + $0x58] sm:$0xff] %vm2062_vm7, %v7195_v56 }
 0x6a3   :  { %6402 = vst.msk [vmem:[#allocation3 + $0x70] sm:$0xff] %vm13870_vm0, %v6383_v5  ;;  %4072 = vrot.lane.b32.xlu0 %v8869_v27, %s10423_s24  ;;  %vm13874_vm0 = vcmask 720512  }
 0x6a4   :  { %4018 = vrot.lane.b32.xlu1 %v8865_v37, %s13775_s14  ;;  %v7691_v31 = vmax.f32 %v13369_v36, 0.0  ;;  %v13376_v38 = vadd.f32 %v9413_v52, %v13364_v39 }
 0x6a5   :  { %v7337_v42 = vpop.permute.xlu0 %7336 }
 0x6a6   :  { %v6172_v26 = vpop.permute.xlu1 %6171  ;;  %7709 = vst [vmem:[#allocation4] sm:$0xff] %v7691_v31  ;;  %v7692_v21 = vmax.f32 %v13376_v38, 0.0 }
 0x6a7   :  { %6190 = vst.msk [vmem:[#allocation3 + $0x80] sm:$0xf] %vm13871_vm11, %v6172_v26  ;;  %3896 = vrot.lane.b32.xlu0 %v8856_v55, %s13810_s28  ;;  %vm13875_vm11 = vcmask 786112  }
 0x6a8   :  { %6261 = vst.msk [vmem:[#allocation3 + $0x80] sm:$0xf] %vm13872_vm13, %v6243_v60  ;;  %7710 = vst [vmem:[#allocation4 + $0x8] sm:$0xff] %v7692_v21  ;;  %vm13876_vm13 = vcmask 851712  }
 0x6a9   :  { %v6913_v54 = vpop.permute.xlu0 %6912 }
 0x6aa   :  { %v7266_v10 = vpop.permute.xlu1 %7265  ;;  %6933 = vst.msk [vmem:[#allocation3 + $0x68] sm:$0xff] %vm1770_vm3, %v6913_v54 }
 0x6ab   :  { %7287 = vst.msk [vmem:[#allocation3 + $0x58] sm:$0xff] %vm2135_vm8, %v7266_v10  ;;  %4085 = vrot.lane.b32.xlu0 %v8870_v32, %s13810_s28 }
 0x6ac   :  { %7358 = vst.msk [vmem:[#allocation3 + $0x58] sm:$0xff] %vm2208_vm9, %v7337_v42 }
 0x6ad   :  { %v6984_v35 = vpop.permute.xlu0 %6983 }
 0x6ae   :  { %v7408_v41 = vpop.permute.xlu1 %7407  ;;  %7004 = vst.msk [vmem:[#allocation3 + $0x68] sm:$0xff] %vm1843_vm4, %v6984_v35 }
 0x6af   :  { %7429 = vst.msk [vmem:[#allocation3 + $0x58] sm:$0xff] %vm2281_vm10, %v7408_v41  ;;  %3910 = vrot.lane.b32.xlu0 %v8857_v46, %s13774_s29  ;;  %v7743_v33 = vld [vmem:[#allocation4 + $0x1] sm:$0xff] }
 0x6b0   :  { %v7759_v51 = vmax.f32 %v7691_v31, %v7743_v33 }
 0x6b1   :  { %v6807_v20 = vpop.permute.xlu0 %6806 }
 0x6b2   :  { %v7055_v12 = vpop.permute.xlu1 %7054  ;;  %6827 = vst.msk [vmem:[#allocation3 + $0x60] sm:$0xff] %vm13873_vm1, %v6807_v20  ;;  %vm13877_vm1 = vcmask 917312  }
 0x6b3   :  { %7075 = vst.msk [vmem:[#allocation3 + $0x68] sm:$0xff] %vm1916_vm5, %v7055_v12  ;;  %4098 = vrot.lane.b32.xlu0 %v8871_v63, %s13774_s29 }
 0x6b5   :  { %v6454_v6 = vpop.permute.xlu0 %6453 }
 0x6b6   :  { %v6525_v30 = vpop.permute.xlu1 %6524  ;;  %v7444_v57 = vld [vmem:[#allocation3 + $0x58] sm:$0xff]  ;;  %6473 = vst.msk [vmem:[#allocation3 + $0x70] sm:$0xff] %vm13874_vm0, %v6454_v6  ;;  %vm13878_vm0 = vcmask 982912  }
 0x6b7   :  { %7658 = vmatprep.mubr.bf16.mxu1 %v7444_v57  ;;  %6544 = vst.msk [vmem:[#allocation3 + $0x70] sm:$0xff] %vm13875_vm11, %v6525_v30  ;;  %3924 = vrot.lane.b32.xlu0 %v8858_v9, %s13775_s14  ;;  %vm13880_vm11 = vcmask 716416  }
 0x6b8   :  { %7659 = vmatmul.mubr.bf16.gmra.mrb[228].mxu1 %v7443_v7 }
 0x6b9   :  { %v6596_v13 = vpop.permute.xlu0 %6595  ;;  %v7445_v52 = vld [vmem:[#allocation3 + $0x60] sm:$0xff] }
 0x6ba   :  { %v6667_v62 = vpop.permute.xlu1 %6666  ;;  %6615 = vst.msk [vmem:[#allocation3 + $0x70] sm:$0xff] %vm13876_vm13, %v6596_v13  ;;  %vm13881_vm13 = vcmask 782016  }
 0x6bb   :  { %6686 = vst.msk [vmem:[#allocation3 + $0x70] sm:$0xff] %vm13877_vm1, %v6667_v62  ;;  %4111 = vrot.lane.b32.xlu0 %v8872_v2, %s13775_s14  ;;  %vm13882_vm1 = vcmask 847616  }
 0x6bd   :  { %v6738_v22 = vpop.permute.xlu0 %6737 }
 0x6be   :  { %v6314_v34 = vpop.permute.xlu1 %6313  ;;  %6757 = vst.msk [vmem:[#allocation3 + $0x70] sm:$0xff] %vm13878_vm0, %v6738_v22  ;;  %vm13884_vm0 = vcmask 257216  }
 0x6bf   :  { %6332 = vst.msk [vmem:[#allocation3 + $0x80] sm:$0xf] %vm2290_vm2, %v6314_v34 }
 0x6c1   :  { %v7126_v40 = vpop.permute.xlu0 %7125 }
 0x6c2   :  { %v6385_v14 = vpop.permute.xlu1 %6384  ;;  %7146 = vst.msk [vmem:[#allocation3 + $0x68] sm:$0xff] %vm1989_vm6, %v7126_v40 }
 0x6c3   :  { %6403 = vst.msk [vmem:[#allocation3 + $0x80] sm:$0xf] %vm13879_vm12, %v6385_v14  ;;  %vm13883_vm12 = vcmask 126016  }
 0x6c5   :  { %v7268_v45 = vpop.permute.xlu0 %7267 }
 0x6c6   :  { %v6456_v24 = vpop.permute.xlu1 %6455 }
 0x6c7   :  { %6474 = vst.msk [vmem:[#allocation3 + $0x80] sm:$0xf] %vm13880_vm11, %v6456_v24  ;;  %vm3871_vm11 = vcmask 516480  }
 0x6c9   :  { %v7410_v19 = vpop.permute.xlu0 %7409 }
 0x6ca   :  { %v6527_v61 = vpop.permute.xlu1 %6526 }
 0x6cb   :  { %6545 = vst.msk [vmem:[#allocation3 + $0x80] sm:$0xf] %vm13881_vm13, %v6527_v61  ;;  %vm3885_vm13 = vcmask 647680  }
 0x6cd   :  { %v7057_v8 = vpop.permute.xlu0 %7056 }
 0x6ce   :  { %v6598_v49 = vpop.permute.xlu1 %6597 }
 0x6cf   :  { %6616 = vst.msk [vmem:[#allocation3 + $0x80] sm:$0xf] %vm13882_vm1, %v6598_v49  ;;  %v9414_v25 = vpop.f32.mrb[212].mxu1  ;;  %vm3899_vm1 = vcmask 778880  }
 0x6d0   :  { %v9415_v18 = vpop.f32.mrb[213].mxu1 }
 0x6d1   :  { %v9416_v23 = vadd.f32 %v9415_v18, %v9414_v25  ;;  %v9417_v15 = vpop.f32.mrb[214].mxu1  ;;  %v6917_v28 = vpop.permute.xlu0 %6916 }
 0x6d2   :  { %v9418_v48 = vpop.f32.mrb[215].mxu1  ;;  %v7197_v0 = vpop.permute.xlu1 %7196  ;;  %6935 = vst.msk [vmem:[#allocation3 + $0x88] sm:$0xf] %vm13883_vm12, %v6917_v28  ;;  %vm3913_vm12 = vcmask 910080  }
 0x6d3   :  { %v7629_v3 = vadd.f32 %v9416_v23, %v13364_v39  ;;  %v9419_v58 = vadd.f32 %v9418_v48, %v9417_v15  ;;  %7217 = vst.msk [vmem:[#allocation3 + $0x68] sm:$0xff] %vm2062_vm7, %v7197_v0 }
 0x6d4   :  { %7288 = vst.msk [vmem:[#allocation3 + $0x68] sm:$0xff] %vm2135_vm8, %v7268_v45 }
 0x6d5   :  { %v7693_v29 = vmax.f32 %v7629_v3, 0.0  ;;  %v13415_v53 = vadd.f32 %v9419_v58, %v13364_v39  ;;  %v6988_v1 = vpop.permute.xlu0 %6987 }
 0x6d6   :  { %v7339_v4 = vpop.permute.xlu1 %7338  ;;  %7006 = vst.msk [vmem:[#allocation3 + $0x88] sm:$0xf] %vm1852_vm14, %v6988_v1  ;;  %vm13892_vm14 = vcmask 1044416  }
 0x6d7   :  { %7711 = vst [vmem:[#allocation4 + $0x10] sm:$0xff] %v7693_v29  ;;  %v7694_v16 = vmax.f32 %v13415_v53, 0.0  ;;  %7359 = vst.msk [vmem:[#allocation3 + $0x68] sm:$0xff] %vm2208_vm9, %v7339_v4 }
 0x6d8   :  { %7430 = vst.msk [vmem:[#allocation3 + $0x68] sm:$0xff] %vm2281_vm10, %v7410_v19 }
 0x6d9   :  { %7712 = vst [vmem:[#allocation4 + $0x18] sm:$0xff] %v7694_v16  ;;  %v7059_v11 = vpop.permute.xlu0 %7058 }
 0x6da   :  { %v6915_v43 = vpop.permute.xlu1 %6914  ;;  %7077 = vst.msk [vmem:[#allocation3 + $0x88] sm:$0xf] %vm13884_vm0, %v7059_v11  ;;  %vm3927_vm0 = vcmask 1041280  }
 0x6db   :  { %6934 = vst.msk [vmem:[#allocation3 + $0x78] sm:$0xff] %vm1770_vm3, %v6915_v43  ;;  %vm13885_vm3 = vcmask 1048512  }
 0x6dd   :  { %v7199_v44 = vpop.permute.xlu0 %7198 }
 0x6de   :  { %v6986_v60 = vpop.permute.xlu1 %6985  ;;  %v7775_v59 = vld [vmem:[#allocation4 + $0xe] sm:$0xff] }
 0x6df   :  { %v7791_v47 = vld [vmem:[#allocation4 + $0xf] sm:$0xff]  ;;  %7005 = vst.msk [vmem:[#allocation3 + $0x78] sm:$0xff] %vm1843_vm4, %v6986_v60  ;;  %v7446_v50 = vld [vmem:[#allocation3 + $0x68] sm:$0xff]  ;;  %vm13886_vm4 = vcmask 322816  }
 0x6e0   :  { %v7744_v17 = vld [vmem:[#allocation4 + $0x9] sm:$0xff]  ;;  %v7807_v5 = vmax.f32 %v7775_v59, %v7791_v47  ;;  %7076 = vst.msk [vmem:[#allocation3 + $0x78] sm:$0xff] %vm1916_vm5, %v7057_v8  ;;  %7666 = vmatprep.mubr.bf16.mxu1 %v7446_v50  ;;  %v7776_v56 = vld [vmem:[#allocation4 + $0x16] sm:$0xff]  ;;  %vm13887_vm5 = vcmask 388416  }
 0x6e1   :  { %v7792_v37 = vld [vmem:[#allocation4 + $0x17] sm:$0xff]  ;;  %7667 = vmatmul.mubr.bf16.gmra.mrb[232].mxu1 %v7445_v52  ;;  %v7760_v26 = vmax.f32 %v7692_v21, %v7744_v17  ;;  %v7341_v10 = vpop.permute.xlu0 %7340 }
 0x6e2   :  { %v7823_v27 = vmax.f32 %v7759_v51, %v7807_v5  ;;  %v7808_v42 = vmax.f32 %v7776_v56, %v7792_v37  ;;  %v6809_v55 = vpop.permute.xlu1 %6808 }
 0x6e3   :  { %6828 = vst.msk [vmem:[#allocation3 + $0x70] sm:$0xff] %vm13885_vm3, %v6809_v55 }
 0x6e4   :  { %7839 = vst [vmem:[#allocation5] sm:$0xff] %v7823_v27  ;;  %v7824_v36 = vmax.f32 %v7760_v26, %v7808_v42 }
 0x6e5   :  { %v7130_v54 = vpop.permute.xlu0 %7129 }
 0x6e6   :  { %7840 = vst [vmem:[#allocation5 + $0x8] sm:$0xff] %v7824_v36  ;;  %v7128_v31 = vpop.permute.xlu1 %7127  ;;  %7148 = vst.msk [vmem:[#allocation3 + $0x88] sm:$0xf] %vm13886_vm4, %v7130_v54 }
 0x6e7   :  { %7147 = vst.msk [vmem:[#allocation3 + $0x78] sm:$0xff] %vm1989_vm6, %v7128_v31  ;;  %vm13888_vm6 = vcmask 454016  }
 0x6e8   :  { %7218 = vst.msk [vmem:[#allocation3 + $0x78] sm:$0xff] %vm2062_vm7, %v7199_v44  ;;  %vm13889_vm7 = vcmask 913216  }
 0x6e9   :  { %v7201_v38 = vpop.permute.xlu0 %7200 }
 0x6ea   :  { %v7270_v32 = vpop.permute.xlu1 %7269  ;;  %7219 = vst.msk [vmem:[#allocation3 + $0x88] sm:$0xf] %vm13887_vm5, %v7201_v38  ;;  %v7447_v62 = vld [vmem:[#allocation3 + $0x70] sm:$0xff] }
 0x6eb   :  { %v9082_v41 = vld.sshfl [vmem:[#allocation5 + $0x2] sm:$0x1 pattern:$0x76325410]  ;;  %7289 = vst.msk [vmem:[#allocation3 + $0x78] sm:$0xff] %vm2135_vm8, %v7270_v32  ;;  %vm13890_vm8 = vcmask 519616  }
 0x6ec   :  { %7866 = vrot.lane.b32.xlu1 %v9082_v41, %s10418_s19  ;;  %v7855_v21 = vld [vmem:[#allocation5] sm:$0x1]  ;;  %7360 = vst.msk [vmem:[#allocation3 + $0x78] sm:$0xff] %vm2208_vm9, %v7341_v10  ;;  %vm13891_vm9 = vcmask 978816  }
 0x6ed   :  { %7856 = vst.msk [vmem:[#allocation6 + $0x1] sm:$0x1] %vm3829_vm15, %v7855_v21  ;;  %v9083_v46 = vld.sshfl [vmem:[#allocation5 + $0x4] sm:$0x1 pattern:$0x76325410]  ;;  %v7272_v12 = vpop.permute.xlu0 %7271 }
 0x6ee   :  { %v7412_v35 = vpop.permute.xlu1 %7411  ;;  %7290 = vst.msk [vmem:[#allocation3 + $0x88] sm:$0xf] %vm13888_vm6, %v7272_v12  ;;  %v9084_v63 = vld.sshfl [vmem:[#allocation5 + $0x6] sm:$0x1 pattern:$0x76325410] }
 0x6ef   :  { %7431 = vst.msk [vmem:[#allocation3 + $0x78] sm:$0xff] %vm2281_vm10, %v7412_v35  ;;  %v9085_v7 = vld.sshfl [vmem:[#allocation5 + $0x8] sm:$0x1 pattern:$0x76325410]  ;;  %vm3843_vm10 = vcmask 254080  }
 0x6f0   :  { %7879 = vrot.lane.b32.xlu1 %v9083_v46, %s10417_s18 }
 0x6f1   :  { %v7343_v30 = vpop.permute.xlu0 %7342 }
 0x6f2   :  { %v6669_v20 = vpop.permute.xlu1 %6668  ;;  %7361 = vst.msk [vmem:[#allocation3 + $0x88] sm:$0xf] %vm13890_vm8, %v7343_v30 }
 0x6f3   :  { %6687 = vst.msk [vmem:[#allocation3 + $0x80] sm:$0xf] %vm13889_vm7, %v6669_v20 }
 0x6f4   :  { %7892 = vrot.lane.b32.xlu1 %v9084_v63, %s10419_s20 }
 0x6f5   :  { %v7414_v9 = vpop.permute.xlu0 %7413 }
 0x6f6   :  { %v6740_v57 = vpop.permute.xlu1 %6739  ;;  %v7448_v6 = vld [vmem:[#allocation3 + $0x78] sm:$0xff]  ;;  %7432 = vst.msk [vmem:[#allocation3 + $0x88] sm:$0xf] %vm2290_vm2, %v7414_v9  ;;  %vm3857_vm2 = vcmask 385280  }
 0x6f7   :  { %6758 = vst.msk [vmem:[#allocation3 + $0x80] sm:$0xf] %vm13891_vm9, %v6740_v57  ;;  %7674 = vmatprep.mubr.bf16.mxu1 %v7448_v6 }
 0x6f8   :  { %7905 = vrot.lane.b32.xlu1 %v9085_v7, %s10423_s24  ;;  %7675 = vmatmul.mubr.bf16.gmra.mrb[236].mxu1 %v7447_v62 }
 0x6f9   :  { %v3841_v2 = vpop.permute.xlu0 %3840 }
 0x6fa   :  { %v6811_v13 = vpop.permute.xlu1 %6810  ;;  %v9420_v34 = vpop.f32.mrb[216].mxu1  ;;  %3844 = vst.msk [vmem:[#allocation6] sm:$0x1] %vm3843_vm10, %v3841_v2 }
 0x6fb   :  { %6829 = vst.msk [vmem:[#allocation3 + $0x80] sm:$0xf] %vm13892_vm14, %v6811_v13  ;;  %v9421_v22 = vpop.f32.mrb[217].mxu1 }
 0x6fc   :  { %v9422_v14 = vadd.f32 %v9421_v22, %v9420_v34  ;;  %v9423_v40 = vpop.f32.mrb[218].mxu1 }
 0x6fd   :  { %v9424_v24 = vpop.f32.mrb[219].mxu1  ;;  %v4034_v49 = vpop.permute.xlu0 %4033  ;;  %v7450_v8 = vld [vmem:[#allocation3 + $0x88] sm:$0xff] }
 0x6fe   :  { %v3941_v45 = vpop.permute.xlu1 %3940  ;;  %v13452_v61 = vadd.f32 %v9422_v14, %v13364_v39  ;;  %v9425_v19 = vadd.f32 %v9424_v24, %v9423_v40  ;;  %4036 = vst.msk [vmem:[#allocation6 + $0x4] sm:$0x1] %vm3843_vm10, %v4034_v49  ;;  %7682 = vmatprep.mubr.bf16.mxu1 %v7450_v8 }
 0x6ff   :  { %3943 = vst.msk [vmem:[#allocation6 + $0x2] sm:$0x1] %vm3843_vm10, %v3941_v45 }
 0x700   :  { %v7695_v25 = vmax.f32 %v13452_v61, 0.0  ;;  %v7640_v18 = vadd.f32 %v9425_v19, %v13364_v39 }
 0x701   :  { %v3855_v0 = vpop.permute.xlu0 %3854 }
 0x702   :  { %v3954_v23 = vpop.permute.xlu1 %3953  ;;  %v7449_v15 = vld [vmem:[#allocation3 + $0x80] sm:$0xff]  ;;  %7713 = vst [vmem:[#allocation4 + $0x20] sm:$0xff] %v7695_v25  ;;  %v7696_v48 = vmax.f32 %v7640_v18, 0.0  ;;  %3858 = vst.msk [vmem:[#allocation6] sm:$0x1] %vm3857_vm2, %v3855_v0 }
 0x703   :  { %3956 = vst.msk [vmem:[#allocation6 + $0x2] sm:$0x1] %vm3857_vm2, %v3954_v23  ;;  %7683 = vmatmul.mubr.bf16.gmra.mrb[240].mxu1 %v7449_v15 }
 0x704   :  { %7714 = vst [vmem:[#allocation4 + $0x28] sm:$0xff] %v7696_v48 }
 0x705   :  { %v4047_v58 = vpop.permute.xlu0 %4046 }
 0x706   :  { %v3967_v3 = vpop.permute.xlu1 %3966  ;;  %4049 = vst.msk [vmem:[#allocation6 + $0x4] sm:$0x1] %vm3857_vm2, %v4047_v58 }
 0x707   :  { %3969 = vst.msk [vmem:[#allocation6 + $0x2] sm:$0x1] %vm3871_vm11, %v3967_v3 }
 0x709   :  { %v7746_v29 = vld [vmem:[#allocation4 + $0x19] sm:$0xff]  ;;  %v3869_v4 = vpop.permute.xlu0 %3868 }
 0x70a   :  { %v3980_v28 = vpop.permute.xlu1 %3979  ;;  %3872 = vst.msk [vmem:[#allocation6] sm:$0x1] %vm3871_vm11, %v3869_v4  ;;  %v7762_v11 = vmax.f32 %v7694_v16, %v7746_v29  ;;  %v10328_v29 = vld [vmem:[%s13725_s5 + $0x40] sm:$0xff]  }
 0x70b   :  { %3982 = vst.msk [vmem:[#allocation6 + $0x2] sm:$0x1] %vm3885_vm13, %v3980_v28  ;;  %v7778_v1 = vld [vmem:[#allocation4 + $0x26] sm:$0xff]  ;;  %9462 = vmatprep.subr.bf16.mxu0 %v10328_v29  ;;  %v10343_v29 = vld [vmem:[%s13725_s5 + $0x90] sm:$0xff]  }
 0x70c   :  { %v7794_v43 = vld [vmem:[#allocation4 + $0x27] sm:$0xff] }
 0x70d   :  { %v7810_v33 = vmax.f32 %v7778_v1, %v7794_v43  ;;  %v4060_v59 = vpop.permute.xlu0 %4059  ;;  %v7747_v35 = vld [vmem:[#allocation4 + $0x21] sm:$0xff] }
 0x70e   :  { %v3993_v60 = vpop.permute.xlu1 %3992  ;;  %4062 = vst.msk [vmem:[#allocation6 + $0x4] sm:$0x1] %vm3871_vm11, %v4060_v59  ;;  %v7763_v20 = vmax.f32 %v7695_v25, %v7747_v35  ;;  %v10329_v4 = vld [vmem:[%s13725_s5] sm:$0xff]  }
 0x70f   :  { %3995 = vst.msk [vmem:[#allocation6 + $0x2] sm:$0x1] %vm3899_vm1, %v3993_v60  ;;  %v7826_v47 = vmax.f32 %v7762_v11, %v7810_v33  ;;  %9463 = vmatpush3.bf16.msra.mxu0 %v10329_v4  ;;  %v10344_v4 = vld [vmem:[%s13725_s5 + $0xd8] sm:$0xff]  }
 0x711   :  { %7842 = vst [vmem:[#allocation5 + $0x18] sm:$0xff] %v7826_v47  ;;  %v3883_v44 = vpop.permute.xlu0 %3882 }
 0x712   :  { %v4006_v17 = vpop.permute.xlu1 %4005  ;;  %3886 = vst.msk [vmem:[#allocation6] sm:$0x1] %vm3885_vm13, %v3883_v44 }
 0x713   :  { %4008 = vst.msk [vmem:[#allocation6 + $0x2] sm:$0x1] %vm3913_vm12, %v4006_v17 }
 0x715   :  { %v4073_v53 = vpop.permute.xlu0 %4072 }
 0x716   :  { %v4019_v50 = vpop.permute.xlu1 %4018  ;;  %4075 = vst.msk [vmem:[#allocation6 + $0x4] sm:$0x1] %vm3885_vm13, %v4073_v53 }
 0x717   :  { %4021 = vst.msk [vmem:[#allocation6 + $0x2] sm:$0x1] %vm3927_vm0, %v4019_v50 }
 0x718   :  { %v9086_v16 = vld.sshfl [vmem:[#allocation5 + $0x1c] sm:$0x1 pattern:$0x76325410] }
 0x719   :  { %7918 = vrot.lane.b32.xlu1 %v9086_v16, %s13810_s28  ;;  %v3897_v51 = vpop.permute.xlu0 %3896  ;;  %v9087_v5 = vld.sshfl [vmem:[#allocation5 + $0x1e] sm:$0x1 pattern:$0x76325410] }
 0x71a   :  { %3900 = vst.msk [vmem:[#allocation6] sm:$0x1] %vm3899_vm1, %v3897_v51 }
 0x71d   :  { %7931 = vrot.lane.b32.xlu1 %v9087_v5, %s13774_s29  ;;  %v4086_v52 = vpop.permute.xlu0 %4085 }
 0x71e   :  { %4088 = vst.msk [vmem:[#allocation6 + $0x4] sm:$0x1] %vm3899_vm1, %v4086_v52 }
 0x721   :  { %v3911_v56 = vpop.permute.xlu0 %3910 }
 0x722   :  { %3914 = vst.msk [vmem:[#allocation6] sm:$0x1] %vm3913_vm12, %v3911_v56 }
 0x725   :  { %v4099_v37 = vpop.permute.xlu0 %4098 }
 0x726   :  { %4101 = vst.msk [vmem:[#allocation6 + $0x4] sm:$0x1] %vm3913_vm12, %v4099_v37 }
 0x729   :  { %v3925_v27 = vpop.permute.xlu0 %3924 }
 0x72a   :  { %3928 = vst.msk [vmem:[#allocation6] sm:$0x1] %vm3927_vm0, %v3925_v27 }
 0x72b   :  { %v9426_v26 = vpop.f32.mrb[220].mxu1 }
 0x72c   :  { %v9427_v42 = vpop.f32.mrb[221].mxu1 }
 0x72d   :  { %v9428_v55 = vadd.f32 %v9427_v42, %v9426_v26  ;;  %v9429_v10 = vpop.f32.mrb[222].mxu1  ;;  %v4112_v32 = vpop.permute.xlu0 %4111  ;;  %v10330_v26 = vld [vmem:[%s13725_s5 + $0x48] sm:$0xff]  }
 0x72e   :  { %v9430_v36 = vpop.f32.mrb[223].mxu1  ;;  %4114 = vst.msk [vmem:[#allocation6 + $0x4] sm:$0x1] %vm3927_vm0, %v4112_v32  ;;  %v10331_v42 = vld [vmem:[%s13725_s5 + $0x8] sm:$0xff]   ;;  %9464 = vmatprep.subr.bf16.mxu0 %v10330_v26  ;;  %v10336_v32 = vld [vmem:[%s13725_s5 + $0x58] sm:$0xff]  }
 0x72f   :  { %v7645_v31 = vadd.f32 %v9428_v55, %v13364_v39  ;;  %v9431_v54 = vadd.f32 %v9430_v36, %v9429_v10  ;;  %v10332_v55 = vld [vmem:[%s13725_s5 + $0x50] sm:$0xff]   ;;  %v10334_v36 = vld [vmem:[%s13725_s5 + $0xc0] sm:$0xff]   ;;  %9465 = vmatpush3.bf16.msra.mxu0 %v10331_v42 }
 0x730   :  { %9466 = vmatprep.subr.bf16.mxu0 %v10332_v55  ;;  %9484 = vmatprep.subr.bf16.mxu1 %v10334_v36 }
 0x731   :  { %v7697_v41 = vmax.f32 %v7645_v31, 0.0  ;;  %v7648_v38 = vadd.f32 %v9431_v54, %v13364_v39  ;;  %v10335_v31 = vld [vmem:[%s13725_s5 + $0x80] sm:$0xff]   ;;  %v10333_v54 = vld [vmem:[%s13725_s5 + $0x10] sm:$0xff]  }
 0x732   :  { %9485 = vmatpush3.bf16.msra.mxu1 %v10335_v31 }
 0x733   :  { %7715 = vst [vmem:[#allocation4 + $0x30] sm:$0xff] %v7697_v41  ;;  %v7698_v21 = vmax.f32 %v7648_v38, 0.0  ;;  %9467 = vmatpush3.bf16.msra.mxu0 %v10333_v54  ;;  %v10337_v41 = vld [vmem:[%s13725_s5 + $0x18] sm:$0xff]  }
 0x734   :  { %9468 = vmatprep.subr.bf16.mxu0 %v10336_v32 }
 0x735   :  { %7716 = vst [vmem:[#allocation4 + $0x38] sm:$0xff] %v7698_v21 }
 0x737   :  { %9469 = vmatpush3.bf16.msra.mxu0 %v10337_v41 }
 0x73a   :  { %v7779_v46 = vld [vmem:[#allocation4 + $0x2e] sm:$0xff] }
 0x73b   :  { %v7795_v12 = vld [vmem:[#allocation4 + $0x2f] sm:$0xff] }
 0x73c   :  { %v7811_v63 = vmax.f32 %v7779_v46, %v7795_v12 }
 0x73e   :  { %v7827_v30 = vmax.f32 %v7763_v20, %v7811_v63 }
 0x740   :  { %7843 = vst [vmem:[#allocation5 + $0x20] sm:$0xff] %v7827_v30 }
 0x747   :  { %v9089_v57 = vld.sshfl [vmem:[#allocation5 + $0x24] sm:$0x1 pattern:$0x76325410]  ;;  %v7948_v6 = vld [vmem:[#allocation5 + $0x22] sm:$0x1] }
 0x748   :  { %7959 = vrot.lane.b32.xlu0 %v9089_v57, %s10418_s19  ;;  %v9088_v7 = vld.sshfl [vmem:[#allocation5 + $0x20] sm:$0x1 pattern:$0x76325410]  ;;  %7949 = vst.msk [vmem:[#allocation6 + $0x3] sm:$0x1] %vm3829_vm15, %v7948_v6 }
 0x749   :  { %7944 = vrot.lane.b32.xlu1 %v9088_v7, %s13775_s14 }
 0x756   :  { %v9432_v9 = vpop.f32.mrb[224].mxu1 }
 0x757   :  { %v9433_v62 = vpop.f32.mrb[225].mxu1 }
 0x758   :  { %v9434_v13 = vadd.f32 %v9433_v62, %v9432_v9  ;;  %v9435_v2 = vpop.f32.mrb[226].mxu1 }
 0x759   :  { %v9436_v34 = vpop.f32.mrb[227].mxu1 }
 0x75a   :  { %v7653_v22 = vadd.f32 %v9434_v13, %v13364_v39  ;;  %v9437_v14 = vadd.f32 %v9436_v34, %v9435_v2 }
 0x75c   :  { %v7699_v24 = vmax.f32 %v7653_v22, 0.0  ;;  %v7656_v45 = vadd.f32 %v9437_v14, %v13364_v39 }
 0x75e   :  { %v7867_v40 = vpop.permute.xlu1 %7866  ;;  %7717 = vst [vmem:[#allocation4 + $0x40] sm:$0xff] %v7699_v24  ;;  %v7700_v61 = vmax.f32 %v7656_v45, 0.0  ;;  %v10339_v45 = vld [vmem:[%s13725_s5 + $0x88] sm:$0xff]  }
 0x75f   :  { %7869 = vst.msk [vmem:[#allocation6 + $0x1] sm:$0x1] %vm3843_vm10, %v7867_v40 }
 0x760   :  { %7718 = vst [vmem:[#allocation4 + $0x48] sm:$0xff] %v7700_v61 }
 0x762   :  { %v7880_v19 = vpop.permute.xlu1 %7879 }
 0x763   :  { %7882 = vst.msk [vmem:[#allocation6 + $0x1] sm:$0x1] %vm3857_vm2, %v7880_v19 }
 0x765   :  { %v7750_v8 = vld [vmem:[#allocation4 + $0x39] sm:$0xff] }
 0x766   :  { %v7893_v49 = vpop.permute.xlu1 %7892  ;;  %v7766_v15 = vmax.f32 %v7698_v21, %v7750_v8 }
 0x767   :  { %7895 = vst.msk [vmem:[#allocation6 + $0x1] sm:$0x1] %vm3871_vm11, %v7893_v49  ;;  %v7782_v18 = vld [vmem:[#allocation4 + $0x46] sm:$0xff] }
 0x768   :  { %v7798_v23 = vld [vmem:[#allocation4 + $0x47] sm:$0xff] }
 0x769   :  { %v7814_v48 = vmax.f32 %v7782_v18, %v7798_v23  ;;  %v7751_v5 = vld [vmem:[#allocation4 + $0x41] sm:$0xff] }
 0x76a   :  { %v7906_v25 = vpop.permute.xlu1 %7905  ;;  %v7767_v37 = vmax.f32 %v7699_v24, %v7751_v5  ;;  %v10338_v24 = vld [vmem:[%s13725_s5 + $0xc8] sm:$0xff]   ;;  %v10340_v23 = vld [vmem:[%s13725_s5 + $0x60] sm:$0xff]  }
 0x76b   :  { %7908 = vst.msk [vmem:[#allocation6 + $0x1] sm:$0x1] %vm3885_vm13, %v7906_v25  ;;  %v7830_v0 = vmax.f32 %v7766_v15, %v7814_v48  ;;  %9486 = vmatprep.subr.bf16.mxu1 %v10338_v24  ;;  %v10341_v15 = vld [vmem:[%s13725_s5 + $0xd0] sm:$0xff]   ;;  %9470 = vmatprep.subr.bf16.mxu0 %v10340_v23  ;;  %v10349_v5 = vld [vmem:[%s13725_s5 + $0xa0] sm:$0xff]  }
 0x76c   :  { %9487 = vmatpush3.bf16.msra.mxu1 %v10339_v45  ;;  %v10355_v24 = vld [vmem:[%s13725_s5 + $0xb0] sm:$0xff]   ;;  %v10356_v45 = vld [vmem:[%s13725_s5 + $0x78] sm:$0xff]  }
 0x76d   :  { %7846 = vst [vmem:[#allocation5 + $0x38] sm:$0xff] %v7830_v0  ;;  %9488 = vmatprep.subr.bf16.mxu1 %v10341_v15  ;;  %v13893_v23 = vld [vmem:[#allocation10_spill] sm:$0xff] }
 0x770   :  { %9489 = vmatpush3.bf16.msra.mxu1 %v10343_v29 }
 0x771   :  { %9490 = vmatprep.subr.bf16.mxu1 %v10344_v4 }
 0x774   :  { %v9090_v3 = vld.sshfl [vmem:[#allocation5 + $0x38] sm:$0x1 pattern:$0x76325410] }
 0x775   :  { %7972 = vrot.lane.b32.xlu0 %v9090_v3, %s10417_s18  ;;  %v9091_v58 = vld.sshfl [vmem:[#allocation5 + $0x3a] sm:$0x1 pattern:$0x76325410] }
 0x776   :  { %v9092_v28 = vld.sshfl [vmem:[#allocation5 + $0x3c] sm:$0x1 pattern:$0x76325410] }
 0x777   :  { %v9093_v1 = vld.sshfl [vmem:[#allocation5 + $0x3e] sm:$0x1 pattern:$0x76325410] }
 0x779   :  { %7985 = vrot.lane.b32.xlu0 %v9091_v58, %s10419_s20 }
 0x77d   :  { %7998 = vrot.lane.b32.xlu0 %v9092_v28, %s10423_s24  ;;  %v10342_v28 = vld [vmem:[%s13725_s5 + $0x20] sm:$0xff]  }
 0x77e   :  { %9471 = vmatpush3.bf16.msra.mxu0 %v10342_v28 }
 0x781   :  { %8011 = vrot.lane.b32.xlu0 %v9093_v1, %s13810_s28 }
 0x78b   :  { %v9438_v43 = vpop.f32.mrb[228].mxu1  ;;  %v7919_v11 = vpop.permute.xlu1 %7918 }
 0x78c   :  { %7921 = vst.msk [vmem:[#allocation6 + $0x1] sm:$0x1] %vm3899_vm1, %v7919_v11  ;;  %v9439_v33 = vpop.f32.mrb[229].mxu1  ;;  %v10346_v11 = vld [vmem:[%s13725_s5 + $0x68] sm:$0xff]  }
 0x78d   :  { %v9440_v60 = vadd.f32 %v9439_v33, %v9438_v43  ;;  %v9441_v59 = vpop.f32.mrb[230].mxu1  ;;  %v10345_v43 = vld [vmem:[%s13725_s5 + $0x98] sm:$0xff]   ;;  %v10347_v33 = vld [vmem:[%s13725_s5 + $0x28] sm:$0xff]   ;;  %9472 = vmatprep.subr.bf16.mxu0 %v10346_v11  ;;  %v10430_v11 = vmov 1983009808  }
 0x78e   :  { %v9442_v47 = vpop.f32.mrb[231].mxu1  ;;  %9491 = vmatpush3.bf16.msra.mxu1 %v10345_v43  ;;  %9473 = vmatpush3.bf16.msra.mxu0 %v10347_v33  ;;  %v8140_v33 = vunpack.c.l.s4 %v10430_v11 }
 0x78f   :  { %v7661_v17 = vadd.f32 %v9440_v60, %v13364_v39  ;;  %v9443_v44 = vadd.f32 %v9442_v47, %v9441_v59  ;;  %v7932_v50 = vpop.permute.xlu1 %7931 }
 0x790   :  { %7934 = vst.msk [vmem:[#allocation6 + $0x1] sm:$0x1] %vm3913_vm12, %v7932_v50 }
 0x791   :  { %v7701_v53 = vmax.f32 %v7661_v17, 0.0  ;;  %v7664_v16 = vadd.f32 %v9443_v44, %v13364_v39  ;;  %v10348_v44 = vld [vmem:[%s13725_s5 + $0xe0] sm:$0xff]  }
 0x792   :  { %9492 = vmatprep.subr.bf16.mxu1 %v10348_v44 }
 0x793   :  { %7719 = vst [vmem:[#allocation4 + $0x50] sm:$0xff] %v7701_v53  ;;  %v7702_v51 = vmax.f32 %v7664_v16, 0.0  ;;  %9493 = vmatpush3.bf16.msra.mxu1 %v10349_v5 }
 0x795   :  { %7720 = vst [vmem:[#allocation4 + $0x58] sm:$0xff] %v7702_v51 }
 0x79a   :  { %v7783_v52 = vld [vmem:[#allocation4 + $0x4e] sm:$0xff] }
 0x79b   :  { %v7799_v56 = vld [vmem:[#allocation4 + $0x4f] sm:$0xff] }
 0x79c   :  { %v7815_v27 = vmax.f32 %v7783_v52, %v7799_v56  ;;  %v7753_v13 = vld [vmem:[#allocation4 + $0x51] sm:$0xff] }
 0x79d   :  { %v7769_v14 = vmax.f32 %v7701_v53, %v7753_v13 }
 0x79e   :  { %v7831_v10 = vmax.f32 %v7767_v37, %v7815_v27 }
 0x7a0   :  { %7847 = vst [vmem:[#allocation5 + $0x40] sm:$0xff] %v7831_v10 }
 0x7a7   :  { %v9094_v38 = vld.sshfl [vmem:[#allocation5 + $0x40] sm:$0x1 pattern:$0x76325410] }
 0x7a8   :  { %8024 = vrot.lane.b32.xlu0 %v9094_v38, %s13774_s29 }
 0x7b4   :  { %v9444_v21 = vpop.f32.mrb[232].mxu1 }
 0x7b5   :  { %v9445_v35 = vpop.f32.mrb[233].mxu1 }
 0x7b6   :  { %v9446_v46 = vadd.f32 %v9445_v35, %v9444_v21  ;;  %v9447_v12 = vpop.f32.mrb[234].mxu1 }
 0x7b7   :  { %v9448_v20 = vpop.f32.mrb[235].mxu1 }
 0x7b8   :  { %v7669_v63 = vadd.f32 %v9446_v46, %v13364_v39  ;;  %v9449_v30 = vadd.f32 %v9448_v20, %v9447_v12  ;;  %v10350_v20 = vld [vmem:[%s13725_s5 + $0x70] sm:$0xff]  }
 0x7b9   :  { %9474 = vmatprep.subr.bf16.mxu0 %v10350_v20  ;;  %v10374_v20 = vld [vmem:[%s13729_s9 + $0x28] sm:$0xff]  }
 0x7ba   :  { %v7960_v57 = vpop.permute.xlu0 %7959  ;;  %v7703_v6 = vmax.f32 %v7669_v63, 0.0  ;;  %v7672_v7 = vadd.f32 %v9449_v30, %v13364_v39  ;;  %v10351_v63 = vld [vmem:[%s13725_s5 + $0x30] sm:$0xff]  }
 0x7bb   :  { %7962 = vst.msk [vmem:[#allocation6 + $0x3] sm:$0x1] %vm3843_vm10, %v7960_v57  ;;  %v7945_v9 = vpop.permute.xlu1 %7944  ;;  %9475 = vmatpush3.bf16.msra.mxu0 %v10351_v63 }
 0x7bc   :  { %7947 = vst.msk [vmem:[#allocation6 + $0x1] sm:$0x1] %vm3927_vm0, %v7945_v9  ;;  %7721 = vst [vmem:[#allocation4 + $0x60] sm:$0xff] %v7703_v6  ;;  %v7704_v62 = vmax.f32 %v7672_v7, 0.0  ;;  %v10353_v6 = vld [vmem:[%s13725_s5 + $0xa8] sm:$0xff]   ;;  %9476 = vmatprep.subr.bf16.mxu0 %v10356_v45  ;;  %v10375_v45 = vld [vmem:[%s13729_s9 + $0x30] sm:$0xff]  }
 0x7be   :  { %7722 = vst [vmem:[#allocation4 + $0x68] sm:$0xff] %v7704_v62 }
 0x7c3   :  { %v7785_v2 = vld [vmem:[#allocation4 + $0x5e] sm:$0xff] }
 0x7c4   :  { %v7801_v34 = vld [vmem:[#allocation4 + $0x5f] sm:$0xff] }
 0x7c5   :  { %v7754_v22 = vld [vmem:[#allocation4 + $0x59] sm:$0xff]  ;;  %v7817_v40 = vmax.f32 %v7785_v2, %v7801_v34  ;;  %v7786_v61 = vld [vmem:[#allocation4 + $0x66] sm:$0xff] }
 0x7c6   :  { %v7802_v19 = vld [vmem:[#allocation4 + $0x67] sm:$0xff]  ;;  %v7770_v8 = vmax.f32 %v7702_v51, %v7754_v22  ;;  %v10354_v22 = vld [vmem:[%s13725_s5 + $0xf0] sm:$0xff]  }
 0x7c7   :  { %v7833_v49 = vmax.f32 %v7769_v14, %v7817_v40  ;;  %v7818_v25 = vmax.f32 %v7786_v61, %v7802_v19  ;;  %v10357_v61 = vld [vmem:[%s13725_s5 + $0x38] sm:$0xff]  }
 0x7c8   :  { %v10358_v19 = vld [vmem:[%s13725_s5 + $0xf8] sm:$0xff]   ;;  %9477 = vmatpush3.bf16.msra.mxu0 %v10357_v61 }
 0x7c9   :  { %7849 = vst [vmem:[#allocation5 + $0x50] sm:$0xff] %v7833_v49  ;;  %v7834_v18 = vmax.f32 %v7770_v8, %v7818_v25  ;;  %v10359_v49 = vld [vmem:[%s13725_s5 + $0xb8] sm:$0xff]   ;;  %10068 = vmatprep.subr.bf16.mxu0 %v13893_v23 }
 0x7ca   :  { %v10376_v61 = vld [vmem:[%s13729_s9 + $0x38] sm:$0xff]  }
 0x7cb   :  { %7850 = vst [vmem:[#allocation5 + $0x58] sm:$0xff] %v7834_v18  ;;  %v9450_v48 = vpop.f32.mrb[236].mxu1 }
 0x7cc   :  { %v9451_v0 = vpop.f32.mrb[237].mxu1 }
 0x7cd   :  { %v9452_v3 = vadd.f32 %v9451_v0, %v9450_v48  ;;  %v9453_v58 = vpop.f32.mrb[238].mxu1 }
 0x7ce   :  { %v9454_v1 = vpop.f32.mrb[239].mxu1 }
 0x7cf   :  { %v7677_v60 = vadd.f32 %v9452_v3, %v13364_v39  ;;  %v9455_v59 = vadd.f32 %v9454_v1, %v9453_v58 }
 0x7d0   :  { %v9095_v47 = vld.sshfl [vmem:[#allocation5 + $0x54] sm:$0x1 pattern:$0x76325410]  ;;  %v8041_v17 = vld [vmem:[#allocation5 + $0x56] sm:$0x1] }
 0x7d1   :  { %8037 = vrot.lane.b32.xlu0 %v9095_v47, %s13775_s14  ;;  %8042 = vst.msk [vmem:[#allocation6 + $0x5] sm:$0x1] %vm3829_vm15, %v8041_v17  ;;  %v7705_v50 = vmax.f32 %v7677_v60, 0.0  ;;  %v7680_v53 = vadd.f32 %v9455_v59, %v13364_v39  ;;  %v8142_v60 = vlaneseq  ;;  %v8141_v47 = vunpack.c.0.s8 %v8140_v33 }
 0x7d2   :  { %v9096_v16 = vld.sshfl [vmem:[#allocation5 + $0x58] sm:$0x1 pattern:$0x76325410] }
 0x7d3   :  { %8052 = vrot.lane.b32.xlu1 %v9096_v16, %s10418_s19  ;;  %7723 = vst [vmem:[#allocation4 + $0x70] sm:$0xff] %v7705_v50  ;;  %v7706_v51 = vmax.f32 %v7680_v53, 0.0  ;;  %v9097_v52 = vld.sshfl [vmem:[#allocation5 + $0x5a] sm:$0x1 pattern:$0x76325410] }
 0x7d4   :  { %v9098_v55 = vld.sshfl [vmem:[#allocation5 + $0x5c] sm:$0x1 pattern:$0x76325410]  ;;  %v8143_v17 = vshrl.u32 %v8142_v60, 7 }
 0x7d5   :  { %7724 = vst [vmem:[#allocation4 + $0x78] sm:$0xff] %v7706_v51 }
 0x7d6   :  { %v9456_v56 = vpop.f32.mrb[240].mxu1  ;;  %v8144_v44 = vsub.s32 %v8141_v47, %v8143_v17 }
 0x7d7   :  { %8065 = vrot.lane.b32.xlu1 %v9097_v52, %s10417_s18  ;;  %v9457_v37 = vpop.f32.mrb[241].mxu1 }
 0x7d8   :  { %v9458_v27 = vadd.f32 %v9457_v37, %v9456_v56  ;;  %v9459_v26 = vpop.f32.mrb[242].mxu1  ;;  %v10361_v37 = vld [vmem:[%s13727_s7] sm:$0xff]  }
 0x7d9   :  { %v9460_v42 = vpop.f32.mrb[243].mxu1 }
 0x7da   :  { %v7685_v10 = vadd.f32 %v9458_v27, %v13364_v39  ;;  %v9461_v36 = vadd.f32 %v9460_v42, %v9459_v26 }
 0x7db   :  { %8078 = vrot.lane.b32.xlu1 %v9098_v55, %s10419_s20  ;;  %v10362_v55 = vld [vmem:[%s13727_s7 + $0x8] sm:$0xff]  }
 0x7dc   :  { %v7707_v31 = vmax.f32 %v7685_v10, 0.0  ;;  %v7688_v54 = vadd.f32 %v9461_v36, %v13364_v39  ;;  %v7757_v41 = vld [vmem:[#allocation4 + $0x71] sm:$0xff]  ;;  %v10352_v39 = vld [vmem:[%s13725_s5 + $0xe8] sm:$0xff]  }
 0x7dd   :  { %v7773_v46 = vmax.f32 %v7705_v50, %v7757_v41  ;;  %9494 = vmatprep.subr.bf16.mxu1 %v10352_v39  ;;  %v10363_v10 = vld [vmem:[%s13727_s7 + $0x10] sm:$0xff]   ;;  %v10364_v36 = vld [vmem:[%s13727_s7 + $0x18] sm:$0xff]   ;;  %v9103_v39 = vld [vmem:[%s13726_s6] ss:$0 sm:$0xff] }
 0x7de   :  { %v7708_v32 = vmax.f32 %v7688_v54, 0.0  ;;  %7725 = vst [vmem:[#allocation4 + $0x80] sm:$0xff] %v7707_v31  ;;  %9495 = vmatpush3.bf16.msra.mxu1 %v10353_v6  ;;  %v10365_v31 = vld [vmem:[%s13727_s7 + $0x20] sm:$0xff]   ;;  %v10366_v54 = vld [vmem:[%s13727_s7 + $0x28] sm:$0xff]   ;;  %v10368_v41 = vld [vmem:[%s13727_s7 + $0x38] sm:$0xff]  }
 0x7df   :  { %9496 = vmatprep.subr.bf16.mxu1 %v10354_v22 }
 0x7e0   :  { %7726 = vst [vmem:[#allocation4 + $0x88] sm:$0xff] %v7708_v32  ;;  %v10367_v32 = vld [vmem:[%s13727_s7 + $0x30] sm:$0xff]  }
 0x7e2   :  { %9497 = vmatpush3.bf16.msra.mxu1 %v10355_v24 }
 0x7e3   :  { %9498 = vmatprep.subr.bf16.mxu1 %v10358_v19  ;;  %v9136_v19 = vld [vmem:[%s13728_s8] ss:$0 sm:$0xff] }
 0x7e5   :  { %v7758_v38 = vld [vmem:[#allocation4 + $0x79] sm:$0xff] }
 0x7e6   :  { %v7789_v21 = vld [vmem:[#allocation4 + $0x7e] sm:$0xff]  ;;  %v7774_v7 = vmax.f32 %v7706_v51, %v7758_v38  ;;  %9499 = vmatpush3.bf16.msra.mxu1 %v10359_v49 }
 0x7e7   :  { %v7805_v35 = vld [vmem:[#allocation4 + $0x7f] sm:$0xff]  ;;  %v7806_v57 = vld [vmem:[#allocation4 + $0x87] sm:$0xff]  ;;  %v7973_v62 = vpop.permute.xlu0 %7972  ;;  %10088 = vmatprep.subr.bf16.mxu1 %v13893_v23 }
 0x7e8   :  { %v7821_v12 = vmax.f32 %v7789_v21, %v7805_v35  ;;  %v7790_v30 = vld [vmem:[#allocation4 + $0x86] sm:$0xff]  ;;  %7975 = vst.msk [vmem:[#allocation6 + $0x3] sm:$0x1] %vm3857_vm2, %v7973_v62  ;;  %v10371_v35 = vld [vmem:[%s13729_s9 + $0x10] sm:$0xff]  }
 0x7e9   :  { %v7822_v9 = vmax.f32 %v7790_v30, %v7806_v57  ;;  %v10369_v38 = vld [vmem:[%s13729_s9] sm:$0xff]   ;;  %v10370_v21 = vld [vmem:[%s13729_s9 + $0x8] sm:$0xff]  }
 0x7ea   :  { %v7837_v13 = vmax.f32 %v7773_v46, %v7821_v12  ;;  %v10372_v46 = vld [vmem:[%s13729_s9 + $0x18] sm:$0xff]   ;;  %v10373_v12 = vld [vmem:[%s13729_s9 + $0x20] sm:$0xff]   ;;  %s10431_s9 = smov [#allocation7]  }
 0x7eb   :  { %v7838_v2 = vmax.f32 %v7774_v7, %v7822_v9  ;;  %v7986_v34 = vpop.permute.xlu0 %7985  ;;  %s8739_s12 = sshll.u32 %s10431_s9, 4  ;;  %s8740_s12 = int_to_ptr.vmem [resolvable:$true] %s8739_s12 }
 0x7ec   :  { %7853 = vst [vmem:[#allocation5 + $0x70] sm:$0xff] %v7837_v13  ;;  %7988 = vst.msk [vmem:[#allocation6 + $0x3] sm:$0x1] %vm3871_vm11, %v7986_v34  ;;  %s10388_s8 = scalar_lea.vmem %s8740_s12, 32  ;;  %p10393_p1 = scmp.lt.s32.totalorder %s8740_s12, %s8740_s12 }
 0x7ed   :  { %7854 = vst [vmem:[#allocation5 + $0x78] sm:$0xff] %v7838_v2  ;;  %p10389_p0 = scmp.ne.s32.totalorder %s8740_s12, %s10388_s8  ;;  %p10394_p2 = scmp.lt.s32.totalorder %s10388_s8, %s10388_s8 }
 0x7ef   :  { %v7999_v14 = vpop.permute.xlu0 %7998  ;;  %p10395_p3 = por %p10394_p2, %p10393_p1 }
 0x7f0   :  { %8001 = vst.msk [vmem:[#allocation6 + $0x3] sm:$0x1] %vm3885_vm13, %v7999_v14 }
 0x7f1   :  { %p10396_p4 = pnand %p10395_p3, %p10389_p0 }
 0x7f3   :  { %v9099_v40 = vld.sshfl [vmem:[#allocation5 + $0x70] sm:$0x1 pattern:$0x76325410]  ;;  %v8012_v8 = vpop.permute.xlu0 %8011 }
 0x7f4   :  { %8091 = vrot.lane.b32.xlu1 %v9099_v40, %s10423_s24  ;;  %v8134_v25 = vld [vmem:[#allocation5 + $0x78] sm:$0x1]  ;;  %8014 = vst.msk [vmem:[#allocation6 + $0x3] sm:$0x1] %vm3899_vm1, %v8012_v8 }
 0x7f5   :  { %v9100_v18 = vld.sshfl [vmem:[#allocation5 + $0x72] sm:$0x1 pattern:$0x76325410]  ;;  %8135 = vst.msk [vmem:[#allocation6 + $0x7] sm:$0x1] %vm3829_vm15, %v8134_v25 }
 0x7f6   :  { %v9101_v15 = vld.sshfl [vmem:[#allocation5 + $0x74] sm:$0x1 pattern:$0x76325410]  ;;  %vm13894_vm15 = vmmov 0  }
 0x7f7   :  { %v9102_v48 = vld.sshfl [vmem:[#allocation5 + $0x76] sm:$0x1 pattern:$0x76325410] }
 0x7f8   :  { %8104 = vrot.lane.b32.xlu1 %v9100_v18, %s13810_s28 }
 0x7fc   :  { %8117 = vrot.lane.b32.xlu1 %v9101_v15, %s13774_s29 }
 0x800   :  { %8130 = vrot.lane.b32.xlu1 %v9102_v48, %s13775_s14 }
 0x81a   :  { %v8025_v0 = vpop.permute.xlu0 %8024 }
 0x81b   :  { %8027 = vst.msk [vmem:[#allocation6 + $0x3] sm:$0x1] %vm3913_vm12, %v8025_v0 }
 0x843   :  { %v8038_v3 = vpop.permute.xlu0 %8037 }
 0x844   :  { %8040 = vst.msk [vmem:[#allocation6 + $0x3] sm:$0x1] %vm3927_vm0, %v8038_v3  ;;  %v9145_v3 = vld [vmem:[%s13730_s10] ss:$0 sm:$0xff] }
 0x845   :  { %v8053_v58 = vpop.permute.xlu1 %8052 }
 0x846   :  { %8055 = vst.msk [vmem:[#allocation6 + $0x5] sm:$0x1] %vm3843_vm10, %v8053_v58 }
 0x849   :  { %v8066_v28 = vpop.permute.xlu1 %8065 }
 0x84a   :  { %8068 = vst.msk [vmem:[#allocation6 + $0x5] sm:$0x1] %vm3857_vm2, %v8066_v28 }
 0x84d   :  { %v8079_v29 = vpop.permute.xlu1 %8078 }
 0x84e   :  { %8081 = vst.msk [vmem:[#allocation6 + $0x5] sm:$0x1] %vm3871_vm11, %v8079_v29 }
 0x866   :  { %v8092_v4 = vpop.permute.xlu1 %8091 }
 0x867   :  { %8094 = vst.msk [vmem:[#allocation6 + $0x5] sm:$0x1] %vm3885_vm13, %v8092_v4 }
 0x86a   :  { %v8105_v1 = vpop.permute.xlu1 %8104 }
 0x86b   :  { %8107 = vst.msk [vmem:[#allocation6 + $0x5] sm:$0x1] %vm3899_vm1, %v8105_v1 }
 0x86e   :  { %v8118_v43 = vpop.permute.xlu1 %8117 }
 0x86f   :  { %8120 = vst.msk [vmem:[#allocation6 + $0x5] sm:$0x1] %vm3913_vm12, %v8118_v43 }
 0x872   :  { %v8131_v59 = vpop.permute.xlu1 %8130 }
 0x873   :  { %8133 = vst.msk [vmem:[#allocation6 + $0x5] sm:$0x1] %vm3927_vm0, %v8131_v59 }
 0x87a   :  { %v8136_v50 = vld [vmem:[#allocation6] sm:$0xff] }
 0x87b   :  { %v8145_v53 = vrot.slane %v8136_v50, %v8144_v44  ;;  %v8138_v16 = vcombine.high %v8136_v50, %v8136_v50 }
 0x87d   :  { %v8153_v51 = vcombine.high %v8145_v53, %v8145_v53  ;;  %v8152_v5 = vrot.slane %v8138_v16, %v8144_v44  ;;  %v8159_v27 = vpack.c.bf16 %v8145_v53, %v8145_v53 }
 0x87f   :  { %v8160_v52 = vpack.c.bf16 %v8153_v51, %v8153_v51  ;;  %v8154_v56 = vcombine.high %v8152_v5, %v8152_v5  ;;  %v8161_v42 = vpack.c.bf16 %v8152_v5, %v8152_v5 }
 0x881   :  { %8458 = vmatprep.mubr.bf16.mxu0 %v8160_v52  ;;  %v8162_v26 = vpack.c.bf16 %v8154_v56, %v8154_v56 }
 0x882   :  { %8459 = vmatmul.mubr.bf16.vlgmr.msra.gmra.mrb[244].mxu0 %v8159_v27 }
 0x883   :  { %8498 = vmatprep.mubr.bf16.mxu1 %v8162_v26  ;;  %10069 = vmatpush3.bf16.msra.mxu0 %v10361_v37 }
 0x884   :  { %8499 = vmatmul.mubr.bf16.vlgmr.msra.gmra.mrb[244].mxu1 %v8161_v42  ;;  %10070 = vmatprep.subr.bf16.mxu0 %v13893_v23 }
 0x885   :  { %10084 = vmatprep.mubr.msk.bf16.mxu0 %vm13894_vm15, %v13893_v23  ;;  %10104 = vmatprep.mubr.msk.bf16.mxu1 %vm13894_vm15, %v13893_v23 }
 0x886   :  { %10089 = vmatpush3.bf16.msra.mxu1 %v10369_v38 }
 0x887   :  { %10071 = vmatpush3.bf16.msra.mxu0 %v10362_v55  ;;  %10090 = vmatprep.subr.bf16.mxu1 %v13893_v23 }
 0x888   :  { %10072 = vmatprep.subr.bf16.mxu0 %v13893_v23 }
 0x88a   :  { %10091 = vmatpush3.bf16.msra.mxu1 %v10370_v21 }
 0x88b   :  { %10073 = vmatpush3.bf16.msra.mxu0 %v10363_v10  ;;  %10092 = vmatprep.subr.bf16.mxu1 %v13893_v23 }
 0x88c   :  { %10074 = vmatprep.subr.bf16.mxu0 %v13893_v23 }
 0x88e   :  { %10093 = vmatpush3.bf16.msra.mxu1 %v10371_v35 }
 0x88f   :  { %10075 = vmatpush3.bf16.msra.mxu0 %v10364_v36  ;;  %10094 = vmatprep.subr.bf16.mxu1 %v13893_v23 }
 0x890   :  { %10076 = vmatprep.subr.bf16.mxu0 %v13893_v23 }
 0x892   :  { %10095 = vmatpush3.bf16.msra.mxu1 %v10372_v46 }
 0x893   :  { %10077 = vmatpush3.bf16.msra.mxu0 %v10365_v31  ;;  %10096 = vmatprep.subr.bf16.mxu1 %v13893_v23 }
 0x894   :  { %10078 = vmatprep.subr.bf16.mxu0 %v13893_v23 }
 0x896   :  { %10097 = vmatpush3.bf16.msra.mxu1 %v10373_v12 }
 0x897   :  { %10079 = vmatpush3.bf16.msra.mxu0 %v10366_v54  ;;  %10098 = vmatprep.subr.bf16.mxu1 %v13893_v23 }
 0x898   :  { %10080 = vmatprep.subr.bf16.mxu0 %v13893_v23 }
 0x89a   :  { %10099 = vmatpush3.bf16.msra.mxu1 %v10374_v20 }
 0x89b   :  { %10081 = vmatpush3.bf16.msra.mxu0 %v10367_v32  ;;  %10100 = vmatprep.subr.bf16.mxu1 %v13893_v23 }
 0x89c   :  { %10082 = vmatprep.subr.bf16.mxu0 %v13893_v23 }
 0x89e   :  { %10101 = vmatpush3.bf16.msra.mxu1 %v10375_v45 }
 0x89f   :  { %10083 = vmatpush3.bf16.msra.mxu0 %v10368_v41  ;;  %10102 = vmatprep.subr.bf16.mxu1 %v13893_v23 }
 0x8a2   :  { %10103 = vmatpush3.bf16.msra.mxu1 %v10376_v61 }
 0x955   :  { %v9478_v63 = vpop.f32.mrb[244].mxu0 }
 0x956   :  { %v9479_v30 = vpop.f32.mrb[245].mxu0 }
 0x957   :  { %v9480_v57 = vadd.f32 %v9479_v30, %v9478_v63  ;;  %v9481_v6 = vpop.f32.mrb[246].mxu0  ;;  %v9500_v7 = vpop.f32.mrb[244].mxu1 }
 0x958   :  { %v9482_v9 = vpop.f32.mrb[247].mxu0  ;;  %v9501_v62 = vpop.f32.mrb[245].mxu1 }
 0x959   :  { %v8461_v13 = vadd.f32 %v9480_v57, %v9103_v39  ;;  %v9502_v2 = vadd.f32 %v9501_v62, %v9500_v7  ;;  %v9503_v34 = vpop.f32.mrb[246].mxu1 }
 0x95a   :  { %v9504_v22 = vpop.f32.mrb[247].mxu1 }
 0x95b   :  { %v8501_v14 = vadd.f32 %v9502_v2, %v8461_v13 }
 0x95d   :  { %v8506_v40 = vmax.f32 %v8501_v14, 0.0 }
 0x95f   :  { %v8507_v24 = vpack.c.bf16 %v8506_v40, %v8506_v40 }
 0x961   :  { %10085 = vmatmul.mubr.bf16.vlgmr.msra.gmra.mrb[248].mxu0 %v8507_v24 }
 0xa34   :  { %v8613_v49 = vpop.f32.mrb[248].mxu0 }
 0xa35   :  { %v8614_v8 = vadd.f32 %v9136_v19, %v8613_v49  ;;  %v10086_v25 = vpop.f32.mrb[249].mxu0 }
 0xa36   :  { %v8616_v18 = vpop.f32.mrb[250].mxu0 }
 0xa37   :  { %v8619_v15 = vmax.f32 %v8614_v8, 0.0  ;;  %v10087_v48 = vpop.f32.mrb[251].mxu0 }
 0xa39   :  { %v8620_v0 = vpack.c.bf16 %v8619_v15, %v8619_v15 }
 0xa3b   :  { %10105 = vmatmul.mubr.bf16.vlgmr.msra.gmra.mrb[248].mxu1 %v8620_v0 }
 0xb0e   :  { %v8726_v23 = vpop.f32.mrb[248].mxu1 }
 0xb0f   :  { %v8727_v58 = vadd.f32 %v9145_v3, %v8726_v23  ;;  %v10106_v28 = vpop.f32.mrb[249].mxu1 }
 0xb10   :  { %v8729_v29 = vpop.f32.mrb[250].mxu1 }
 0xb11   :  { %8732 = vst [vmem:[#allocation7] sm:$0x3] %v8727_v58  ;;  %v10107_v4 = vpop.f32.mrb[251].mxu1 }
 0xb12   :  { %10399 = shalt.err (!%p10396_p4)
}
 0xb13   :  { %s10400_s10 = scalar_lea.hbm %s13731_s11, 32 }
 0xb14   :  { %p10401_p5 = scmp.ne.s32.totalorder %s13731_s11, %s10400_s10  ;;  %p10404_p6 = scmp.lt.u32.totalorder %s10400_s10, %s13731_s11 }
 0xb16   :  { %p10406_p7 = pnand %p10404_p6, %p10401_p5 }
 0xb18   :  { %10409 = shalt.err (!%p10406_p7)
}
 0xb19   :  { %8742 = dma.vmem_to_hbm [thread:$0]  %s8740_s12, 32, %s13731_s11, [#allocation8]  }
 0xb1a   :  { %10410 = dma.done.wait [#allocation8], 32  }
 0xb1b   :  { %10411 = vsyncadd [#allocation8], 4294967264 }
 0xb1c   :  { %8746 = vsyncpa [#allocation8], 1 }

</bundles_post_ra>
